<compile_context>
chip_gen: v6e
topology: v6e:2x2x1
jax: 0.10.0
libtpu: 0.0.40
codegen_flags: <defaults>
</compile_context>

<pallas_src>
import functools

import jax
import jax.numpy as jnp
from jax.experimental import pallas as pl
from jax.experimental.pallas import tpu as pltpu


def _wmsa_kernel(x_ref, wqkv_ref, bqkv_ref, wproj_ref, bproj_ref, mask_ref,
                 o_ref, *, num_heads, scale, nW, has_mask):
    """Fused window attention on a block of BB windows.

    x_ref    : (BB, N, C)
    wqkv_ref : (C, 3C)   (transposed PyTorch qkv weight)
    bqkv_ref : (1, 3C)
    wproj_ref: (C, C)    (transposed PyTorch proj weight)
    bproj_ref: (1, C)
    mask_ref : (nW, N, N)   (zeros placeholder when mask=None)
    o_ref    : (BB, N, C)
    """
    BB, N, C = x_ref.shape
    hd = C // num_heads
    in_dtype = x_ref.dtype

    # --- QKV projection on the whole block (one big MXU matmul) -------------
    x2d = x_ref[...].reshape(BB * N, C)
    qkv = jnp.dot(x2d, wqkv_ref[...], preferred_element_type=jnp.float32)
    qkv = qkv + bqkv_ref[...].astype(jnp.float32)            # (BB*N, 3C) f32
    qkv = qkv.reshape(BB, N, 3 * C)
    # Low-precision view for the attention matmuls (identity cast when f32).
    qkv_lp = qkv.astype(in_dtype)

    # --- mask broadcast hoisted out of the per-head loop ---------------------
    if has_mask:
        # Windows within the block are batch-major / window-minor and BB is a
        # multiple of nW, so tiling the (nW, N, N) mask gives the right add.
        mask_full = jnp.broadcast_to(
            mask_ref[...].astype(jnp.float32)[None],
            (BB // nW, nW, N, N)).reshape(BB, N, N)
    else:
        mask_full = None

    # --- per-head attention (static Python loop over heads) -----------------
    out_heads = []
    for h in range(num_heads):
        q_h = qkv_lp[:, :, h * hd:(h + 1) * hd]                   # (BB, N, hd)
        k_h = qkv_lp[:, :, C + h * hd:C + (h + 1) * hd]           # (BB, N, hd)
        v_h = qkv_lp[:, :, 2 * C + h * hd:2 * C + (h + 1) * hd]   # (BB, N, hd)

        s = jnp.einsum('bnd,bmd->bnm', q_h, k_h,
                       preferred_element_type=jnp.float32)        # (BB, N, N)
        s = s * scale
        if has_mask:
            s = s + mask_full

        # numerically-stable softmax over the last dim
        s = s - s.max(axis=-1, keepdims=True)
        p = jnp.exp(s)
        inv_denom = pl.reciprocal(p.sum(axis=-1, keepdims=True),
                                  approx=False)                    # (BB, N, 1)

        o_h = jnp.einsum('bnm,bmd->bnd', p.astype(in_dtype), v_h,
                         preferred_element_type=jnp.float32)       # (BB, N, hd)
        out_heads.append(o_h * inv_denom)

    out = jnp.concatenate(out_heads, axis=-1).reshape(BB * N, C)

    # --- output projection ---------------------------------------------------
    out = jnp.dot(out.astype(in_dtype), wproj_ref[...],
                  preferred_element_type=jnp.float32)
    out = out + bproj_ref[...].astype(jnp.float32)
    o_ref[...] = out.reshape(BB, N, C).astype(o_ref.dtype)


def _block_bytes(m, N, C, itemsize):
    """Rough VMEM footprint of one grid step for a block of m windows."""
    io = 2 * 2 * m * N * C * itemsize           # x + y tiles, double-buffered
    f32 = 4 * m * N * (3 * C + 2 * C)           # qkv + head outputs + proj acc
    attn = 4 * m * N * N * 3                    # scores / probs / mask copies
    return io + f32 + attn


def _pick_block_windows(B_, nW, N, C, itemsize):
    """Pick BB: multiple of nW dividing B_, big tiles but >= 2 grid steps."""
    cands = [m for m in range(nW, B_ + 1, nW) if B_ % m == 0] or [B_]
    budget = 8 << 20   # safe under the tightest default scoped-VMEM (v5e 16MiB)
    fitting = [m for m in cands if _block_bytes(m, N, C, itemsize) <= budget] \
        or [cands[0]]
    multi_step = [m for m in fitting if B_ // m >= 2]
    return max(multi_step if multi_step else fitting)


def window_attention_forward(x, wqkv, bqkv, wproj, bproj, num_heads,
                             mask=None, qk_scale=None, block_windows=None):
    """Mirrors WindowAttention.forward.

    x    : (B_, N, C) with B_ = B * nW, N = Wh * Ww
    wqkv : (C, 3C)  == PyTorch qkv.weight.T ;  bqkv : (3C,)
    wproj: (C, C)   == PyTorch proj.weight.T;  bproj: (C,)
    mask : (nW, N, N) of 0 / -inf-like values, or None
    """
    B_, N, C = x.shape
    hd = C // num_heads
    scale = qk_scale if qk_scale is not None else hd ** (-0.5)

    has_mask = mask is not None
    if has_mask:
        mask_arr = mask
        nW = mask.shape[0]
    else:
        mask_arr = jnp.zeros((1, N, N), dtype=jnp.float32)
        nW = 1

    BB = (block_windows if block_windows is not None
          else _pick_block_windows(B_, nW, N, C, jnp.dtype(x.dtype).itemsize))
    assert B_ % BB == 0 and BB % nW == 0, "block size must align with nW / B_"

    kernel = functools.partial(_wmsa_kernel, num_heads=num_heads,
                               scale=float(scale), nW=nW, has_mask=has_mask)

    return pl.pallas_call(
        kernel,
        out_shape=jax.ShapeDtypeStruct((B_, N, C), x.dtype),
        grid_spec=pltpu.PrefetchScalarGridSpec(
            num_scalar_prefetch=0,
            grid=(B_ // BB,),
            in_specs=[
                pl.BlockSpec((BB, N, C), lambda g: (g, 0, 0)),
                pl.BlockSpec((C, 3 * C), lambda g: (0, 0)),
                pl.BlockSpec((1, 3 * C), lambda g: (0, 0)),
                pl.BlockSpec((C, C), lambda g: (0, 0)),
                pl.BlockSpec((1, C), lambda g: (0, 0)),
                pl.BlockSpec((nW, N, N), lambda g: (0, 0, 0)),
            ],
            out_specs=pl.BlockSpec((BB, N, C), lambda g: (g, 0, 0)),
        ),
        compiler_params=pltpu.CompilerParams(
            dimension_semantics=("parallel",)),
    )(x, wqkv, bqkv.reshape(1, 3 * C), wproj, bproj.reshape(1, C), mask_arr)


def _window_attention_ref(x, wqkv, bqkv, wproj, bproj, num_heads,
                          mask=None, qk_scale=None):
    """Pure-JAX reference mirroring the PyTorch forward exactly."""
    B_, N, C = x.shape
    hd = C // num_heads
    scale = qk_scale if qk_scale is not None else hd ** (-0.5)

    xf = x.astype(jnp.float32)
    qkv = xf @ wqkv.astype(jnp.float32) + bqkv.astype(jnp.float32)      # (B_, N, 3C)
    qkv = qkv.reshape(B_, N, 3, num_heads, hd).transpose(2, 0, 3, 1, 4)
    q, k, v = qkv[0], qkv[1], qkv[2]                                     # (B_, H, N, hd)
    q = q * scale
    attn = jnp.einsum('bhnd,bhmd->bhnm', q, k)
    if mask is not None:
        nW = mask.shape[0]
        attn = attn.reshape(B_ // nW, nW, num_heads, N, N) + \
            mask.astype(jnp.float32)[None, :, None]
        attn = attn.reshape(B_, num_heads, N, N)
    attn = jax.nn.softmax(attn, axis=-1)
    out = jnp.einsum('bhnm,bhmd->bhnd', attn, v)
    out = out.transpose(0, 2, 1, 3).reshape(B_, N, C)
    out = out @ wproj.astype(jnp.float32) + bproj.astype(jnp.float32)
    return out.astype(x.dtype)


if __name__ == "__main__":
    key = jax.random.PRNGKey(0)
    k_x, k_qw, k_qb, k_pw, k_pb = jax.random.split(key, 5)

    # Small, module-consistent shapes: window 8x8 -> N=64, dim=128, 4 heads,
    # B=2 images x nW=4 windows -> B_=8.
    B, nW = 2, 4
    Wh, Ww = 8, 8
    N = Wh * Ww
    C = 128
    num_heads = 4
    B_ = B * nW

    # Parameters (stored transposed relative to PyTorch nn.Linear weights).
    w_scale = (2.0 / (C + 3 * C)) ** 0.5
    wqkv = jax.random.normal(k_qw, (C, 3 * C), dtype=jnp.float32) * w_scale
    bqkv = jax.random.normal(k_qb, (3 * C,), dtype=jnp.float32) * 0.02
    wproj = jax.random.normal(k_pw, (C, C), dtype=jnp.float32) * (1.0 / C) ** 0.5
    bproj = jax.random.normal(k_pb, (C,), dtype=jnp.float32) * 0.02

    x = jax.random.normal(k_x, (B_, N, C), dtype=jnp.float32)

    # 0 / -100 shifted-window style mask, different per window, every row has
    # at least one unmasked entry.
    groups = jnp.arange(N) // (N // 4)
    base = jnp.where(groups[:, None] == groups[None, :], 0.0, -100.0)
    mask = jnp.stack([base * float(w % 2) for w in range(nW)]).astype(jnp.float32)

    # --- masked path ---------------------------------------------------------
    out = jax.block_until_ready(
        window_attention_forward(x, wqkv, bqkv, wproj, bproj, num_heads, mask=mask))
    ref = _window_attention_ref(x, wqkv, bqkv, wproj, bproj, num_heads, mask=mask)
    assert out.shape == (B_, N, C)
    assert jnp.allclose(out, ref, atol=2e-4, rtol=2e-4)

    # --- mask=None path ------------------------------------------------------
    out_nm = jax.block_until_ready(
        window_attention_forward(x, wqkv, bqkv, wproj, bproj, num_heads, mask=None))
    ref_nm = _window_attention_ref(x, wqkv, bqkv, wproj, bproj, num_heads, mask=None)
    assert jnp.allclose(out_nm, ref_nm, atol=2e-4, rtol=2e-4)

    print("KERNEL_OK")
</pallas_src>

<mosaic_0001>
module attributes {stable_mosaic.version = 11 : i64} {
  func.func @_wmsa_kernel(%arg0: i32, %arg1: memref<4x64x128xf32, #tpu.memory_space<vmem>>, %arg2: memref<128x384xf32, #tpu.memory_space<vmem>>, %arg3: memref<1x384xf32, #tpu.memory_space<vmem>>, %arg4: memref<128x128xf32, #tpu.memory_space<vmem>>, %arg5: memref<1x128xf32, #tpu.memory_space<vmem>>, %arg6: memref<4x64x64xf32, #tpu.memory_space<vmem>>, %arg7: memref<4x64x128xf32, #tpu.memory_space<vmem>>) attributes {dimension_semantics = [#tpu.dimension_semantics<parallel>], iteration_bounds = array<i64: 2>, scalar_prefetch = 0 : i64, scratch_operands = 0 : i64, tpu.core_type = #tpu.core_type<tc>, window_params = [{transform_indices = @transform_0, window_bounds = array<i64: 4, 64, 128>}, {pipeline_mode = #tpu.pipeline_mode<synchronous>, transform_indices = @transform_1, window_bounds = array<i64: 128, 384>}, {pipeline_mode = #tpu.pipeline_mode<synchronous>, transform_indices = @transform_2, window_bounds = array<i64: 1, 384>}, {pipeline_mode = #tpu.pipeline_mode<synchronous>, transform_indices = @transform_3, window_bounds = array<i64: 128, 128>}, {pipeline_mode = #tpu.pipeline_mode<synchronous>, transform_indices = @transform_4, window_bounds = array<i64: 1, 128>}, {pipeline_mode = #tpu.pipeline_mode<synchronous>, transform_indices = @transform_5, window_bounds = array<i64: 4, 64, 64>}, {transform_indices = @transform_6, window_bounds = array<i64: 4, 64, 128>}]} {
    %c0 = arith.constant 0 : index
    %c0_0 = arith.constant 0 : index
    %c0_1 = arith.constant 0 : index
    %0 = vector.load %arg1[%c0, %c0_0, %c0_1] : memref<4x64x128xf32, #tpu.memory_space<vmem>>, vector<4x64x128xf32>
    %1 = vector.shape_cast %0 : vector<4x64x128xf32> to vector<256x128xf32>
    %c0_2 = arith.constant 0 : index
    %c0_3 = arith.constant 0 : index
    %2 = vector.load %arg2[%c0_2, %c0_3] : memref<128x384xf32, #tpu.memory_space<vmem>>, vector<128x384xf32>
    %cst = arith.constant dense<0.000000e+00> : vector<256x384xf32>
    %3 = tpu.matmul %1, %2, %cst {dimension_numbers = #tpu.dot_dimension_numbers<[1], [0], [0], [1], [0, 0, 1, 1], [], []>} : vector<256x128xf32>, vector<128x384xf32>, vector<256x384xf32> -> vector<256x384xf32>
    %c0_4 = arith.constant 0 : index
    %c0_5 = arith.constant 0 : index
    %4 = vector.load %arg3[%c0_4, %c0_5] : memref<1x384xf32, #tpu.memory_space<vmem>>, vector<1x384xf32>
    %5 = vector.broadcast %4 : vector<1x384xf32> to vector<256x384xf32>
    %6 = arith.addf %3, %5 : vector<256x384xf32>
    %7 = vector.shape_cast %6 : vector<256x384xf32> to vector<4x64x384xf32>
    %c0_6 = arith.constant 0 : index
    %c0_7 = arith.constant 0 : index
    %c0_8 = arith.constant 0 : index
    %8 = vector.load %arg6[%c0_6, %c0_7, %c0_8] : memref<4x64x64xf32, #tpu.memory_space<vmem>>, vector<4x64x64xf32>
    %9 = vector.shape_cast %8 : vector<4x64x64xf32> to vector<1x4x64x64xf32>
    %10 = vector.shape_cast %9 : vector<1x4x64x64xf32> to vector<4x64x64xf32>
    %11 = vector.extract_strided_slice %7 {offsets = [0, 0, 0], sizes = [4, 64, 32], strides = [1, 1, 1]} : vector<4x64x384xf32> to vector<4x64x32xf32>
    %12 = vector.extract_strided_slice %7 {offsets = [0, 0, 128], sizes = [4, 64, 32], strides = [1, 1, 1]} : vector<4x64x384xf32> to vector<4x64x32xf32>
    %13 = vector.extract_strided_slice %7 {offsets = [0, 0, 256], sizes = [4, 64, 32], strides = [1, 1, 1]} : vector<4x64x384xf32> to vector<4x64x32xf32>
    "tpu.trace_start"() <{level = 10 : i32, message = "bnd,bmd->bnm"}> : () -> ()
    %cst_9 = arith.constant dense<0.000000e+00> : vector<4x64x64xf32>
    %14 = tpu.matmul %11, %12, %cst_9 {dimension_numbers = #tpu.dot_dimension_numbers<[2], [2], [1], [1], [0, 0, 0, 1, 1, 1], [0], [0]>} : vector<4x64x32xf32>, vector<4x64x32xf32>, vector<4x64x64xf32> -> vector<4x64x64xf32>
    "tpu.trace_stop"() : () -> ()
    %cst_10 = arith.constant 0.176776692 : f32
    %15 = vector.broadcast %cst_10 : f32 to vector<4x64x64xf32>
    %16 = arith.mulf %14, %15 : vector<4x64x64xf32>
    %17 = arith.addf %16, %10 : vector<4x64x64xf32>
    %cst_11 = arith.constant dense<0xFF800000> : vector<4x64xf32>
    %18 = vector.multi_reduction <maximumf>, %17, %cst_11 [2] : vector<4x64x64xf32> to vector<4x64xf32>
    %19 = vector.shape_cast %18 : vector<4x64xf32> to vector<4x64x1xf32>
    %20 = vector.broadcast %19 : vector<4x64x1xf32> to vector<4x64x64xf32>
    %21 = arith.subf %17, %20 : vector<4x64x64xf32>
    %22 = math.exp %21 : vector<4x64x64xf32>
    %cst_12 = arith.constant dense<0.000000e+00> : vector<4x64xf32>
    %23 = vector.multi_reduction <add>, %22, %cst_12 [2] : vector<4x64x64xf32> to vector<4x64xf32>
    %24 = vector.shape_cast %23 : vector<4x64xf32> to vector<4x64x1xf32>
    %25 = tpu.reciprocal %24 : vector<4x64x1xf32> -> vector<4x64x1xf32>
    "tpu.trace_start"() <{level = 10 : i32, message = "bnm,bmd->bnd"}> : () -> ()
    %cst_13 = arith.constant dense<0.000000e+00> : vector<4x64x32xf32>
    %26 = tpu.matmul %22, %13, %cst_13 {dimension_numbers = #tpu.dot_dimension_numbers<[2], [1], [1], [2], [0, 0, 0, 1, 1, 2], [0], [0]>} : vector<4x64x64xf32>, vector<4x64x32xf32>, vector<4x64x32xf32> -> vector<4x64x32xf32>
    "tpu.trace_stop"() : () -> ()
    %27 = vector.broadcast %25 : vector<4x64x1xf32> to vector<4x64x32xf32>
    %28 = arith.mulf %26, %27 : vector<4x64x32xf32>
    %29 = vector.extract_strided_slice %7 {offsets = [0, 0, 32], sizes = [4, 64, 32], strides = [1, 1, 1]} : vector<4x64x384xf32> to vector<4x64x32xf32>
    %30 = vector.extract_strided_slice %7 {offsets = [0, 0, 160], sizes = [4, 64, 32], strides = [1, 1, 1]} : vector<4x64x384xf32> to vector<4x64x32xf32>
    %31 = vector.extract_strided_slice %7 {offsets = [0, 0, 288], sizes = [4, 64, 32], strides = [1, 1, 1]} : vector<4x64x384xf32> to vector<4x64x32xf32>
    "tpu.trace_start"() <{level = 10 : i32, message = "bnd,bmd->bnm"}> : () -> ()
    %cst_14 = arith.constant dense<0.000000e+00> : vector<4x64x64xf32>
    %32 = tpu.matmul %29, %30, %cst_14 {dimension_numbers = #tpu.dot_dimension_numbers<[2], [2], [1], [1], [0, 0, 0, 1, 1, 1], [0], [0]>} : vector<4x64x32xf32>, vector<4x64x32xf32>, vector<4x64x64xf32> -> vector<4x64x64xf32>
    "tpu.trace_stop"() : () -> ()
    %cst_15 = arith.constant 0.176776692 : f32
    %33 = vector.broadcast %cst_15 : f32 to vector<4x64x64xf32>
    %34 = arith.mulf %32, %33 : vector<4x64x64xf32>
    %35 = arith.addf %34, %10 : vector<4x64x64xf32>
    %cst_16 = arith.constant dense<0xFF800000> : vector<4x64xf32>
    %36 = vector.multi_reduction <maximumf>, %35, %cst_16 [2] : vector<4x64x64xf32> to vector<4x64xf32>
    %37 = vector.shape_cast %36 : vector<4x64xf32> to vector<4x64x1xf32>
    %38 = vector.broadcast %37 : vector<4x64x1xf32> to vector<4x64x64xf32>
    %39 = arith.subf %35, %38 : vector<4x64x64xf32>
    %40 = math.exp %39 : vector<4x64x64xf32>
    %cst_17 = arith.constant dense<0.000000e+00> : vector<4x64xf32>
    %41 = vector.multi_reduction <add>, %40, %cst_17 [2] : vector<4x64x64xf32> to vector<4x64xf32>
    %42 = vector.shape_cast %41 : vector<4x64xf32> to vector<4x64x1xf32>
    %43 = tpu.reciprocal %42 : vector<4x64x1xf32> -> vector<4x64x1xf32>
    "tpu.trace_start"() <{level = 10 : i32, message = "bnm,bmd->bnd"}> : () -> ()
    %cst_18 = arith.constant dense<0.000000e+00> : vector<4x64x32xf32>
    %44 = tpu.matmul %40, %31, %cst_18 {dimension_numbers = #tpu.dot_dimension_numbers<[2], [1], [1], [2], [0, 0, 0, 1, 1, 2], [0], [0]>} : vector<4x64x64xf32>, vector<4x64x32xf32>, vector<4x64x32xf32> -> vector<4x64x32xf32>
    "tpu.trace_stop"() : () -> ()
    %45 = vector.broadcast %43 : vector<4x64x1xf32> to vector<4x64x32xf32>
    %46 = arith.mulf %44, %45 : vector<4x64x32xf32>
    %47 = vector.extract_strided_slice %7 {offsets = [0, 0, 64], sizes = [4, 64, 32], strides = [1, 1, 1]} : vector<4x64x384xf32> to vector<4x64x32xf32>
    %48 = vector.extract_strided_slice %7 {offsets = [0, 0, 192], sizes = [4, 64, 32], strides = [1, 1, 1]} : vector<4x64x384xf32> to vector<4x64x32xf32>
    %49 = vector.extract_strided_slice %7 {offsets = [0, 0, 320], sizes = [4, 64, 32], strides = [1, 1, 1]} : vector<4x64x384xf32> to vector<4x64x32xf32>
    "tpu.trace_start"() <{level = 10 : i32, message = "bnd,bmd->bnm"}> : () -> ()
    %cst_19 = arith.constant dense<0.000000e+00> : vector<4x64x64xf32>
    %50 = tpu.matmul %47, %48, %cst_19 {dimension_numbers = #tpu.dot_dimension_numbers<[2], [2], [1], [1], [0, 0, 0, 1, 1, 1], [0], [0]>} : vector<4x64x32xf32>, vector<4x64x32xf32>, vector<4x64x64xf32> -> vector<4x64x64xf32>
    "tpu.trace_stop"() : () -> ()
    %cst_20 = arith.constant 0.176776692 : f32
    %51 = vector.broadcast %cst_20 : f32 to vector<4x64x64xf32>
    %52 = arith.mulf %50, %51 : vector<4x64x64xf32>
    %53 = arith.addf %52, %10 : vector<4x64x64xf32>
    %cst_21 = arith.constant dense<0xFF800000> : vector<4x64xf32>
    %54 = vector.multi_reduction <maximumf>, %53, %cst_21 [2] : vector<4x64x64xf32> to vector<4x64xf32>
    %55 = vector.shape_cast %54 : vector<4x64xf32> to vector<4x64x1xf32>
    %56 = vector.broadcast %55 : vector<4x64x1xf32> to vector<4x64x64xf32>
    %57 = arith.subf %53, %56 : vector<4x64x64xf32>
    %58 = math.exp %57 : vector<4x64x64xf32>
    %cst_22 = arith.constant dense<0.000000e+00> : vector<4x64xf32>
    %59 = vector.multi_reduction <add>, %58, %cst_22 [2] : vector<4x64x64xf32> to vector<4x64xf32>
    %60 = vector.shape_cast %59 : vector<4x64xf32> to vector<4x64x1xf32>
    %61 = tpu.reciprocal %60 : vector<4x64x1xf32> -> vector<4x64x1xf32>
    "tpu.trace_start"() <{level = 10 : i32, message = "bnm,bmd->bnd"}> : () -> ()
    %cst_23 = arith.constant dense<0.000000e+00> : vector<4x64x32xf32>
    %62 = tpu.matmul %58, %49, %cst_23 {dimension_numbers = #tpu.dot_dimension_numbers<[2], [1], [1], [2], [0, 0, 0, 1, 1, 2], [0], [0]>} : vector<4x64x64xf32>, vector<4x64x32xf32>, vector<4x64x32xf32> -> vector<4x64x32xf32>
    "tpu.trace_stop"() : () -> ()
    %63 = vector.broadcast %61 : vector<4x64x1xf32> to vector<4x64x32xf32>
    %64 = arith.mulf %62, %63 : vector<4x64x32xf32>
    %65 = vector.extract_strided_slice %7 {offsets = [0, 0, 96], sizes = [4, 64, 32], strides = [1, 1, 1]} : vector<4x64x384xf32> to vector<4x64x32xf32>
    %66 = vector.extract_strided_slice %7 {offsets = [0, 0, 224], sizes = [4, 64, 32], strides = [1, 1, 1]} : vector<4x64x384xf32> to vector<4x64x32xf32>
    %67 = vector.extract_strided_slice %7 {offsets = [0, 0, 352], sizes = [4, 64, 32], strides = [1, 1, 1]} : vector<4x64x384xf32> to vector<4x64x32xf32>
    "tpu.trace_start"() <{level = 10 : i32, message = "bnd,bmd->bnm"}> : () -> ()
    %cst_24 = arith.constant dense<0.000000e+00> : vector<4x64x64xf32>
    %68 = tpu.matmul %65, %66, %cst_24 {dimension_numbers = #tpu.dot_dimension_numbers<[2], [2], [1], [1], [0, 0, 0, 1, 1, 1], [0], [0]>} : vector<4x64x32xf32>, vector<4x64x32xf32>, vector<4x64x64xf32> -> vector<4x64x64xf32>
    "tpu.trace_stop"() : () -> ()
    %cst_25 = arith.constant 0.176776692 : f32
    %69 = vector.broadcast %cst_25 : f32 to vector<4x64x64xf32>
    %70 = arith.mulf %68, %69 : vector<4x64x64xf32>
    %71 = arith.addf %70, %10 : vector<4x64x64xf32>
    %cst_26 = arith.constant dense<0xFF800000> : vector<4x64xf32>
    %72 = vector.multi_reduction <maximumf>, %71, %cst_26 [2] : vector<4x64x64xf32> to vector<4x64xf32>
    %73 = vector.shape_cast %72 : vector<4x64xf32> to vector<4x64x1xf32>
    %74 = vector.broadcast %73 : vector<4x64x1xf32> to vector<4x64x64xf32>
    %75 = arith.subf %71, %74 : vector<4x64x64xf32>
    %76 = math.exp %75 : vector<4x64x64xf32>
    %cst_27 = arith.constant dense<0.000000e+00> : vector<4x64xf32>
    %77 = vector.multi_reduction <add>, %76, %cst_27 [2] : vector<4x64x64xf32> to vector<4x64xf32>
    %78 = vector.shape_cast %77 : vector<4x64xf32> to vector<4x64x1xf32>
    %79 = tpu.reciprocal %78 : vector<4x64x1xf32> -> vector<4x64x1xf32>
    "tpu.trace_start"() <{level = 10 : i32, message = "bnm,bmd->bnd"}> : () -> ()
    %cst_28 = arith.constant dense<0.000000e+00> : vector<4x64x32xf32>
    %80 = tpu.matmul %76, %67, %cst_28 {dimension_numbers = #tpu.dot_dimension_numbers<[2], [1], [1], [2], [0, 0, 0, 1, 1, 2], [0], [0]>} : vector<4x64x64xf32>, vector<4x64x32xf32>, vector<4x64x32xf32> -> vector<4x64x32xf32>
    "tpu.trace_stop"() : () -> ()
    %81 = vector.broadcast %79 : vector<4x64x1xf32> to vector<4x64x32xf32>
    %82 = arith.mulf %80, %81 : vector<4x64x32xf32>
    %83 = tpu.concatenate %28, %46, %64, %82 in 2 : vector<4x64x32xf32>, vector<4x64x32xf32>, vector<4x64x32xf32>, vector<4x64x32xf32> -> vector<4x64x128xf32>
    %84 = vector.shape_cast %83 : vector<4x64x128xf32> to vector<256x128xf32>
    %c0_29 = arith.constant 0 : index
    %c0_30 = arith.constant 0 : index
    %85 = vector.load %arg4[%c0_29, %c0_30] : memref<128x128xf32, #tpu.memory_space<vmem>>, vector<128x128xf32>
    %cst_31 = arith.constant dense<0.000000e+00> : vector<256x128xf32>
    %86 = tpu.matmul %84, %85, %cst_31 {dimension_numbers = #tpu.dot_dimension_numbers<[1], [0], [0], [1], [0, 0, 1, 1], [], []>} : vector<256x128xf32>, vector<128x128xf32>, vector<256x128xf32> -> vector<256x128xf32>
    %c0_32 = arith.constant 0 : index
    %c0_33 = arith.constant 0 : index
    %87 = vector.load %arg5[%c0_32, %c0_33] : memref<1x128xf32, #tpu.memory_space<vmem>>, vector<1x128xf32>
    %88 = vector.broadcast %87 : vector<1x128xf32> to vector<256x128xf32>
    %89 = arith.addf %86, %88 : vector<256x128xf32>
    %90 = vector.shape_cast %89 : vector<256x128xf32> to vector<4x64x128xf32>
    %c0_34 = arith.constant 0 : index
    %c0_35 = arith.constant 0 : index
    %c0_36 = arith.constant 0 : index
    %91 = vector.load %arg7[%c0_34, %c0_35, %c0_36] : memref<4x64x128xf32, #tpu.memory_space<vmem>>, vector<4x64x128xf32>
    tpu.vector_store %arg7[%c0_34, %c0_35, %c0_36], %90 {strides = array<i32>} : memref<4x64x128xf32, #tpu.memory_space<vmem>>, vector<4x64x128xf32>,
    return
  }
  func.func @transform_0(%arg0: i32) -> (i32, i32, i32) {
    %c0_i32 = arith.constant 0 : i32
    %c0_i32_0 = arith.constant 0 : i32
    %c0_i32_1 = arith.constant 0 : i32
    return %arg0, %c0_i32, %c0_i32_0 : i32, i32, i32
  }
  func.func @transform_1(%arg0: i32) -> (i32, i32) {
    %c0_i32 = arith.constant 0 : i32
    %c0_i32_0 = arith.constant 0 : i32
    %c0_i32_1 = arith.constant 0 : i32
    return %c0_i32, %c0_i32_0 : i32, i32
  }
  func.func @transform_2(%arg0: i32) -> (i32, i32) {
    %c0_i32 = arith.constant 0 : i32
    %c0_i32_0 = arith.constant 0 : i32
    %c0_i32_1 = arith.constant 0 : i32
    return %c0_i32, %c0_i32_0 : i32, i32
  }
  func.func @transform_3(%arg0: i32) -> (i32, i32) {
    %c0_i32 = arith.constant 0 : i32
    %c0_i32_0 = arith.constant 0 : i32
    %c0_i32_1 = arith.constant 0 : i32
    return %c0_i32, %c0_i32_0 : i32, i32
  }
  func.func @transform_4(%arg0: i32) -> (i32, i32) {
    %c0_i32 = arith.constant 0 : i32
    %c0_i32_0 = arith.constant 0 : i32
    %c0_i32_1 = arith.constant 0 : i32
    return %c0_i32, %c0_i32_0 : i32, i32
  }
  func.func @transform_5(%arg0: i32) -> (i32, i32, i32) {
    %c0_i32 = arith.constant 0 : i32
    %c0_i32_0 = arith.constant 0 : i32
    %c0_i32_1 = arith.constant 0 : i32
    %c0_i32_2 = arith.constant 0 : i32
    return %c0_i32, %c0_i32_0, %c0_i32_1 : i32, i32, i32
  }
  func.func @transform_6(%arg0: i32) -> (i32, i32, i32) {
    %c0_i32 = arith.constant 0 : i32
    %c0_i32_0 = arith.constant 0 : i32
    %c0_i32_1 = arith.constant 0 : i32
    return %arg0, %c0_i32, %c0_i32_0 : i32, i32, i32
  }
}

</mosaic_0001>

<bundles_post_ra>
// kernel: tpu_custom_call.1
= control target key start
LH: loop header
LB: loop body
LE: loop exit
PB: predicated region body
PF: predicated region fallthrough
CT: control target
= control target key end

     0   :  { %11 = vsyncpa [#allocation3], 0  ;;  %s16890_s0 = inlined_call_operand.hbm [shape: f32[8,64,128], index: 0, kind: input, shape index: {}]   ;;  %s16891_s1 = inlined_call_operand.hbm [shape: f32[128,384], index: 1, kind: input, shape index: {}]   ;;  %s16892_s2 = inlined_call_operand.vmem [shape: f32[1,384], index: 2, kind: input, shape index: {}]   ;;  %s16893_s3 = inlined_call_operand.hbm [shape: f32[128,128], index: 3, kind: input, shape index: {}]   ;;  %s16894_s4 = inlined_call_operand.vmem [shape: f32[1,128], index: 4, kind: input, shape index: {}]   ;;  %s16895_s5 = inlined_call_operand.hbm [shape: f32[4,64,64], index: 5, kind: input, shape index: {}]   ;;  %s16896_s6 = inlined_call_operand.hbm [shape: f32[8,64,128], index: 6, kind: output, shape index: {}]  }
   0x1   :  { %13 = vsyncpa [#allocation3 + $0x1], 0 }
   0x2   :  { %14 = vsyncpa [#allocation6], 0 }
   0x3   :  { %15 = vsyncpa [#allocation9], 0 }
   0x4   :  { %16 = vsyncpa [#allocation4], 0 }
   0x5   :  { %18 = vsyncpa [#allocation4 + $0x1], 0  ;;  %s11768_s21 = smov 0   ;;  %s11770_s22 = smov 0  }
   0x6   :  { %s11772_s23 = smov 0   ;;  %s11774_s24 = smov 0  }
   0x7 LB: > { %s11789_s25 = sadd.s32 4294967295, %s11716_s24   ;;  %s8496_s26 = sadd.s32 4294967294, %s11716_s24   ;;  %s11716_s24 = sphi %s11774_s24, %s18364_s24   ;;  %s11712_s23 = sphi %s11772_s23, %s18363_s23   ;;  %s11708_s22 = sphi %s11770_s22, %s18362_s22   ;;  %s11704_s21 = sphi %s11768_s21, %s18361_s21  }
   0x8   : > { %p44_p0 = scmp.ne.s32.totalorder %s11708_s22, %s11704_s21  ;;  %p16897_p1 = scmp.eq.s32.totalorder %s11789_s25, 0 }
   0x9   : > { %p179_p3 = scmp.eq.s32.totalorder %s8496_s26, 1  ;;  %p8497_p5 = scmp.ge.s32.totalorder %s11716_s24, 1 }
   0xa   : > { %p11798_p4 = por %p16897_p1, %p44_p0  ;;  %p186_p7 = scmp.lt.s32.totalorder %s11716_s24, 3 }
   0xb   : > { %p11803_p6 = por %p179_p3, %p44_p0  ;;  %s11718_s30 = smov [#allocation5]  }
   0xc   : > { %s17268_s27 = scalar_select %p11798_p4, 1, 0 }
   0xd   : > { %s17269_s28 = scalar_select %p11803_p6, 1, 0 }
   0xe   : > { %p11808_p8 = pnand %p8497_p5, %p186_p7  ;;  %s198_s7 = sshll.u32 %s11718_s30, 4  ;;  %s199_s7 = int_to_ptr.vmem [resolvable:$true] %s198_s7 }
   0xf   : > { %s11719_s9 = smov [#allocation7]   ;;  %s11549_s11 = scalar_lea.vmem %s199_s7, 6144 }
  0x10   : > { %s17270_s29 = scalar_select %p11808_p8, 1, 0 }
  0x11   : > { %p10619_p9 = pneg %p11808_p8  ;;  %s214_s10 = sshll.u32 %s11719_s9, 4  ;;  %s215_s10 = int_to_ptr.vmem [resolvable:$true] %s214_s10 }
  0x12   : > { %p11550_p13 = scmp.ne.s32.totalorder %s199_s7, %s11549_s11  ;;  %p11557_p5 = scmp.lt.s32.totalorder %s199_s7, %s199_s7 }
  0x13   : > { %p11817_p11 = pnand %p10619_p9, %p16897_p1  ;;  %p11558_p7 = scmp.lt.s32.totalorder %s11549_s11, %s11549_s11 }
  0x15   : > { %p11540_p12 = pneg %p11817_p11  ;;  %p11559_p10 = por %p11558_p7, %p11557_p5 }
  0x17   : > { %p11552_p0 = pnand %p11550_p13, %p11540_p12 }
  0x19   : > { %p11553_p3 = pneg %p11552_p0 }
  0x1b   : > { %p11560_p9 = pnand %p11559_p10, %p11553_p3 }
  0x1d   : > { %11563 = shalt.err (!%p11560_p9)
}
  0x1e   : > { %s11720_s12 = smov 384   ;;  %s11721_s13 = smov 24  }
  0x1f   : > { %10622 = dma.hbm_to_vmem [thread:$0]  (!%p11817_p11), %s16891_s1, 6144, %s199_s7, [#allocation6], %s11720_s12, %s11720_s12, %s11721_s13  }
  0x20   : > { %s11575_s16 = scalar_lea.vmem %s215_s10, 2048  ;;  %p11583_p2 = scmp.lt.s32.totalorder %s215_s10, %s215_s10 }
  0x21   : > { %p11576_p1 = scmp.ne.s32.totalorder %s215_s10, %s11575_s16  ;;  %p11584_p6 = scmp.lt.s32.totalorder %s11575_s16, %s11575_s16 }
  0x23   : > { %p11578_p13 = pnand %p11576_p1, %p11540_p12  ;;  %p11585_p5 = por %p11584_p6, %p11583_p2 }
  0x25   : > { %p11579_p0 = pneg %p11578_p13 }
  0x27   : > { %p11586_p10 = pnand %p11585_p5, %p11579_p0 }
  0x29   : > { %11589 = shalt.err (!%p11586_p10)
}
  0x2a   : > { %s16898_s17 = smov 128   ;;  %s16899_s18 = smov 8  }
  0x2b   : > { %10625 = dma.hbm_to_vmem [thread:$0]  (!%p11817_p11), %s16893_s3, 2048, %s215_s10, [#allocation6], %s16898_s17, %s16898_s17, %s16899_s18  }
  0x2c   : > { %s11724_s26 = smov [#allocation8]   ;;  %s11843_s7 = sadd.s32 1, %s11716_s24  }
  0x2d   : > { %s230_s30 = sshll.u32 %s11724_s26, 4  ;;  %s231_s30 = int_to_ptr.vmem [resolvable:$true] %s230_s30 }
  0x2e   : > { %s11601_s9 = scalar_lea.vmem %s231_s30, 4096  ;;  %p11609_p3 = scmp.lt.s32.totalorder %s231_s30, %s231_s30 }
  0x2f   : > { %p11602_p1 = scmp.ne.s32.totalorder %s231_s30, %s11601_s9  ;;  %p11610_p7 = scmp.lt.s32.totalorder %s11601_s9, %s11601_s9 }
  0x31   : > { %p11604_p2 = pnand %p11602_p1, %p11540_p12  ;;  %p11611_p9 = por %p11610_p7, %p11609_p3 }
  0x33   : > { %p11605_p6 = pneg %p11604_p2 }
  0x35   : > { %p11612_p13 = pnand %p11611_p9, %p11605_p6 }
  0x37   : > { %11615 = shalt.err (!%p11612_p13)
}
  0x38   : > { %10628 = dma.hbm_to_vmem [thread:$0]  (!%p11817_p11), %s16895_s5, 4096, %s231_s30, [#allocation9], %s16898_s17, %s16898_s17, %s16899_s18  }
  0x39   : > { %s28_s12 = ssub.s32 %s11716_s24, %s11843_s7  ;;  %s31_s8 = sadd.s32 1, %s11712_s23 }
  0x3a   : > { %p29_p12 = scmp.eq.s32.totalorder %s28_s12, 0  ;;  %p38_p0 = scmp.ne.s32.totalorder %s11712_s23, %s11708_s22 }
  0x3b   : > { %p39_p5 = scmp.eq.s32.totalorder %s11716_s24, 0  ;;  %p10640_p10 = scmp.lt.s32.totalorder %s11716_s24, 2 }
  0x3c   : > { %s11864_s13 = scalar_select %p29_p12, %s11712_s23, %s31_s8  }
  0x3d   : > { %p40_p1 = por %p39_p5, %p38_p0  ;;  %p17272_p2 = scmp.eq.s32.totalorder %s11789_s25, 1 }
  0x3e   : > { %s244_s15 = sand.u32 1, %s11712_s23   ;;  %s8904_s16 = sshll.u32 %s11716_s24, 12 }
  0x3f   : > { %p11868_p6 = por %p17272_p2, %p38_p0  ;;  %s8502_s19 = sshll.u32 %s244_s15, 8 }
  0x40   : > { %s11877_s30 = scalar_lea.hbm %s16890_s0, %s8904_s16  ;;  %s248_s9 = scalar_lea.vmem [#allocation2], %s8502_s19 }
  0x41   : > { %s17273_s14 = scalar_select %p11868_p6, 1, 0 }
  0x42   : > { %s256_s10 = sshll.u32 %s248_s9, 4  ;;  %p11879_p11 = pnand %p10640_p10, %p40_p1  ;;  %s11883_s10 = int_to_ptr.vmem [resolvable:$true] %s256_s10 }
  0x43   : > { %s11885_s12 = scalar_lea.sflag [#allocation3], %s244_s15  ;;  %s11616_s8 = scalar_lea.hbm %s11877_s30, 4096 }
  0x44   : > { %p11617_p3 = scmp.ne.s32.totalorder %s11877_s30, %s11616_s8  ;;  %p11618_p7 = pneg %p11879_p11 }
  0x45   : > { %s11621_s19 = scalar_lea.hbm %s16890_s0, 8192  ;;  %p11622_p12 = scmp.lt.s32.totalorder %s11877_s30, %s16890_s0 }
  0x46   : > { %p11619_p9 = pnand %p11618_p7, %p11617_p3  ;;  %p11623_p0 = scmp.lt.s32.totalorder %s11621_s19, %s11616_s8 }
  0x48   : > { %p11620_p13 = pneg %p11619_p9  ;;  %p11624_p5 = por %p11623_p0, %p11622_p12 }
  0x4a   : > { %p11625_p10 = pnand %p11624_p5, %p11620_p13 }
  0x4c   : > { %11628 = shalt.err (!%p11625_p10)
}
  0x4d   : > { %s11629_s15 = scalar_lea.vmem %s11883_s10, 4096  ;;  %s11725_s17 = smov [#allocation2]  }
  0x4e   : > { %p11630_p1 = scmp.ne.s32.totalorder %s11883_s10, %s11629_s15  ;;  %s11634_s18 = sshll.u32 %s11725_s17, 4  ;;  %s11635_s18 = int_to_ptr.vmem [resolvable:$false] %s11634_s18 }
  0x4f   : > { %s11636_s16 = scalar_lea.vmem %s11635_s18, 8192  ;;  %p11637_p9 = scmp.lt.s32.totalorder %s11883_s10, %s11635_s18 }
  0x50   : > { %p11632_p2 = pnand %p11630_p1, %p11618_p7  ;;  %p11638_p6 = scmp.lt.s32.totalorder %s11636_s16, %s11629_s15 }
  0x52   : > { %p11633_p3 = pneg %p11632_p2  ;;  %p11639_p4 = por %p11638_p6, %p11637_p9 }
  0x54   : > { %p11640_p8 = pnand %p11639_p4, %p11633_p3 }
  0x56   : > { %11643 = shalt.err (!%p11640_p8)
}
  0x57   : > { %s17275_s8 = smov 8   ;;  %s17276_s20 = smov 128  }
  0x58   : > { %10632 = dma.hbm_to_vmem [thread:$0]  (!%p11879_p11), %s11877_s30, 4096, %s11883_s10, %s11885_s12, %s17276_s20, %s17276_s20, %s17275_s8  }
  0x59   : > { %p17277_p7 = scmp.ne.s32.totalorder %s17270_s29, 0 }
  0x5b   : > { %268 = sbr.rel (%p17277_p7) target bundleno = 3568 (0xdf0), region = 44 }
  0x60   : > { %s11912_s17 = sand.u32 1, %s11708_s22   ;;  %p17278_p4 = scmp.ne.s32.totalorder %s17268_s27, 0 }
  0x61   : > { %s8507_s18 = sshll.u32 %s11912_s17, 8  ;;  %s271_s19 = scalar_lea.sflag [#allocation3], %s11912_s17 }
  0x62   : > { %s11918_s11 = scalar_lea.vmem [#allocation2], %s8507_s18 }
  0x63   : > { %11687 = dma.done.wait (%p17278_p4), %s271_s19, 4096  }
  0x64   : > { %11689 = vsyncadd (%p17278_p4), %s271_s19, 4294963200  ;;  %p17279_p8 = scmp.eq.s32.totalorder %s11789_s25, 0 }
  0x66   : > { %11691 = dma.done.wait (%p17279_p8), [#allocation6], 8192   ;;  %p17280_p6 = pmov %p17279_p8 }
  0x68   : > { %11693 = vsyncadd (%p17280_p6), [#allocation6], 4294959104  ;;  %p17281_p11 = pmov %p17280_p6 }
  0x69   : > { %p17282_p13 = pmov %p17280_p6 }
  0x6a   : > { %11695 = dma.done.wait (%p17281_p11), [#allocation9], 4096  }
  0x6b   : > { %11697 = vsyncadd (%p17282_p13), [#allocation9], 4294963200  ;;  %v11726_v0 = vmov 0.0   ;;  %v395_v1 = vld [vmem:[#allocation5 + $0x170] sm:$0xff]  ;;  %v394_v2 = vld [vmem:[#allocation5 + $0x168] sm:$0xff]  ;;  %vm928_vm0 = vcmask 261120  }
  0x6c   : > { %478 = vmatprep.mubr.f32.mxu0 %v11726_v0  ;;  %610 = vmatprep.mubr.f32.mxu1 %v11726_v0  ;;  %v392_v3 = vld [vmem:[#allocation5 + $0x158] sm:$0xff]  ;;  %v391_v4 = vld [vmem:[#allocation5 + $0x150] sm:$0xff]  ;;  %v389_v5 = vld [vmem:[#allocation5 + $0x140] sm:$0xff]  ;;  %s11727_s30 = smov 96   ;;  %s11728_s10 = smov 64   ;;  %vm1605_vm1 = vcmask 523264  }
  0x6d   : > { %414 = vmatprep.subr.mxu0 %v395_v1  ;;  %10571 = vmatprep.subr.mxu1 %v395_v1  ;;  %v388_v6 = vld [vmem:[#allocation5 + $0x138] sm:$0xff]  ;;  %v386_v7 = vld [vmem:[#allocation5 + $0x128] sm:$0xff]  ;;  %v385_v8 = vld [vmem:[#allocation5 + $0x120] sm:$0xff]  ;;  %s11729_s12 = smov 32   ;;  %vm8066_vm2 = vcmask 785408   ;;  %s16525_s15 = scalar_lea.vmem [#allocation10], %s8507_s18 }
  0x6e   : > { %415 = vmatpush1.msra.mxu0 %v394_v2  ;;  %10587 = vmatpush1.msra.mxu1 %v394_v2  ;;  %v383_v9 = vld [vmem:[#allocation5 + $0x110] sm:$0xff]  ;;  %v382_v10 = vld [vmem:[#allocation5 + $0x108] sm:$0xff]  ;;  %v380_v11 = vld [vmem:[#allocation5 + $0xf8] sm:$0xff]  ;;  %s8906_s16 = sshll.u32 %s11789_s25, 12  ;;  %s8394_s8 = sshll.u32 %s16525_s15, 4  ;;  %s16844_s8 = int_to_ptr.vmem [resolvable:$true] %s8394_s8 }
  0x6f   : > { %416 = vmatprep.subr.mxu0 %v392_v3  ;;  %10572 = vmatprep.subr.mxu1 %v392_v3  ;;  %v379_v12 = vld [vmem:[#allocation5 + $0xf0] sm:$0xff]  ;;  %v377_v13 = vld [vmem:[#allocation5 + $0xe0] sm:$0xff]  ;;  %v376_v14 = vld [vmem:[#allocation5 + $0xd8] sm:$0xff]  ;;  %s16842_s19 = scalar_lea.hbm %s16896_s6, %s8906_s16  ;;  %s8380_s25 = scalar_lea.sflag [#allocation4], %s11912_s17 }
  0x70   : > { %417 = vmatpush1.msra.mxu0 %v391_v4  ;;  %10588 = vmatpush1.msra.mxu1 %v391_v4  ;;  %v374_v15 = vld [vmem:[#allocation5 + $0xc8] sm:$0xff]  ;;  %v373_v16 = vld [vmem:[#allocation5 + $0xc0] sm:$0xff]  ;;  %v371_v17 = vld [vmem:[#allocation5 + $0xb0] sm:$0xff]  ;;  %p18358_p0 = scmp.ne.s32.totalorder %s17273_s14, 0  ;;  %s11730_s27 = smov [#allocation10]  }
  0x71   : > { %418 = vmatprep.subr.mxu0 %v389_v5  ;;  %10573 = vmatprep.subr.mxu1 %v389_v5  ;;  %v370_v18 = vld [vmem:[#allocation5 + $0xa8] sm:$0xff]  ;;  %v368_v19 = vld [vmem:[#allocation5 + $0x98] sm:$0xff]  ;;  %v367_v20 = vld [vmem:[#allocation5 + $0x90] sm:$0xff]  ;;  %s11648_s29 = sshll.u32 %s11730_s27, 4  ;;  %s11649_s29 = int_to_ptr.vmem [resolvable:$false] %s11648_s29 }
  0x72   : > { %419 = vmatpush1.msra.mxu0 %v388_v6  ;;  %10589 = vmatpush1.msra.mxu1 %v388_v6  ;;  %v365_v21 = vld [vmem:[#allocation5 + $0x80] sm:$0xff]  ;;  %v364_v22 = vld [vmem:[#allocation5 + $0x78] sm:$0xff]  ;;  %v362_v23 = vld [vmem:[#allocation5 + $0x68] sm:$0xff]  ;;  %p11651_p1 = scmp.lt.s32.totalorder %s16844_s8, %s11649_s29 }
  0x73   : > { %420 = vmatprep.subr.mxu0 %v386_v7  ;;  %10574 = vmatprep.subr.mxu1 %v386_v7  ;;  %v361_v24 = vld [vmem:[#allocation5 + $0x60] sm:$0xff]  ;;  %v359_v25 = vld [vmem:[#allocation5 + $0x50] sm:$0xff]  ;;  %v358_v26 = vld [vmem:[#allocation5 + $0x48] sm:$0xff] }
  0x74   : > { %421 = vmatpush1.msra.mxu0 %v385_v8  ;;  %10590 = vmatpush1.msra.mxu1 %v385_v8  ;;  %v356_v27 = vld [vmem:[#allocation5 + $0x38] sm:$0xff]  ;;  %v355_v28 = vld [vmem:[#allocation5 + $0x30] sm:$0xff]  ;;  %v353_v29 = vld [vmem:[#allocation5 + $0x20] sm:$0xff] }
  0x75   : > { %422 = vmatprep.subr.mxu0 %v383_v9  ;;  %10575 = vmatprep.subr.mxu1 %v383_v9  ;;  %v352_v30 = vld [vmem:[#allocation5 + $0x18] sm:$0xff]  ;;  %v350_v31 = vld [vmem:[#allocation5 + $0x8] sm:$0xff]  ;;  %v349_v32 = vld [vmem:[#allocation5] sm:$0xff] }
  0x76   : > { %423 = vmatpush1.msra.mxu0 %v382_v10  ;;  %10591 = vmatpush1.msra.mxu1 %v382_v10  ;;  %v11935_v33 = vld [vmem:[%s11918_s11] sm:$0xff]  ;;  %v11938_v34 = vld [vmem:[%s11918_s11 + $0xb0] sm:$0xff]  ;;  %v396_v35 = vld [vmem:[#allocation5 + $0x178] sm:$0xff] }
  0x77   : > { %424 = vmatprep.subr.mxu0 %v380_v11  ;;  %10576 = vmatprep.subr.mxu1 %v380_v11  ;;  %v11944_v36 = vld [vmem:[%s11918_s11 + $0x8] sm:$0xff]  ;;  %v11948_v37 = vld [vmem:[%s11918_s11 + $0xb8] sm:$0xff]  ;;  %v393_v38 = vld [vmem:[#allocation5 + $0x160] sm:$0xff] }
  0x78   : > { %425 = vmatpush1.msra.mxu0 %v379_v12  ;;  %10592 = vmatpush1.msra.mxu1 %v379_v12  ;;  %v11954_v39 = vld [vmem:[%s11918_s11 + $0x10] sm:$0xff]  ;;  %v11958_v40 = vld [vmem:[%s11918_s11 + $0xc0] sm:$0xff]  ;;  %v390_v41 = vld [vmem:[#allocation5 + $0x148] sm:$0xff] }
  0x79   : > { %426 = vmatprep.subr.mxu0 %v377_v13  ;;  %10577 = vmatprep.subr.mxu1 %v377_v13  ;;  %v11964_v42 = vld [vmem:[%s11918_s11 + $0x18] sm:$0xff]  ;;  %v11968_v43 = vld [vmem:[%s11918_s11 + $0xc8] sm:$0xff]  ;;  %v387_v44 = vld [vmem:[#allocation5 + $0x130] sm:$0xff] }
  0x7a   : > { %427 = vmatpush1.msra.mxu0 %v376_v14  ;;  %10593 = vmatpush1.msra.mxu1 %v376_v14  ;;  %v11974_v45 = vld [vmem:[%s11918_s11 + $0x20] sm:$0xff]  ;;  %v11978_v46 = vld [vmem:[%s11918_s11 + $0xd0] sm:$0xff]  ;;  %v384_v47 = vld [vmem:[#allocation5 + $0x118] sm:$0xff] }
  0x7b   : > { %428 = vmatprep.subr.mxu0 %v374_v15  ;;  %10578 = vmatprep.subr.mxu1 %v374_v15  ;;  %v11984_v48 = vld [vmem:[%s11918_s11 + $0x28] sm:$0xff]  ;;  %v11988_v49 = vld [vmem:[%s11918_s11 + $0xd8] sm:$0xff]  ;;  %v381_v50 = vld [vmem:[#allocation5 + $0x100] sm:$0xff] }
  0x7c   : > { %429 = vmatpush1.msra.mxu0 %v373_v16  ;;  %10594 = vmatpush1.msra.mxu1 %v373_v16  ;;  %v11994_v51 = vld [vmem:[%s11918_s11 + $0x30] sm:$0xff]  ;;  %v11998_v52 = vld [vmem:[%s11918_s11 + $0xe0] sm:$0xff]  ;;  %v378_v53 = vld [vmem:[#allocation5 + $0xe8] sm:$0xff] }
  0x7d   : > { %430 = vmatprep.subr.mxu0 %v371_v17  ;;  %10579 = vmatprep.subr.mxu1 %v371_v17  ;;  %v12004_v54 = vld [vmem:[%s11918_s11 + $0x38] sm:$0xff]  ;;  %v12008_v55 = vld [vmem:[%s11918_s11 + $0xe8] sm:$0xff]  ;;  %v375_v56 = vld [vmem:[#allocation5 + $0xd0] sm:$0xff] }
  0x7e   : > { %431 = vmatpush1.msra.mxu0 %v370_v18  ;;  %10595 = vmatpush1.msra.mxu1 %v370_v18  ;;  %v12014_v57 = vld [vmem:[%s11918_s11 + $0x40] sm:$0xff]  ;;  %v12018_v58 = vld [vmem:[%s11918_s11 + $0xf0] sm:$0xff]  ;;  %v372_v59 = vld [vmem:[#allocation5 + $0xb8] sm:$0xff] }
  0x7f   : > { %432 = vmatprep.subr.mxu0 %v368_v19  ;;  %10580 = vmatprep.subr.mxu1 %v368_v19  ;;  %v369_v60 = vld [vmem:[#allocation5 + $0xa0] sm:$0xff]  ;;  %v326_v61 = vld [vmem:[%s11918_s11 + $0x48] sm:$0xff]  ;;  %v363_v63 = vld [vmem:[#allocation5 + $0x70] sm:$0xff] }
  0x80   : > { %433 = vmatpush1.msra.mxu0 %v367_v20  ;;  %10596 = vmatpush1.msra.mxu1 %v367_v20  ;;  %v366_v62 = vld [vmem:[#allocation5 + $0x88] sm:$0xff]  ;;  %v12026_v1 = vld [vmem:[%s11918_s11 + $0xf8] sm:$0xff]  ;;  %v327_v2 = vld [vmem:[%s11918_s11 + $0x50] sm:$0xff] }
  0x81   : > { %434 = vmatprep.subr.mxu0 %v365_v21  ;;  %10581 = vmatprep.subr.mxu1 %v365_v21  ;;  %v360_v3 = vld [vmem:[#allocation5 + $0x58] sm:$0xff]  ;;  %v357_v4 = vld [vmem:[#allocation5 + $0x40] sm:$0xff]  ;;  %v354_v6 = vld [vmem:[#allocation5 + $0x28] sm:$0xff] }
  0x82   : > { %435 = vmatpush1.msra.mxu0 %v364_v22  ;;  %10597 = vmatpush1.msra.mxu1 %v364_v22  ;;  %v328_v5 = vld [vmem:[%s11918_s11 + $0x58] sm:$0xff]  ;;  %v351_v7 = vld [vmem:[#allocation5 + $0x10] sm:$0xff]  ;;  %v329_v8 = vld [vmem:[%s11918_s11 + $0x60] sm:$0xff] }
  0x83   : > { %436 = vmatprep.subr.mxu0 %v362_v23  ;;  %10582 = vmatprep.subr.mxu1 %v362_v23  ;;  %v330_v9 = vld [vmem:[%s11918_s11 + $0x68] sm:$0xff]  ;;  %v331_v10 = vld [vmem:[%s11918_s11 + $0x70] sm:$0xff]  ;;  %v332_v11 = vld [vmem:[%s11918_s11 + $0x78] sm:$0xff] }
  0x84   : > { %437 = vmatpush1.msra.mxu0 %v361_v24  ;;  %10598 = vmatpush1.msra.mxu1 %v361_v24  ;;  %v333_v12 = vld [vmem:[%s11918_s11 + $0x80] sm:$0xff]  ;;  %v334_v13 = vld [vmem:[%s11918_s11 + $0x88] sm:$0xff]  ;;  %v335_v14 = vld [vmem:[%s11918_s11 + $0x90] sm:$0xff] }
  0x85   : > { %438 = vmatprep.subr.mxu0 %v359_v25  ;;  %10583 = vmatprep.subr.mxu1 %v359_v25  ;;  %v336_v15 = vld [vmem:[%s11918_s11 + $0x98] sm:$0xff]  ;;  %v337_v16 = vld [vmem:[%s11918_s11 + $0xa0] sm:$0xff]  ;;  %v338_v17 = vld [vmem:[%s11918_s11 + $0xa8] sm:$0xff]  ;;  %s11644_s11 = scalar_lea.vmem %s16844_s8, 4096 }
  0x86   : > { %439 = vmatpush1.msra.mxu0 %v358_v26  ;;  %10599 = vmatpush1.msra.mxu1 %v358_v26  ;;  %v12078_v20 = vld [vmem:[%s16892_s2] sm:$0x7]  ;;  %p11645_p12 = scmp.ne.s32.totalorder %s16844_s8, %s11644_s11 }
  0x87   : > { %440 = vmatprep.subr.mxu0 %v356_v27  ;;  %10584 = vmatprep.subr.mxu1 %v356_v27 }
  0x88   : > { %441 = vmatpush1.msra.mxu0 %v355_v28  ;;  %10600 = vmatpush1.msra.mxu1 %v355_v28  ;;  %p11646_p5 = pnand %p11645_p12, %p18358_p0 }
  0x89   : > { %442 = vmatprep.subr.mxu0 %v353_v29  ;;  %10585 = vmatprep.subr.mxu1 %v353_v29 }
  0x8a   : > { %443 = vmatpush1.msra.mxu0 %v352_v30  ;;  %10601 = vmatpush1.msra.mxu1 %v352_v30  ;;  %p11647_p10 = pneg %p11646_p5 }
  0x8b   : > { %444 = vmatprep.subr.mxu0 %v350_v31  ;;  %10586 = vmatprep.subr.mxu1 %v350_v31 }
  0x8c   : > { %445 = vmatpush1.msra.mxu0 %v349_v32  ;;  %10602 = vmatpush1.msra.mxu1 %v349_v32 }
  0x8d   : > { %479 = vmatmul.mubr.f32.vlgmr.msra.gmra.mxu0 %v11935_v33  ;;  %611 = vmatmul.mubr.f32.vlgmr.msra.gmra.mxu1 %v11938_v34 }
  0x8e   : > { %484 = vmatprep.mubr.f32.mxu0 %v11726_v0  ;;  %616 = vmatprep.mubr.f32.mxu1 %v11726_v0 }
  0x8f   : > { %9515 = vmatprep.subr.mxu1 %v396_v35 }
  0x90   : > { %9516 = vmatpush3.msra.mxu1 %v396_v35 }
  0x91   : > { %485 = vmatmul.mubr.f32.gmra.mxu0 %v11944_v36  ;;  %617 = vmatmul.mubr.f32.gmra.mxu1 %v11948_v37 }
  0x92   : > { %490 = vmatprep.mubr.f32.mxu0 %v11726_v0  ;;  %622 = vmatprep.mubr.f32.mxu1 %v11726_v0 }
  0x93   : > { %9517 = vmatprep.subr.mxu1 %v393_v38 }
  0x94   : > { %9518 = vmatpush3.msra.mxu1 %v393_v38 }
  0x95   : > { %491 = vmatmul.mubr.f32.gmra.mxu0 %v11954_v39  ;;  %623 = vmatmul.mubr.f32.gmra.mxu1 %v11958_v40 }
  0x96   : > { %496 = vmatprep.mubr.f32.mxu0 %v11726_v0  ;;  %628 = vmatprep.mubr.f32.mxu1 %v11726_v0 }
  0x97   : > { %9519 = vmatprep.subr.mxu1 %v390_v41 }
  0x98   : > { %9520 = vmatpush3.msra.mxu1 %v390_v41 }
  0x99   : > { %497 = vmatmul.mubr.f32.gmra.mxu0 %v11964_v42  ;;  %629 = vmatmul.mubr.f32.gmra.mxu1 %v11968_v43 }
  0x9a   : > { %502 = vmatprep.mubr.f32.mxu0 %v11726_v0  ;;  %634 = vmatprep.mubr.f32.mxu1 %v11726_v0 }
  0x9b   : > { %9521 = vmatprep.subr.mxu1 %v387_v44 }
  0x9c   : > { %9522 = vmatpush3.msra.mxu1 %v387_v44 }
  0x9d   : > { %503 = vmatmul.mubr.f32.gmra.mxu0 %v11974_v45  ;;  %635 = vmatmul.mubr.f32.gmra.mxu1 %v11978_v46 }
  0x9e   : > { %508 = vmatprep.mubr.f32.mxu0 %v11726_v0  ;;  %640 = vmatprep.mubr.f32.mxu1 %v11726_v0 }
  0x9f   : > { %9523 = vmatprep.subr.mxu1 %v384_v47 }
  0xa0   : > { %9524 = vmatpush3.msra.mxu1 %v384_v47 }
  0xa1   : > { %509 = vmatmul.mubr.f32.gmra.mxu0 %v11984_v48  ;;  %641 = vmatmul.mubr.f32.gmra.mxu1 %v11988_v49 }
  0xa2   : > { %514 = vmatprep.mubr.f32.mxu0 %v11726_v0  ;;  %646 = vmatprep.mubr.f32.mxu1 %v11726_v0 }
  0xa3   : > { %9525 = vmatprep.subr.mxu1 %v381_v50 }
  0xa4   : > { %9526 = vmatpush3.msra.mxu1 %v381_v50 }
  0xa5   : > { %515 = vmatmul.mubr.f32.gmra.mxu0 %v11994_v51  ;;  %647 = vmatmul.mubr.f32.gmra.mxu1 %v11998_v52 }
  0xa6   : > { %520 = vmatprep.mubr.f32.mxu0 %v11726_v0  ;;  %652 = vmatprep.mubr.f32.mxu1 %v11726_v0 }
  0xa7   : > { %9527 = vmatprep.subr.mxu1 %v378_v53 }
  0xa8   : > { %9528 = vmatpush3.msra.mxu1 %v378_v53 }
  0xa9   : > { %521 = vmatmul.mubr.f32.gmra.mxu0 %v12004_v54  ;;  %653 = vmatmul.mubr.f32.gmra.mxu1 %v12008_v55 }
  0xaa   : > { %526 = vmatprep.mubr.f32.mxu0 %v11726_v0  ;;  %658 = vmatprep.mubr.f32.mxu1 %v11726_v0 }
  0xab   : > { %9529 = vmatprep.subr.mxu1 %v375_v56 }
  0xac   : > { %9530 = vmatpush3.msra.mxu1 %v375_v56 }
  0xad   : > { %527 = vmatmul.mubr.f32.gmra.mxu0 %v12014_v57  ;;  %659 = vmatmul.mubr.f32.gmra.mxu1 %v12018_v58 }
  0xae   : > { %532 = vmatprep.mubr.f32.mxu0 %v11726_v0  ;;  %9531 = vmatprep.subr.mxu1 %v372_v59 }
  0xaf   : > { %9532 = vmatpush3.msra.mxu1 %v372_v59  ;;  %664 = vmatprep.mubr.f32.mxu1 %v11726_v0 }
  0xb0   : > { %9533 = vmatprep.subr.mxu1 %v369_v60 }
  0xb1   : > { %533 = vmatmul.mubr.f32.gmra.mxu0 %v326_v61  ;;  %9534 = vmatpush3.msra.mxu1 %v369_v60 }
  0xb2   : > { %538 = vmatprep.mubr.f32.mxu0 %v11726_v0  ;;  %9535 = vmatprep.subr.mxu1 %v366_v62 }
  0xb3   : > { %9536 = vmatpush3.msra.mxu1 %v366_v62 }
  0xb4   : > { %9537 = vmatprep.subr.mxu1 %v363_v63  ;;  %665 = vmatmul.mubr.f32.gmra.mxu1 %v12026_v1 }
  0xb5   : > { %539 = vmatmul.mubr.f32.gmra.mxu0 %v327_v2  ;;  %9538 = vmatpush3.msra.mxu1 %v363_v63 }
  0xb6   : > { %544 = vmatprep.mubr.f32.mxu0 %v11726_v0  ;;  %9539 = vmatprep.subr.mxu1 %v360_v3 }
  0xb7   : > { %9540 = vmatpush3.msra.mxu1 %v360_v3  ;;  %9547 = vmatprep.mubr.f32.mxu1 %v11935_v33 }
  0xb8   : > { %9541 = vmatprep.subr.mxu1 %v357_v4 }
  0xb9   : > { %545 = vmatmul.mubr.f32.gmra.mxu0 %v328_v5  ;;  %9542 = vmatpush3.msra.mxu1 %v357_v4 }
  0xba   : > { %550 = vmatprep.mubr.f32.mxu0 %v11726_v0  ;;  %9543 = vmatprep.subr.mxu1 %v354_v6 }
  0xbb   : > { %9544 = vmatpush3.msra.mxu1 %v354_v6 }
  0xbc   : > { %9545 = vmatprep.subr.mxu1 %v351_v7 }
  0xbd   : > { %551 = vmatmul.mubr.f32.gmra.mxu0 %v329_v8  ;;  %9546 = vmatpush3.msra.mxu1 %v351_v7 }
  0xbe   : > { %556 = vmatprep.mubr.f32.mxu0 %v11726_v0  ;;  %9548 = vmatmul.mubr.f32.vlgmr.msra.gmra.mxu1 %v11944_v36 }
  0xbf   : > { %9550 = vmatprep.mubr.f32.mxu1 %v11954_v39 }
  0xc1   : > { %557 = vmatmul.mubr.f32.gmra.mxu0 %v330_v9 }
  0xc2   : > { %562 = vmatprep.mubr.f32.mxu0 %v11726_v0  ;;  %9551 = vmatmul.mubr.f32.gmra.mxu1 %v11964_v42 }
  0xc3   : > { %9553 = vmatprep.mubr.f32.mxu1 %v11974_v45 }
  0xc5   : > { %563 = vmatmul.mubr.f32.gmra.mxu0 %v331_v10 }
  0xc6   : > { %568 = vmatprep.mubr.f32.mxu0 %v11726_v0  ;;  %9554 = vmatmul.mubr.f32.gmra.mxu1 %v11984_v48 }
  0xc7   : > { %9556 = vmatprep.mubr.f32.mxu1 %v11994_v51 }
  0xc9   : > { %569 = vmatmul.mubr.f32.gmra.mxu0 %v332_v11 }
  0xca   : > { %574 = vmatprep.mubr.f32.mxu0 %v11726_v0  ;;  %9557 = vmatmul.mubr.f32.gmra.mxu1 %v12004_v54 }
  0xcb   : > { %9559 = vmatprep.mubr.f32.mxu1 %v12014_v57 }
  0xcd   : > { %575 = vmatmul.mubr.f32.gmra.mxu0 %v333_v12 }
  0xce   : > { %580 = vmatprep.mubr.f32.mxu0 %v11726_v0  ;;  %9560 = vmatmul.mubr.f32.gmra.mxu1 %v326_v61 }
  0xcf   : > { %9562 = vmatprep.mubr.f32.mxu1 %v327_v2 }
  0xd1   : > { %581 = vmatmul.mubr.f32.gmra.mxu0 %v334_v13 }
  0xd2   : > { %586 = vmatprep.mubr.f32.mxu0 %v11726_v0  ;;  %9563 = vmatmul.mubr.f32.gmra.mxu1 %v328_v5 }
  0xd3   : > { %9565 = vmatprep.mubr.f32.mxu1 %v329_v8 }
  0xd5   : > { %587 = vmatmul.mubr.f32.gmra.mxu0 %v335_v14 }
  0xd6   : > { %592 = vmatprep.mubr.f32.mxu0 %v11726_v0  ;;  %9566 = vmatmul.mubr.f32.gmra.mxu1 %v330_v9 }
  0xd7   : > { %9568 = vmatprep.mubr.f32.mxu1 %v331_v10 }
  0xd9   : > { %593 = vmatmul.mubr.f32.gmra.mxu0 %v336_v15 }
  0xda   : > { %598 = vmatprep.mubr.f32.mxu0 %v11726_v0  ;;  %9569 = vmatmul.mubr.f32.gmra.mxu1 %v332_v11 }
  0xdb   : > { %9571 = vmatprep.mubr.f32.mxu1 %v333_v12 }
  0xdd   : > { %599 = vmatmul.mubr.f32.gmra.mxu0 %v337_v16 }
  0xde   : > { %604 = vmatprep.mubr.f32.mxu0 %v11726_v0  ;;  %9572 = vmatmul.mubr.f32.gmra.mxu1 %v334_v13  ;;  %v399_v0 = vlaneseq }
  0xdf   : > { %9574 = vmatprep.mubr.f32.mxu1 %v335_v14 }
  0xe0   : > { %v12072_v18 = vshrl.u32 %v399_v0, 7 }
  0xe1   : > { %605 = vmatmul.mubr.f32.gmra.mxu0 %v338_v17 }
  0xe2   : > { %9575 = vmatmul.mubr.f32.gmra.mxu1 %v336_v15  ;;  %v401_v19 = vsub.s32 0, %v12072_v18  ;;  %v405_v21 = vsub.s32 1, %v12072_v18 }
  0xe3   : > { %9577 = vmatprep.mubr.f32.mxu1 %v337_v16 }
  0xe4   : > { %v12082_v22 = vrot.slane %v12078_v20, %v401_v19  ;;  %v12085_v23 = vrot.slane %v12078_v20, %v405_v21 }
  0xe6   : > { %9578 = vmatmul.mubr.f32.gmra.mxu1 %v338_v17 }
  0xe7   : > { %9580 = vmatprep.mubr.f32.mxu1 %v11938_v34 }
  0xea   : > { %9581 = vmatmul.mubr.f32.gmra.mxu1 %v11948_v37 }
  0xeb   : > { %9583 = vmatprep.mubr.f32.mxu1 %v11958_v40 }
  0xee   : > { %9584 = vmatmul.mubr.f32.gmra.mxu1 %v11968_v43 }
  0xef   : > { %9586 = vmatprep.mubr.f32.mxu1 %v11978_v46 }
  0xf2   : > { %9587 = vmatmul.mubr.f32.gmra.mxu1 %v11988_v49 }
  0xf3   : > { %9589 = vmatprep.mubr.f32.mxu1 %v11998_v52 }
  0xf6   : > { %9590 = vmatmul.mubr.f32.gmra.mxu1 %v12008_v55 }
  0xf7   : > { %9592 = vmatprep.mubr.f32.mxu1 %v12018_v58 }
  0xfa   : > { %9593 = vmatmul.mubr.f32.gmra.mxu1 %v12026_v1 }
 0x14d   : > { %v480_v24 = vpop.f32.mrf.mxu0  ;;  %v612_v25 = vpop.f32.mrf.mxu1 }
 0x14e   : > { %v12088_v26 = vadd.f32 %v480_v24, %v12082_v22  ;;  %v12098_v32 = vadd.f32 %v612_v25, %v12082_v22 }
 0x14f   : > { %v482_v27 = vpop.f32.mrf.mxu0  ;;  %v614_v28 = vpop.f32.mrf.mxu1 }
 0x150   : > { %17283 = vst [vmem:[#allocation15_spill] sm:$0xff] %v12088_v26  ;;  %v12091_v29 = vadd.f32 %v614_v28, %v12085_v23  ;;  %2474 = vrot.lane.b32.xlu0 %v12088_v26, %s11727_s30  ;;  %9611 = vmatprep.mubr.msk.f32.mxu1 %vm928_vm0, %v12088_v26  ;;  %17285 = vst [vmem:[#allocation17_spill] sm:$0xff] %v12098_v32  ;;  %v12111_v39 = vadd.f32 %v482_v27, %v12085_v23 }
 0x151   : > { %v486_v30 = vpop.f32.mrf.mxu0  ;;  %v618_v31 = vpop.f32.mrf.mxu1 }
 0x152   : > { %17284 = vst [vmem:[#allocation16_spill] sm:$0xff] %v12091_v29  ;;  %v12101_v33 = vadd.f32 %v486_v30, %v12082_v22  ;;  %2840 = vrot.lane.b32.xlu1 %v12091_v29, %s11727_s30  ;;  %17288 = vst [vmem:[#allocation20_spill] sm:$0xff] %v12111_v39  ;;  %v12120_v42 = vadd.f32 %v618_v31, %v12082_v22 }
 0x153   : > { %v488_v34 = vpop.f32.mrf.mxu0  ;;  %v620_v35 = vpop.f32.mrf.mxu1 }
 0x154   : > { %17286 = vst [vmem:[#allocation18_spill] sm:$0xff] %v12101_v33  ;;  %2824 = vrot.lane.b32.xlu0 %v12098_v32, %s11727_s30  ;;  %v12108_v36 = vadd.f32 %v620_v35, %v12085_v23  ;;  %17289 = vst [vmem:[#allocation21_spill] sm:$0xff] %v12120_v42  ;;  %v12127_v45 = vadd.f32 %v488_v34, %v12085_v23 }
 0x155   : > { %v492_v37 = vpop.f32.mrf.mxu0  ;;  %v624_v38 = vpop.f32.mrf.mxu1 }
 0x156   : > { %17287 = vst [vmem:[#allocation19_spill] sm:$0xff] %v12108_v36  ;;  %2476 = vrot.lane.b32.xlu1 %v12101_v33, %s11727_s30  ;;  %9651 = vmatprep.subr.msk.mxu0 %vm928_vm0, %v12108_v36  ;;  %17290 = vst [vmem:[#allocation22_spill] sm:$0xff] %v12127_v45  ;;  %v12146_v56 = vadd.f32 %v492_v37, %v12082_v22  ;;  %v12160_v61 = vadd.f32 %v624_v38, %v12082_v22 }
 0x157   : > { %v494_v40 = vpop.f32.mrf.mxu0  ;;  %v626_v41 = vpop.f32.mrf.mxu1  ;;  %9652 = vmatpush3.xpose.msk.msra.mxu0 %vm928_vm0, %v12108_v36 }
 0x158   : > { %2490 = vrot.lane.b32.xlu0 %v12111_v39, %s11727_s30  ;;  %9653 = vmatprep.subr.msk.mxu0 %vm928_vm0, %v12091_v29  ;;  %v12134_v48 = vadd.f32 %v626_v41, %v12085_v23  ;;  %17293 = vst [vmem:[#allocation25_spill] sm:$0xff] %v12146_v56  ;;  %17295 = vst [vmem:[#allocation27_spill] sm:$0xff] %v12160_v61  ;;  %v12172_v3 = vadd.f32 %v494_v40, %v12085_v23 }
 0x159   : > { %v498_v43 = vpop.f32.mrf.mxu0  ;;  %v630_v44 = vpop.f32.mrf.mxu1 }
 0x15a   : > { %2826 = vrot.lane.b32.xlu1 %v12120_v42, %s11727_s30  ;;  %17291 = vst [vmem:[#allocation23_spill] sm:$0xff] %v12134_v48  ;;  %v12139_v51 = vadd.f32 %v498_v43, %v12082_v22  ;;  %v12151_v57 = vadd.f32 %v630_v44, %v12082_v22  ;;  %17297 = vst [vmem:[#allocation29_spill] sm:$0xff] %v12172_v3 }
 0x15b   : > { %v500_v46 = vpop.f32.mrf.mxu0  ;;  %9654 = vmatpush3.xpose.msk.msra.mxu0 %vm928_vm0, %v12091_v29  ;;  %v632_v47 = vpop.f32.mrf.mxu1 }
 0x15c   : > { %2492 = vrot.lane.b32.xlu0 %v12127_v45, %s11727_s30  ;;  %17292 = vst [vmem:[#allocation24_spill] sm:$0xff] %v12139_v51  ;;  %17294 = vst [vmem:[#allocation26_spill] sm:$0xff] %v12151_v57  ;;  %v12190_v11 = vadd.f32 %v500_v46, %v12085_v23  ;;  %v12213_v17 = vadd.f32 %v632_v47, %v12085_v23 }
 0x15d   : > { %v504_v49 = vpop.f32.mrf.mxu0  ;;  %v636_v50 = vpop.f32.mrf.mxu1 }
 0x15e   : > { %2997 = vrot.lane.b32.xlu1 %v12134_v48, %s11727_s30  ;;  %17301 = vst [vmem:[#allocation33_spill] sm:$0xff] %v12190_v11  ;;  %17304 = vst [vmem:[#allocation36_spill] sm:$0xff] %v12213_v17  ;;  %v12233_v25 = vadd.f32 %v504_v49, %v12082_v22  ;;  %v12250_v34 = vadd.f32 %v636_v50, %v12082_v22 }
 0x15f   : > { %v506_v52 = vpop.f32.mrf.mxu0  ;;  %v638_v53 = vpop.f32.mrf.mxu1 }
 0x160   : > { %2842 = vrot.lane.b32.xlu0 %v12108_v36, %s11727_s30  ;;  %v12167_v1 = vadd.f32 %v506_v52, %v12085_v23  ;;  %v12183_v8 = vadd.f32 %v638_v53, %v12085_v23  ;;  %17306 = vst [vmem:[#allocation38_spill] sm:$0xff] %v12233_v25  ;;  %17307 = vst [vmem:[#allocation39_spill] sm:$0xff] %v12250_v34 }
 0x161   : > { %v510_v54 = vpop.f32.mrf.mxu0  ;;  %v642_v55 = vpop.f32.mrf.mxu1 }
 0x162   : > { %2480 = vrot.lane.b32.xlu1 %v12139_v51, %s11727_s30  ;;  %17296 = vst [vmem:[#allocation28_spill] sm:$0xff] %v12167_v1  ;;  %17300 = vst [vmem:[#allocation32_spill] sm:$0xff] %v12183_v8  ;;  %v12193_v12 = vadd.f32 %v510_v54, %v12082_v22  ;;  %v12218_v0 = vadd.f32 %v642_v55, %v12082_v22 }
 0x163   : > { %v512_v58 = vpop.f32.mrf.mxu0  ;;  %v12155_v59 = vpop.f32.mrf.mxu1 }
 0x164   : > { %2478 = vrot.lane.b32.xlu0 %v12146_v56, %s11727_s30  ;;  %17302 = vst [vmem:[#allocation34_spill] sm:$0xff] %v12193_v12  ;;  %v12210_v16 = vadd.f32 %v512_v58, %v12085_v23  ;;  %17305 = vst [vmem:[#allocation37_spill] sm:$0xff] %v12218_v0  ;;  %v12288_v49 = vadd.f32 %v12155_v59, %v12085_v23 }
 0x165   : > { %v12157_v60 = vpop.f32.mrf.mxu0  ;;  %v12164_v62 = vpop.f32.mrf.mxu1 }
 0x166   : > { %2983 = vrot.lane.b32.xlu1 %v12151_v57, %s11727_s30  ;;  %17303 = vst [vmem:[#allocation35_spill] sm:$0xff] %v12210_v16  ;;  %17310 = vst [vmem:[#allocation42_spill] sm:$0xff] %v12288_v49  ;;  %v12309_v58 = vadd.f32 %v12157_v60, %v12082_v22 }
 0x167   : > { %v518_v63 = vpop.f32.mrf.mxu0  ;;  %v650_v4 = vpop.f32.mrf.mxu1 }
 0x168   : > { %2981 = vrot.lane.b32.xlu0 %v12160_v61, %s11727_s30  ;;  %v12177_v6 = vadd.f32 %v518_v63, %v12085_v23  ;;  %v12259_v37 = vadd.f32 %v650_v4, %v12085_v23  ;;  %17312 = vst [vmem:[#allocation44_spill] sm:$0xff] %v12309_v58 }
 0x169   : > { %v522_v2 = vpop.f32.mrf.mxu0  ;;  %v654_v9 = vpop.f32.mrf.mxu1 }
 0x16a   : > { %2498 = vrot.lane.b32.xlu1 %v12167_v1, %s11727_s30  ;;  %17298 = vst [vmem:[#allocation30_spill] sm:$0xff] %v12177_v6  ;;  %17308 = vst [vmem:[#allocation40_spill] sm:$0xff] %v12259_v37  ;;  %v12270_v41 = vadd.f32 %v522_v2, %v12082_v22  ;;  %v12293_v50 = vadd.f32 %v654_v9, %v12082_v22 }
 0x16b   : > { %v524_v5 = vpop.f32.mrf.mxu0  ;;  %v656_v14 = vpop.f32.mrf.mxu1 }
 0x16c   : > { %v12180_v7 = vadd.f32 %v524_v5, %v12085_v23  ;;  %2494 = vrot.lane.b32.xlu0 %v12172_v3, %s11727_s30  ;;  %17309 = vst [vmem:[#allocation41_spill] sm:$0xff] %v12270_v41  ;;  %17311 = vst [vmem:[#allocation43_spill] sm:$0xff] %v12293_v50  ;;  %v12318_v2 = vadd.f32 %v656_v14, %v12085_v23  ;;  %v12330_v5 = vadd.f32 %v12164_v62, %v12082_v22 }
 0x16d   : > { %v12187_v10 = vpop.f32.mrf.mxu0  ;;  %v12220_v19 = vpop.f32.mrf.mxu1 }
 0x16e   : > { %17299 = vst [vmem:[#allocation31_spill] sm:$0xff] %v12180_v7  ;;  %9595 = vmatprep.subr.msk.mxu1 %vm928_vm0, %v12180_v7  ;;  %3001 = vrot.lane.b32.xlu1 %v12183_v8, %s11727_s30  ;;  %17313 = vst [vmem:[#allocation45_spill] sm:$0xff] %v12318_v2 }
 0x16f   : > { %v12199_v13 = vpop.f32.mrf.mxu0  ;;  %9596 = vmatpush3.xpose.msk.msra.mxu1 %vm928_vm0, %v12180_v7  ;;  %v662_v27 = vpop.f32.mrf.mxu1  ;;  %17314 = vst [vmem:[#allocation46_spill] sm:$0xff] %v12330_v5 }
 0x170   : > { %9597 = vmatprep.subr.msk.mxu1 %vm928_vm0, %v12177_v6  ;;  %2496 = vrot.lane.b32.xlu0 %v12190_v11, %s11727_s30  ;;  %v12342_v26 = vadd.f32 %v662_v27, %v12085_v23 }
 0x171   : > { %v12207_v15 = vpop.f32.mrf.mxu0 }
 0x172   : > { %2484 = vrot.lane.b32.xlu1 %v12193_v12, %s11727_s30  ;;  %17316 = vst [vmem:[#allocation48_spill] sm:$0xff] %v12342_v26 }
 0x173   : > { %v12222_v21 = vpop.f32.mrf.mxu0  ;;  %9598 = vmatpush3.xpose.msk.msra.mxu1 %vm928_vm0, %v12177_v6 }
 0x174   : > { %9599 = vmatprep.subr.msk.mxu1 %vm928_vm0, %v12210_v16  ;;  %2999 = vrot.lane.b32.xlu0 %v12213_v17, %s11727_s30  ;;  %v12245_v30 = vpop.f32.mrf.mxu1 }
 0x175   : > { %v12230_v24 = vpop.f32.mrf.mxu0 }
 0x176   : > { %2987 = vrot.lane.b32.xlu1 %v12218_v0, %s11727_s30  ;;  %v12265_v38 = vpop.f32.mrf.mxu1 }
 0x177   : > { %v12237_v28 = vpop.f32.mrf.mxu0  ;;  %9600 = vmatpush3.xpose.msk.msra.mxu1 %vm928_vm0, %v12210_v16 }
 0x178   : > { %9601 = vmatprep.subr.msk.mxu1 %vm928_vm0, %v12167_v1  ;;  %2482 = vrot.lane.b32.xlu0 %v12233_v25, %s11727_s30 }
 0x179   : > { %v12247_v31 = vpop.f32.mrf.mxu0 }
 0x17a   : > { %2502 = vrot.lane.b32.xlu1 %v12177_v6, %s11727_s30  ;;  %v12434_v6 = vadd.f32 %v12230_v24, %v12082_v22 }
 0x17b   : > { %v12254_v35 = vpop.f32.mrf.mxu0  ;;  %9602 = vmatpush3.xpose.msk.msra.mxu1 %vm928_vm0, %v12167_v1 }
 0x17c   : > { %9603 = vmatprep.subr.msk.mxu1 %vm928_vm0, %v12190_v11  ;;  %2985 = vrot.lane.b32.xlu0 %v12250_v34, %s11727_s30  ;;  %17328 = vst [vmem:[#allocation60_spill] sm:$0xff] %v12434_v6 }
 0x17d   : > { %v12267_v40 = vpop.f32.mrf.mxu0 }
 0x17e   : > { %3005 = vrot.lane.b32.xlu1 %v12259_v37, %s11727_s30  ;;  %v12274_v43 = vpop.f32.mrf.mxu1 }
 0x17f   : > { %v554_v44 = vpop.f32.mrf.mxu0  ;;  %9604 = vmatpush3.xpose.msk.msra.mxu1 %vm928_vm0, %v12190_v11 }
 0x180   : > { %9605 = vmatprep.subr.msk.mxu1 %vm928_vm0, %v12172_v3  ;;  %2500 = vrot.lane.b32.xlu0 %v12210_v16, %s11727_s30  ;;  %v12282_v46 = vpop.f32.mrf.mxu1  ;;  %v12398_v16 = vadd.f32 %v12187_v10, %v12082_v22 }
 0x181   : > { %v12284_v47 = vpop.f32.mrf.mxu0 }
 0x182   : > { %2488 = vrot.lane.b32.xlu1 %v12270_v41, %s11727_s30  ;;  %v12295_v52 = vpop.f32.mrf.mxu1  ;;  %17324 = vst [vmem:[#allocation56_spill] sm:$0xff] %v12398_v16 }
 0x183   : > { %v560_v53 = vpop.f32.mrf.mxu0  ;;  %9606 = vmatpush3.xpose.msk.msra.mxu1 %vm928_vm0, %v12172_v3 }
 0x184   : > { %9607 = vmatprep.subr.msk.mxu1 %vm928_vm0, %v12127_v45  ;;  %3003 = vrot.lane.b32.xlu0 %v12288_v49, %s11727_s30  ;;  %v12303_v54 = vpop.f32.mrf.mxu1 }
 0x185   : > { %v12305_v55 = vpop.f32.mrf.mxu0 }
 0x186   : > { %2991 = vrot.lane.b32.xlu1 %v12293_v50, %s11727_s30  ;;  %v12313_v59 = vpop.f32.mrf.mxu1 }
 0x187   : > { %v566_v63 = vpop.f32.mrf.mxu0  ;;  %9608 = vmatpush3.xpose.msk.msra.mxu1 %vm928_vm0, %v12127_v45 }
 0x188   : > { %9609 = vmatprep.subr.msk.mxu1 %vm928_vm0, %v12111_v39  ;;  %2486 = vrot.lane.b32.xlu0 %v12309_v58, %s11727_s30  ;;  %v12324_v60 = vpop.f32.mrf.mxu1  ;;  %v12349_v45 = vadd.f32 %v566_v63, %v12085_v23 }
 0x189   : > { %v12326_v4 = vpop.f32.mrf.mxu0 }
 0x18a   : > { %3007 = vrot.lane.b32.xlu1 %v12318_v2, %s11727_s30  ;;  %v12334_v9 = vpop.f32.mrf.mxu1  ;;  %17317 = vst [vmem:[#allocation49_spill] sm:$0xff] %v12349_v45 }
 0x18b   : > { %v572_v14 = vpop.f32.mrf.mxu0  ;;  %9610 = vmatpush3.xpose.msk.msra.mxu1 %vm928_vm0, %v12111_v39  ;;  %v12377_v39 = vadd.f32 %v560_v53, %v12085_v23  ;;  %v409_v53 = vsub.s32 2, %v12072_v18 }
 0x18c   : > { %v12339_v36 = vadd.f32 %v572_v14, %v12085_v23  ;;  %2989 = vrot.lane.b32.xlu0 %v12330_v5, %s11727_s30  ;;  %v12346_v62 = vpop.f32.mrf.mxu1 }
 0x18d   : > { %v576_v11 = vpop.f32.mrf.mxu0  ;;  %17322 = vst [vmem:[#allocation54_spill] sm:$0xff] %v12377_v39  ;;  %v12422_v10 = vrot.slane %v12078_v20, %v409_v53  ;;  %v12458_v53 = vadd.f32 %v12199_v13, %v12085_v23 }
 0x18e   : > { %17315 = vst [vmem:[#allocation47_spill] sm:$0xff] %v12339_v36  ;;  %v12352_v29 = vadd.f32 %v576_v11, %v12082_v22  ;;  %3009 = vrot.lane.b32.xlu1 %v12342_v26, %s11727_s30  ;;  %9612 = vmatmul.mubr.msk.f32.vlgmr.msra.gmra.mxu1 %vm928_vm0, %v12101_v33  ;;  %v12358_v27 = vpop.f32.mrf.mxu1  ;;  %v12368_v11 = vadd.f32 %v12207_v15, %v12082_v22 }
 0x18f   : > { %17319 = vst [vmem:[#allocation51_spill] sm:$0xff] %v12358_v27  ;;  %9623 = vmatprep.subr.msk.mxu1 %vm928_vm0, %v12339_v36  ;;  %v12362_v14 = vpop.f32.mrf.mxu0  ;;  %9614 = vmatprep.mubr.msk.f32.mxu1 %vm928_vm0, %v12146_v56  ;;  %v12391_v15 = vadd.f32 %v12245_v30, %v12082_v22  ;;  %v12409_v30 = vadd.f32 %v554_v44, %v12085_v23  ;;  %17330 = vst [vmem:[#allocation62_spill] sm:$0xff] %v12458_v53 }
 0x190   : > { %17318 = vst [vmem:[#allocation50_spill] sm:$0xff] %v12352_v29  ;;  %17320 = vst [vmem:[#allocation52_spill] sm:$0xff] %v12368_v11  ;;  %9624 = vmatpush3.xpose.msk.msra.mxu1 %vm928_vm0, %v12339_v36  ;;  %9667 = vmatprep.mubr.msk.f32.mxu0 %vm928_vm0, %v12352_v29  ;;  %v12374_v63 = vpop.f32.mrf.mxu1  ;;  %v12428_v44 = vadd.f32 %v12220_v19, %v12082_v22  ;;  %v12452_v19 = vadd.f32 %v12274_v43, %v12422_v10 }
 0x191   : > { %17321 = vst [vmem:[#allocation53_spill] sm:$0xff] %v12374_v63  ;;  %2504 = vrot.lane.b32.xlu0 %v12180_v7, %s11727_s30  ;;  %9625 = vmatprep.subr.msk.mxu1 %vm928_vm0, %v12349_v45  ;;  %v12383_v56 = vpop.f32.mrf.mxu0  ;;  %17323 = vst [vmem:[#allocation55_spill] sm:$0xff] %v12391_v15  ;;  %v12482_v43 = vadd.f32 %v12222_v21, %v12085_v23  ;;  %v12490_v63 = vadd.f32 %v12282_v46, %v12422_v10 }
 0x192   : > { %2645 = vrot.lane.b32.xlu1 %v12368_v11, %s11727_s30  ;;  %9615 = vmatmul.mubr.msk.f32.gmra.mxu1 %vm928_vm0, %v12139_v51  ;;  %v12394_v33 = vpop.f32.mrf.mxu1  ;;  %17326 = vst [vmem:[#allocation58_spill] sm:$0xff] %v12409_v30  ;;  %17327 = vst [vmem:[#allocation59_spill] sm:$0xff] %v12428_v44 }
 0x193   : > { %v12400_v3 = vpop.f32.mrf.mxu0  ;;  %9617 = vmatprep.mubr.msk.f32.mxu1 %vm928_vm0, %v12233_v25  ;;  %17329 = vst [vmem:[#allocation61_spill] sm:$0xff] %v12452_v19  ;;  %17333 = vst [vmem:[#allocation65_spill] sm:$0xff] %v12482_v43 }
 0x194   : > { %9626 = vmatpush3.xpose.msk.msra.mxu1 %vm928_vm0, %v12349_v45  ;;  %v12406_v51 = vpop.f32.mrf.mxu1  ;;  %17335 = vst [vmem:[#allocation67_spill] sm:$0xff] %v12490_v63 }
 0x195   : > { %17325 = vst [vmem:[#allocation57_spill] sm:$0xff] %v12406_v51  ;;  %2643 = vrot.lane.b32.xlu0 %v12398_v16, %s11727_s30  ;;  %9627 = vmatprep.subr.msk.mxu1 %vm928_vm0, %v12377_v39  ;;  %v12415_v18 = vpop.f32.mrf.mxu0 }
 0x196   : > { %2995 = vrot.lane.b32.xlu1 %v12391_v15, %s11727_s30  ;;  %9618 = vmatmul.mubr.msk.f32.gmra.mxu1 %vm928_vm0, %v12193_v12  ;;  %v12424_v25 = vpop.f32.mrf.mxu1 }
 0x197   : > { %v590_v1 = vpop.f32.mrf.mxu0  ;;  %9620 = vmatprep.mubr.msk.f32.mxu1 %vm928_vm0, %v12309_v58  ;;  %v12462_v58 = vadd.f32 %v12254_v35, %v12085_v23 }
 0x198   : > { %9628 = vmatpush3.xpose.msk.msra.mxu1 %vm928_vm0, %v12377_v39  ;;  %v12438_v12 = vpop.f32.mrf.mxu1 }
 0x199   : > { %2993 = vrot.lane.b32.xlu0 %v12428_v44, %s11727_s30  ;;  %9629 = vmatprep.subr.msk.mxu1 %vm928_vm0, %v12409_v30  ;;  %v12444_v20 = vpop.f32.mrf.mxu0  ;;  %17331 = vst [vmem:[#allocation63_spill] sm:$0xff] %v12462_v58 }
 0x19a   : > { %2647 = vrot.lane.b32.xlu1 %v12434_v6, %s11727_s30  ;;  %9621 = vmatmul.mubr.msk.f32.gmra.mxu1 %vm928_vm0, %v12270_v41  ;;  %v12454_v24 = vpop.f32.mrf.mxu1 }
 0x19b   : > { %v596_v7 = vpop.f32.mrf.mxu0  ;;  %9639 = vmatprep.mubr.msk.f32.mxu1 %vm928_vm0, %v12398_v16  ;;  %v12486_v16 = vadd.f32 %v12237_v28, %v12085_v23  ;;  %v12506_v28 = vadd.f32 %v12295_v52, %v12422_v10 }
 0x19c   : > { %9630 = vmatpush3.xpose.msk.msra.mxu1 %vm928_vm0, %v12409_v30  ;;  %v12468_v41 = vpop.f32.mrf.mxu1  ;;  %v12537_v52 = vadd.f32 %v596_v7, %v12085_v23  ;;  %v12555_v7 = vadd.f32 %v12247_v31, %v12082_v22 }
 0x19d   : > { %2659 = vrot.lane.b32.xlu0 %v12458_v53, %s11727_s30  ;;  %9631 = vmatprep.subr.msk.mxu1 %vm928_vm0, %v12462_v58  ;;  %v12474_v13 = vpop.f32.mrf.mxu0  ;;  %17334 = vst [vmem:[#allocation66_spill] sm:$0xff] %v12486_v16  ;;  %17337 = vst [vmem:[#allocation69_spill] sm:$0xff] %v12506_v28 }
 0x19e   : > { %3544 = vrot.lane.b32.xlu1 %v12452_v19, %s11727_s30  ;;  %v12478_v35 = vpop.f32.mrf.mxu1  ;;  %17341 = vst [vmem:[#allocation73_spill] sm:$0xff] %v12537_v52  ;;  %17342 = vst [vmem:[#allocation74_spill] sm:$0xff] %v12555_v7 }
 0x19f   : > { %17332 = vst [vmem:[#allocation64_spill] sm:$0xff] %v12478_v35  ;;  %v602_v15 = vpop.f32.mrf.mxu0 }
 0x1a0   : > { %9632 = vmatpush3.xpose.msk.msra.mxu1 %vm928_vm0, %v12462_v58  ;;  %v12494_v27 = vpop.f32.mrf.mxu1  ;;  %v12515_v44 = vadd.f32 %v602_v15, %v12085_v23 }
 0x1a1   : > { %17336 = vst [vmem:[#allocation68_spill] sm:$0xff] %v12494_v27  ;;  %2661 = vrot.lane.b32.xlu0 %v12482_v43, %s11727_s30  ;;  %9633 = vmatprep.subr.msk.mxu1 %vm928_vm0, %v12486_v16  ;;  %v12500_v21 = vpop.f32.mrf.mxu0  ;;  %v12512_v27 = vadd.f32 %v12265_v38, %v12085_v23 }
 0x1a2   : > { %3542 = vrot.lane.b32.xlu1 %v12490_v63, %s11727_s30  ;;  %v12508_v46 = vpop.f32.mrf.mxu1  ;;  %17339 = vst [vmem:[#allocation71_spill] sm:$0xff] %v12515_v44 }
 0x1a3   : > { %17338 = vst [vmem:[#allocation70_spill] sm:$0xff] %v12512_v27  ;;  %v608_v35 = vpop.f32.mrf.mxu0 }
 0x1a4   : > { %v12518_v50 = vadd.f32 %v608_v35, %v12085_v23  ;;  %9634 = vmatpush3.xpose.msk.msra.mxu1 %vm928_vm0, %v12486_v16  ;;  %v12522_v51 = vpop.f32.mrf.mxu1 }
 0x1a5   : > { %3011 = vrot.lane.b32.xlu0 %v12512_v27, %s11727_s30  ;;  %9635 = vmatprep.subr.msk.mxu1 %vm928_vm0, %v12482_v43 }
 0x1a6   : > { %17340 = vst [vmem:[#allocation72_spill] sm:$0xff] %v12518_v50  ;;  %9655 = vmatprep.subr.msk.mxu0 %vm928_vm0, %v12518_v50  ;;  %3548 = vrot.lane.b32.xlu1 %v12506_v28, %s11727_s30  ;;  %v12532_v38 = vpop.f32.mrf.mxu1 }
 0x1a7   : > { %9656 = vmatpush3.xpose.msk.msra.mxu0 %vm928_vm0, %v12518_v50 }
 0x1a8   : > { %9636 = vmatpush3.xpose.msk.msra.mxu1 %vm928_vm0, %v12482_v43  ;;  %9657 = vmatprep.subr.msk.mxu0 %vm928_vm0, %v12515_v44  ;;  %v12543_v15 = vpop.f32.mrf.mxu1 }
 0x1a9   : > { %2663 = vrot.lane.b32.xlu0 %v12486_v16, %s11727_s30  ;;  %9637 = vmatprep.subr.msk.mxu1 %vm928_vm0, %v12458_v53  ;;  %v12566_v16 = vadd.f32 %v590_v1, %v12085_v23 }
 0x1aa   : > { %2665 = vrot.lane.b32.xlu1 %v12462_v58, %s11727_s30  ;;  %v12551_v35 = vpop.f32.mrf.mxu1  ;;  %v12587_v58 = vadd.f32 %v12324_v60, %v12422_v10  ;;  %v12607_v60 = vadd.f32 %v12400_v3, %v12085_v23  ;;  %v12627_v3 = vadd.f32 %v12305_v55, %v12082_v22  ;;  %v12659_v55 = vadd.f32 %v12334_v9, %v12422_v10 }
 0x1ab   : > { %9658 = vmatpush3.xpose.msk.msra.mxu0 %vm928_vm0, %v12515_v44  ;;  %17343 = vst [vmem:[#allocation75_spill] sm:$0xff] %v12566_v16  ;;  %v12683_v9 = vadd.f32 %v12346_v62, %v12422_v10  ;;  %v12708_v62 = vadd.f32 %v12474_v13, %v12082_v22 }
 0x1ac   : > { %9638 = vmatpush3.xpose.msk.msra.mxu1 %vm928_vm0, %v12458_v53  ;;  %9659 = vmatprep.subr.msk.mxu0 %vm928_vm0, %v12537_v52  ;;  %v12563_v43 = vpop.f32.mrf.mxu1  ;;  %v12576_v53 = vadd.f32 %v12303_v54, %v12422_v10  ;;  %17346 = vst [vmem:[#allocation78_spill] sm:$0xff] %v12587_v58  ;;  %v12599_v54 = vadd.f32 %v12267_v40, %v12082_v22  ;;  %17348 = vst [vmem:[#allocation80_spill] sm:$0xff] %v12607_v60 }
 0x1ad   : > { %2649 = vrot.lane.b32.xlu0 %v12555_v7, %s11727_s30  ;;  %9679 = vmatprep.subr.msk.mxu1 %vm928_vm0, %v12512_v27  ;;  %v12615_v40 = vadd.f32 %v12284_v47, %v12082_v22  ;;  %17350 = vst [vmem:[#allocation82_spill] sm:$0xff] %v12627_v3  ;;  %v12635_v47 = vadd.f32 %v12362_v14, %v12085_v23  ;;  %17354 = vst [vmem:[#allocation86_spill] sm:$0xff] %v12659_v55 }
 0x1ae   : > { %2667 = vrot.lane.b32.xlu1 %v12409_v30, %s11727_s30  ;;  %v9585_v31 = vpop.f32.mrf.mxu1  ;;  %17344 = vst [vmem:[#allocation76_spill] sm:$0xff] %v12576_v53  ;;  %17347 = vst [vmem:[#allocation79_spill] sm:$0xff] %v12599_v54  ;;  %v12651_v23 = vadd.f32 %v12326_v4, %v12082_v22  ;;  %v12679_v4 = vadd.f32 %v12415_v18, %v12082_v22 }
 0x1af   : > { %9640 = vmatmul.mubr.msk.f32.vlgmr.msra.gmra.mxu1 %vm928_vm0, %v12368_v11  ;;  %9660 = vmatpush3.xpose.msk.msra.mxu0 %vm928_vm0, %v12537_v52  ;;  %v12583_v1 = vadd.f32 %v9585_v31, %v12422_v10  ;;  %17349 = vst [vmem:[#allocation81_spill] sm:$0xff] %v12615_v40  ;;  %17351 = vst [vmem:[#allocation83_spill] sm:$0xff] %v12635_v47  ;;  %v12639_v31 = vadd.f32 %v12313_v59, %v12422_v10 }
 0x1b0   : > { %9642 = vmatprep.mubr.msk.f32.mxu1 %vm928_vm0, %v12434_v6  ;;  %9680 = vmatpush3.xpose.msk.msra.mxu1 %vm928_vm0, %v12512_v27  ;;  %17353 = vst [vmem:[#allocation85_spill] sm:$0xff] %v12651_v23  ;;  %v12671_v59 = vadd.f32 %v12383_v56, %v12082_v22  ;;  %17356 = vst [vmem:[#allocation88_spill] sm:$0xff] %v12679_v4  ;;  %v12701_v56 = vadd.f32 %v12444_v20, %v12082_v22 }
 0x1b1   : > { %17345 = vst [vmem:[#allocation77_spill] sm:$0xff] %v12583_v1  ;;  %9661 = vmatprep.subr.msk.mxu0 %vm928_vm0, %v12566_v16  ;;  %3546 = vrot.lane.b32.xlu0 %v12576_v53, %s11727_s30  ;;  %17352 = vst [vmem:[#allocation84_spill] sm:$0xff] %v12639_v31  ;;  %v12729_v20 = vadd.f32 %v12500_v21, %v12082_v22  ;;  %v12750_v22 = vadd.f32 %v12394_v33, %v12422_v10 }
 0x1b2   : > { %9681 = vmatprep.subr.msk.mxu1 %vm928_vm0, %v12342_v26  ;;  %3550 = vrot.lane.b32.xlu1 %v12587_v58, %s11727_s30  ;;  %17355 = vst [vmem:[#allocation87_spill] sm:$0xff] %v12671_v59  ;;  %17357 = vst [vmem:[#allocation89_spill] sm:$0xff] %v12683_v9  ;;  %v12769_v33 = vadd.f32 %v12454_v24, %v12422_v10  ;;  %v12790_v24 = vadd.f32 %v12468_v41, %v12422_v10 }
 0x1b3   : > { %9643 = vmatmul.mubr.msk.f32.gmra.mxu1 %vm928_vm0, %v12555_v7  ;;  %9662 = vmatpush3.xpose.msk.msra.mxu0 %vm928_vm0, %v12566_v16  ;;  %17358 = vst [vmem:[#allocation90_spill] sm:$0xff] %v12701_v56  ;;  %17359 = vst [vmem:[#allocation91_spill] sm:$0xff] %v12708_v62 }
 0x1b4   : > { %9645 = vmatprep.mubr.msk.f32.mxu1 %vm928_vm0, %v12599_v54  ;;  %9682 = vmatpush3.xpose.msk.msra.mxu1 %vm928_vm0, %v12342_v26  ;;  %17362 = vst [vmem:[#allocation94_spill] sm:$0xff] %v12729_v20  ;;  %17365 = vst [vmem:[#allocation97_spill] sm:$0xff] %v12750_v22 }
 0x1b5   : > { %9663 = vmatprep.subr.msk.mxu0 %vm928_vm0, %v12607_v60  ;;  %2651 = vrot.lane.b32.xlu0 %v12599_v54, %s11727_s30  ;;  %17368 = vst [vmem:[#allocation100_spill] sm:$0xff] %v12769_v33  ;;  %17371 = vst [vmem:[#allocation103_spill] sm:$0xff] %v12790_v24 }
 0x1b6   : > { %9683 = vmatprep.subr.msk.mxu1 %vm928_vm0, %v12318_v2  ;;  %2653 = vrot.lane.b32.xlu1 %v12615_v40, %s11727_s30 }
 0x1b7   : > { %9646 = vmatmul.mubr.msk.f32.gmra.mxu1 %vm928_vm0, %v12615_v40  ;;  %9664 = vmatpush3.xpose.msk.msra.mxu0 %vm928_vm0, %v12607_v60 }
 0x1b8   : > { %9648 = vmatprep.mubr.msk.f32.mxu1 %vm928_vm0, %v12627_v3  ;;  %9684 = vmatpush3.xpose.msk.msra.mxu1 %vm928_vm0, %v12318_v2 }
 0x1b9   : > { %9665 = vmatprep.subr.msk.mxu0 %vm928_vm0, %v12635_v47  ;;  %3552 = vrot.lane.b32.xlu0 %v12639_v31, %s11727_s30 }
 0x1ba   : > { %9685 = vmatprep.subr.msk.mxu1 %vm928_vm0, %v12259_v37  ;;  %2669 = vrot.lane.b32.xlu1 %v12377_v39, %s11727_s30 }
 0x1bb   : > { %9649 = vmatmul.mubr.msk.f32.gmra.mxu1 %vm928_vm0, %v12651_v23  ;;  %9666 = vmatpush3.xpose.msk.msra.mxu0 %vm928_vm0, %v12635_v47 }
 0x1bc   : > { %9686 = vmatpush3.xpose.msk.msra.mxu1 %vm928_vm0, %v12259_v37  ;;  %9695 = vmatprep.mubr.msk.f32.mxu1 %vm928_vm0, %v12160_v61 }
 0x1bd   : > { %3556 = vrot.lane.b32.xlu0 %v12659_v55, %s11727_s30  ;;  %9687 = vmatprep.subr.msk.mxu1 %vm928_vm0, %v12288_v49 }
 0x1be   : > { %9668 = vmatmul.mubr.msk.f32.vlgmr.msra.gmra.mxu0 %vm928_vm0, %v12671_v59  ;;  %9707 = vmatprep.subr.mxu0 %v12659_v55 }
 0x1bf   : > { %3554 = vrot.lane.b32.xlu1 %v12683_v9, %s11727_s30  ;;  %9670 = vmatprep.mubr.msk.f32.mxu0 %vm928_vm0, %v12679_v4 }
 0x1c0   : > { %9688 = vmatpush3.xpose.msk.msra.mxu1 %vm928_vm0, %v12288_v49  ;;  %9708 = vmatpush3.msra.mxu0 %v12659_v55  ;;  %v12773_v55 = vpop.f32.mrf.mxu1 }
 0x1c1   : > { %9709 = vmatprep.subr.mxu0 %v12683_v9  ;;  %2657 = vrot.lane.b32.xlu0 %v12651_v23, %s11727_s30 }
 0x1c2   : > { %9689 = vmatprep.subr.msk.mxu1 %vm928_vm0, %v12183_v8  ;;  %9710 = vmatpush3.msra.mxu0 %v12683_v9  ;;  %v12713_v14 = vpop.permute.xlu0 %2474  ;;  %v12795_v9 = vpop.f32.mrf.mxu1 }
 0x1c3   : > { %17360 = vst [vmem:[#allocation92_spill] sm:$0xff] %v12713_v14  ;;  %9671 = vmatmul.mubr.msk.f32.gmra.mxu0 %vm928_vm0, %v12701_v56  ;;  %9711 = vmatprep.subr.mxu0 %v12639_v31 }
 0x1c4   : > { %2655 = vrot.lane.b32.xlu1 %v12627_v3, %s11727_s30  ;;  %9673 = vmatprep.mubr.msk.f32.mxu0 %vm928_vm0, %v12708_v62  ;;  %v12722_v18 = vpop.permute.xlu1 %2840 }
 0x1c5   : > { %17361 = vst [vmem:[#allocation93_spill] sm:$0xff] %v12722_v18  ;;  %9690 = vmatpush3.xpose.msk.msra.mxu1 %vm928_vm0, %v12183_v8  ;;  %9712 = vmatpush3.msra.mxu0 %v12639_v31 }
 0x1c6   : > { %9713 = vmatprep.subr.mxu0 %v12587_v58  ;;  %2812 = vrot.lane.b32.xlu0 %v12352_v29, %s11727_s30  ;;  %v12734_v13 = vpop.permute.xlu0 %2824 }
 0x1c7   : > { %17363 = vst [vmem:[#allocation95_spill] sm:$0xff] %v12734_v13  ;;  %9691 = vmatprep.subr.msk.mxu1 %vm928_vm0, %v12213_v17  ;;  %9714 = vmatpush3.msra.mxu0 %v12587_v58  ;;  %v12762_v58 = vadd.f32 %v12438_v12, %v12422_v10 }
 0x1c8   : > { %9674 = vmatmul.mubr.msk.f32.gmra.mxu0 %vm928_vm0, %v12729_v20  ;;  %9715 = vmatprep.subr.mxu0 %v12506_v28  ;;  %v12742_v31 = vpop.permute.xlu1 %2476 }
 0x1c9   : > { %17364 = vst [vmem:[#allocation96_spill] sm:$0xff] %v12742_v31  ;;  %2671 = vrot.lane.b32.xlu1 %v12349_v45, %s11727_s30  ;;  %9676 = vmatprep.mubr.msk.f32.mxu0 %vm928_vm0, %v12098_v32  ;;  %17367 = vst [vmem:[#allocation99_spill] sm:$0xff] %v12762_v58  ;;  %v17385_v31 = vld [vmem:[#allocation51_spill] sm:$0xff] }
 0x1ca   : > { %9692 = vmatpush3.xpose.msk.msra.mxu1 %vm928_vm0, %v12213_v17  ;;  %9716 = vmatpush3.msra.mxu0 %v12506_v28  ;;  %v12755_v21 = vpop.permute.xlu0 %2490 }
 0x1cb   : > { %17366 = vst [vmem:[#allocation98_spill] sm:$0xff] %v12755_v21  ;;  %9717 = vmatprep.subr.mxu0 %v12576_v53  ;;  %2828 = vrot.lane.b32.xlu0 %v12635_v47, %s11727_s30 }
 0x1cc   : > { %9693 = vmatprep.subr.msk.mxu1 %vm928_vm0, %v12134_v48  ;;  %9718 = vmatpush3.msra.mxu0 %v12576_v53  ;;  %v12771_v28 = vpop.permute.xlu1 %2826 }
 0x1cd   : > { %17369 = vst [vmem:[#allocation101_spill] sm:$0xff] %v12771_v28  ;;  %9677 = vmatmul.mubr.msk.f32.gmra.mxu0 %vm928_vm0, %v12120_v42  ;;  %9719 = vmatprep.subr.mxu0 %v12452_v19  ;;  %v12812_v28 = vadd.f32 %v12551_v35, %v12422_v10 }
 0x1ce   : > { %3709 = vrot.lane.b32.xlu1 %v12750_v22, %s11727_s30  ;;  %9694 = vmatpush3.xpose.msk.msra.mxu1 %vm928_vm0, %v12134_v48  ;;  %v12782_v12 = vpop.permute.xlu0 %2492 }
 0x1cf   : > { %17370 = vst [vmem:[#allocation102_spill] sm:$0xff] %v12782_v12  ;;  %9720 = vmatpush3.msra.mxu0 %v12452_v19  ;;  %3711 = vrot.lane.b32.xlu0 %v12762_v58, %s11727_s30  ;;  %v12802_v19 = vadd.f32 %v12424_v25, %v12422_v10  ;;  %17375 = vst [vmem:[#allocation107_spill] sm:$0xff] %v12812_v28  ;;  %v17391_v12 = vld [vmem:[#allocation55_spill] sm:$0xff] }
 0x1d0   : > { %9721 = vmatprep.subr.mxu0 %v12490_v63  ;;  %9735 = vmatprep.subr.mxu1 %v12769_v33  ;;  %v12793_v53 = vpop.permute.xlu1 %2997 }
 0x1d1   : > { %17372 = vst [vmem:[#allocation104_spill] sm:$0xff] %v12793_v53  ;;  %9722 = vmatpush3.msra.mxu0 %v12490_v63  ;;  %9696 = vmatmul.mubr.msk.f32.vlgmr.msra.gmra.mxu1 %vm928_vm0, %v12151_v57  ;;  %17373 = vst [vmem:[#allocation105_spill] sm:$0xff] %v12802_v19  ;;  %v12820_v63 = vpop.f32.mrf.mxu1 }
 0x1d2   : > { %2673 = vrot.lane.b32.xlu1 %v12339_v36, %s11727_s30  ;;  %9698 = vmatprep.mubr.msk.f32.mxu1 %vm928_vm0, %v12250_v34  ;;  %v12808_v41 = vpop.permute.xlu0 %2842 }
 0x1d3   : > { %17374 = vst [vmem:[#allocation106_spill] sm:$0xff] %v12808_v41  ;;  %9736 = vmatpush3.msra.mxu1 %v12769_v33  ;;  %3717 = vrot.lane.b32.xlu0 %v12769_v33, %s11727_s30  ;;  %v12838_v53 = vpop.f32.mrf.mxu1 }
 0x1d4   : > { %9737 = vmatprep.subr.mxu1 %v12790_v24  ;;  %v12818_v25 = vpop.permute.xlu1 %2480  ;;  %9763 = vmatprep.subr.mxu0 %v12812_v28 }
 0x1d5   : > { %17376 = vst [vmem:[#allocation108_spill] sm:$0xff] %v12818_v25  ;;  %9738 = vmatpush3.msra.mxu1 %v12790_v24  ;;  %v17380_v25 = vld [vmem:[#allocation57_spill] sm:$0xff] }
 0x1d6   : > { %3713 = vrot.lane.b32.xlu1 %v12802_v19, %s11727_s30  ;;  %9699 = vmatmul.mubr.msk.f32.gmra.mxu1 %vm928_vm0, %v12218_v0  ;;  %v12828_v35 = vpop.permute.xlu0 %2478  ;;  %v12848_v18 = vadd.f32 %v17380_v25, %v12422_v10  ;;  %v12870_v25 = vadd.f32 %v12508_v46, %v12422_v10 }
 0x1d7   : > { %17377 = vst [vmem:[#allocation109_spill] sm:$0xff] %v12828_v35  ;;  %9739 = vmatprep.subr.mxu1 %v12802_v19  ;;  %9701 = vmatprep.mubr.msk.f32.mxu1 %vm928_vm0, %v12330_v5  ;;  %v877_v35 = vpop.f32.mrf.mxu1 }
 0x1d8   : > { %9740 = vmatpush3.msra.mxu1 %v12802_v19  ;;  %2830 = vrot.lane.b32.xlu0 %v12607_v60, %s11727_s30  ;;  %v12836_v33 = vpop.permute.xlu1 %2983  ;;  %17381 = vst [vmem:[#allocation57_spill] sm:$0xff] %v12848_v18  ;;  %v17382_v19 = vld [vmem:[#allocation43_spill] sm:$0xff]  ;;  %17387 = vst [vmem:[#allocation113_spill] sm:$0xff] %v12870_v25 }
 0x1d9   : > { %17378 = vst [vmem:[#allocation110_spill] sm:$0xff] %v12836_v33  ;;  %9741 = vmatprep.subr.mxu1 %v12762_v58  ;;  %v17383_v33 = vld [vmem:[#allocation59_spill] sm:$0xff]  ;;  %v9594_v41 = vpop.f32.mrf.mxu1 }
 0x1da   : > { %9742 = vmatpush3.msra.mxu1 %v12762_v58  ;;  %2814 = vrot.lane.b32.xlu1 %v12671_v59, %s11727_s30  ;;  %v12844_v13 = vpop.permute.xlu0 %2981 }
 0x1db   : > { %17379 = vst [vmem:[#allocation111_spill] sm:$0xff] %v12844_v13  ;;  %9702 = vmatmul.mubr.msk.f32.gmra.mxu1 %vm928_vm0, %v17382_v19  ;;  %9743 = vmatprep.subr.mxu1 %v12750_v22  ;;  %v12860_v13 = vadd.f32 %v17385_v31, %v12422_v10  ;;  %v17389_v31 = vld [vmem:[#allocation53_spill] sm:$0xff] }
 0x1dc   : > { %9704 = vmatprep.mubr.msk.f32.mxu1 %vm928_vm0, %v17383_v33  ;;  %9744 = vmatpush3.msra.mxu1 %v12750_v22  ;;  %v12856_v58 = vpop.permute.xlu1 %2498  ;;  %v12876_v21 = vadd.f32 %v17389_v31, %v12422_v10  ;;  %v12904_v31 = vadd.f32 %v12532_v38, %v12422_v10 }
 0x1dd   : > { %17384 = vst [vmem:[#allocation112_spill] sm:$0xff] %v12856_v58  ;;  %17386 = vst [vmem:[#allocation51_spill] sm:$0xff] %v12860_v13  ;;  %3715 = vrot.lane.b32.xlu0 %v12790_v24, %s11727_s30  ;;  %9745 = vmatprep.subr.mxu1 %v12848_v18  ;;  %v12882_v24 = vadd.f32 %v9594_v41, %v12422_v10 }
 0x1de   : > { %9746 = vmatpush3.msra.mxu1 %v12848_v18  ;;  %2818 = vrot.lane.b32.xlu1 %v12701_v56, %s11727_s30  ;;  %v12872_v22 = vpop.permute.xlu0 %2494  ;;  %17390 = vst [vmem:[#allocation53_spill] sm:$0xff] %v12876_v21  ;;  %17396 = vst [vmem:[#allocation119_spill] sm:$0xff] %v12904_v31 }
 0x1df   : > { %17388 = vst [vmem:[#allocation114_spill] sm:$0xff] %v12872_v22  ;;  %9705 = vmatmul.mubr.msk.f32.gmra.mxu1 %vm928_vm0, %v17391_v12  ;;  %9747 = vmatprep.subr.mxu1 %v12860_v13  ;;  %17392 = vst [vmem:[#allocation115_spill] sm:$0xff] %v12882_v24 }
 0x1e0   : > { %9748 = vmatpush3.msra.mxu1 %v12860_v13  ;;  %v12885_v14 = vpop.permute.xlu1 %3001 }
 0x1e1   : > { %17393 = vst [vmem:[#allocation116_spill] sm:$0xff] %v12885_v14  ;;  %2816 = vrot.lane.b32.xlu0 %v12679_v4, %s11727_s30  ;;  %9749 = vmatprep.subr.mxu1 %v12876_v21 }
 0x1e2   : > { %9750 = vmatpush3.msra.mxu1 %v12876_v21  ;;  %3870 = vrot.lane.b32.xlu1 %v12870_v25, %s11727_s30  ;;  %v12893_v46 = vpop.permute.xlu0 %2496 }
 0x1e3   : > { %17394 = vst [vmem:[#allocation117_spill] sm:$0xff] %v12893_v46  ;;  %9791 = vmatprep.subr.mxu1 %v12882_v24  ;;  %v12918_v46 = vadd.f32 %v12543_v15, %v12422_v10 }
 0x1e4   : > { %v12896_v41 = vpop.permute.xlu1 %2484 }
 0x1e5   : > { %17395 = vst [vmem:[#allocation118_spill] sm:$0xff] %v12896_v41  ;;  %2832 = vrot.lane.b32.xlu0 %v12566_v16, %s11727_s30  ;;  %17400 = vst [vmem:[#allocation123_spill] sm:$0xff] %v12918_v46 }
 0x1e6   : > { %2834 = vrot.lane.b32.xlu1 %v12537_v52, %s11727_s30  ;;  %v12906_v14 = vpop.permute.xlu0 %2999 }
 0x1e7   : > { %17397 = vst [vmem:[#allocation120_spill] sm:$0xff] %v12906_v14 }
 0x1e8   : > { %v12908_v22 = vpop.permute.xlu1 %2987 }
 0x1e9   : > { %17398 = vst [vmem:[#allocation121_spill] sm:$0xff] %v12908_v22  ;;  %2820 = vrot.lane.b32.xlu0 %v12708_v62, %s11727_s30 }
 0x1ea   : > { %3874 = vrot.lane.b32.xlu1 %v12904_v31, %s11727_s30  ;;  %v12914_v41 = vpop.permute.xlu0 %2482 }
 0x1eb   : > { %17399 = vst [vmem:[#allocation122_spill] sm:$0xff] %v12914_v41 }
 0x1ec   : > { %v12920_v58 = vpop.permute.xlu1 %2502 }
 0x1ed   : > { %17401 = vst [vmem:[#allocation124_spill] sm:$0xff] %v12920_v58  ;;  %3872 = vrot.lane.b32.xlu0 %v12918_v46, %s11727_s30 }
 0x1ee   : > { %2836 = vrot.lane.b32.xlu1 %v12515_v44, %s11727_s30  ;;  %v12926_v38 = vpop.permute.xlu0 %2985 }
 0x1ef   : > { %17402 = vst [vmem:[#allocation125_spill] sm:$0xff] %v12926_v38  ;;  %v12946_v38 = vadd.f32 %v12522_v51, %v12422_v10  ;;  %v17413_v51 = vld [vmem:[#allocation31_spill] sm:$0xff] }
 0x1f0   : > { %v12928_v22 = vpop.permute.xlu1 %3005 }
 0x1f1   : > { %17403 = vst [vmem:[#allocation126_spill] sm:$0xff] %v12928_v22  ;;  %3878 = vrot.lane.b32.xlu0 %v12812_v28, %s11727_s30  ;;  %17407 = vst [vmem:[#allocation130_spill] sm:$0xff] %v12946_v38  ;;  %v17408_v22 = vld [vmem:[#allocation64_spill] sm:$0xff] }
 0x1f2   : > { %2822 = vrot.lane.b32.xlu1 %v12729_v20, %s11727_s30  ;;  %v12934_v15 = vpop.permute.xlu0 %2500  ;;  %v12950_v58 = vadd.f32 %v17408_v22, %v12422_v10 }
 0x1f3   : > { %17404 = vst [vmem:[#allocation127_spill] sm:$0xff] %v12934_v15 }
 0x1f4   : > { %v12936_v14 = vpop.permute.xlu1 %2488  ;;  %17409 = vst [vmem:[#allocation64_spill] sm:$0xff] %v12950_v58 }
 0x1f5   : > { %17405 = vst [vmem:[#allocation128_spill] sm:$0xff] %v12936_v14  ;;  %3707 = vrot.lane.b32.xlu0 %v12848_v18, %s11727_s30 }
 0x1f6   : > { %3705 = vrot.lane.b32.xlu1 %v12860_v13, %s11727_s30  ;;  %v12942_v41 = vpop.permute.xlu0 %3003 }
 0x1f7   : > { %17406 = vst [vmem:[#allocation129_spill] sm:$0xff] %v12942_v41 }
 0x1f8   : > { %v12952_v33 = vpop.permute.xlu1 %2991 }
 0x1f9   : > { %17410 = vst [vmem:[#allocation131_spill] sm:$0xff] %v12952_v33  ;;  %3868 = vrot.lane.b32.xlu0 %v12946_v38, %s11727_s30  ;;  %v17415_v33 = vld [vmem:[#allocation68_spill] sm:$0xff] }
 0x1fa   : > { %3866 = vrot.lane.b32.xlu1 %v12950_v58, %s11727_s30  ;;  %v12958_v18 = vpop.permute.xlu0 %2486  ;;  %v12970_v41 = vadd.f32 %v17415_v33, %v12422_v10  ;;  %v12989_v33 = vadd.f32 %v877_v35, %v12422_v10 }
 0x1fb   : > { %17411 = vst [vmem:[#allocation132_spill] sm:$0xff] %v12958_v18 }
 0x1fc   : > { %v12960_v13 = vpop.permute.xlu1 %3007  ;;  %17416 = vst [vmem:[#allocation68_spill] sm:$0xff] %v12970_v41  ;;  %17421 = vst [vmem:[#allocation138_spill] sm:$0xff] %v12989_v33 }
 0x1fd   : > { %17412 = vst [vmem:[#allocation133_spill] sm:$0xff] %v12960_v13  ;;  %3703 = vrot.lane.b32.xlu0 %v12876_v21, %s11727_s30  ;;  %v12982_v21 = vadd.f32 %v12563_v43, %v12422_v10 }
 0x1fe   : > { %4240 = vrot.lane.b32.xlu1 %v17413_v51, %s11728_s10  ;;  %v12966_v22 = vpop.permute.xlu0 %2989 }
 0x1ff   : > { %17414 = vst [vmem:[#allocation134_spill] sm:$0xff] %v12966_v22  ;;  %17418 = vst [vmem:[#allocation136_spill] sm:$0xff] %v12982_v21  ;;  %v17420_v22 = vld [vmem:[#allocation30_spill] sm:$0xff] }
 0x200   : > { %v12972_v14 = vpop.permute.xlu1 %3009 }
 0x201   : > { %17417 = vst [vmem:[#allocation135_spill] sm:$0xff] %v12972_v14  ;;  %3864 = vrot.lane.b32.xlu0 %v12970_v41, %s11727_s30  ;;  %v12993_v14 = vadd.f32 %v12838_v53, %v12422_v10  ;;  %v17427_v53 = vld [vmem:[#allocation28_spill] sm:$0xff] }
 0x202   : > { %2838 = vrot.lane.b32.xlu1 %v12518_v50, %s11727_s30 }
 0x203   : > { %v12978_v13 = vpop.permute.xlu0 %2504  ;;  %17422 = vst [vmem:[#allocation139_spill] sm:$0xff] %v12993_v14 }
 0x204   : > { %v12984_v51 = vpop.permute.xlu1 %2645 }
 0x205   : > { %17419 = vst [vmem:[#allocation137_spill] sm:$0xff] %v12984_v51  ;;  %4238 = vrot.lane.b32.xlu0 %v17420_v22, %s11728_s10  ;;  %v887_v22 = vpop.f32.mrf.mxu1 }
 0x206   : > { %3876 = vrot.lane.b32.xlu1 %v12982_v21, %s11727_s30 }
 0x207   : > { %v12997_v18 = vpop.permute.xlu0 %2643 }
 0x208   : > { %17423 = vst [vmem:[#allocation140_spill] sm:$0xff] %v12997_v18  ;;  %v12999_v15 = vpop.permute.xlu1 %2995  ;;  %v13020_v18 = vadd.f32 %v887_v22, %v12422_v10 }
 0x209   : > { %17424 = vst [vmem:[#allocation141_spill] sm:$0xff] %v12999_v15  ;;  %4033 = vrot.lane.b32.xlu0 %v12989_v33, %s11727_s30  ;;  %v13015_v15 = vadd.f32 %v12773_v55, %v12422_v10 }
 0x20a   : > { %4035 = vrot.lane.b32.xlu1 %v12993_v14, %s11727_s30  ;;  %17430 = vst [vmem:[#allocation146_spill] sm:$0xff] %v13020_v18 }
 0x20b   : > { %v13005_v43 = vpop.permute.xlu0 %2993  ;;  %17428 = vst [vmem:[#allocation144_spill] sm:$0xff] %v13015_v15 }
 0x20c   : > { %17425 = vst [vmem:[#allocation142_spill] sm:$0xff] %v13005_v43  ;;  %v13007_v35 = vpop.permute.xlu1 %2647  ;;  %v13032_v43 = vadd.f32 %v12795_v9, %v12422_v10 }
 0x20d   : > { %17426 = vst [vmem:[#allocation143_spill] sm:$0xff] %v13007_v35  ;;  %4234 = vrot.lane.b32.xlu0 %v17427_v53, %s11728_s10  ;;  %v17435_v35 = vld [vmem:[#allocation29_spill] sm:$0xff] }
 0x20e   : > { %4039 = vrot.lane.b32.xlu1 %v12882_v24, %s11727_s30  ;;  %17433 = vst [vmem:[#allocation149_spill] sm:$0xff] %v13032_v43 }
 0x20f   : > { %v13017_v51 = vpop.permute.xlu0 %2659 }
 0x210   : > { %17429 = vst [vmem:[#allocation145_spill] sm:$0xff] %v13017_v51  ;;  %v13022_v33 = vpop.permute.xlu1 %3544  ;;  %v17438_v51 = vld [vmem:[#allocation63_spill] sm:$0xff] }
 0x211   : > { %17431 = vst [vmem:[#allocation147_spill] sm:$0xff] %v13022_v33  ;;  %4025 = vrot.lane.b32.xlu0 %v13015_v15, %s11727_s30  ;;  %v17443_v15 = vld [vmem:[#allocation18_spill] sm:$0xff] }
 0x212   : > { %4037 = vrot.lane.b32.xlu1 %v13020_v18, %s11727_s30  ;;  %v908_v18 = vld [vmem:[#allocation8 + $0x60] sm:$0xff] }
 0x213   : > { %v13028_v53 = vpop.permute.xlu0 %2661 }
 0x214   : > { %17432 = vst [vmem:[#allocation148_spill] sm:$0xff] %v13028_v53  ;;  %v13034_v55 = vpop.permute.xlu1 %3542  ;;  %v17439_v53 = vld [vmem:[#allocation35_spill] sm:$0xff] }
 0x215   : > { %17434 = vst [vmem:[#allocation150_spill] sm:$0xff] %v13034_v55  ;;  %4230 = vrot.lane.b32.xlu0 %v17435_v35, %s11728_s10  ;;  %v13052_v55 = vadd.f32 %v12820_v63, %v12422_v10 }
 0x216   : > { %4031 = vrot.lane.b32.xlu1 %v13032_v43, %s11727_s30 }
 0x217   : > { %v13040_v22 = vpop.permute.xlu0 %3011  ;;  %17441 = vst [vmem:[#allocation154_spill] sm:$0xff] %v13052_v55 }
 0x218   : > { %17436 = vst [vmem:[#allocation151_spill] sm:$0xff] %v13040_v22  ;;  %v13042_v33 = vpop.permute.xlu1 %3548 }
 0x219   : > { %17437 = vst [vmem:[#allocation152_spill] sm:$0xff] %v13042_v33  ;;  %4401 = vrot.lane.b32.xlu0 %v17438_v51, %s11728_s10 }
 0x21a   : > { %4236 = vrot.lane.b32.xlu1 %v17439_v53, %s11728_s10  ;;  %v17446_v53 = vld [vmem:[#allocation16_spill] sm:$0xff] }
 0x21b   : > { %v13048_v9 = vpop.permute.xlu0 %2663 }
 0x21c   : > { %17440 = vst [vmem:[#allocation153_spill] sm:$0xff] %v13048_v9  ;;  %v13054_v35 = vpop.permute.xlu1 %2665 }
 0x21d   : > { %17442 = vst [vmem:[#allocation155_spill] sm:$0xff] %v13054_v35  ;;  %4212 = vrot.lane.b32.xlu0 %v17443_v15, %s11728_s10  ;;  %v17449_v15 = vld [vmem:[#allocation33_spill] sm:$0xff] }
 0x21e   : > { %4029 = vrot.lane.b32.xlu1 %v13052_v55, %s11727_s30 }
 0x21f   : > { %v13060_v33 = vpop.permute.xlu0 %2649 }
 0x220   : > { %17444 = vst [vmem:[#allocation156_spill] sm:$0xff] %v13060_v33  ;;  %v13062_v51 = vpop.permute.xlu1 %2667 }
 0x221   : > { %17445 = vst [vmem:[#allocation157_spill] sm:$0xff] %v13062_v51  ;;  %4576 = vrot.lane.b32.xlu0 %v17446_v53, %s11728_s10 }
 0x222   : > { %4027 = vrot.lane.b32.xlu1 %v12583_v1, %s11727_s30 }
 0x223   : > { %v13068_v63 = vpop.permute.xlu0 %3546 }
 0x224   : > { %17447 = vst [vmem:[#allocation158_spill] sm:$0xff] %v13068_v63  ;;  %v13070_v10 = vpop.permute.xlu1 %3550 }
 0x225   : > { %17448 = vst [vmem:[#allocation159_spill] sm:$0xff] %v13070_v10  ;;  %4574 = vrot.lane.b32.xlu0 %v12518_v50, %s11728_s10  ;;  %v17458_v10 = vld [vmem:[#allocation24_spill] sm:$0xff] }
 0x226   : > { %4232 = vrot.lane.b32.xlu1 %v17449_v15, %s11728_s10 }
 0x227   : > { %v13076_v22 = vpop.permute.xlu0 %2651 }
 0x228   : > { %17450 = vst [vmem:[#allocation160_spill] sm:$0xff] %v13076_v22  ;;  %v13078_v33 = vpop.permute.xlu1 %2653 }
 0x229   : > { %17451 = vst [vmem:[#allocation161_spill] sm:$0xff] %v13078_v33  ;;  %4572 = vrot.lane.b32.xlu0 %v12515_v44, %s11728_s10  ;;  %v17456_v44 = vld [vmem:[#allocation22_spill] sm:$0xff] }
 0x22a   : > { %4409 = vrot.lane.b32.xlu1 %v12339_v36, %s11728_s10 }
 0x22b   : > { %v13084_v53 = vpop.permute.xlu0 %3552 }
 0x22c   : > { %17452 = vst [vmem:[#allocation162_spill] sm:$0xff] %v13084_v53  ;;  %v13086_v63 = vpop.permute.xlu1 %2669  ;;  %v17461_v53 = vld [vmem:[#allocation20_spill] sm:$0xff] }
 0x22d   : > { %17453 = vst [vmem:[#allocation163_spill] sm:$0xff] %v13086_v63  ;;  %4570 = vrot.lane.b32.xlu0 %v12537_v52, %s11728_s10 }
 0x22e   : > { %4407 = vrot.lane.b32.xlu1 %v12349_v45, %s11728_s10 }
 0x22f   : > { %v13092_v50 = vpop.permute.xlu0 %3556 }
 0x230   : > { %17454 = vst [vmem:[#allocation164_spill] sm:$0xff] %v13092_v50 }
 0x231   : > { %4381 = vrot.lane.b32.xlu0 %v12368_v11, %s11728_s10  ;;  %v13096_v15 = vpop.permute.xlu1 %3554 }
 0x232   : > { %17455 = vst [vmem:[#allocation165_spill] sm:$0xff] %v13096_v15  ;;  %4228 = vrot.lane.b32.xlu1 %v17456_v44, %s11728_s10 }
 0x233   : > { %v13100_v36 = vpop.permute.xlu0 %2657 }
 0x234   : > { %17457 = vst [vmem:[#allocation166_spill] sm:$0xff] %v13100_v36  ;;  %v17468_v36 = vld [vmem:[#allocation19_spill] sm:$0xff] }
 0x235   : > { %4216 = vrot.lane.b32.xlu0 %v17458_v10, %s11728_s10  ;;  %v17465_v10 = vld [vmem:[#allocation15_spill] sm:$0xff] }
 0x236   : > { %4405 = vrot.lane.b32.xlu1 %v12377_v39, %s11728_s10  ;;  %v13106_v52 = vpop.permute.xlu1 %2655 }
 0x237   : > { %17459 = vst [vmem:[#allocation167_spill] sm:$0xff] %v13106_v52 }
 0x238   : > { %v13108_v45 = vpop.permute.xlu0 %2812 }
 0x239   : > { %17460 = vst [vmem:[#allocation168_spill] sm:$0xff] %v13108_v45 }
 0x23a   : > { %4226 = vrot.lane.b32.xlu1 %v17461_v53, %s11728_s10 }
 0x23b   : > { %v13112_v11 = vpop.permute.xlu1 %2671 }
 0x23c   : > { %17462 = vst [vmem:[#allocation169_spill] sm:$0xff] %v13112_v11  ;;  %v902_v11 = vld [vmem:[#allocation8 + $0x30] sm:$0xff] }
 0x23d   : > { %v13114_v15 = vpop.permute.xlu0 %2828 }
 0x23e   : > { %17463 = vst [vmem:[#allocation170_spill] sm:$0xff] %v13114_v15  ;;  %4403 = vrot.lane.b32.xlu1 %v12409_v30, %s11728_s10  ;;  %v17471_v15 = vld [vmem:[#allocation66_spill] sm:$0xff] }
 0x240   : > { %v13118_v44 = vpop.permute.xlu1 %3709 }
 0x241   : > { %17464 = vst [vmem:[#allocation171_spill] sm:$0xff] %v13118_v44  ;;  %v13122_v39 = vpop.permute.xlu0 %3711  ;;  %v17473_v44 = vld [vmem:[#allocation65_spill] sm:$0xff] }
 0x242   : > { %4210 = vrot.lane.b32.xlu1 %v17465_v10, %s11728_s10  ;;  %17466 = vst [vmem:[#allocation172_spill] sm:$0xff] %v13122_v39  ;;  %v897_v10 = vld [vmem:[#allocation8 + $0x8] sm:$0xff] }
 0x244   : > { %v13124_v50 = vpop.permute.xlu1 %2673 }
 0x245   : > { %17467 = vst [vmem:[#allocation173_spill] sm:$0xff] %v13124_v50  ;;  %v13130_v52 = vpop.permute.xlu0 %3717 }
 0x246   : > { %4578 = vrot.lane.b32.xlu1 %v17468_v36, %s11728_s10  ;;  %17470 = vst [vmem:[#allocation175_spill] sm:$0xff] %v13130_v52 }
 0x248   : > { %v13128_v53 = vpop.permute.xlu1 %3713 }
 0x249   : > { %17469 = vst [vmem:[#allocation174_spill] sm:$0xff] %v13128_v53  ;;  %v896_v53 = vld [vmem:[#allocation8] sm:$0xff] }
 0x24a   : > { %4399 = vrot.lane.b32.xlu1 %v17471_v15, %s11728_s10  ;;  %v13138_v39 = vpop.permute.xlu0 %2830  ;;  %v17476_v15 = vld [vmem:[#allocation62_spill] sm:$0xff] }
 0x24b   : > { %17474 = vst [vmem:[#allocation177_spill] sm:$0xff] %v13138_v39 }
 0x24c   : > { %v13134_v30 = vpop.permute.xlu1 %2814 }
 0x24d   : > { %17472 = vst [vmem:[#allocation176_spill] sm:$0xff] %v13134_v30 }
 0x24e   : > { %4397 = vrot.lane.b32.xlu1 %v17473_v44, %s11728_s10  ;;  %v9613_v33 = vpop.f32.mrf.mxu1 }
 0x24f   : > { %v1542_v22 = vmul.f32 0.17677669, %v9613_v33 }
 0x250   : > { %v13140_v45 = vpop.permute.xlu1 %2818  ;;  %v1043_v36 = vpop.f32.mrf.mxu1 }
 0x251   : > { %17475 = vst [vmem:[#allocation178_spill] sm:$0xff] %v13140_v45  ;;  %v13142_v9 = vadd.f32 %v1542_v22, %v897_v10  ;;  %v1541_v52 = vmul.f32 0.17677669, %v1043_v36  ;;  %v13156_v45 = vpop.permute.xlu0 %3715  ;;  %v17479_v22 = vld [vmem:[#allocation56_spill] sm:$0xff] }
 0x252   : > { %4395 = vrot.lane.b32.xlu1 %v17476_v15, %s11728_s10  ;;  %v13146_v30 = vpop.f32.mrf.mxu1  ;;  %17478 = vst [vmem:[#allocation180_spill] sm:$0xff] %v13156_v45 }
 0x253   : > { %v1609_v44 = vsel %vm1605_vm1, %v13142_v9, -inf  ;;  %v13150_v35 = vadd.f32 %v1541_v52, %v896_v53  ;;  %v900_v53 = vld [vmem:[#allocation8 + $0x20] sm:$0xff]  ;;  %v1544_v24 = vmul.f32 0.17677669, %v13146_v30 }
 0x254   : > { %v13152_v39 = vpop.permute.xlu1 %3870  ;;  %1610 = vmax.xlane.f32.xlu0 %v1609_v44  ;;  %v13154_v33 = vpop.f32.mrf.mxu1 }
 0x255   : > { %17477 = vst [vmem:[#allocation179_spill] sm:$0xff] %v13152_v39  ;;  %v1606_v10 = vsel %vm1605_vm1, %v13150_v35, -inf  ;;  %v13170_v39 = vpop.permute.xlu0 %2816  ;;  %v1543_v30 = vmul.f32 0.17677669, %v13154_v33  ;;  %v914_v33 = vld [vmem:[#allocation8 + $0x90] sm:$0xff] }
 0x256   : > { %4379 = vrot.lane.b32.xlu1 %v17479_v22, %s11728_s10  ;;  %v13160_v36 = vpop.f32.mrf.mxu1  ;;  %17481 = vst [vmem:[#allocation182_spill] sm:$0xff] %v13170_v39 }
 0x257   : > { %v1546_v34 = vmul.f32 0.17677669, %v13160_v36 }
 0x258   : > { %v13164_v15 = vpop.permute.xlu1 %2834  ;;  %1607 = vmax.xlane.f32.xlu0 %v1606_v10  ;;  %v1063_v52 = vpop.f32.mrf.mxu1 }
 0x259   : > { %17480 = vst [vmem:[#allocation181_spill] sm:$0xff] %v13164_v15  ;;  %v1545_v51 = vmul.f32 0.17677669, %v1063_v52  ;;  %v17484_v15 = vld [vmem:[#allocation25_spill] sm:$0xff]  ;;  %v13184_v1 = vpop.permute.xlu0 %2832 }
 0x25a   : > { %4747 = vrot.lane.b32.xlu1 %v12512_v27, %s11728_s10  ;;  %v13168_v44 = vpop.f32.mrf.mxu1  ;;  %17487 = vst [vmem:[#allocation187_spill] sm:$0xff] %v13184_v1 }
 0x25b   : > { %v13172_v45 = vadd.f32 %v1545_v51, %v900_v53 }
 0x25c   : > { %v13174_v22 = vpop.permute.xlu1 %3874  ;;  %v1073_v63 = vpop.f32.mrf.mxu1 }
 0x25d   : > { %17482 = vst [vmem:[#allocation183_spill] sm:$0xff] %v13172_v45  ;;  %17483 = vst [vmem:[#allocation184_spill] sm:$0xff] %v13174_v22  ;;  %v1547_v50 = vmul.f32 0.17677669, %v1073_v63  ;;  %v1618_v10 = vsel %vm1605_vm1, %v13172_v45, -inf  ;;  %v13192_v53 = vpop.permute.xlu0 %2820 }
 0x25e   : > { %4214 = vrot.lane.b32.xlu1 %v17484_v15, %s11728_s10  ;;  %1619 = vmax.xlane.f32.xlu0 %v1618_v10  ;;  %17489 = vst [vmem:[#allocation189_spill] sm:$0xff] %v13192_v53  ;;  %v906_v53 = vld [vmem:[#allocation8 + $0x50] sm:$0xff] }
 0x25f   : > { %v13180_v52 = vadd.f32 %v1547_v50, %v902_v11  ;;  %v905_v11 = vld [vmem:[#allocation8 + $0x48] sm:$0xff] }
 0x260   : > { %v13182_v27 = vpop.permute.xlu1 %2836 }
 0x261   : > { %17485 = vst [vmem:[#allocation185_spill] sm:$0xff] %v13180_v52  ;;  %17486 = vst [vmem:[#allocation186_spill] sm:$0xff] %v13182_v27  ;;  %v1624_v51 = vsel %vm1605_vm1, %v13180_v52, -inf  ;;  %v13196_v10 = vpop.permute.xlu0 %3872  ;;  %v904_v27 = vld [vmem:[#allocation8 + $0x40] sm:$0xff]  ;;  %v899_v52 = vld [vmem:[#allocation8 + $0x18] sm:$0xff] }
 0x262   : > { %4568 = vrot.lane.b32.xlu1 %v12566_v16, %s11728_s10  ;;  %1625 = vmax.xlane.f32.xlu0 %v1624_v51  ;;  %17491 = vst [vmem:[#allocation191_spill] sm:$0xff] %v13196_v10 }
 0x264   : > { %v13190_v63 = vpop.permute.xlu1 %2822 }
 0x265   : > { %17488 = vst [vmem:[#allocation188_spill] sm:$0xff] %v13190_v63  ;;  %v13202_v16 = vpop.permute.xlu0 %3878 }
 0x266   : > { %17493 = vst [vmem:[#allocation193_spill] sm:$0xff] %v13202_v16 }
 0x268   : > { %v13194_v22 = vpop.permute.xlu1 %3705 }
 0x269   : > { %17490 = vst [vmem:[#allocation190_spill] sm:$0xff] %v13194_v22 }
 0x26c   : > { %v13198_v50 = vpop.permute.xlu1 %3866 }
 0x26d   : > { %17492 = vst [vmem:[#allocation192_spill] sm:$0xff] %v13198_v50 }
 0x26f   : > { %v9641_v15 = vpop.f32.mrf.mxu1 }
 0x270   : > { %v1550_v39 = vmul.f32 0.17677669, %v9641_v15  ;;  %v13210_v10 = vpop.permute.xlu1 %4240 }
 0x271   : > { %v1196_v1 = vpop.f32.mrf.mxu1  ;;  %17494 = vst [vmem:[#allocation194_spill] sm:$0xff] %v13210_v10 }
 0x272   : > { %v13200_v55 = vadd.f32 %v1550_v39, %v905_v11  ;;  %v1549_v43 = vmul.f32 0.17677669, %v1196_v1  ;;  %v13218_v11 = vpop.permute.xlu0 %3707 }
 0x273   : > { %v13204_v51 = vpop.f32.mrf.mxu1  ;;  %17496 = vst [vmem:[#allocation196_spill] sm:$0xff] %v13218_v11 }
 0x274   : > { %v1633_v63 = vsel %vm1605_vm1, %v13200_v55, -inf  ;;  %v13208_v22 = vadd.f32 %v1549_v43, %v904_v27  ;;  %v13220_v43 = vpop.permute.xlu1 %2838 }
 0x275   : > { %1634 = vmax.xlane.f32.xlu0 %v1633_v63  ;;  %v1206_v50 = vpop.f32.mrf.mxu1  ;;  %17497 = vst [vmem:[#allocation197_spill] sm:$0xff] %v13220_v43 }
 0x276   : > { %v1551_v15 = vmul.f32 0.17677669, %v1206_v50  ;;  %v1630_v39 = vsel %vm1605_vm1, %v13208_v22, -inf  ;;  %v13231_v5 = vpop.permute.xlu0 %3868 }
 0x277   : > { %v13212_v14 = vpop.f32.mrf.mxu1  ;;  %17499 = vst [vmem:[#allocation199_spill] sm:$0xff] %v13231_v5 }
 0x278   : > { %v13216_v1 = vadd.f32 %v1551_v15, %v906_v53  ;;  %v910_v15 = vld [vmem:[#allocation8 + $0x70] sm:$0xff] }
 0x279   : > { %1631 = vmax.xlane.f32.xlu0 %v1630_v39  ;;  %v1216_v16 = vpop.f32.mrf.mxu1 }
 0x27a   : > { %17495 = vst [vmem:[#allocation195_spill] sm:$0xff] %v13216_v1  ;;  %v1553_v27 = vmul.f32 0.17677669, %v1216_v16  ;;  %v1636_v63 = vsel %vm1605_vm1, %v13216_v1, -inf  ;;  %v13249_v32 = vpop.permute.xlu0 %3703 }
 0x27b   : > { %v13222_v10 = vpop.f32.mrf.mxu1  ;;  %17503 = vst [vmem:[#allocation203_spill] sm:$0xff] %v13249_v32  ;;  %v1548_v32 = vmul.f32 0.17677669, %v13168_v44 }
 0x27c   : > { %v13226_v50 = vadd.f32 %v1553_v27, %v908_v18  ;;  %v13239_v18 = vadd.f32 %v1544_v24, %v899_v52  ;;  %v13242_v27 = vpop.permute.xlu1 %3876 }
 0x27d   : > { %1637 = vmax.xlane.f32.xlu0 %v1636_v63  ;;  %v1226_v53 = vpop.f32.mrf.mxu1  ;;  %17502 = vst [vmem:[#allocation202_spill] sm:$0xff] %v13242_v27  ;;  %v898_v63 = vld [vmem:[#allocation8 + $0x10] sm:$0xff] }
 0x27e   : > { %17498 = vst [vmem:[#allocation198_spill] sm:$0xff] %v13226_v50  ;;  %v1555_v11 = vmul.f32 0.17677669, %v1226_v53  ;;  %v13229_v39 = vpop.f32.mrf.mxu0  ;;  %v1642_v43 = vsel %vm1605_vm1, %v13226_v50, -inf  ;;  %17501 = vst [vmem:[#allocation201_spill] sm:$0xff] %v13239_v18  ;;  %v13253_v52 = vadd.f32 %v1543_v30, %v898_v63 }
 0x280   : > { %v13233_v16 = vpop.f32.mrf.mxu0  ;;  %v13237_v45 = vadd.f32 %v1555_v11, %v910_v15  ;;  %v1615_v11 = vsel %vm1605_vm1, %v13239_v18, -inf  ;;  %17504 = vst [vmem:[#allocation204_spill] sm:$0xff] %v13253_v52  ;;  %v901_v15 = vld [vmem:[#allocation8 + $0x28] sm:$0xff]  ;;  %v13255_v27 = vpop.permute.xlu1 %4035  ;;  %v1612_v18 = vsel %vm1605_vm1, %v13253_v52, -inf  ;;  %v907_v52 = vld [vmem:[#allocation8 + $0x58] sm:$0xff] }
 0x281   : > { %1643 = vmax.xlane.f32.xlu0 %v1642_v43  ;;  %17505 = vst [vmem:[#allocation205_spill] sm:$0xff] %v13255_v27  ;;  %v13261_v36 = vadd.f32 %v1546_v34, %v901_v15  ;;  %v1552_v34 = vmul.f32 0.17677669, %v13204_v51 }
 0x282   : > { %17500 = vst [vmem:[#allocation200_spill] sm:$0xff] %v13237_v45  ;;  %v1648_v5 = vsel %vm1605_vm1, %v13237_v45, -inf }
 0x283   : > { %v13244_v53 = vpop.f32.mrf.mxu0  ;;  %17507 = vst [vmem:[#allocation207_spill] sm:$0xff] %v13261_v36  ;;  %v13285_v51 = vadd.f32 %v1552_v34, %v907_v52 }
 0x284   : > { %v13273_v15 = vpop.permute.xlu1 %4039 }
 0x285   : > { %v1359_v24 = vpop.f32.mrf.mxu0  ;;  %1649 = vmax.xlane.f32.xlu0 %v1648_v5  ;;  %v903_v5 = vld [vmem:[#allocation8 + $0x38] sm:$0xff]  ;;  %17510 = vst [vmem:[#allocation210_spill] sm:$0xff] %v13273_v15 }
 0x286   : > { %1616 = vmax.xlane.f32.xlu1 %v1615_v11  ;;  %v1559_v43 = vmul.f32 0.17677669, %v1359_v24  ;;  %v916_v11 = vld [vmem:[#allocation8 + $0xa0] sm:$0xff]  ;;  %v13268_v24 = vpop.permute.xlu0 %3864 }
 0x287   : > { %17508 = vst [vmem:[#allocation208_spill] sm:$0xff] %v13268_v24  ;;  %v1554_v24 = vmul.f32 0.17677669, %v13212_v14  ;;  %v1556_v14 = vmul.f32 0.17677669, %v13222_v10 }
 0x288   : > { %v13257_v50 = vpop.f32.mrf.mxu0  ;;  %v13259_v45 = vadd.f32 %v1559_v43, %v914_v33  ;;  %v13270_v33 = vadd.f32 %v1548_v32, %v903_v5  ;;  %v1558_v10 = vmul.f32 0.17677669, %v13229_v39  ;;  %v1557_v39 = vmul.f32 0.17677669, %v13233_v16  ;;  %v915_v16 = vld [vmem:[#allocation8 + $0x98] sm:$0xff] }
 0x28a   : > { %17506 = vst [vmem:[#allocation206_spill] sm:$0xff] %v13259_v45  ;;  %1613 = vmax.xlane.f32.xlu1 %v1612_v18  ;;  %v1369_v30 = vpop.f32.mrf.mxu0  ;;  %v1660_v63 = vsel %vm1605_vm1, %v13259_v45, -inf  ;;  %17509 = vst [vmem:[#allocation209_spill] sm:$0xff] %v13270_v33  ;;  %v1621_v18 = vsel %vm1605_vm1, %v13261_v36, -inf  ;;  %v13283_v5 = vpop.permute.xlu0 %4238  ;;  %v1627_v15 = vsel %vm1605_vm1, %v13270_v33, -inf  ;;  %v911_v33 = vld [vmem:[#allocation8 + $0x78] sm:$0xff] }
 0x28b   : > { %v1561_v27 = vmul.f32 0.17677669, %v1369_v30  ;;  %1661 = vmax.xlane.f32.xlu0 %v1660_v63  ;;  %v918_v63 = vld [vmem:[#allocation8 + $0xb0] sm:$0xff]  ;;  %17512 = vst [vmem:[#allocation212_spill] sm:$0xff] %v13283_v5  ;;  %v13294_v36 = vpop.permute.xlu1 %4037  ;;  %v1639_v5 = vsel %vm1605_vm1, %v13285_v51, -inf }
 0x28c   : > { %17514 = vst [vmem:[#allocation214_spill] sm:$0xff] %v13294_v36 }
 0x28d   : > { %v13275_v44 = vpop.f32.mrf.mxu0  ;;  %v13279_v43 = vadd.f32 %v1561_v27, %v916_v11  ;;  %v909_v11 = vld [vmem:[#allocation8 + $0x68] sm:$0xff] }
 0x28e   : > { %1622 = vmax.xlane.f32.xlu1 %v1621_v18  ;;  %v13298_v34 = vadd.f32 %v1554_v24, %v909_v11  ;;  %v13305_v36 = vpop.permute.xlu0 %4033  ;;  %v13309_v11 = vadd.f32 %v1556_v14, %v911_v33 }
 0x28f   : > { %17511 = vst [vmem:[#allocation211_spill] sm:$0xff] %v13279_v43  ;;  %v1379_v45 = vpop.f32.mrf.mxu0  ;;  %v1666_v30 = vsel %vm1605_vm1, %v13279_v43, -inf  ;;  %17517 = vst [vmem:[#allocation217_spill] sm:$0xff] %v13305_v36 }
 0x290   : > { %v1563_v32 = vmul.f32 0.17677669, %v1379_v45  ;;  %1667 = vmax.xlane.f32.xlu0 %v1666_v30  ;;  %v920_v45 = vld [vmem:[#allocation8 + $0xc0] sm:$0xff]  ;;  %17515 = vst [vmem:[#allocation215_spill] sm:$0xff] %v13298_v34  ;;  %17518 = vst [vmem:[#allocation218_spill] sm:$0xff] %v13309_v11 }
 0x291   : > { %v13290_v27 = vpop.f32.mrf.mxu1 }
 0x292   : > { %1628 = vmax.xlane.f32.xlu1 %v1627_v15  ;;  %v13292_v18 = vadd.f32 %v1563_v32, %v918_v63  ;;  %v923_v15 = vld [vmem:[#allocation8 + $0xd8] sm:$0xff]  ;;  %v13320_v36 = vpop.permute.xlu0 %4234 }
 0x293   : > { %v1502_v43 = vpop.f32.mrf.mxu1  ;;  %17521 = vst [vmem:[#allocation221_spill] sm:$0xff] %v13320_v36 }
 0x294   : > { %17513 = vst [vmem:[#allocation213_spill] sm:$0xff] %v13292_v18  ;;  %v1565_v30 = vmul.f32 0.17677669, %v1502_v43  ;;  %v1672_v52 = vsel %vm1605_vm1, %v13292_v18, -inf  ;;  %v13312_v18 = vpop.permute.xlu1 %4031 }
 0x295   : > { %1673 = vmax.xlane.f32.xlu0 %v1672_v52  ;;  %17519 = vst [vmem:[#allocation219_spill] sm:$0xff] %v13312_v18  ;;  %v1560_v18 = vmul.f32 0.17677669, %v13244_v53 }
 0x296   : > { %1640 = vmax.xlane.f32.xlu1 %v1639_v5  ;;  %v9700_v63 = vpop.f32.mrf.mxu1  ;;  %v13303_v32 = vadd.f32 %v1565_v30, %v920_v45  ;;  %v1645_v5 = vsel %vm1605_vm1, %v13298_v34, -inf  ;;  %v913_v45 = vld [vmem:[#allocation8 + $0x88] sm:$0xff]  ;;  %v13334_v34 = vpop.permute.xlu0 %4025 }
 0x297   : > { %v1568_v43 = vmul.f32 0.17677669, %v9700_v63  ;;  %v13322_v33 = vadd.f32 %v1558_v10, %v913_v45  ;;  %v926_v45 = vld [vmem:[#allocation8 + $0xf0] sm:$0xff]  ;;  %17524 = vst [vmem:[#allocation224_spill] sm:$0xff] %v13334_v34 }
 0x298   : > { %17516 = vst [vmem:[#allocation216_spill] sm:$0xff] %v13303_v32  ;;  %v1512_v1 = vpop.f32.mrf.mxu1  ;;  %v1678_v24 = vsel %vm1605_vm1, %v13303_v32, -inf }
 0x299   : > { %v13314_v52 = vadd.f32 %v1568_v43, %v923_v15  ;;  %1679 = vmax.xlane.f32.xlu0 %v1678_v24  ;;  %17522 = vst [vmem:[#allocation222_spill] sm:$0xff] %v13322_v33  ;;  %v1651_v15 = vsel %vm1605_vm1, %v13309_v11, -inf  ;;  %v912_v43 = vld [vmem:[#allocation8 + $0x80] sm:$0xff]  ;;  %v13327_v24 = vpop.permute.xlu1 %4236  ;;  %v1657_v36 = vsel %vm1605_vm1, %v13322_v33, -inf  ;;  %v917_v33 = vld [vmem:[#allocation8 + $0xa8] sm:$0xff] }
 0x29a   : > { %1646 = vmax.xlane.f32.xlu1 %v1645_v5  ;;  %17523 = vst [vmem:[#allocation223_spill] sm:$0xff] %v13327_v24  ;;  %v13332_v10 = vadd.f32 %v1557_v39, %v912_v43  ;;  %v1562_v24 = vmul.f32 0.17677669, %v13257_v50 }
 0x29b   : > { %17520 = vst [vmem:[#allocation220_spill] sm:$0xff] %v13314_v52  ;;  %v9703_v30 = vpop.f32.mrf.mxu1  ;;  %v1687_v63 = vsel %vm1605_vm1, %v13314_v52, -inf }
 0x29c   : > { %v1654_v53 = vsel %vm1605_vm1, %v13332_v10, -inf }
 0x29d   : > { %v1522_v14 = vpop.f32.mrf.mxu1  ;;  %1688 = vmax.xlane.f32.xlu0 %v1687_v63  ;;  %v13341_v11 = vpop.permute.xlu1 %4029 }
 0x29e   : > { %1652 = vmax.xlane.f32.xlu1 %v1651_v15  ;;  %v13338_v15 = vadd.f32 %v1560_v18, %v915_v16  ;;  %v1564_v18 = vmul.f32 0.17677669, %v13275_v44  ;;  %v1566_v16 = vmul.f32 0.17677669, %v13290_v27  ;;  %v1570_v27 = vmul.f32 0.17677669, %v9703_v30 }
 0x29f   : > { %v9706_v5 = vpop.f32.mrf.mxu1 }
 0x2a0   : > { %v1663_v50 = vsel %vm1605_vm1, %v13338_v15, -inf  ;;  %v1572_v30 = vmul.f32 0.17677669, %v9706_v5 }
 0x2a1   : > { %v1532_v32 = vpop.f32.mrf.mxu1  ;;  %v13354_v43 = vpop.permute.xlu1 %4027 }
 0x2a2   : > { %v1571_v52 = vmul.f32 0.17677669, %v1532_v32  ;;  %1658 = vmax.xlane.f32.xlu1 %v1657_v36  ;;  %v13347_v36 = vpop.permute.xlu0 %4230  ;;  %v13349_v32 = vadd.f32 %v1562_v24, %v917_v33  ;;  %17526 = vst [vmem:[#allocation226_spill] sm:$0xff] %v13354_v43 }
 0x2a3   : > { %17525 = vst [vmem:[#allocation225_spill] sm:$0xff] %v13347_v36  ;;  %v1567_v36 = vmul.f32 0.17677669, %v1512_v1  ;;  %v1569_v1 = vmul.f32 0.17677669, %v1522_v14 }
 0x2a4   : > { %v13336_v63 = vadd.f32 %v1571_v52, %v926_v45  ;;  %v919_v52 = vld [vmem:[#allocation8 + $0xb8] sm:$0xff] }
 0x2a5   : > { %v13356_v45 = vadd.f32 %v1564_v18, %v919_v52  ;;  %v13365_v44 = vpop.permute.xlu1 %4232  ;;  %v922_v18 = vld [vmem:[#allocation8 + $0xd0] sm:$0xff] }
 0x2a6   : > { %1655 = vmax.xlane.f32.xlu1 %v1654_v53  ;;  %v1696_v39 = vsel %vm1605_vm1, %v13336_v63, -inf  ;;  %v1669_v53 = vsel %vm1605_vm1, %v13349_v32, -inf  ;;  %v13361_v33 = vpop.permute.xlu0 %4401  ;;  %17528 = vst [vmem:[#allocation228_spill] sm:$0xff] %v13365_v44  ;;  %v13373_v43 = vadd.f32 %v1567_v36, %v922_v18  ;;  %v927_v18 = vld [vmem:[#allocation8 + $0xf8] sm:$0xff] }
 0x2a7   : > { %1697 = vmax.xlane.f32.xlu0 %v1696_v39  ;;  %v921_v39 = vld [vmem:[#allocation8 + $0xc8] sm:$0xff]  ;;  %17527 = vst [vmem:[#allocation227_spill] sm:$0xff] %v13361_v33 }
 0x2a8   : > { %v13363_v24 = vadd.f32 %v1566_v16, %v921_v39  ;;  %v1684_v33 = vsel %vm1605_vm1, %v13373_v43, -inf }
 0x2a9   : > { %v13375_v16 = vpop.permute.xlu1 %4409 }
 0x2aa   : > { %1664 = vmax.xlane.f32.xlu1 %v1663_v50  ;;  %v1675_v50 = vsel %vm1605_vm1, %v13356_v45, -inf  ;;  %v13369_v52 = vpop.permute.xlu0 %4212  ;;  %v1681_v34 = vsel %vm1605_vm1, %v13363_v24, -inf }
 0x2ab   : > { %17529 = vst [vmem:[#allocation229_spill] sm:$0xff] %v13369_v52 }
 0x2ad   : > { %v13383_v52 = vpop.permute.xlu1 %4407 }
 0x2ae   : > { %1670 = vmax.xlane.f32.xlu1 %v1669_v53  ;;  %v925_v53 = vld [vmem:[#allocation8 + $0xe8] sm:$0xff]  ;;  %v13381_v44 = vpop.permute.xlu0 %4576 }
 0x2af   : > { %v13377_v39 = vadd.f32 %v1570_v27, %v925_v53  ;;  %17530 = vst [vmem:[#allocation230_spill] sm:$0xff] %v13381_v44  ;;  %v13393_v27 = vadd.f32 %v1572_v30, %v927_v18 }
 0x2b1   : > { %v13399_v53 = vpop.permute.xlu1 %4228 }
 0x2b2   : > { %1676 = vmax.xlane.f32.xlu1 %v1675_v50  ;;  %v924_v50 = vld [vmem:[#allocation8 + $0xe0] sm:$0xff]  ;;  %v13391_v14 = vpop.permute.xlu0 %4574 }
 0x2b3   : > { %v13389_v36 = vadd.f32 %v1569_v1, %v924_v50  ;;  %17531 = vst [vmem:[#allocation231_spill] sm:$0xff] %v13391_v14  ;;  %v1699_v1 = vsel %vm1605_vm1, %v13393_v27, -inf }
 0x2b5   : > { %v1690_v5 = vsel %vm1605_vm1, %v13389_v36, -inf  ;;  %v13407_v30 = vpop.permute.xlu1 %4405 }
 0x2b6   : > { %1682 = vmax.xlane.f32.xlu1 %v1681_v34  ;;  %v1693_v34 = vsel %vm1605_vm1, %v13377_v39, -inf  ;;  %v13405_v50 = vpop.permute.xlu0 %4572 }
 0x2b7   : > { %17533 = vst [vmem:[#allocation232_spill] sm:$0xff] %v13405_v50 }
 0x2ba   : > { %1685 = vmax.xlane.f32.xlu1 %v1684_v33  ;;  %v17532_v33 = vld [vmem:[#allocation34_spill] sm:$0xff]  ;;  %v13411_v18 = vpop.permute.xlu0 %4570 }
 0x2bb   : > { %17535 = vst [vmem:[#allocation233_spill] sm:$0xff] %v13411_v18 }
 0x2bd   : > { %4745 = vrot.lane.b32.xlu0 %v12342_v26, %s11728_s10  ;;  %v17539_v26 = vld [vmem:[#allocation38_spill] sm:$0xff] }
 0x2be   : > { %1694 = vmax.xlane.f32.xlu1 %v1693_v34  ;;  %v17534_v34 = vld [vmem:[#allocation41_spill] sm:$0xff] }
 0x2c1   : > { %4220 = vrot.lane.b32.xlu0 %v17532_v33, %s11728_s10  ;;  %v17541_v33 = vld [vmem:[#allocation44_spill] sm:$0xff] }
 0x2c2   : > { %1691 = vmax.xlane.f32.xlu1 %v1690_v5  ;;  %v13415_v5 = vpop.permute.xlu1 %4226 }
 0x2c3   : > { %17536 = vst [vmem:[#allocation234_spill] sm:$0xff] %v13415_v5 }
 0x2c5   : > { %4743 = vrot.lane.b32.xlu0 %v12318_v2, %s11728_s10  ;;  %v13419_v2 = vpop.permute.xlu0 %4381 }
 0x2c6   : > { %1700 = vmax.xlane.f32.xlu1 %v1699_v1  ;;  %17537 = vst [vmem:[#allocation235_spill] sm:$0xff] %v13419_v2  ;;  %v13421_v1 = vpop.permute.xlu1 %4403 }
 0x2c7   : > { %17538 = vst [vmem:[#allocation236_spill] sm:$0xff] %v13421_v1 }
 0x2c9   : > { %4224 = vrot.lane.b32.xlu0 %v17534_v34, %s11728_s10  ;;  %v13427_v34 = vpop.permute.xlu0 %4216 }
 0x2ca   : > { %17540 = vst [vmem:[#allocation237_spill] sm:$0xff] %v13427_v34 }
 0x2cd   : > { %4741 = vrot.lane.b32.xlu0 %v12259_v37, %s11728_s10  ;;  %v13431_v37 = vpop.permute.xlu1 %4210 }
 0x2d1   : > { %4550 = vrot.lane.b32.xlu0 %v12671_v59, %s11728_s10 }
 0x2d5   : > { %4383 = vrot.lane.b32.xlu0 %v12434_v6, %s11728_s10 }
 0x2d7   : > { %4218 = vrot.lane.b32.xlu1 %v17539_v26, %s11728_s10  ;;  %v13440_v26 = vpop.permute.xlu1 %4578 }
 0x2d8   : > { %17542 = vst [vmem:[#allocation238_spill] sm:$0xff] %v13440_v26 }
 0x2d9   : > { %4737 = vrot.lane.b32.xlu0 %v12183_v8, %s11728_s10 }
 0x2db   : > { %4566 = vrot.lane.b32.xlu1 %v12607_v60, %s11728_s10 }
 0x2dd   : > { %4389 = vrot.lane.b32.xlu0 %v12615_v40, %s11728_s10  ;;  %v1611_v59 = vpop.xlane.xlu0 %1610  ;;  %v13449_v40 = vpop.permute.xlu1 %4399 }
 0x2de   : > { %v1703_v6 = vsub.f32 %v13142_v9, %v1611_v59  ;;  %17543 = vst [vmem:[#allocation239_spill] sm:$0xff] %v13449_v40 }
 0x2df   : > { %4222 = vrot.lane.b32.xlu1 %v17541_v33, %s11728_s10  ;;  %v17580_v33 = vld [vmem:[#allocation173_spill] sm:$0xff] }
 0x2e0   : > { %v1736_v18 = vmul.f32 1.442695, %v1703_v6 }
 0x2e1   : > { %4391 = vrot.lane.b32.xlu0 %v12627_v3, %s11728_s10  ;;  %v1608_v8 = vpop.xlane.xlu0 %1607  ;;  %v13457_v6 = vpop.permute.xlu1 %4397 }
 0x2e2   : > { %v1702_v2 = vsub.f32 %v13150_v35, %v1608_v8  ;;  %17544 = vst [vmem:[#allocation240_spill] sm:$0xff] %v13457_v6 }
 0x2e3   : > { %4564 = vrot.lane.b32.xlu1 %v12635_v47, %s11728_s10 }
 0x2e4   : > { %v1734_v60 = vmul.f32 1.442695, %v1702_v2 }
 0x2e5   : > { %4733 = vrot.lane.b32.xlu0 %v12134_v48, %s11728_s10  ;;  %v13467_v2 = vpop.permute.xlu1 %4395  ;;  %v17551_v48 = vld [vmem:[#allocation195_spill] sm:$0xff] }
 0x2e6   : > { %10930 = vpow2.f32 %v1734_v60  ;;  %17546 = vst [vmem:[#allocation242_spill] sm:$0xff] %v13467_v2 }
 0x2e7   : > { %10932 = vpow2.f32 %v1736_v18  ;;  %4548 = vrot.lane.b32.xlu1 %v12352_v29, %s11728_s10  ;;  %v1620_v59 = vpop.xlane.xlu0 %1619 }
 0x2e9   : > { %4719 = vrot.lane.b32.xlu0 %v12151_v57, %s11728_s10  ;;  %v13484_v35 = vpop.permute.xlu1 %4379 }
 0x2ea   : > { %17548 = vst [vmem:[#allocation244_spill] sm:$0xff] %v13484_v35 }
 0x2eb   : > { %4739 = vrot.lane.b32.xlu1 %v12288_v49, %s11728_s10  ;;  %v13489_v9 = vpop.xlane.xlu0 %1625 }
 0x2ed   : > { %4554 = vrot.lane.b32.xlu0 %v12701_v56, %s11728_s10  ;;  %v17556_v56 = vld [vmem:[#allocation183_spill] sm:$0xff] }
 0x2ef   : > { %4385 = vrot.lane.b32.xlu1 %v12555_v7, %s11728_s10  ;;  %v17575_v7 = vld [vmem:[#allocation215_spill] sm:$0xff] }
 0x2f1   : > { %4558 = vrot.lane.b32.xlu0 %v12729_v20, %s11728_s10 }
 0x2f3   : > { %v13465_v8 = vpop.eup %10930  ;;  %4387 = vrot.lane.b32.xlu1 %v12599_v54, %s11728_s10 }
 0x2f4   : > { %17545 = vst [vmem:[#allocation241_spill] sm:$0xff] %v13465_v8  ;;  %v13471_v60 = vpop.eup %10932  ;;  %9723 = vmatprep.mubr.msk.f32.mxu0 %vm1605_vm1, %v13465_v8  ;;  %v13500_v8 = vpop.permute.xlu1 %4747 }
 0x2f5   : > { %17547 = vst [vmem:[#allocation243_spill] sm:$0xff] %v13471_v60  ;;  %4562 = vrot.lane.b32.xlu0 %v12120_v42, %s11728_s10  ;;  %9724 = vmatmul.mubr.msk.f32.vlgmr.msra.gmra.mxu0 %vm1605_vm1, %v13471_v60  ;;  %17549 = vst [vmem:[#allocation245_spill] sm:$0xff] %v13500_v8  ;;  %v17554_v42 = vld [vmem:[#allocation39_spill] sm:$0xff] }
 0x2f6   : > { %9764 = vmatpush3.msra.mxu0 %v12812_v28 }
 0x2f7   : > { %4735 = vrot.lane.b32.xlu1 %v12213_v17, %s11728_s10  ;;  %9765 = vmatprep.subr.mxu0 %v12982_v21 }
 0x2f8   : > { %9766 = vmatpush3.msra.mxu0 %v12982_v21 }
 0x2f9   : > { %4723 = vrot.lane.b32.xlu0 %v12218_v0, %s11728_s10  ;;  %9767 = vmatprep.subr.mxu0 %v12904_v31 }
 0x2fa   : > { %9768 = vmatpush3.msra.mxu0 %v12904_v31 }
 0x2fb   : > { %4393 = vrot.lane.b32.xlu1 %v12651_v23, %s11728_s10  ;;  %9769 = vmatprep.subr.mxu0 %v12918_v46 }
 0x2fc   : > { %9770 = vmatpush3.msra.mxu0 %v12918_v46 }
 0x2fd   : > { %4727 = vrot.lane.b32.xlu0 %v17382_v19, %s11728_s10  ;;  %9771 = vmatprep.subr.mxu0 %v12870_v25 }
 0x2fe   : > { %9772 = vmatpush3.msra.mxu0 %v12870_v25  ;;  %v1635_v18 = vpop.xlane.xlu0 %1634 }
 0x2ff   : > { %4717 = vrot.lane.b32.xlu1 %v12160_v61, %s11728_s10  ;;  %9773 = vmatprep.subr.mxu0 %v12946_v38  ;;  %v1711_v60 = vsub.f32 %v13200_v55, %v1635_v18  ;;  %v13516_v55 = vpop.permute.xlu1 %4214 }
 0x300   : > { %9774 = vmatpush3.msra.mxu0 %v12946_v38  ;;  %17550 = vst [vmem:[#allocation246_spill] sm:$0xff] %v13516_v55 }
 0x301   : > { %4731 = vrot.lane.b32.xlu0 %v17391_v12, %s11728_s10  ;;  %9775 = vmatprep.subr.mxu0 %v12950_v58  ;;  %v1752_v57 = vmul.f32 1.442695, %v1711_v60  ;;  %v17553_v60 = vld [vmem:[#allocation17_spill] sm:$0xff] }
 0x302   : > { %9776 = vmatpush3.msra.mxu0 %v12950_v58  ;;  %v1632_v19 = vpop.xlane.xlu0 %1631 }
 0x303   : > { %4552 = vrot.lane.b32.xlu1 %v12679_v4, %s11728_s10  ;;  %v1710_v0 = vsub.f32 %v13208_v22, %v1632_v19  ;;  %9777 = vmatprep.subr.mxu0 %v12970_v41  ;;  %v13523_v61 = vpop.permute.xlu1 %4568 }
 0x304   : > { %9778 = vmatpush3.msra.mxu0 %v12970_v41  ;;  %17552 = vst [vmem:[#allocation195_spill] sm:$0xff] %v13523_v61 }
 0x305   : > { %v1750_v18 = vmul.f32 1.442695, %v1710_v0  ;;  %9819 = vmatprep.subr.msk.mxu0 %vm928_vm0, %v12978_v13 }
 0x306   : > { %v1638_v12 = vpop.xlane.xlu0 %1637 }
 0x307   : > { %10934 = vpow2.f32 %v1750_v18  ;;  %4556 = vrot.lane.b32.xlu1 %v12708_v62, %s11728_s10  ;;  %v1712_v20 = vsub.f32 %v17551_v48, %v1638_v12  ;;  %v17555_v18 = vld [vmem:[#allocation201_spill] sm:$0xff]  ;;  %v1706_v62 = vsub.f32 %v17556_v56, %v1620_v59  ;;  %v17557_v48 = vld [vmem:[#allocation46_spill] sm:$0xff] }
 0x308   : > { %10936 = vpow2.f32 %v1752_v57 }
 0x309   : > { %v1754_v19 = vmul.f32 1.442695, %v1712_v20  ;;  %v17559_v20 = vld [vmem:[#allocation204_spill] sm:$0xff] }
 0x30a   : > { %v1644_v22 = vpop.xlane.xlu0 %1643 }
 0x30b   : > { %10938 = vpow2.f32 %v1754_v19  ;;  %4560 = vrot.lane.b32.xlu1 %v17553_v60, %s11728_s10 }
 0x30e   : > { %v1650_v4 = vpop.xlane.xlu0 %1649 }
 0x30f   : > { %v1617_v0 = vpop.xlane.xlu1 %1616  ;;  %4721 = vrot.lane.b32.xlu1 %v17554_v42, %s11728_s10  ;;  %v1742_v42 = vmul.f32 1.442695, %v1706_v62 }
 0x310   : > { %v1705_v17 = vsub.f32 %v17555_v18, %v1617_v0  ;;  %v17561_v0 = vld [vmem:[#allocation185_spill] sm:$0xff] }
 0x311   : > { %v1708_v56 = vsub.f32 %v17561_v0, %v13489_v9  ;;  %v17567_v0 = vld [vmem:[#allocation139_spill] sm:$0xff] }
 0x312   : > { %v1740_v49 = vmul.f32 1.442695, %v1705_v17  ;;  %v17565_v17 = vld [vmem:[#allocation207_spill] sm:$0xff] }
 0x313   : > { %v1614_v23 = vpop.xlane.xlu1 %1613  ;;  %4725 = vrot.lane.b32.xlu1 %v17557_v48, %s11728_s10  ;;  %v17562_v48 = vld [vmem:[#allocation59_spill] sm:$0xff]  ;;  %v1746_v9 = vmul.f32 1.442695, %v1708_v56 }
 0x314   : > { %v13533_v57 = vpop.eup %10934  ;;  %v1704_v12 = vsub.f32 %v17559_v20, %v1614_v23  ;;  %v13536_v19 = vpop.xlane.xlu0 %1661  ;;  %v17563_v23 = vld [vmem:[#allocation115_spill] sm:$0xff] }
 0x315   : > { %17558 = vst [vmem:[#allocation201_spill] sm:$0xff] %v13533_v57  ;;  %v13538_v60 = vpop.eup %10936  ;;  %9751 = vmatprep.mubr.msk.f32.mxu1 %vm1605_vm1, %v13533_v57  ;;  %v17566_v57 = vld [vmem:[#allocation146_spill] sm:$0xff] }
 0x316   : > { %17560 = vst [vmem:[#allocation183_spill] sm:$0xff] %v13538_v60  ;;  %v1738_v59 = vmul.f32 1.442695, %v1704_v12  ;;  %9752 = vmatmul.mubr.msk.f32.vlgmr.msra.gmra.mxu1 %vm1605_vm1, %v13538_v60 }
 0x317   : > { %v1623_v18 = vpop.xlane.xlu1 %1622  ;;  %4729 = vrot.lane.b32.xlu1 %v17562_v48, %s11728_s10  ;;  %9792 = vmatpush3.msra.mxu1 %v17563_v23 }
 0x318   : > { %v13549_v20 = vpop.eup %10938  ;;  %10940 = vpow2.f32 %v1738_v59  ;;  %v1707_v29 = vsub.f32 %v17565_v17, %v1623_v18  ;;  %9793 = vmatprep.subr.mxu1 %v17566_v57  ;;  %v17568_v59 = vld [vmem:[#allocation209_spill] sm:$0xff]  ;;  %v17569_v17 = vld [vmem:[#allocation138_spill] sm:$0xff] }
 0x319   : > { %17564 = vst [vmem:[#allocation204_spill] sm:$0xff] %v13549_v20  ;;  %10942 = vpow2.f32 %v1740_v49  ;;  %9794 = vmatpush3.msra.mxu1 %v17566_v57  ;;  %v13554_v62 = vpop.xlane.xlu0 %1667  ;;  %9754 = vmatprep.mubr.msk.f32.mxu1 %vm1605_vm1, %v13549_v20  ;;  %v17570_v49 = vld [vmem:[#allocation198_spill] sm:$0xff] }
 0x31a   : > { %10944 = vpow2.f32 %v1742_v42  ;;  %v1744_v12 = vmul.f32 1.442695, %v1707_v29  ;;  %9795 = vmatprep.subr.mxu1 %v17567_v0  ;;  %v1714_v48 = vsub.f32 %v17570_v49, %v1644_v22  ;;  %v17571_v42 = vld [vmem:[#allocation149_spill] sm:$0xff] }
 0x31b   : > { %v1629_v60 = vpop.xlane.xlu1 %1628  ;;  %9796 = vmatpush3.msra.mxu1 %v17567_v0 }
 0x31c   : > { %10946 = vpow2.f32 %v1744_v12  ;;  %v1709_v18 = vsub.f32 %v17568_v59, %v1629_v60  ;;  %9797 = vmatprep.subr.mxu1 %v17569_v17  ;;  %v17572_v12 = vld [vmem:[#allocation154_spill] sm:$0xff]  ;;  %v1758_v60 = vmul.f32 1.442695, %v1714_v48  ;;  %v17573_v59 = vld [vmem:[#allocation200_spill] sm:$0xff] }
 0x31d   : > { %9798 = vmatpush3.msra.mxu1 %v17569_v17  ;;  %10948 = vpow2.f32 %v1746_v9  ;;  %v1716_v3 = vsub.f32 %v17573_v59, %v1650_v4 }
 0x31e   : > { %v1748_v47 = vmul.f32 1.442695, %v1709_v18  ;;  %v13564_v20 = vpop.xlane.xlu0 %1673  ;;  %9799 = vmatprep.subr.mxu1 %v17571_v42  ;;  %v17574_v18 = vld [vmem:[#allocation77_spill] sm:$0xff] }
 0x31f   : > { %v1641_v29 = vpop.xlane.xlu1 %1640  ;;  %9800 = vmatpush3.msra.mxu1 %v17571_v42  ;;  %v1762_v48 = vmul.f32 1.442695, %v1716_v3  ;;  %v17582_v3 = vld [vmem:[#allocation218_spill] sm:$0xff] }
 0x320   : > { %10950 = vpow2.f32 %v1748_v47  ;;  %v1713_v56 = vsub.f32 %v13285_v51, %v1641_v29  ;;  %9801 = vmatprep.subr.mxu1 %v17572_v12  ;;  %v17576_v47 = vld [vmem:[#allocation144_spill] sm:$0xff] }
 0x321   : > { %9802 = vmatpush3.msra.mxu1 %v17572_v12  ;;  %v17578_v29 = vld [vmem:[#allocation216_spill] sm:$0xff] }
 0x322   : > { %v1756_v22 = vmul.f32 1.442695, %v1713_v56  ;;  %v1680_v9 = vpop.xlane.xlu0 %1679  ;;  %9803 = vmatprep.subr.mxu1 %v17574_v18 }
 0x323   : > { %v1647_v49 = vpop.xlane.xlu1 %1646  ;;  %9804 = vmatpush3.msra.mxu1 %v17574_v18  ;;  %v1726_v4 = vsub.f32 %v17578_v29, %v1680_v9 }
 0x324   : > { %10952 = vpow2.f32 %v1756_v22  ;;  %v1715_v54 = vsub.f32 %v17575_v7, %v1647_v49  ;;  %9805 = vmatprep.subr.mxu1 %v17576_v47 }
 0x325   : > { %v13576_v51 = vpop.eup %10940  ;;  %10954 = vpow2.f32 %v1758_v60  ;;  %9806 = vmatpush3.msra.mxu1 %v17576_v47  ;;  %v17590_v47 = vld [vmem:[#allocation211_spill] sm:$0xff] }
 0x326   : > { %17577 = vst [vmem:[#allocation185_spill] sm:$0xff] %v13576_v51  ;;  %v13580_v56 = vpop.eup %10942  ;;  %v1760_v59 = vmul.f32 1.442695, %v1715_v54  ;;  %9726 = vmatprep.mubr.msk.f32.mxu0 %vm1605_vm1, %v13576_v51  ;;  %9847 = vmatprep.subr.msk.mxu1 %vm928_vm0, %v17580_v33  ;;  %v1782_v54 = vmul.f32 1.442695, %v1726_v4 }
 0x327   : > { %17579 = vst [vmem:[#allocation207_spill] sm:$0xff] %v13580_v56  ;;  %v13586_v7 = vpop.eup %10944  ;;  %9727 = vmatmul.mubr.msk.f32.gmra.mxu0 %vm1605_vm1, %v13580_v56  ;;  %v1653_v60 = vpop.xlane.xlu1 %1652 }
 0x328   : > { %17581 = vst [vmem:[#allocation209_spill] sm:$0xff] %v13586_v7  ;;  %10956 = vpow2.f32 %v1760_v59  ;;  %v1717_v22 = vsub.f32 %v17582_v3, %v1653_v60  ;;  %9729 = vmatprep.mubr.msk.f32.mxu0 %vm1605_vm1, %v13586_v7  ;;  %v17586_v60 = vld [vmem:[#allocation222_spill] sm:$0xff] }
 0x329   : > { %v13593_v9 = vpop.eup %10946  ;;  %10958 = vpow2.f32 %v1762_v48  ;;  %v17587_v7 = vld [vmem:[#allocation206_spill] sm:$0xff] }
 0x32a   : > { %17583 = vst [vmem:[#allocation198_spill] sm:$0xff] %v13593_v9  ;;  %v1764_v49 = vmul.f32 1.442695, %v1717_v22  ;;  %v13595_v29 = vpop.eup %10948  ;;  %v1720_v48 = vsub.f32 %v17587_v7, %v13536_v19 }
 0x32b   : > { %17584 = vst [vmem:[#allocation200_spill] sm:$0xff] %v13595_v29  ;;  %9730 = vmatmul.mubr.msk.f32.gmra.mxu0 %vm1605_vm1, %v13593_v9  ;;  %v1659_v51 = vpop.xlane.xlu1 %1658 }
 0x32c   : > { %10960 = vpow2.f32 %v1764_v49  ;;  %9732 = vmatprep.mubr.msk.f32.mxu0 %vm1605_vm1, %v13595_v29  ;;  %v1719_v3 = vsub.f32 %v17586_v60, %v1659_v51  ;;  %v1770_v29 = vmul.f32 1.442695, %v1720_v48 }
 0x32d   : > { %v13601_v59 = vpop.eup %10950  ;;  %10962 = vpow2.f32 %v1782_v54  ;;  %v1722_v54 = vsub.f32 %v17590_v47, %v13554_v62  ;;  %v17593_v62 = vld [vmem:[#allocation213_spill] sm:$0xff] }
 0x32e   : > { %17585 = vst [vmem:[#allocation215_spill] sm:$0xff] %v13601_v59  ;;  %v1768_v49 = vmul.f32 1.442695, %v1719_v3  ;;  %v1724_v47 = vsub.f32 %v17593_v62, %v13564_v20 }
 0x32f   : > { %9733 = vmatmul.mubr.msk.f32.gmra.mxu0 %vm1605_vm1, %v13601_v59  ;;  %v1656_v4 = vpop.xlane.xlu1 %1655  ;;  %v1774_v60 = vmul.f32 1.442695, %v1722_v54 }
 0x330   : > { %v1718_v22 = vsub.f32 %v13332_v10, %v1656_v4 }
 0x331   : > { %v13609_v9 = vpop.eup %10952 }
 0x332   : > { %17588 = vst [vmem:[#allocation216_spill] sm:$0xff] %v13609_v9  ;;  %v13611_v56 = vpop.eup %10954  ;;  %v1766_v12 = vmul.f32 1.442695, %v1718_v22  ;;  %9755 = vmatmul.mubr.msk.f32.gmra.mxu1 %vm1605_vm1, %v13609_v9 }
 0x333   : > { %17589 = vst [vmem:[#allocation173_spill] sm:$0xff] %v13611_v56  ;;  %9757 = vmatprep.mubr.msk.f32.mxu1 %vm1605_vm1, %v13611_v56  ;;  %v1665_v19 = vpop.xlane.xlu1 %1664 }
 0x334   : > { %10964 = vpow2.f32 %v1766_v12  ;;  %v1721_v10 = vsub.f32 %v13338_v15, %v1665_v19 }
 0x335   : > { %v13620_v51 = vpop.eup %10956  ;;  %10966 = vpow2.f32 %v1768_v49 }
 0x336   : > { %17591 = vst [vmem:[#allocation218_spill] sm:$0xff] %v13620_v51  ;;  %v13622_v7 = vpop.eup %10958  ;;  %10968 = vpow2.f32 %v1770_v29  ;;  %v1772_v3 = vmul.f32 1.442695, %v1721_v10  ;;  %9758 = vmatmul.mubr.msk.f32.gmra.mxu1 %vm1605_vm1, %v13620_v51  ;;  %v1778_v29 = vmul.f32 1.442695, %v1724_v47  ;;  %v17598_v47 = vld [vmem:[#allocation220_spill] sm:$0xff] }
 0x337   : > { %17592 = vst [vmem:[#allocation222_spill] sm:$0xff] %v13622_v7  ;;  %v1671_v48 = vpop.xlane.xlu1 %1670  ;;  %9760 = vmatprep.mubr.msk.f32.mxu1 %vm1605_vm1, %v13622_v7  ;;  %v11451_v51 = vld [vmem:[#allocation8 + $0x48] sm:$0xff]  ;;  %v11457_v7 = vld [vmem:[#allocation8 + $0x78] sm:$0xff] }
 0x338   : > { %10970 = vpow2.f32 %v1772_v3  ;;  %v1723_v15 = vsub.f32 %v13349_v32, %v1671_v48  ;;  %v1689_v32 = vpop.xlane.xlu0 %1688 }
 0x339   : > { %v13631_v12 = vpop.eup %10960  ;;  %10972 = vpow2.f32 %v1774_v60  ;;  %v1729_v3 = vsub.f32 %v17598_v47, %v1689_v32 }
 0x33a   : > { %17594 = vst [vmem:[#allocation206_spill] sm:$0xff] %v13631_v12  ;;  %v13633_v4 = vpop.eup %10962  ;;  %v1776_v22 = vmul.f32 1.442695, %v1723_v15  ;;  %9761 = vmatmul.mubr.msk.f32.gmra.mxu1 %vm1605_vm1, %v13631_v12 }
 0x33b   : > { %17595 = vst [vmem:[#allocation211_spill] sm:$0xff] %v13633_v4  ;;  %v1677_v20 = vpop.xlane.xlu1 %1676  ;;  %9807 = vmatprep.mubr.msk.f32.mxu1 %vm1605_vm1, %v13633_v4 }
 0x33c   : > { %10974 = vpow2.f32 %v1776_v22  ;;  %v1725_v49 = vsub.f32 %v13356_v45, %v1677_v20  ;;  %v17601_v22 = vld [vmem:[#allocation124_spill] sm:$0xff]  ;;  %v1788_v20 = vmul.f32 1.442695, %v1729_v3 }
 0x33d   : > { %10976 = vpow2.f32 %v1778_v29 }
 0x33e   : > { %v1780_v54 = vmul.f32 1.442695, %v1725_v49 }
 0x33f   : > { %v1683_v19 = vpop.xlane.xlu1 %1682 }
 0x340   : > { %10978 = vpow2.f32 %v1780_v54  ;;  %v1727_v10 = vsub.f32 %v13363_v24, %v1683_v19  ;;  %v1698_v19 = vpop.xlane.xlu0 %1697 }
 0x341   : > { %v13641_v60 = vpop.eup %10964  ;;  %v1732_v3 = vsub.f32 %v13336_v63, %v1698_v19 }
 0x342   : > { %17596 = vst [vmem:[#allocation213_spill] sm:$0xff] %v13641_v60  ;;  %v13643_v62 = vpop.eup %10966  ;;  %v1784_v48 = vmul.f32 1.442695, %v1727_v10  ;;  %9779 = vmatprep.mubr.msk.f32.mxu0 %vm1605_vm1, %v13641_v60 }
 0x343   : > { %17597 = vst [vmem:[#allocation247_spill] sm:$0xff] %v13643_v62  ;;  %v13648_v15 = vpop.eup %10968  ;;  %9780 = vmatmul.mubr.msk.f32.vlgmr.msra.gmra.mxu0 %vm1605_vm1, %v13643_v62  ;;  %v1686_v45 = vpop.xlane.xlu1 %1685  ;;  %v1794_v63 = vmul.f32 1.442695, %v1732_v3  ;;  %v11450_v62 = vld [vmem:[#allocation8 + $0x40] sm:$0xff] }
 0x344   : > { %17599 = vst [vmem:[#allocation220_spill] sm:$0xff] %v13648_v15  ;;  %10980 = vpow2.f32 %v1784_v48  ;;  %9820 = vmatpush3.xpose.msk.msra.mxu0 %vm928_vm0, %v12978_v13  ;;  %v1728_v24 = vsub.f32 %v13373_v43, %v1686_v45  ;;  %9782 = vmatprep.mubr.msk.f32.mxu0 %vm1605_vm1, %v13648_v15  ;;  %v17604_v43 = vld [vmem:[#allocation127_spill] sm:$0xff] }
 0x345   : > { %v13657_v29 = vpop.eup %10970  ;;  %9821 = vmatprep.subr.msk.mxu0 %vm928_vm0, %v17601_v22 }
 0x346   : > { %17600 = vst [vmem:[#allocation248_spill] sm:$0xff] %v13657_v29  ;;  %v1786_v49 = vmul.f32 1.442695, %v1728_v24  ;;  %v13661_v54 = vpop.eup %10972 }
 0x347   : > { %17602 = vst [vmem:[#allocation124_spill] sm:$0xff] %v13661_v54  ;;  %9783 = vmatmul.mubr.msk.f32.gmra.mxu0 %vm1605_vm1, %v13657_v29  ;;  %v1695_v32 = vpop.xlane.xlu1 %1694 }
 0x348   : > { %10982 = vpow2.f32 %v1786_v49  ;;  %9822 = vmatpush3.xpose.msk.msra.mxu0 %vm928_vm0, %v17601_v22  ;;  %9785 = vmatprep.mubr.msk.f32.mxu0 %vm1605_vm1, %v13661_v54  ;;  %v1731_v10 = vsub.f32 %v13377_v39, %v1695_v32  ;;  %v17607_v22 = vld [vmem:[#allocation112_spill] sm:$0xff] }
 0x349   : > { %v13669_v13 = vpop.eup %10974  ;;  %9823 = vmatprep.subr.msk.mxu0 %vm928_vm0, %v17604_v43  ;;  %10984 = vpow2.f32 %v1788_v20  ;;  %v17608_v32 = vld [vmem:[#allocation92_spill] sm:$0xff] }
 0x34a   : > { %17603 = vst [vmem:[#allocation249_spill] sm:$0xff] %v13669_v13  ;;  %v13674_v47 = vpop.eup %10976  ;;  %v1792_v39 = vmul.f32 1.442695, %v1731_v10 }
 0x34b   : > { %17605 = vst [vmem:[#allocation127_spill] sm:$0xff] %v13674_v47  ;;  %9786 = vmatmul.mubr.msk.f32.gmra.mxu0 %vm1605_vm1, %v13669_v13  ;;  %v1692_v48 = vpop.xlane.xlu1 %1691  ;;  %v11444_v13 = vld [vmem:[#allocation8 + $0x18] sm:$0xff] }
 0x34c   : > { %9824 = vmatpush3.xpose.msk.msra.mxu0 %vm928_vm0, %v17604_v43  ;;  %v1730_v45 = vsub.f32 %v13389_v36, %v1692_v48  ;;  %9788 = vmatprep.mubr.msk.f32.mxu0 %vm1605_vm1, %v13674_v47  ;;  %v17610_v43 = vld [vmem:[#allocation117_spill] sm:$0xff]  ;;  %v17613_v48 = vld [vmem:[#allocation114_spill] sm:$0xff] }
 0x34d   : > { %v13684_v24 = vpop.eup %10978  ;;  %9825 = vmatprep.subr.msk.mxu0 %vm928_vm0, %v17607_v22 }
 0x34e   : > { %17606 = vst [vmem:[#allocation250_spill] sm:$0xff] %v13684_v24  ;;  %v1790_v20 = vmul.f32 1.442695, %v1730_v45 }
 0x34f   : > { %9789 = vmatmul.mubr.msk.f32.gmra.mxu0 %vm1605_vm1, %v13684_v24  ;;  %v1701_v49 = vpop.xlane.xlu1 %1700 }
 0x350   : > { %10986 = vpow2.f32 %v1790_v20  ;;  %9826 = vmatpush3.xpose.msk.msra.mxu0 %vm928_vm0, %v17607_v22  ;;  %v1733_v36 = vsub.f32 %v13393_v27, %v1701_v49  ;;  %9835 = vmatprep.mubr.msk.f32.mxu0 %vm928_vm0, %v17608_v32  ;;  %v17611_v27 = vld [vmem:[#allocation169_spill] sm:$0xff]  ;;  %v17616_v22 = vld [vmem:[#allocation102_spill] sm:$0xff]  ;;  %v17622_v32 = vld [vmem:[#allocation155_spill] sm:$0xff] }
 0x351   : > { %v13695_v19 = vpop.eup %10980  ;;  %9827 = vmatprep.subr.msk.mxu0 %vm928_vm0, %v17610_v43  ;;  %10988 = vpow2.f32 %v1792_v39  ;;  %v17617_v39 = vld [vmem:[#allocation157_spill] sm:$0xff] }
 0x352   : > { %17609 = vst [vmem:[#allocation112_spill] sm:$0xff] %v13695_v19  ;;  %v1796_v10 = vmul.f32 1.442695, %v1733_v36  ;;  %9808 = vmatmul.mubr.msk.f32.vlgmr.msra.gmra.mxu1 %vm1605_vm1, %v13695_v19  ;;  %10990 = vpow2.f32 %v1794_v63  ;;  %v17619_v63 = vld [vmem:[#allocation98_spill] sm:$0xff] }
 0x353   : > { %9848 = vmatpush3.xpose.msk.msra.mxu1 %vm928_vm0, %v17580_v33  ;;  %v17615_v33 = vld [vmem:[#allocation163_spill] sm:$0xff] }
 0x354   : > { %9828 = vmatpush3.xpose.msk.msra.mxu0 %vm928_vm0, %v17610_v43  ;;  %9849 = vmatprep.subr.msk.mxu1 %vm928_vm0, %v17611_v27  ;;  %10992 = vpow2.f32 %v1796_v10  ;;  %v17624_v10 = vld [vmem:[#allocation106_spill] sm:$0xff] }
 0x355   : > { %v13707_v3 = vpop.eup %10982  ;;  %9829 = vmatprep.subr.msk.mxu0 %vm928_vm0, %v17613_v48 }
 0x356   : > { %17612 = vst [vmem:[#allocation92_spill] sm:$0xff] %v13707_v3  ;;  %9810 = vmatprep.mubr.msk.f32.mxu1 %vm1605_vm1, %v13707_v3  ;;  %v13713_v45 = vpop.eup %10984 }
 0x357   : > { %17614 = vst [vmem:[#allocation117_spill] sm:$0xff] %v13713_v45  ;;  %9850 = vmatpush3.xpose.msk.msra.mxu1 %vm928_vm0, %v17611_v27  ;;  %v17625_v27 = vld [vmem:[#allocation96_spill] sm:$0xff] }
 0x358   : > { %9811 = vmatmul.mubr.msk.f32.gmra.mxu1 %vm1605_vm1, %v13713_v45  ;;  %9830 = vmatpush3.xpose.msk.msra.mxu0 %vm928_vm0, %v17613_v48  ;;  %v17626_v48 = vld [vmem:[#allocation109_spill] sm:$0xff] }
 0x359   : > { %9851 = vmatprep.subr.msk.mxu1 %vm928_vm0, %v17615_v33  ;;  %9831 = vmatprep.subr.msk.mxu0 %vm928_vm0, %v17616_v22 }
 0x35b   : > { %9852 = vmatpush3.xpose.msk.msra.mxu1 %vm928_vm0, %v17615_v33  ;;  %v17627_v33 = vld [vmem:[#allocation153_spill] sm:$0xff] }
 0x35c   : > { %9832 = vmatpush3.xpose.msk.msra.mxu0 %vm928_vm0, %v17616_v22  ;;  %9853 = vmatprep.subr.msk.mxu1 %vm928_vm0, %v17617_v39  ;;  %v17628_v22 = vld [vmem:[#allocation140_spill] sm:$0xff] }
 0x35d   : > { %v13731_v20 = vpop.eup %10986  ;;  %9833 = vmatprep.subr.msk.mxu0 %vm928_vm0, %v17619_v63 }
 0x35e   : > { %17618 = vst [vmem:[#allocation169_spill] sm:$0xff] %v13731_v20  ;;  %9813 = vmatprep.mubr.msk.f32.mxu1 %vm1605_vm1, %v13731_v20  ;;  %v13737_v49 = vpop.eup %10988 }
 0x35f   : > { %17620 = vst [vmem:[#allocation114_spill] sm:$0xff] %v13737_v49  ;;  %9854 = vmatpush3.xpose.msk.msra.mxu1 %vm928_vm0, %v17617_v39  ;;  %v13741_v36 = vpop.eup %10990  ;;  %v17629_v39 = vld [vmem:[#allocation93_spill] sm:$0xff] }
 0x360   : > { %17621 = vst [vmem:[#allocation163_spill] sm:$0xff] %v13741_v36  ;;  %9814 = vmatmul.mubr.msk.f32.gmra.mxu1 %vm1605_vm1, %v13737_v49  ;;  %9834 = vmatpush3.xpose.msk.msra.mxu0 %vm928_vm0, %v17619_v63  ;;  %v17630_v63 = vld [vmem:[#allocation108_spill] sm:$0xff] }
 0x361   : > { %9855 = vmatprep.subr.msk.mxu1 %vm928_vm0, %v17622_v32  ;;  %9816 = vmatprep.mubr.msk.f32.mxu1 %vm1605_vm1, %v13741_v36  ;;  %v13751_v43 = vpop.eup %10992 }
 0x362   : > { %17623 = vst [vmem:[#allocation102_spill] sm:$0xff] %v13751_v43  ;;  %9875 = vmatprep.subr.msk.mxu0 %vm928_vm0, %v17624_v10 }
 0x363   : > { %9836 = vmatmul.mubr.msk.f32.vlgmr.msra.gmra.mxu0 %vm928_vm0, %v17625_v27  ;;  %9856 = vmatpush3.xpose.msk.msra.mxu1 %vm928_vm0, %v17622_v32  ;;  %v17631_v32 = vld [vmem:[#allocation122_spill] sm:$0xff]  ;;  %v17632_v27 = vld [vmem:[#allocation148_spill] sm:$0xff] }
 0x364   : > { %9838 = vmatprep.mubr.msk.f32.mxu0 %vm928_vm0, %v17626_v48  ;;  %9857 = vmatprep.subr.msk.mxu1 %vm928_vm0, %v17627_v33  ;;  %v17634_v48 = vld [vmem:[#allocation118_spill] sm:$0xff] }
 0x365   : > { %9876 = vmatpush3.xpose.msk.msra.mxu0 %vm928_vm0, %v17624_v10  ;;  %9817 = vmatmul.mubr.msk.f32.gmra.mxu1 %vm1605_vm1, %v13751_v43  ;;  %v17633_v10 = vld [vmem:[#allocation197_spill] sm:$0xff]  ;;  %v17682_v43 = vld [vmem:[#allocation134_spill] sm:$0xff] }
 0x366   : > { %9863 = vmatprep.mubr.msk.f32.mxu1 %vm928_vm0, %v17628_v22  ;;  %9877 = vmatprep.subr.msk.mxu0 %vm928_vm0, %v17629_v39  ;;  %v17635_v22 = vld [vmem:[#allocation132_spill] sm:$0xff] }
 0x367   : > { %9839 = vmatmul.mubr.msk.f32.gmra.mxu0 %vm928_vm0, %v17630_v63  ;;  %9858 = vmatpush3.xpose.msk.msra.mxu1 %vm928_vm0, %v17627_v33  ;;  %v17636_v33 = vld [vmem:[#allocation145_spill] sm:$0xff]  ;;  %v17637_v63 = vld [vmem:[#allocation186_spill] sm:$0xff] }
 0x368   : > { %9841 = vmatprep.mubr.msk.f32.mxu0 %vm928_vm0, %v17631_v32  ;;  %9859 = vmatprep.subr.msk.mxu1 %vm928_vm0, %v17632_v27  ;;  %v17639_v32 = vld [vmem:[#allocation168_spill] sm:$0xff] }
 0x369   : > { %9878 = vmatpush3.xpose.msk.msra.mxu0 %vm928_vm0, %v17629_v39  ;;  %v17638_v39 = vld [vmem:[#allocation128_spill] sm:$0xff] }
 0x36a   : > { %9879 = vmatprep.subr.msk.mxu0 %vm928_vm0, %v17633_v10 }
 0x36b   : > { %9842 = vmatmul.mubr.msk.f32.gmra.mxu0 %vm928_vm0, %v17634_v48  ;;  %9860 = vmatpush3.xpose.msk.msra.mxu1 %vm928_vm0, %v17632_v27  ;;  %v17640_v27 = vld [vmem:[#allocation151_spill] sm:$0xff]  ;;  %v17641_v48 = vld [vmem:[#allocation181_spill] sm:$0xff] }
 0x36c   : > { %9844 = vmatprep.mubr.msk.f32.mxu0 %vm928_vm0, %v17635_v22  ;;  %9861 = vmatprep.subr.msk.mxu1 %vm928_vm0, %v17636_v33  ;;  %v17643_v22 = vld [vmem:[#allocation143_spill] sm:$0xff] }
 0x36d   : > { %9880 = vmatpush3.xpose.msk.msra.mxu0 %vm928_vm0, %v17633_v10  ;;  %v17642_v10 = vld [vmem:[#allocation137_spill] sm:$0xff] }
 0x36e   : > { %9881 = vmatprep.subr.msk.mxu0 %vm928_vm0, %v17637_v63 }
 0x36f   : > { %9845 = vmatmul.mubr.msk.f32.gmra.mxu0 %vm928_vm0, %v17638_v39  ;;  %9862 = vmatpush3.xpose.msk.msra.mxu1 %vm928_vm0, %v17636_v33  ;;  %v17644_v33 = vld [vmem:[#allocation135_spill] sm:$0xff] }
 0x370   : > { %9891 = vmatprep.mubr.msk.f32.mxu0 %vm928_vm0, %v17639_v32  ;;  %9903 = vmatprep.subr.msk.mxu1 %vm928_vm0, %v17640_v27  ;;  %v17645_v39 = vld [vmem:[#allocation187_spill] sm:$0xff]  ;;  %v17647_v32 = vld [vmem:[#allocation160_spill] sm:$0xff] }
 0x371   : > { %9882 = vmatpush3.xpose.msk.msra.mxu0 %vm928_vm0, %v17637_v63  ;;  %v17646_v63 = vld [vmem:[#allocation156_spill] sm:$0xff] }
 0x372   : > { %9883 = vmatprep.subr.msk.mxu0 %vm928_vm0, %v17641_v48  ;;  %9864 = vmatmul.mubr.msk.f32.vlgmr.msra.gmra.mxu1 %vm928_vm0, %v17642_v10  ;;  %v17648_v10 = vld [vmem:[#allocation133_spill] sm:$0xff] }
 0x373   : > { %9866 = vmatprep.mubr.msk.f32.mxu1 %vm928_vm0, %v17643_v22  ;;  %9904 = vmatpush3.xpose.msk.msra.mxu1 %vm928_vm0, %v17640_v27  ;;  %v17649_v27 = vld [vmem:[#allocation177_spill] sm:$0xff]  ;;  %v17651_v22 = vld [vmem:[#allocation167_spill] sm:$0xff] }
 0x374   : > { %9905 = vmatprep.subr.msk.mxu1 %vm928_vm0, %v17644_v33 }
 0x375   : > { %9884 = vmatpush3.xpose.msk.msra.mxu0 %vm928_vm0, %v17641_v48  ;;  %v17650_v48 = vld [vmem:[#allocation161_spill] sm:$0xff] }
 0x376   : > { %9885 = vmatprep.subr.msk.mxu0 %vm928_vm0, %v17645_v39  ;;  %9867 = vmatmul.mubr.msk.f32.gmra.mxu1 %vm928_vm0, %v17646_v63  ;;  %v17652_v63 = vld [vmem:[#allocation126_spill] sm:$0xff] }
 0x377   : > { %9869 = vmatprep.mubr.msk.f32.mxu1 %vm928_vm0, %v17647_v32  ;;  %9906 = vmatpush3.xpose.msk.msra.mxu1 %vm928_vm0, %v17644_v33  ;;  %v17653_v33 = vld [vmem:[#allocation170_spill] sm:$0xff]  ;;  %v17655_v32 = vld [vmem:[#allocation111_spill] sm:$0xff] }
 0x378   : > { %9907 = vmatprep.subr.msk.mxu1 %vm928_vm0, %v17648_v10 }
 0x379   : > { %9886 = vmatpush3.xpose.msk.msra.mxu0 %vm928_vm0, %v17645_v39  ;;  %v17654_v39 = vld [vmem:[#allocation166_spill] sm:$0xff] }
 0x37a   : > { %9887 = vmatprep.subr.msk.mxu0 %vm928_vm0, %v17649_v27  ;;  %9870 = vmatmul.mubr.msk.f32.gmra.mxu1 %vm928_vm0, %v17650_v48  ;;  %v17656_v48 = vld [vmem:[#allocation129_spill] sm:$0xff] }
 0x37b   : > { %9872 = vmatprep.mubr.msk.f32.mxu1 %vm928_vm0, %v17651_v22  ;;  %9908 = vmatpush3.xpose.msk.msra.mxu1 %vm928_vm0, %v17648_v10  ;;  %v17657_v10 = vld [vmem:[#allocation164_spill] sm:$0xff] }
 0x37c   : > { %9909 = vmatprep.subr.msk.mxu1 %vm928_vm0, %v17652_v63  ;;  %v17659_v22 = vld [vmem:[#allocation116_spill] sm:$0xff] }
 0x37d   : > { %9888 = vmatpush3.xpose.msk.msra.mxu0 %vm928_vm0, %v17649_v27  ;;  %v17658_v27 = vld [vmem:[#allocation176_spill] sm:$0xff] }
 0x37e   : > { %9889 = vmatprep.subr.msk.mxu0 %vm928_vm0, %v17653_v33  ;;  %9873 = vmatmul.mubr.msk.f32.gmra.mxu1 %vm928_vm0, %v17654_v39  ;;  %v17661_v39 = vld [vmem:[#allocation165_spill] sm:$0xff] }
 0x37f   : > { %9910 = vmatpush3.xpose.msk.msra.mxu1 %vm928_vm0, %v17652_v63  ;;  %9919 = vmatprep.mubr.msk.f32.mxu1 %vm928_vm0, %v17655_v32  ;;  %v17660_v63 = vld [vmem:[#allocation182_spill] sm:$0xff] }
 0x380   : > { %9911 = vmatprep.subr.msk.mxu1 %vm928_vm0, %v17656_v48  ;;  %v17663_v32 = vld [vmem:[#allocation162_spill] sm:$0xff] }
 0x381   : > { %9890 = vmatpush3.xpose.msk.msra.mxu0 %vm928_vm0, %v17653_v33  ;;  %v17662_v33 = vld [vmem:[#allocation178_spill] sm:$0xff] }
 0x382   : > { %9931 = vmatprep.subr.mxu0 %v17657_v10 }
 0x383   : > { %9912 = vmatpush3.xpose.msk.msra.mxu1 %vm928_vm0, %v17656_v48  ;;  %v17664_v48 = vld [vmem:[#allocation189_spill] sm:$0xff] }
 0x384   : > { %9892 = vmatmul.mubr.msk.f32.vlgmr.msra.gmra.mxu0 %vm928_vm0, %v17658_v27  ;;  %9913 = vmatprep.subr.msk.mxu1 %vm928_vm0, %v17659_v22  ;;  %v17665_v27 = vld [vmem:[#allocation120_spill] sm:$0xff] }
 0x385   : > { %9894 = vmatprep.mubr.msk.f32.mxu0 %vm928_vm0, %v17660_v63  ;;  %9932 = vmatpush3.msra.mxu0 %v17657_v10  ;;  %v17666_v10 = vld [vmem:[#allocation159_spill] sm:$0xff]  ;;  %v17668_v63 = vld [vmem:[#allocation152_spill] sm:$0xff] }
 0x386   : > { %9933 = vmatprep.subr.mxu0 %v17661_v39 }
 0x387   : > { %9934 = vmatpush3.msra.mxu0 %v17661_v39  ;;  %9914 = vmatpush3.xpose.msk.msra.mxu1 %vm928_vm0, %v17659_v22  ;;  %v17667_v22 = vld [vmem:[#allocation188_spill] sm:$0xff]  ;;  %v17669_v39 = vld [vmem:[#allocation95_spill] sm:$0xff] }
 0x388   : > { %9895 = vmatmul.mubr.msk.f32.gmra.mxu0 %vm928_vm0, %v17662_v33  ;;  %9935 = vmatprep.subr.mxu0 %v17663_v32  ;;  %v17670_v33 = vld [vmem:[#allocation104_spill] sm:$0xff] }
 0x389   : > { %9897 = vmatprep.mubr.msk.f32.mxu0 %vm928_vm0, %v17664_v48  ;;  %9936 = vmatpush3.msra.mxu0 %v17663_v32  ;;  %v17671_v32 = vld [vmem:[#allocation158_spill] sm:$0xff]  ;;  %v17672_v48 = vld [vmem:[#allocation101_spill] sm:$0xff] }
 0x38a   : > { %9915 = vmatprep.subr.msk.mxu1 %vm928_vm0, %v17665_v27  ;;  %9937 = vmatprep.subr.mxu0 %v17666_v10 }
 0x38b   : > { %9938 = vmatpush3.msra.mxu0 %v17666_v10  ;;  %9916 = vmatpush3.xpose.msk.msra.mxu1 %vm928_vm0, %v17665_v27  ;;  %v17673_v27 = vld [vmem:[#allocation147_spill] sm:$0xff] }
 0x38c   : > { %9898 = vmatmul.mubr.msk.f32.gmra.mxu0 %vm928_vm0, %v17667_v22  ;;  %9939 = vmatprep.subr.mxu0 %v17668_v63  ;;  %v17674_v10 = vld [vmem:[#allocation175_spill] sm:$0xff]  ;;  %v17675_v22 = vld [vmem:[#allocation150_spill] sm:$0xff] }
 0x38d   : > { %9900 = vmatprep.mubr.msk.f32.mxu0 %vm928_vm0, %v17669_v39  ;;  %9940 = vmatpush3.msra.mxu0 %v17668_v63  ;;  %v17676_v63 = vld [vmem:[#allocation110_spill] sm:$0xff]  ;;  %v17677_v39 = vld [vmem:[#allocation125_spill] sm:$0xff] }
 0x38e   : > { %9917 = vmatprep.subr.msk.mxu1 %vm928_vm0, %v17670_v33  ;;  %9941 = vmatprep.subr.mxu0 %v17671_v32 }
 0x38f   : > { %9942 = vmatpush3.msra.mxu0 %v17671_v32  ;;  %9918 = vmatpush3.xpose.msk.msra.mxu1 %vm928_vm0, %v17670_v33  ;;  %v17678_v33 = vld [vmem:[#allocation193_spill] sm:$0xff]  ;;  %v17679_v32 = vld [vmem:[#allocation180_spill] sm:$0xff] }
 0x390   : > { %9901 = vmatmul.mubr.msk.f32.gmra.mxu0 %vm928_vm0, %v17672_v48  ;;  %9943 = vmatprep.subr.mxu0 %v17673_v27  ;;  %v17680_v48 = vld [vmem:[#allocation121_spill] sm:$0xff] }
 0x391   : > { %9944 = vmatpush3.msra.mxu0 %v17673_v27  ;;  %9959 = vmatprep.subr.mxu1 %v17674_v10  ;;  %v17681_v27 = vld [vmem:[#allocation174_spill] sm:$0xff] }
 0x392   : > { %9945 = vmatprep.subr.mxu0 %v17675_v22  ;;  %9920 = vmatmul.mubr.msk.f32.vlgmr.msra.gmra.mxu1 %vm928_vm0, %v17676_v63  ;;  %v17685_v63 = vld [vmem:[#allocation171_spill] sm:$0xff] }
 0x393   : > { %9946 = vmatpush3.msra.mxu0 %v17675_v22  ;;  %9922 = vmatprep.mubr.msk.f32.mxu1 %vm928_vm0, %v17677_v39  ;;  %v17683_v22 = vld [vmem:[#allocation172_spill] sm:$0xff]  ;;  %v17686_v39 = vld [vmem:[#allocation142_spill] sm:$0xff] }
 0x394   : > { %9960 = vmatpush3.msra.mxu1 %v17674_v10  ;;  %9987 = vmatprep.subr.mxu0 %v17678_v33  ;;  %v17684_v10 = vld [vmem:[#allocation131_spill] sm:$0xff] }
 0x395   : > { %9961 = vmatprep.subr.mxu1 %v17679_v32 }
 0x396   : > { %9962 = vmatpush3.msra.mxu1 %v17679_v32  ;;  %v17687_v32 = vld [vmem:[#allocation196_spill] sm:$0xff] }
 0x397   : > { %9923 = vmatmul.mubr.msk.f32.gmra.mxu1 %vm928_vm0, %v17680_v48  ;;  %9963 = vmatprep.subr.mxu1 %v17681_v27  ;;  %v17689_v48 = vld [vmem:[#allocation190_spill] sm:$0xff] }
 0x398   : > { %9925 = vmatprep.mubr.msk.f32.mxu1 %vm928_vm0, %v17682_v43  ;;  %9964 = vmatpush3.msra.mxu1 %v17681_v27  ;;  %v17688_v43 = vld [vmem:[#allocation141_spill] sm:$0xff]  ;;  %v17690_v27 = vld [vmem:[#allocation203_spill] sm:$0xff] }
 0x399   : > { %9965 = vmatprep.subr.mxu1 %v17683_v22 }
 0x39a   : > { %9966 = vmatpush3.msra.mxu1 %v17683_v22  ;;  %v17691_v22 = vld [vmem:[#allocation210_spill] sm:$0xff] }
 0x39b   : > { %9926 = vmatmul.mubr.msk.f32.gmra.mxu1 %vm928_vm0, %v17684_v10  ;;  %9967 = vmatprep.subr.mxu1 %v17685_v63 }
 0x39c   : > { %9928 = vmatprep.mubr.msk.f32.mxu1 %vm928_vm0, %v17686_v39  ;;  %9968 = vmatpush3.msra.mxu1 %v17685_v63 }
 0x39d   : > { %9969 = vmatprep.subr.mxu1 %v17687_v32 }
 0x39e   : > { %9970 = vmatpush3.msra.mxu1 %v17687_v32 }
 0x39f   : > { %9929 = vmatmul.mubr.msk.f32.gmra.mxu1 %vm928_vm0, %v17688_v43  ;;  %9971 = vmatprep.subr.mxu1 %v17689_v48 }
 0x3a0   : > { %9972 = vmatpush3.msra.mxu1 %v17689_v48 }
 0x3a1   : > { %9973 = vmatprep.subr.mxu1 %v17690_v27 }
 0x3a2   : > { %9974 = vmatpush3.msra.mxu1 %v17690_v27 }
 0x3a3   : > { %10015 = vmatprep.subr.mxu1 %v17691_v22 }
 0x3b5   : > { %v13929_v10 = vpop.f32.mrf.mxu0 }
 0x3b6   : > { %17692 = vst [vmem:[#allocation157_spill] sm:$0xff] %v13929_v10 }
 0x3b7   : > { %v13931_v63 = vpop.f32.mrf.mxu0 }
 0x3b8   : > { %17693 = vst [vmem:[#allocation98_spill] sm:$0xff] %v13931_v63  ;;  %v11445_v63 = vld [vmem:[#allocation8 + $0x28] sm:$0xff] }
 0x3d6   : > { %v13939_v43 = vpop.f32.mrf.mxu1 }
 0x3d7   : > { %17697 = vst [vmem:[#allocation109_spill] sm:$0xff] %v13939_v43 }
 0x3d8   : > { %v13943_v48 = vpop.f32.mrf.mxu1 }
 0x3d9   : > { %17699 = vst [vmem:[#allocation140_spill] sm:$0xff] %v13943_v48 }
 0x3e7   : > { %v13933_v39 = vpop.f32.mrf.mxu0 }
 0x3e8   : > { %17694 = vst [vmem:[#allocation155_spill] sm:$0xff] %v13933_v39 }
 0x3e9   : > { %v13935_v32 = vpop.f32.mrf.mxu0 }
 0x3ea   : > { %17695 = vst [vmem:[#allocation106_spill] sm:$0xff] %v13935_v32 }
 0x3eb   : > { %v13937_v36 = vpop.f32.mrf.mxu0 }
 0x3ec   : > { %17696 = vst [vmem:[#allocation96_spill] sm:$0xff] %v13937_v36 }
 0x3ed   : > { %v13941_v49 = vpop.f32.mrf.mxu0 }
 0x3ee   : > { %17698 = vst [vmem:[#allocation153_spill] sm:$0xff] %v13941_v49 }
 0x3ef   : > { %v13945_v20 = vpop.f32.mrf.mxu0 }
 0x3f0   : > { %17700 = vst [vmem:[#allocation93_spill] sm:$0xff] %v13945_v20 }
 0x3f1   : > { %v13949_v45 = vpop.f32.mrf.mxu0 }
 0x3f2   : > { %v13947_v27 = vpop.f32.mrf.mxu1  ;;  %17702 = vst [vmem:[#allocation122_spill] sm:$0xff] %v13949_v45 }
 0x3f3   : > { %17701 = vst [vmem:[#allocation108_spill] sm:$0xff] %v13947_v27 }
 0x3f4   : > { %v13951_v3 = vpop.f32.mrf.mxu1 }
 0x3f5   : > { %17703 = vst [vmem:[#allocation148_spill] sm:$0xff] %v13951_v3 }
 0x3f6   : > { %v13955_v4 = vpop.f32.mrf.mxu1 }
 0x3f7   : > { %17705 = vst [vmem:[#allocation118_spill] sm:$0xff] %v13955_v4 }
 0x3f8   : > { %v13959_v36 = vpop.f32.mrf.mxu1 }
 0x3f9   : > { %17707 = vst [vmem:[#allocation145_spill] sm:$0xff] %v13959_v36 }
 0x3fa   : > { %v13963_v49 = vpop.f32.mrf.mxu1 }
 0x3fb   : > { %17709 = vst [vmem:[#allocation128_spill] sm:$0xff] %v13963_v49 }
 0x3fc   : > { %v13967_v20 = vpop.f32.mrf.mxu1 }
 0x3fd   : > { %17711 = vst [vmem:[#allocation151_spill] sm:$0xff] %v13967_v20 }
 0x403   : > { %v13953_v19 = vpop.f32.mrf.mxu0 }
 0x404   : > { %17704 = vst [vmem:[#allocation197_spill] sm:$0xff] %v13953_v19 }
 0x405   : > { %v13957_v24 = vpop.f32.mrf.mxu0 }
 0x406   : > { %17706 = vst [vmem:[#allocation132_spill] sm:$0xff] %v13957_v24 }
 0x407   : > { %v13961_v43 = vpop.f32.mrf.mxu0 }
 0x408   : > { %17708 = vst [vmem:[#allocation186_spill] sm:$0xff] %v13961_v43 }
 0x409   : > { %v13965_v48 = vpop.f32.mrf.mxu0 }
 0x40a   : > { %17710 = vst [vmem:[#allocation168_spill] sm:$0xff] %v13965_v48 }
 0x40b   : > { %v13969_v27 = vpop.f32.mrf.mxu0 }
 0x40c   : > { %17712 = vst [vmem:[#allocation181_spill] sm:$0xff] %v13969_v27  ;;  %v11442_v27 = vld [vmem:[#allocation8 + $0x8] sm:$0xff] }
 0x40d   : > { %v13973_v3 = vpop.f32.mrf.mxu0 }
 0x40e   : > { %17714 = vst [vmem:[#allocation143_spill] sm:$0xff] %v13973_v3 }
 0x40f   : > { %v13977_v4 = vpop.f32.mrf.mxu0 }
 0x410   : > { %17716 = vst [vmem:[#allocation187_spill] sm:$0xff] %v13977_v4  ;;  %v11443_v4 = vld [vmem:[#allocation8] sm:$0xff] }
 0x411   : > { %v13981_v36 = vpop.f32.mrf.mxu0 }
 0x412   : > { %v13971_v45 = vpop.f32.mrf.mxu1  ;;  %17718 = vst [vmem:[#allocation160_spill] sm:$0xff] %v13981_v36 }
 0x413   : > { %17713 = vst [vmem:[#allocation137_spill] sm:$0xff] %v13971_v45 }
 0x414   : > { %v13975_v19 = vpop.f32.mrf.mxu1 }
 0x415   : > { %17715 = vst [vmem:[#allocation135_spill] sm:$0xff] %v13975_v19 }
 0x418   : > { %v13979_v24 = vpop.f32.mrf.mxu1 }
 0x419   : > { %17717 = vst [vmem:[#allocation156_spill] sm:$0xff] %v13979_v24 }
 0x41a   : > { %v13983_v43 = vpop.f32.mrf.mxu1 }
 0x41b   : > { %17719 = vst [vmem:[#allocation133_spill] sm:$0xff] %v13983_v43 }
 0x420   : > { %v13985_v48 = vpop.f32.mrf.mxu1 }
 0x421   : > { %17720 = vst [vmem:[#allocation177_spill] sm:$0xff] %v13985_v48 }
 0x422   : > { %v13989_v47 = vpop.f32.mrf.mxu1 }
 0x423   : > { %v9837_v49 = vpop.f32.mrf.mxu0  ;;  %17721 = vst [vmem:[#allocation161_spill] sm:$0xff] %v13989_v47 }
 0x424   : > { %v3151_v20 = vmul.f32 0.17677669, %v9837_v49 }
 0x425   : > { %v2604_v32 = vpop.f32.mrf.mxu0 }
 0x426   : > { %v13987_v39 = vadd.f32 %v11442_v27, %v3151_v20  ;;  %v3150_v45 = vmul.f32 0.17677669, %v2604_v32  ;;  %v13999_v27 = vpop.f32.mrf.mxu1 }
 0x427   : > { %v9840_v3 = vpop.f32.mrf.mxu0  ;;  %17722 = vst [vmem:[#allocation167_spill] sm:$0xff] %v13999_v27  ;;  %v11447_v27 = vld [vmem:[#allocation8 + $0x38] sm:$0xff] }
 0x428   : > { %v3153_v19 = vmul.f32 0.17677669, %v9840_v3  ;;  %v3217_v24 = vsel %vm1605_vm1, %v13987_v39, -inf  ;;  %v13993_v36 = vadd.f32 %v11443_v4, %v3150_v45  ;;  %v11446_v45 = vld [vmem:[#allocation8 + $0x10] sm:$0xff] }
 0x429   : > { %v2614_v43 = vpop.f32.mrf.mxu0  ;;  %3218 = vmax.xlane.f32.xlu1 %v3217_v24 }
 0x42a   : > { %v13995_v48 = vadd.f32 %v11444_v13, %v3153_v19  ;;  %v3152_v49 = vmul.f32 0.17677669, %v2614_v43  ;;  %v3214_v20 = vsel %vm1605_vm1, %v13993_v36, -inf  ;;  %v14007_v43 = vpop.f32.mrf.mxu1 }
 0x42b   : > { %v9843_v32 = vpop.f32.mrf.mxu0  ;;  %3215 = vmax.xlane.f32.xlu0 %v3214_v20  ;;  %17723 = vst [vmem:[#allocation126_spill] sm:$0xff] %v14007_v43 }
 0x42c   : > { %v3155_v3 = vmul.f32 0.17677669, %v9843_v32  ;;  %v3223_v24 = vsel %vm1605_vm1, %v13995_v48, -inf  ;;  %v14005_v13 = vadd.f32 %v11446_v45, %v3152_v49  ;;  %v11448_v49 = vld [vmem:[#allocation8 + $0x20] sm:$0xff] }
 0x42d   : > { %v2624_v47 = vpop.f32.mrf.mxu0 }
 0x42e   : > { %v14001_v10 = vadd.f32 %v11445_v63, %v3155_v3  ;;  %v3154_v4 = vmul.f32 0.17677669, %v2624_v47  ;;  %v3220_v29 = vsel %vm1605_vm1, %v14005_v13, -inf }
 0x42f   : > { %v9846_v19 = vpop.f32.mrf.mxu0  ;;  %3224 = vmax.xlane.f32.xlu0 %v3223_v24 }
 0x430   : > { %v3157_v54 = vmul.f32 0.17677669, %v9846_v19  ;;  %v3229_v20 = vsel %vm1605_vm1, %v14001_v10, -inf  ;;  %v14015_v45 = vadd.f32 %v11448_v49, %v3154_v4 }
 0x431   : > { %v2634_v32 = vpop.f32.mrf.mxu0  ;;  %3230 = vmax.xlane.f32.xlu1 %v3229_v20 }
 0x432   : > { %v14011_v63 = vadd.f32 %v11447_v27, %v3157_v54  ;;  %v3156_v47 = vmul.f32 0.17677669, %v2634_v32  ;;  %v9865_v3 = vpop.f32.mrf.mxu1  ;;  %v3226_v54 = vsel %vm1605_vm1, %v14015_v45, -inf  ;;  %v11449_v27 = vld [vmem:[#allocation8 + $0x30] sm:$0xff] }
 0x433   : > { %3221 = vmax.xlane.f32.xlu0 %v3220_v29  ;;  %v3159_v15 = vmul.f32 0.17677669, %v9865_v3 }
 0x434   : > { %v2773_v24 = vpop.f32.mrf.mxu1  ;;  %v3235_v19 = vsel %vm1605_vm1, %v14011_v63, -inf  ;;  %v14021_v32 = vadd.f32 %v11449_v27, %v3156_v47  ;;  %v11452_v47 = vld [vmem:[#allocation8 + $0x50] sm:$0xff] }
 0x435   : > { %v3158_v43 = vmul.f32 0.17677669, %v2773_v24  ;;  %3236 = vmax.xlane.f32.xlu1 %v3235_v19  ;;  %v14027_v24 = vadd.f32 %v11451_v51, %v3159_v15  ;;  %v11454_v15 = vld [vmem:[#allocation8 + $0x58] sm:$0xff] }
 0x436   : > { %v9868_v20 = vpop.f32.mrf.mxu1  ;;  %v3232_v9 = vsel %vm1605_vm1, %v14021_v32, -inf }
 0x437   : > { %v14023_v60 = vadd.f32 %v11450_v62, %v3158_v43  ;;  %3227 = vmax.xlane.f32.xlu0 %v3226_v54  ;;  %v3161_v3 = vmul.f32 0.17677669, %v9868_v20  ;;  %v11453_v54 = vld [vmem:[#allocation8 + $0x68] sm:$0xff]  ;;  %v3241_v12 = vsel %vm1605_vm1, %v14027_v24, -inf }
 0x438   : > { %v2783_v4 = vpop.f32.mrf.mxu1 }
 0x439   : > { %v3160_v29 = vmul.f32 0.17677669, %v2783_v4  ;;  %v3238_v49 = vsel %vm1605_vm1, %v14023_v60, -inf  ;;  %v14037_v20 = vadd.f32 %v11454_v15, %v3161_v3 }
 0x43a   : > { %3239 = vmax.xlane.f32.xlu1 %v3238_v49  ;;  %v9871_v19 = vpop.f32.mrf.mxu1 }
 0x43b   : > { %v14031_v27 = vadd.f32 %v11452_v47, %v3160_v29  ;;  %v3163_v62 = vmul.f32 0.17677669, %v9871_v19  ;;  %3233 = vmax.xlane.f32.xlu0 %v3232_v9  ;;  %v11455_v19 = vld [vmem:[#allocation8 + $0x60] sm:$0xff]  ;;  %v3247_v3 = vsel %vm1605_vm1, %v14037_v20, -inf }
 0x43c   : > { %v2793_v43 = vpop.f32.mrf.mxu1 }
 0x43d   : > { %v14033_v4 = vadd.f32 %v11453_v54, %v3163_v62  ;;  %v3162_v59 = vmul.f32 0.17677669, %v2793_v43  ;;  %v3244_v51 = vsel %vm1605_vm1, %v14031_v27, -inf  ;;  %v11456_v54 = vld [vmem:[#allocation8 + $0x70] sm:$0xff] }
 0x43e   : > { %3245 = vmax.xlane.f32.xlu1 %v3244_v51  ;;  %v9874_v49 = vpop.f32.mrf.mxu1 }
 0x43f   : > { %3242 = vmax.xlane.f32.xlu0 %v3241_v12  ;;  %v14041_v9 = vadd.f32 %v11455_v19, %v3162_v59  ;;  %v3165_v47 = vmul.f32 0.17677669, %v9874_v49  ;;  %v3253_v43 = vsel %vm1605_vm1, %v14033_v4, -inf }
 0x440   : > { %v2803_v29 = vpop.f32.mrf.mxu1 }
 0x441   : > { %v3164_v62 = vmul.f32 0.17677669, %v2803_v29  ;;  %v14049_v12 = vadd.f32 %v11457_v7, %v3165_v47  ;;  %v3250_v59 = vsel %vm1605_vm1, %v14041_v9, -inf  ;;  %v14059_v47 = vpop.permute.xlu0 %4745 }
 0x442   : > { %3254 = vmax.xlane.f32.xlu1 %v3253_v43  ;;  %v11458_v43 = vld [vmem:[#allocation8 + $0x88] sm:$0xff]  ;;  %17724 = vst [vmem:[#allocation170_spill] sm:$0xff] %v14059_v47 }
 0x443   : > { %v14047_v51 = vadd.f32 %v11456_v54, %v3164_v62  ;;  %3248 = vmax.xlane.f32.xlu0 %v3247_v3  ;;  %v3259_v7 = vsel %vm1605_vm1, %v14049_v12, -inf }
 0x444   : > { %v9893_v15 = vpop.f32.mrf.mxu0 }
 0x445   : > { %v3167_v56 = vmul.f32 0.17677669, %v9893_v15  ;;  %v3256_v49 = vsel %vm1605_vm1, %v14047_v51, -inf  ;;  %v11459_v15 = vld [vmem:[#allocation8 + $0x98] sm:$0xff] }
 0x446   : > { %v2942_v29 = vpop.f32.mrf.mxu0  ;;  %3251 = vmax.xlane.f32.xlu1 %v3250_v59 }
 0x447   : > { %3257 = vmax.xlane.f32.xlu0 %v3256_v49  ;;  %v14055_v18 = vadd.f32 %v11458_v43, %v3167_v56  ;;  %v3166_v62 = vmul.f32 0.17677669, %v2942_v29  ;;  %v11460_v29 = vld [vmem:[#allocation8 + $0x80] sm:$0xff]  ;;  %v14069_v43 = vpop.permute.xlu1 %4218 }
 0x448   : > { %v9896_v19 = vpop.f32.mrf.mxu0  ;;  %17725 = vst [vmem:[#allocation166_spill] sm:$0xff] %v14069_v43 }
 0x449   : > { %v3169_v3 = vmul.f32 0.17677669, %v9896_v19  ;;  %v3265_v56 = vsel %vm1605_vm1, %v14055_v18, -inf  ;;  %v14067_v19 = vadd.f32 %v11460_v29, %v3166_v62 }
 0x44a   : > { %v2952_v54 = vpop.f32.mrf.mxu0  ;;  %3260 = vmax.xlane.f32.xlu1 %v3259_v7  ;;  %v11461_v7 = vld [vmem:[#allocation8 + $0xa8] sm:$0xff] }
 0x44b   : > { %v14061_v35 = vadd.f32 %v11459_v15, %v3169_v3  ;;  %v3168_v61 = vmul.f32 0.17677669, %v2952_v54  ;;  %v14073_v54 = vpop.permute.xlu0 %4220  ;;  %v11462_v15 = vld [vmem:[#allocation8 + $0x90] sm:$0xff]  ;;  %v3262_v29 = vsel %vm1605_vm1, %v14067_v19, -inf }
 0x44c   : > { %v9899_v8 = vpop.f32.mrf.mxu0  ;;  %17726 = vst [vmem:[#allocation111_spill] sm:$0xff] %v14073_v54  ;;  %v14083_v54 = vpop.permute.xlu1 %4566 }
 0x44d   : > { %v3171_v59 = vmul.f32 0.17677669, %v9899_v8  ;;  %v3271_v49 = vsel %vm1605_vm1, %v14061_v35, -inf  ;;  %v14075_v50 = vadd.f32 %v11462_v15, %v3168_v61  ;;  %17727 = vst [vmem:[#allocation129_spill] sm:$0xff] %v14083_v54  ;;  %v11464_v15 = vld [vmem:[#allocation8 + $0xc8] sm:$0xff] }
 0x44e   : > { %v2962_v47 = vpop.f32.mrf.mxu0  ;;  %3272 = vmax.xlane.f32.xlu0 %v3271_v49  ;;  %3266 = vmax.xlane.f32.xlu1 %v3265_v56 }
 0x44f   : > { %v14071_v3 = vadd.f32 %v11461_v7, %v3171_v59  ;;  %v3170_v2 = vmul.f32 0.17677669, %v2962_v47  ;;  %v11463_v59 = vld [vmem:[#allocation8 + $0xb8] sm:$0xff]  ;;  %v3268_v47 = vsel %vm1605_vm1, %v14075_v50, -inf  ;;  %v14093_v44 = vpop.permute.xlu0 %4743 }
 0x450   : > { %v9902_v8 = vpop.f32.mrf.mxu0  ;;  %17728 = vst [vmem:[#allocation164_spill] sm:$0xff] %v14093_v44  ;;  %v14101_v55 = vpop.permute.xlu1 %4222 }
 0x451   : > { %v3173_v14 = vmul.f32 0.17677669, %v9902_v8  ;;  %v3277_v62 = vsel %vm1605_vm1, %v14071_v3, -inf  ;;  %17729 = vst [vmem:[#allocation176_spill] sm:$0xff] %v14101_v55  ;;  %v11469_v55 = vld [vmem:[#allocation8 + $0xe8] sm:$0xff] }
 0x452   : > { %v2972_v6 = vpop.f32.mrf.mxu0  ;;  %3278 = vmax.xlane.f32.xlu0 %v3277_v62  ;;  %3263 = vmax.xlane.f32.xlu1 %v3262_v29  ;;  %v9921_v49 = vpop.f32.mrf.mxu1  ;;  %v11465_v62 = vld [vmem:[#allocation8 + $0xa0] sm:$0xff] }
 0x453   : > { %v14081_v56 = vadd.f32 %v11463_v59, %v3173_v14  ;;  %v3175_v7 = vmul.f32 0.17677669, %v9921_v49  ;;  %v3172_v8 = vmul.f32 0.17677669, %v2972_v6  ;;  %v14091_v29 = vadd.f32 %v11465_v62, %v3170_v2  ;;  %v11467_v2 = vld [vmem:[#allocation8 + $0xd8] sm:$0xff] }
 0x454   : > { %v3111_v61 = vpop.f32.mrf.mxu1 }
 0x455   : > { %v14087_v43 = vadd.f32 %v11464_v15, %v3175_v7  ;;  %v3283_v34 = vsel %vm1605_vm1, %v14081_v56, -inf  ;;  %v3174_v54 = vmul.f32 0.17677669, %v3111_v61  ;;  %v3274_v7 = vsel %vm1605_vm1, %v14091_v29, -inf  ;;  %v11466_v15 = vld [vmem:[#allocation8 + $0xb0] sm:$0xff] }
 0x456   : > { %3284 = vmax.xlane.f32.xlu0 %v3283_v34  ;;  %3269 = vmax.xlane.f32.xlu1 %v3268_v47  ;;  %v14099_v40 = vadd.f32 %v11466_v15, %v3172_v8  ;;  %v14105_v47 = vpop.permute.xlu0 %4224 }
 0x457   : > { %v9924_v14 = vpop.f32.mrf.mxu1  ;;  %v3289_v49 = vsel %vm1605_vm1, %v14087_v43, -inf  ;;  %17730 = vst [vmem:[#allocation116_spill] sm:$0xff] %v14105_v47  ;;  %v11470_v47 = vld [vmem:[#allocation8 + $0xd0] sm:$0xff] }
 0x458   : > { %v3177_v59 = vmul.f32 0.17677669, %v9924_v14  ;;  %v11468_v14 = vld [vmem:[#allocation8 + $0xc0] sm:$0xff]  ;;  %v3280_v15 = vsel %vm1605_vm1, %v14099_v40, -inf }
 0x459   : > { %v3121_v6 = vpop.f32.mrf.mxu1  ;;  %v14109_v26 = vadd.f32 %v11468_v14, %v3174_v54 }
 0x45a   : > { %v14103_v62 = vadd.f32 %v11467_v2, %v3177_v59  ;;  %3290 = vmax.xlane.f32.xlu0 %v3289_v49  ;;  %3275 = vmax.xlane.f32.xlu1 %v3274_v7  ;;  %v3176_v1 = vmul.f32 0.17677669, %v3121_v6  ;;  %v14115_v2 = vpop.permute.xlu1 %4564  ;;  %v11471_v6 = vld [vmem:[#allocation8 + $0xe0] sm:$0xff] }
 0x45b   : > { %v9927_v34 = vpop.f32.mrf.mxu1  ;;  %17731 = vst [vmem:[#allocation182_spill] sm:$0xff] %v14115_v2 }
 0x45c   : > { %v3179_v44 = vmul.f32 0.17677669, %v9927_v34  ;;  %v3295_v61 = vsel %vm1605_vm1, %v14103_v62, -inf  ;;  %v14119_v54 = vadd.f32 %v11470_v47, %v3176_v1 }
 0x45d   : > { %v3131_v8 = vpop.f32.mrf.mxu1 }
 0x45e   : > { %v14113_v59 = vadd.f32 %v11469_v55, %v3179_v44  ;;  %v3178_v49 = vmul.f32 0.17677669, %v3131_v8  ;;  %3296 = vmax.xlane.f32.xlu0 %v3295_v61  ;;  %3281 = vmax.xlane.f32.xlu1 %v3280_v15  ;;  %v3286_v44 = vsel %vm1605_vm1, %v14109_v26, -inf  ;;  %v14125_v55 = vpop.permute.xlu0 %4741  ;;  %v11472_v61 = vld [vmem:[#allocation8 + $0xf8] sm:$0xff]  ;;  %v3292_v1 = vsel %vm1605_vm1, %v14119_v54, -inf  ;;  %v14133_v47 = vpop.permute.xlu1 %4548 }
 0x45f   : > { %v9930_v7 = vpop.f32.mrf.mxu1  ;;  %17732 = vst [vmem:[#allocation165_spill] sm:$0xff] %v14125_v55 }
 0x460   : > { %v3301_v34 = vsel %vm1605_vm1, %v14113_v59, -inf  ;;  %v14121_v14 = vadd.f32 %v11471_v6, %v3178_v49  ;;  %v3181_v5 = vmul.f32 0.17677669, %v9930_v7 }
 0x462   : > { %3302 = vmax.xlane.f32.xlu0 %v3301_v34  ;;  %3287 = vmax.xlane.f32.xlu1 %v3286_v44  ;;  %v14127_v8 = vadd.f32 %v11472_v61, %v3181_v5  ;;  %v3298_v15 = vsel %vm1605_vm1, %v14121_v14, -inf  ;;  %v14135_v49 = vpop.permute.xlu0 %4550  ;;  %v14139_v34 = vpop.permute.xlu1 %4739  ;;  %v17738_v61 = vld [vmem:[#allocation89_spill] sm:$0xff] }
 0x463   : > { %17733 = vst [vmem:[#allocation178_spill] sm:$0xff] %v14135_v49  ;;  %17734 = vst [vmem:[#allocation162_spill] sm:$0xff] %v14139_v34 }
 0x464   : > { %v3307_v7 = vsel %vm1605_vm1, %v14127_v8, -inf }
 0x466   : > { %3299 = vmax.xlane.f32.xlu0 %v3298_v15  ;;  %3293 = vmax.xlane.f32.xlu1 %v3292_v1  ;;  %v14141_v5 = vpop.permute.xlu0 %4383  ;;  %v14143_v6 = vpop.permute.xlu1 %4385 }
 0x467   : > { %17735 = vst [vmem:[#allocation189_spill] sm:$0xff] %v14141_v5  ;;  %17736 = vst [vmem:[#allocation120_spill] sm:$0xff] %v14143_v6  ;;  %v17745_v6 = vld [vmem:[#allocation84_spill] sm:$0xff] }
 0x46a   : > { %3308 = vmax.xlane.f32.xlu0 %v3307_v7  ;;  %v14145_v44 = vpop.permute.xlu0 %4737  ;;  %v14149_v55 = vpop.permute.xlu1 %4387  ;;  %v17743_v7 = vld [vmem:[#allocation86_spill] sm:$0xff] }
 0x46b   : > { %17737 = vst [vmem:[#allocation159_spill] sm:$0xff] %v14145_v44  ;;  %17739 = vst [vmem:[#allocation188_spill] sm:$0xff] %v14149_v55 }
 0x46e   : > { %v14151_v15 = vpop.permute.xlu0 %4389  ;;  %v14153_v1 = vpop.permute.xlu1 %4735 }
 0x46f   : > { %17740 = vst [vmem:[#allocation152_spill] sm:$0xff] %v14151_v15  ;;  %17741 = vst [vmem:[#allocation95_spill] sm:$0xff] %v14153_v1  ;;  %v17750_v1 = vld [vmem:[#allocation61_spill] sm:$0xff] }
 0x472   : > { %v14155_v49 = vpop.permute.xlu0 %4391  ;;  %v14159_v34 = vpop.permute.xlu1 %4393 }
 0x473   : > { %17742 = vst [vmem:[#allocation104_spill] sm:$0xff] %v14155_v49  ;;  %17744 = vst [vmem:[#allocation158_spill] sm:$0xff] %v14159_v34  ;;  %v3141_v49 = vpop.f32.mrf.mxu1 }
 0x476   : > { %v14163_v44 = vpop.permute.xlu0 %4733  ;;  %v14167_v55 = vpop.permute.xlu1 %4717 }
 0x477   : > { %5282 = vrot.lane.b32.xlu1 %v17738_v61, %s11728_s10  ;;  %17746 = vst [vmem:[#allocation101_spill] sm:$0xff] %v14163_v44  ;;  %v17747_v61 = vld [vmem:[#allocation76_spill] sm:$0xff]  ;;  %17748 = vst [vmem:[#allocation147_spill] sm:$0xff] %v14167_v55  ;;  %v11473_v55 = vld [vmem:[#allocation8 + $0xf0] sm:$0xff] }
 0x478   : > { %v17753_v44 = vld [vmem:[#allocation100_spill] sm:$0xff] }
 0x47a   : > { %v14169_v15 = vpop.permute.xlu0 %4719  ;;  %v14173_v5 = vpop.permute.xlu1 %4552 }
 0x47b   : > { %17749 = vst [vmem:[#allocation175_spill] sm:$0xff] %v14169_v15  ;;  %17751 = vst [vmem:[#allocation150_spill] sm:$0xff] %v14173_v5 }
 0x47e   : > { %v14177_v34 = vpop.permute.xlu0 %4554 }
 0x480   : > { %5284 = vrot.lane.b32.xlu0 %v17743_v7, %s11728_s10  ;;  %v17752_v7 = vld [vmem:[#allocation67_spill] sm:$0xff] }
 0x482   : > { %v14185_v15 = vpop.permute.xlu0 %4558 }
 0x484   : > { %5280 = vrot.lane.b32.xlu0 %v17745_v6, %s11728_s10  ;;  %v3180_v6 = vmul.f32 0.17677669, %v3141_v49 }
 0x486   : > { %v14183_v2 = vadd.f32 %v11473_v55, %v3180_v6  ;;  %v14195_v49 = vpop.permute.xlu0 %4562 }
 0x488   : > { %5274 = vrot.lane.b32.xlu0 %v17747_v61, %s11728_s10  ;;  %v14181_v61 = vpop.permute.xlu1 %4556  ;;  %v3304_v5 = vsel %vm1605_vm1, %v14183_v2, -inf }
 0x48a   : > { %v14201_v6 = vpop.permute.xlu0 %4723 }
 0x48b   : > { %17758 = vst [vmem:[#allocation193_spill] sm:$0xff] %v14201_v6 }
 0x48c   : > { %5272 = vrot.lane.b32.xlu0 %v17750_v1, %s11728_s10  ;;  %v17754_v1 = vld [vmem:[#allocation105_spill] sm:$0xff] }
 0x490   : > { %5270 = vrot.lane.b32.xlu0 %v17752_v7, %s11728_s10  ;;  %v14191_v7 = vpop.permute.xlu1 %4560 }
 0x491   : > { %17755 = vst [vmem:[#allocation110_spill] sm:$0xff] %v14191_v7  ;;  %v14209_v7 = vpop.permute.xlu0 %4727 }
 0x492   : > { %17761 = vst [vmem:[#allocation121_spill] sm:$0xff] %v14209_v7  ;;  %v17766_v7 = vld [vmem:[#allocation103_spill] sm:$0xff] }
 0x494   : > { %5437 = vrot.lane.b32.xlu0 %v17753_v44, %s11728_s10  ;;  %v17756_v44 = vld [vmem:[#allocation57_spill] sm:$0xff]  ;;  %v14199_v55 = vpop.permute.xlu1 %4721 }
 0x495   : > { %17757 = vst [vmem:[#allocation125_spill] sm:$0xff] %v14199_v55  ;;  %v14217_v55 = vpop.permute.xlu0 %4731 }
 0x496   : > { %17764 = vst [vmem:[#allocation134_spill] sm:$0xff] %v14217_v55 }
 0x498   : > { %5433 = vrot.lane.b32.xlu0 %v17754_v1, %s11728_s10  ;;  %v14205_v1 = vpop.permute.xlu1 %4725 }
 0x499   : > { %17759 = vst [vmem:[#allocation180_spill] sm:$0xff] %v14205_v1 }
 0x49b   : > { %3305 = vmax.xlane.f32.xlu1 %v3304_v5  ;;  %v17760_v5 = vld [vmem:[#allocation51_spill] sm:$0xff] }
 0x49c   : > { %5586 = vrot.lane.b32.xlu0 %v12904_v31, %s11728_s10  ;;  %v17762_v31 = vld [vmem:[#allocation78_spill] sm:$0xff] }
 0x4a0   : > { %5427 = vrot.lane.b32.xlu0 %v17756_v44, %s11728_s10  ;;  %v14215_v44 = vpop.permute.xlu1 %4729 }
 0x4a1   : > { %17763 = vst [vmem:[#allocation174_spill] sm:$0xff] %v14215_v44 }
 0x4a4   : > { %5580 = vrot.lane.b32.xlu0 %v12946_v38, %s11728_s10  ;;  %v17765_v38 = vld [vmem:[#allocation69_spill] sm:$0xff] }
 0x4a8   : > { %5425 = vrot.lane.b32.xlu0 %v17760_v5, %s11728_s10 }
 0x4ac   : > { %5578 = vrot.lane.b32.xlu0 %v12950_v58, %s11728_s10  ;;  %5278 = vrot.lane.b32.xlu1 %v17762_v31, %s11728_s10 }
 0x4b0   : > { %5741 = vrot.lane.b32.xlu0 %v17566_v57, %s11728_s10  ;;  %5276 = vrot.lane.b32.xlu1 %v17765_v38, %s11728_s10 }
 0x4b2   : > { %v3219_v1 = vpop.xlane.xlu1 %3218 }
 0x4b3   : > { %v3311_v5 = vsub.f32 %v13987_v39, %v3219_v1 }
 0x4b4   : > { %5735 = vrot.lane.b32.xlu0 %v17571_v42, %s11728_s10  ;;  %5590 = vrot.lane.b32.xlu1 %v12812_v28, %s11728_s10  ;;  %v3216_v58 = vpop.xlane.xlu0 %3215 }
 0x4b5   : > { %v3310_v31 = vsub.f32 %v13993_v36, %v3216_v58  ;;  %v3344_v44 = vmul.f32 1.442695, %v3311_v5  ;;  %v17767_v36 = vld [vmem:[#allocation99_spill] sm:$0xff] }
 0x4b7   : > { %v3342_v55 = vmul.f32 1.442695, %v3310_v31 }
 0x4b8   : > { %5435 = vrot.lane.b32.xlu1 %v17766_v7, %s11728_s10  ;;  %v3225_v57 = vpop.xlane.xlu0 %3224 }
 0x4b9   : > { %10994 = vpow2.f32 %v3342_v55  ;;  %v3313_v39 = vsub.f32 %v13995_v48, %v3225_v57 }
 0x4ba   : > { %10996 = vpow2.f32 %v3344_v44  ;;  %v3231_v38 = vpop.xlane.xlu1 %3230 }
 0x4bb   : > { %v3348_v6 = vmul.f32 1.442695, %v3313_v39  ;;  %v3315_v58 = vsub.f32 %v14001_v10, %v3231_v38 }
 0x4bc   : > { %5588 = vrot.lane.b32.xlu1 %v12982_v21, %s11728_s10  ;;  %v3222_v1 = vpop.xlane.xlu0 %3221 }
 0x4bd   : > { %v3312_v42 = vsub.f32 %v14005_v13, %v3222_v1  ;;  %v3352_v57 = vmul.f32 1.442695, %v3315_v58  ;;  %v17771_v58 = vld [vmem:[#allocation202_spill] sm:$0xff] }
 0x4be   : > { %v3237_v28 = vpop.xlane.xlu1 %3236 }
 0x4bf   : > { %v3346_v31 = vmul.f32 1.442695, %v3312_v42  ;;  %v3317_v48 = vsub.f32 %v14011_v63, %v3237_v28 }
 0x4c0   : > { %5431 = vrot.lane.b32.xlu1 %v17767_v36, %s11728_s10  ;;  %v3228_v5 = vpop.xlane.xlu0 %3227 }
 0x4c1   : > { %10998 = vpow2.f32 %v3346_v31  ;;  %v3314_v44 = vsub.f32 %v14015_v45, %v3228_v5  ;;  %v3356_v45 = vmul.f32 1.442695, %v3317_v48 }
 0x4c2   : > { %11000 = vpow2.f32 %v3348_v6 }
 0x4c3   : > { %v3350_v55 = vmul.f32 1.442695, %v3314_v44  ;;  %v3240_v21 = vpop.xlane.xlu1 %3239 }
 0x4c4   : > { %v3318_v13 = vsub.f32 %v14023_v60, %v3240_v21  ;;  %5584 = vrot.lane.b32.xlu1 %v12918_v46, %s11728_s10  ;;  %v3234_v38 = vpop.xlane.xlu0 %3233  ;;  %v17770_v60 = vld [vmem:[#allocation97_spill] sm:$0xff] }
 0x4c5   : > { %11002 = vpow2.f32 %v3350_v55  ;;  %v3316_v42 = vsub.f32 %v14021_v32, %v3234_v38  ;;  %v17774_v55 = vld [vmem:[#allocation191_spill] sm:$0xff] }
 0x4c6   : > { %v14244_v10 = vpop.eup %10994  ;;  %v3358_v39 = vmul.f32 1.442695, %v3318_v13  ;;  %11004 = vpow2.f32 %v3352_v57  ;;  %v17772_v57 = vld [vmem:[#allocation184_spill] sm:$0xff] }
 0x4c7   : > { %17768 = vst [vmem:[#allocation172_spill] sm:$0xff] %v14244_v10  ;;  %v14246_v1 = vpop.eup %10996  ;;  %v3354_v6 = vmul.f32 1.442695, %v3316_v42  ;;  %v3246_v28 = vpop.xlane.xlu1 %3245  ;;  %9947 = vmatprep.mubr.msk.f32.mxu0 %vm1605_vm1, %v14244_v10 }
 0x4c8   : > { %17769 = vst [vmem:[#allocation131_spill] sm:$0xff] %v14246_v1  ;;  %11006 = vpow2.f32 %v3358_v39  ;;  %v3320_v21 = vsub.f32 %v14031_v27, %v3246_v28  ;;  %5429 = vrot.lane.b32.xlu1 %v17770_v60, %s11728_s10  ;;  %9948 = vmatmul.mubr.msk.f32.vlgmr.msra.gmra.mxu0 %vm1605_vm1, %v14246_v1  ;;  %v3243_v63 = vpop.xlane.xlu0 %3242 }
 0x4c9   : > { %11008 = vpow2.f32 %v3354_v6  ;;  %9988 = vmatpush3.msra.mxu0 %v17678_v33  ;;  %v3319_v32 = vsub.f32 %v14027_v24, %v3243_v63 }
 0x4ca   : > { %9989 = vmatprep.subr.mxu0 %v17771_v58  ;;  %11010 = vpow2.f32 %v3356_v45  ;;  %v3362_v31 = vmul.f32 1.442695, %v3320_v21  ;;  %v17776_v45 = vld [vmem:[#allocation179_spill] sm:$0xff] }
 0x4cb   : > { %v3360_v5 = vmul.f32 1.442695, %v3319_v32  ;;  %9990 = vmatpush3.msra.mxu0 %v17771_v58  ;;  %v3255_v27 = vpop.xlane.xlu1 %3254 }
 0x4cc   : > { %v3323_v44 = vsub.f32 %v14033_v4, %v3255_v27  ;;  %9991 = vmatprep.subr.mxu0 %v17772_v57  ;;  %5582 = vrot.lane.b32.xlu1 %v12870_v25, %s11728_s10  ;;  %v3249_v48 = vpop.xlane.xlu0 %3248  ;;  %v17782_v27 = vld [vmem:[#allocation192_spill] sm:$0xff] }
 0x4cd   : > { %11012 = vpow2.f32 %v3360_v5  ;;  %9992 = vmatpush3.msra.mxu0 %v17772_v57  ;;  %v3321_v33 = vsub.f32 %v14037_v20, %v3249_v48  ;;  %v17777_v20 = vld [vmem:[#allocation53_spill] sm:$0xff] }
 0x4ce   : > { %v14265_v24 = vpop.eup %10998  ;;  %9993 = vmatprep.subr.mxu0 %v17774_v55  ;;  %11014 = vpow2.f32 %v3362_v31  ;;  %v3368_v13 = vmul.f32 1.442695, %v3323_v44 }
 0x4cf   : > { %17773 = vst [vmem:[#allocation171_spill] sm:$0xff] %v14265_v24  ;;  %v3364_v38 = vmul.f32 1.442695, %v3321_v33  ;;  %9994 = vmatpush3.msra.mxu0 %v17774_v55  ;;  %v3252_v4 = vpop.xlane.xlu1 %3251  ;;  %9950 = vmatprep.mubr.msk.f32.mxu0 %vm1605_vm1, %v14265_v24  ;;  %v14271_v42 = vpop.eup %11000 }
 0x4d0   : > { %17775 = vst [vmem:[#allocation142_spill] sm:$0xff] %v14271_v42  ;;  %v3322_v39 = vsub.f32 %v14041_v9, %v3252_v4  ;;  %9995 = vmatprep.subr.mxu0 %v17776_v45  ;;  %5423 = vrot.lane.b32.xlu1 %v17777_v20, %s11728_s10  ;;  %v3258_v6 = vpop.xlane.xlu0 %3257  ;;  %v17779_v9 = vld [vmem:[#allocation199_spill] sm:$0xff] }
 0x4d1   : > { %11016 = vpow2.f32 %v3364_v38  ;;  %9951 = vmatmul.mubr.msk.f32.gmra.mxu0 %vm1605_vm1, %v14271_v42  ;;  %v3324_v28 = vsub.f32 %v14047_v51, %v3258_v6 }
 0x4d2   : > { %v14280_v21 = vpop.eup %11002  ;;  %v3366_v63 = vmul.f32 1.442695, %v3322_v39  ;;  %9996 = vmatpush3.msra.mxu0 %v17776_v45  ;;  %11018 = vpow2.f32 %v3368_v13  ;;  %v17786_v13 = vld [vmem:[#allocation194_spill] sm:$0xff] }
 0x4d3   : > { %17778 = vst [vmem:[#allocation196_spill] sm:$0xff] %v14280_v21  ;;  %v3370_v32 = vmul.f32 1.442695, %v3324_v28  ;;  %9997 = vmatprep.subr.mxu0 %v17779_v9  ;;  %v3261_v58 = vpop.xlane.xlu1 %3260  ;;  %9953 = vmatprep.mubr.msk.f32.mxu0 %vm1605_vm1, %v14280_v21  ;;  %v14286_v31 = vpop.eup %11004  ;;  %v11504_v21 = vld [vmem:[#allocation8 + $0xf8] sm:$0xff] }
 0x4d4   : > { %17780 = vst [vmem:[#allocation141_spill] sm:$0xff] %v14286_v31  ;;  %11020 = vpow2.f32 %v3366_v63  ;;  %9998 = vmatpush3.msra.mxu0 %v17779_v9  ;;  %v3325_v51 = vsub.f32 %v14049_v12, %v3261_v58  ;;  %5576 = vrot.lane.b32.xlu1 %v12970_v41, %s11728_s10  ;;  %v17784_v12 = vld [vmem:[#allocation208_spill] sm:$0xff]  ;;  %v17789_v63 = vld [vmem:[#allocation31_spill] sm:$0xff] }
 0x4d5   : > { %v14292_v5 = vpop.eup %11006  ;;  %11022 = vpow2.f32 %v3370_v32  ;;  %9999 = vmatprep.subr.mxu0 %v17782_v27  ;;  %9954 = vmatmul.mubr.msk.f32.gmra.mxu0 %vm1605_vm1, %v14286_v31  ;;  %v17790_v32 = vld [vmem:[#allocation214_spill] sm:$0xff] }
 0x4d6   : > { %17781 = vst [vmem:[#allocation190_spill] sm:$0xff] %v14292_v5  ;;  %v14297_v44 = vpop.eup %11008  ;;  %v3372_v57 = vmul.f32 1.442695, %v3325_v51  ;;  %10000 = vmatpush3.msra.mxu0 %v17782_v27  ;;  %9975 = vmatprep.mubr.msk.f32.mxu1 %vm1605_vm1, %v14292_v5 }
 0x4d7   : > { %17783 = vst [vmem:[#allocation203_spill] sm:$0xff] %v14297_v44  ;;  %10001 = vmatprep.subr.mxu0 %v17784_v12  ;;  %v3273_v48 = vpop.xlane.xlu0 %3272  ;;  %v3267_v33 = vpop.xlane.xlu1 %3266  ;;  %9956 = vmatprep.mubr.msk.f32.mxu0 %vm1605_vm1, %v14297_v44 }
 0x4d8   : > { %v14305_v55 = vpop.eup %11010  ;;  %11024 = vpow2.f32 %v3372_v57  ;;  %10002 = vmatpush3.msra.mxu0 %v17784_v12  ;;  %5743 = vrot.lane.b32.xlu1 %v17563_v23, %s11728_s10  ;;  %v3327_v4 = vsub.f32 %v14055_v18, %v3267_v33  ;;  %v3329_v9 = vsub.f32 %v14061_v35, %v3273_v48  ;;  %v17795_v48 = vld [vmem:[#allocation217_spill] sm:$0xff] }
 0x4d9   : > { %17785 = vst [vmem:[#allocation210_spill] sm:$0xff] %v14305_v55  ;;  %10043 = vmatprep.subr.msk.mxu0 %vm928_vm0, %v17786_v13  ;;  %9957 = vmatmul.mubr.msk.f32.gmra.mxu0 %vm1605_vm1, %v14305_v55 }
 0x4da   : > { %v14314_v38 = vpop.eup %11012  ;;  %v3376_v58 = vmul.f32 1.442695, %v3327_v4  ;;  %v3380_v4 = vmul.f32 1.442695, %v3329_v9  ;;  %v17798_v9 = vld [vmem:[#allocation30_spill] sm:$0xff] }
 0x4db   : > { %17787 = vst [vmem:[#allocation103_spill] sm:$0xff] %v14314_v38  ;;  %v3279_v39 = vpop.xlane.xlu0 %3278  ;;  %v3264_v45 = vpop.xlane.xlu1 %3263  ;;  %9976 = vmatmul.mubr.msk.f32.vlgmr.msra.gmra.mxu1 %vm1605_vm1, %v14314_v38  ;;  %v11487_v38 = vld [vmem:[#allocation8 + $0x68] sm:$0xff] }
 0x4dc   : > { %v14319_v6 = vpop.eup %11014  ;;  %v3326_v28 = vsub.f32 %v14067_v19, %v3264_v45  ;;  %10016 = vmatpush3.msra.mxu1 %v17691_v22  ;;  %5944 = vrot.lane.b32.xlu1 %v17789_v63, %s11729_s12  ;;  %v17792_v19 = vld [vmem:[#allocation205_spill] sm:$0xff]  ;;  %v3331_v45 = vsub.f32 %v14071_v3, %v3279_v39 }
 0x4dd   : > { %17788 = vst [vmem:[#allocation99_spill] sm:$0xff] %v14319_v6  ;;  %9978 = vmatprep.mubr.msk.f32.mxu1 %vm1605_vm1, %v14319_v6  ;;  %10017 = vmatprep.subr.mxu1 %v17790_v32  ;;  %v11498_v6 = vld [vmem:[#allocation8 + $0xd8] sm:$0xff] }
 0x4de   : > { %v14328_v18 = vpop.eup %11016  ;;  %v3374_v51 = vmul.f32 1.442695, %v3326_v28  ;;  %10018 = vmatpush3.msra.mxu1 %v17790_v32  ;;  %v3384_v39 = vmul.f32 1.442695, %v3331_v45 }
 0x4df   : > { %17791 = vst [vmem:[#allocation202_spill] sm:$0xff] %v14328_v18  ;;  %10019 = vmatprep.subr.mxu1 %v17792_v19  ;;  %v3285_v22 = vpop.xlane.xlu0 %3284  ;;  %v3270_v27 = vpop.xlane.xlu1 %3269  ;;  %9979 = vmatmul.mubr.msk.f32.gmra.mxu1 %vm1605_vm1, %v14328_v18 }
 0x4e0   : > { %v14335_v57 = vpop.eup %11018  ;;  %v3328_v12 = vsub.f32 %v14075_v50, %v3270_v27  ;;  %10020 = vmatpush3.msra.mxu1 %v17792_v19  ;;  %5739 = vrot.lane.b32.xlu1 %v17567_v0, %s11728_s10  ;;  %11026 = vpow2.f32 %v3374_v51  ;;  %v17797_v50 = vld [vmem:[#allocation219_spill] sm:$0xff] }
 0x4e1   : > { %17793 = vst [vmem:[#allocation184_spill] sm:$0xff] %v14335_v57  ;;  %v14341_v35 = vpop.eup %11020  ;;  %10021 = vmatprep.subr.mxu1 %v17795_v48  ;;  %11028 = vpow2.f32 %v3376_v58  ;;  %v3333_v58 = vsub.f32 %v14081_v56, %v3285_v22 }
 0x4e2   : > { %17794 = vst [vmem:[#allocation191_spill] sm:$0xff] %v14341_v35  ;;  %v14344_v33 = vpop.eup %11022  ;;  %v3378_v28 = vmul.f32 1.442695, %v3328_v12  ;;  %10022 = vmatpush3.msra.mxu1 %v17795_v48  ;;  %9981 = vmatprep.mubr.msk.f32.mxu1 %vm1605_vm1, %v14341_v35  ;;  %v11497_v35 = vld [vmem:[#allocation8 + $0xa8] sm:$0xff] }
 0x4e3   : > { %17796 = vst [vmem:[#allocation179_spill] sm:$0xff] %v14344_v33  ;;  %10023 = vmatprep.subr.mxu1 %v17797_v50  ;;  %v3291_v63 = vpop.xlane.xlu0 %3290  ;;  %v3276_v32 = vpop.xlane.xlu1 %3275  ;;  %9982 = vmatmul.mubr.msk.f32.gmra.mxu1 %vm1605_vm1, %v14335_v57  ;;  %v3388_v56 = vmul.f32 1.442695, %v3333_v58  ;;  %v11486_v57 = vld [vmem:[#allocation8 + $0x50] sm:$0xff] }
 0x4e4   : > { %v3330_v51 = vsub.f32 %v14091_v29, %v3276_v32  ;;  %10024 = vmatpush3.msra.mxu1 %v17797_v50  ;;  %5942 = vrot.lane.b32.xlu1 %v17798_v9, %s11729_s12  ;;  %11030 = vpow2.f32 %v3378_v28  ;;  %v17800_v29 = vld [vmem:[#allocation226_spill] sm:$0xff]  ;;  %v17802_v50 = vld [vmem:[#allocation35_spill] sm:$0xff] }
 0x4e5   : > { %v14357_v3 = vpop.eup %11024  ;;  %9984 = vmatprep.mubr.msk.f32.mxu1 %vm1605_vm1, %v14344_v33  ;;  %10025 = vmatprep.subr.mxu1 %v13341_v11  ;;  %11032 = vpow2.f32 %v3380_v4  ;;  %v17801_v4 = vld [vmem:[#allocation224_spill] sm:$0xff] }
 0x4e6   : > { %17799 = vst [vmem:[#allocation199_spill] sm:$0xff] %v14357_v3  ;;  %v3382_v19 = vmul.f32 1.442695, %v3330_v51  ;;  %10026 = vmatpush3.msra.mxu1 %v13341_v11  ;;  %v3335_v11 = vsub.f32 %v14087_v43, %v3291_v63 }
 0x4e7   : > { %10027 = vmatprep.subr.mxu1 %v17800_v29  ;;  %v3297_v27 = vpop.xlane.xlu0 %3296  ;;  %v3282_v12 = vpop.xlane.xlu1 %3281  ;;  %9985 = vmatmul.mubr.msk.f32.gmra.mxu1 %vm1605_vm1, %v14357_v3 }
 0x4e8   : > { %v3332_v48 = vsub.f32 %v14099_v40, %v3282_v12  ;;  %10028 = vmatpush3.msra.mxu1 %v17800_v29  ;;  %5737 = vrot.lane.b32.xlu1 %v17569_v17, %s11728_s10  ;;  %11034 = vpow2.f32 %v3382_v19  ;;  %v3392_v51 = vmul.f32 1.442695, %v3335_v11  ;;  %v3337_v43 = vsub.f32 %v14103_v62, %v3297_v27 }
 0x4e9   : > { %10029 = vmatprep.subr.mxu1 %v17801_v4  ;;  %11036 = vpow2.f32 %v3384_v39 }
 0x4ea   : > { %v3386_v22 = vmul.f32 1.442695, %v3332_v48  ;;  %10030 = vmatpush3.msra.mxu1 %v17801_v4  ;;  %v3396_v29 = vmul.f32 1.442695, %v3337_v43  ;;  %v17806_v48 = vld [vmem:[#allocation212_spill] sm:$0xff]  ;;  %v17809_v4 = vld [vmem:[#allocation223_spill] sm:$0xff] }
 0x4eb   : > { %10071 = vmatprep.subr.msk.mxu1 %vm928_vm0, %v13375_v16  ;;  %v3303_v45 = vpop.xlane.xlu0 %3302  ;;  %v3288_v40 = vpop.xlane.xlu1 %3287 }
 0x4ec   : > { %v3334_v28 = vsub.f32 %v14109_v26, %v3288_v40  ;;  %5940 = vrot.lane.b32.xlu1 %v17802_v50, %s11729_s12  ;;  %11038 = vpow2.f32 %v3386_v22  ;;  %v3339_v27 = vsub.f32 %v14113_v59, %v3303_v45  ;;  %v17812_v22 = vld [vmem:[#allocation221_spill] sm:$0xff] }
 0x4ed   : > { %v14379_v32 = vpop.eup %11026  ;;  %11040 = vpow2.f32 %v3388_v56 }
 0x4ee   : > { %17803 = vst [vmem:[#allocation192_spill] sm:$0xff] %v14379_v32  ;;  %v3390_v63 = vmul.f32 1.442695, %v3334_v28  ;;  %v14382_v9 = vpop.eup %11028  ;;  %10003 = vmatprep.mubr.msk.f32.mxu0 %vm1605_vm1, %v14379_v32  ;;  %v3400_v59 = vmul.f32 1.442695, %v3339_v27  ;;  %v17815_v28 = vld [vmem:[#allocation228_spill] sm:$0xff] }
 0x4ef   : > { %17804 = vst [vmem:[#allocation208_spill] sm:$0xff] %v14382_v9  ;;  %v3300_v39 = vpop.xlane.xlu0 %3299  ;;  %v3294_v58 = vpop.xlane.xlu1 %3293  ;;  %10004 = vmatmul.mubr.msk.f32.vlgmr.msra.gmra.mxu0 %vm1605_vm1, %v14382_v9  ;;  %v17830_v27 = vld [vmem:[#allocation237_spill] sm:$0xff] }
 0x4f0   : > { %v3338_v26 = vsub.f32 %v14121_v14, %v3300_v39  ;;  %v3336_v19 = vsub.f32 %v14119_v54, %v3294_v58  ;;  %11042 = vpow2.f32 %v3390_v63  ;;  %10044 = vmatpush3.xpose.msk.msra.mxu0 %vm928_vm0, %v17786_v13  ;;  %v17823_v39 = vld [vmem:[#allocation236_spill] sm:$0xff]  ;;  %v17824_v58 = vld [vmem:[#allocation227_spill] sm:$0xff] }
 0x4f1   : > { %v14392_v62 = vpop.eup %11030  ;;  %11044 = vpow2.f32 %v3392_v51  ;;  %10045 = vmatprep.subr.msk.mxu0 %vm928_vm0, %v17806_v48  ;;  %v17818_v51 = vld [vmem:[#allocation225_spill] sm:$0xff] }
 0x4f2   : > { %17805 = vst [vmem:[#allocation194_spill] sm:$0xff] %v14392_v62  ;;  %v3394_v12 = vmul.f32 1.442695, %v3336_v19  ;;  %v14397_v14 = vpop.eup %11032  ;;  %10006 = vmatprep.mubr.msk.f32.mxu0 %vm1605_vm1, %v14392_v62  ;;  %v3398_v54 = vmul.f32 1.442695, %v3338_v26  ;;  %v17825_v26 = vld [vmem:[#allocation238_spill] sm:$0xff] }
 0x4f3   : > { %17807 = vst [vmem:[#allocation31_spill] sm:$0xff] %v14397_v14  ;;  %10007 = vmatmul.mubr.msk.f32.gmra.mxu0 %vm1605_vm1, %v14397_v14  ;;  %v17828_v19 = vld [vmem:[#allocation239_spill] sm:$0xff] }
 0x4f4   : > { %11046 = vpow2.f32 %v3394_v12  ;;  %10046 = vmatpush3.xpose.msk.msra.mxu0 %vm928_vm0, %v17806_v48  ;;  %v17831_v12 = vld [vmem:[#allocation166_spill] sm:$0xff]  ;;  %v17832_v48 = vld [vmem:[#allocation240_spill] sm:$0xff] }
 0x4f5   : > { %v14405_v13 = vpop.eup %11034  ;;  %11048 = vpow2.f32 %v3396_v29  ;;  %10047 = vmatprep.subr.msk.mxu0 %vm928_vm0, %v17809_v4  ;;  %v17829_v29 = vld [vmem:[#allocation230_spill] sm:$0xff] }
 0x4f6   : > { %17808 = vst [vmem:[#allocation214_spill] sm:$0xff] %v14405_v13  ;;  %v14409_v56 = vpop.eup %11036  ;;  %10009 = vmatprep.mubr.msk.f32.mxu0 %vm1605_vm1, %v14405_v13  ;;  %11050 = vpow2.f32 %v3398_v54  ;;  %v17833_v54 = vld [vmem:[#allocation231_spill] sm:$0xff]  ;;  %v11484_v13 = vld [vmem:[#allocation8 + $0x58] sm:$0xff] }
 0x4f7   : > { %17810 = vst [vmem:[#allocation205_spill] sm:$0xff] %v14409_v56  ;;  %10010 = vmatmul.mubr.msk.f32.gmra.mxu0 %vm1605_vm1, %v14409_v56  ;;  %11052 = vpow2.f32 %v3400_v59  ;;  %v17834_v59 = vld [vmem:[#allocation111_spill] sm:$0xff]  ;;  %v11482_v56 = vld [vmem:[#allocation8 + $0x48] sm:$0xff] }
 0x4f8   : > { %10048 = vmatpush3.xpose.msk.msra.mxu0 %vm928_vm0, %v17809_v4  ;;  %v17835_v4 = vld [vmem:[#allocation176_spill] sm:$0xff] }
 0x4f9   : > { %v14417_v11 = vpop.eup %11038  ;;  %10049 = vmatprep.subr.msk.mxu0 %vm928_vm0, %v17812_v22 }
 0x4fa   : > { %17811 = vst [vmem:[#allocation217_spill] sm:$0xff] %v14417_v11  ;;  %v14421_v45 = vpop.eup %11040  ;;  %10012 = vmatprep.mubr.msk.f32.mxu0 %vm1605_vm1, %v14417_v11 }
 0x4fb   : > { %17813 = vst [vmem:[#allocation219_spill] sm:$0xff] %v14421_v45  ;;  %10013 = vmatmul.mubr.msk.f32.gmra.mxu0 %vm1605_vm1, %v14421_v45 }
 0x4fc   : > { %10050 = vmatpush3.xpose.msk.msra.mxu0 %vm928_vm0, %v17812_v22  ;;  %10059 = vmatprep.mubr.msk.f32.mxu0 %vm928_vm0, %v13431_v37  ;;  %v17836_v22 = vld [vmem:[#allocation242_spill] sm:$0xff] }
 0x4fd   : > { %v14431_v40 = vpop.eup %11042  ;;  %10051 = vmatprep.subr.msk.mxu0 %vm928_vm0, %v17815_v28 }
 0x4fe   : > { %17814 = vst [vmem:[#allocation30_spill] sm:$0xff] %v14431_v40  ;;  %v14435_v50 = vpop.eup %11044  ;;  %10031 = vmatprep.mubr.msk.f32.mxu1 %vm1605_vm1, %v14431_v40  ;;  %v11483_v40 = vld [vmem:[#allocation8 + $0x40] sm:$0xff] }
 0x4ff   : > { %17816 = vst [vmem:[#allocation226_spill] sm:$0xff] %v14435_v50  ;;  %10032 = vmatmul.mubr.msk.f32.vlgmr.msra.gmra.mxu1 %vm1605_vm1, %v14435_v50 }
 0x500   : > { %10052 = vmatpush3.xpose.msk.msra.mxu0 %vm928_vm0, %v17815_v28  ;;  %10072 = vmatpush3.xpose.msk.msra.mxu1 %vm928_vm0, %v13375_v16  ;;  %v17837_v28 = vld [vmem:[#allocation232_spill] sm:$0xff] }
 0x501   : > { %v14445_v37 = vpop.eup %11046  ;;  %10053 = vmatprep.subr.msk.mxu0 %vm928_vm0, %v17818_v51  ;;  %10073 = vmatprep.subr.msk.mxu1 %vm928_vm0, %v13383_v52 }
 0x502   : > { %17817 = vst [vmem:[#allocation224_spill] sm:$0xff] %v14445_v37  ;;  %v14451_v43 = vpop.eup %11048  ;;  %10034 = vmatprep.mubr.msk.f32.mxu1 %vm1605_vm1, %v14445_v37 }
 0x503   : > { %17819 = vst [vmem:[#allocation35_spill] sm:$0xff] %v14451_v43  ;;  %10035 = vmatmul.mubr.msk.f32.gmra.mxu1 %vm1605_vm1, %v14451_v43  ;;  %v14457_v63 = vpop.eup %11050 }
 0x504   : > { %17820 = vst [vmem:[#allocation212_spill] sm:$0xff] %v14457_v63  ;;  %10054 = vmatpush3.xpose.msk.msra.mxu0 %vm928_vm0, %v17818_v51  ;;  %10074 = vmatpush3.xpose.msk.msra.mxu1 %vm928_vm0, %v13383_v52  ;;  %v14467_v16 = vpop.eup %11052  ;;  %v17822_v52 = vld [vmem:[#allocation234_spill] sm:$0xff]  ;;  %v17838_v51 = vld [vmem:[#allocation116_spill] sm:$0xff] }
 0x505   : > { %10037 = vmatprep.mubr.msk.f32.mxu1 %vm1605_vm1, %v14457_v63  ;;  %10055 = vmatprep.subr.msk.mxu0 %vm928_vm0, %v13399_v53  ;;  %17821 = vst [vmem:[#allocation223_spill] sm:$0xff] %v14467_v16 }
 0x506   : > { %10075 = vmatprep.subr.msk.mxu1 %vm928_vm0, %v13407_v30 }
 0x507   : > { %10038 = vmatmul.mubr.msk.f32.gmra.mxu1 %vm1605_vm1, %v14467_v16 }
 0x508   : > { %10056 = vmatpush3.xpose.msk.msra.mxu0 %vm928_vm0, %v13399_v53  ;;  %10076 = vmatpush3.xpose.msk.msra.mxu1 %vm928_vm0, %v13407_v30  ;;  %v17826_v53 = vld [vmem:[#allocation229_spill] sm:$0xff]  ;;  %v17827_v30 = vld [vmem:[#allocation246_spill] sm:$0xff] }
 0x509   : > { %10057 = vmatprep.subr.msk.mxu0 %vm928_vm0, %v17822_v52  ;;  %10077 = vmatprep.subr.msk.mxu1 %vm928_vm0, %v17823_v39 }
 0x50c   : > { %10058 = vmatpush3.xpose.msk.msra.mxu0 %vm928_vm0, %v17822_v52  ;;  %10078 = vmatpush3.xpose.msk.msra.mxu1 %vm928_vm0, %v17823_v39  ;;  %v17839_v52 = vld [vmem:[#allocation245_spill] sm:$0xff]  ;;  %v3309_v39 = vpop.xlane.xlu0 %3308 }
 0x50d   : > { %10079 = vmatprep.subr.msk.mxu1 %vm928_vm0, %v17824_v58  ;;  %10099 = vmatprep.subr.msk.mxu0 %vm928_vm0, %v17825_v26 }
 0x50f   : > { %10060 = vmatmul.mubr.msk.f32.vlgmr.msra.gmra.mxu0 %vm928_vm0, %v17826_v53  ;;  %v3341_v53 = vsub.f32 %v14127_v8, %v3309_v39 }
 0x510   : > { %10062 = vmatprep.mubr.msk.f32.mxu0 %vm928_vm0, %v17827_v30  ;;  %10080 = vmatpush3.xpose.msk.msra.mxu1 %vm928_vm0, %v17824_v58  ;;  %v17840_v58 = vld [vmem:[#allocation233_spill] sm:$0xff]  ;;  %v17841_v30 = vld [vmem:[#allocation195_spill] sm:$0xff] }
 0x511   : > { %10100 = vmatpush3.xpose.msk.msra.mxu0 %vm928_vm0, %v17825_v26  ;;  %10081 = vmatprep.subr.msk.mxu1 %vm928_vm0, %v17828_v19  ;;  %v5283_v26 = vpop.permute.xlu1 %5282 }
 0x512   : > { %10101 = vmatprep.subr.msk.mxu0 %vm928_vm0, %v17829_v29 }
 0x513   : > { %10063 = vmatmul.mubr.msk.f32.gmra.mxu0 %vm928_vm0, %v17830_v27  ;;  %v5285_v27 = vpop.permute.xlu0 %5284 }
 0x514   : > { %10065 = vmatprep.mubr.msk.f32.mxu0 %vm928_vm0, %v17831_v12  ;;  %10082 = vmatpush3.xpose.msk.msra.mxu1 %vm928_vm0, %v17828_v19 }
 0x515   : > { %10102 = vmatpush3.xpose.msk.msra.mxu0 %vm928_vm0, %v17829_v29  ;;  %10083 = vmatprep.subr.msk.mxu1 %vm928_vm0, %v17832_v48  ;;  %v3404_v29 = vmul.f32 1.442695, %v3341_v53 }
 0x516   : > { %10103 = vmatprep.subr.msk.mxu0 %vm928_vm0, %v17833_v54 }
 0x517   : > { %10066 = vmatmul.mubr.msk.f32.gmra.mxu0 %vm928_vm0, %v17834_v59  ;;  %v5281_v59 = vpop.permute.xlu0 %5280 }
 0x518   : > { %10068 = vmatprep.mubr.msk.f32.mxu0 %vm928_vm0, %v17835_v4  ;;  %10084 = vmatpush3.xpose.msk.msra.mxu1 %vm928_vm0, %v17832_v48  ;;  %v17842_v48 = vld [vmem:[#allocation129_spill] sm:$0xff]  ;;  %v17844_v4 = vld [vmem:[#allocation178_spill] sm:$0xff] }
 0x519   : > { %10104 = vmatpush3.xpose.msk.msra.mxu0 %vm928_vm0, %v17833_v54  ;;  %10085 = vmatprep.subr.msk.mxu1 %vm928_vm0, %v17836_v22  ;;  %v17843_v54 = vld [vmem:[#allocation182_spill] sm:$0xff] }
 0x51a   : > { %10105 = vmatprep.subr.msk.mxu0 %vm928_vm0, %v17837_v28 }
 0x51b   : > { %10069 = vmatmul.mubr.msk.f32.gmra.mxu0 %vm928_vm0, %v17838_v51 }
 0x51c   : > { %10086 = vmatpush3.xpose.msk.msra.mxu1 %vm928_vm0, %v17836_v22  ;;  %10115 = vmatprep.mubr.msk.f32.mxu0 %vm928_vm0, %v14133_v47  ;;  %v5275_v22 = vpop.permute.xlu0 %5274 }
 0x51d   : > { %10106 = vmatpush3.xpose.msk.msra.mxu0 %vm928_vm0, %v17837_v28  ;;  %10127 = vmatprep.subr.msk.mxu1 %vm928_vm0, %v17839_v52  ;;  %v17845_v28 = vld [vmem:[#allocation150_spill] sm:$0xff] }
 0x51e   : > { %10107 = vmatprep.subr.msk.mxu0 %vm928_vm0, %v17840_v58 }
 0x520   : > { %v5273_v53 = vpop.permute.xlu0 %5272 }
 0x521   : > { %10108 = vmatpush3.xpose.msk.msra.mxu0 %vm928_vm0, %v17840_v58 }
 0x522   : > { %10109 = vmatprep.subr.msk.mxu0 %vm928_vm0, %v17841_v30 }
 0x524   : > { %v3306_v47 = vpop.xlane.xlu1 %3305 }
 0x525   : > { %v3340_v19 = vsub.f32 %v14183_v2, %v3306_v47  ;;  %10110 = vmatpush3.xpose.msk.msra.mxu0 %vm928_vm0, %v17841_v30  ;;  %v17850_v30 = vld [vmem:[#allocation235_spill] sm:$0xff]  ;;  %v5271_v47 = vpop.permute.xlu0 %5270 }
 0x526   : > { %10111 = vmatprep.subr.msk.mxu0 %vm928_vm0, %v17842_v48 }
 0x527   : > { %v3402_v12 = vmul.f32 1.442695, %v3340_v19  ;;  %v17852_v19 = vld [vmem:[#allocation170_spill] sm:$0xff] }
 0x528   : > { %v5279_v8 = vpop.permute.xlu1 %5278 }
 0x529   : > { %11054 = vpow2.f32 %v3402_v12  ;;  %10112 = vmatpush3.xpose.msk.msra.mxu0 %vm928_vm0, %v17842_v48  ;;  %v17856_v12 = vld [vmem:[#allocation152_spill] sm:$0xff] }
 0x52a   : > { %11056 = vpow2.f32 %v3404_v29  ;;  %10113 = vmatprep.subr.msk.mxu0 %vm928_vm0, %v17843_v54  ;;  %v17853_v29 = vld [vmem:[#allocation120_spill] sm:$0xff] }
 0x52b   : > { %v17857_v48 = vld [vmem:[#allocation104_spill] sm:$0xff] }
 0x52c   : > { %v5277_v2 = vpop.permute.xlu1 %5276 }
 0x52d   : > { %10114 = vmatpush3.xpose.msk.msra.mxu0 %vm928_vm0, %v17843_v54 }
 0x52e   : > { %10155 = vmatprep.subr.mxu0 %v5285_v27 }
 0x530   : > { %10116 = vmatmul.mubr.msk.f32.vlgmr.msra.gmra.mxu0 %vm928_vm0, %v17844_v4  ;;  %v14561_v39 = vpop.permute.xlu1 %5590  ;;  %v17860_v4 = vld [vmem:[#allocation147_spill] sm:$0xff] }
 0x531   : > { %10118 = vmatprep.mubr.msk.f32.mxu0 %vm928_vm0, %v17845_v28  ;;  %10156 = vmatpush3.msra.mxu0 %v5285_v27  ;;  %v17854_v27 = vld [vmem:[#allocation188_spill] sm:$0xff] }
 0x532   : > { %10157 = vmatprep.subr.mxu0 %v5283_v26 }
 0x533   : > { %10158 = vmatpush3.msra.mxu0 %v5283_v26 }
 0x534   : > { %10119 = vmatmul.mubr.msk.f32.gmra.mxu0 %vm928_vm0, %v14177_v34  ;;  %10159 = vmatprep.subr.mxu0 %v5281_v59  ;;  %v17848_v34 = vld [vmem:[#allocation110_spill] sm:$0xff]  ;;  %v5436_v26 = vpop.permute.xlu1 %5435 }
 0x535   : > { %10121 = vmatprep.mubr.msk.f32.mxu0 %vm928_vm0, %v14181_v61  ;;  %10160 = vmatpush3.msra.mxu0 %v5281_v59  ;;  %v17849_v61 = vld [vmem:[#allocation244_spill] sm:$0xff]  ;;  %v17859_v59 = vld [vmem:[#allocation158_spill] sm:$0xff] }
 0x536   : > { %v14559_v51 = vpop.eup %11054  ;;  %10161 = vmatprep.subr.mxu0 %v5279_v8 }
 0x537   : > { %17846 = vst [vmem:[#allocation221_spill] sm:$0xff] %v14559_v51  ;;  %v14565_v58 = vpop.eup %11056  ;;  %10040 = vmatprep.mubr.msk.f32.mxu1 %vm1605_vm1, %v14559_v51  ;;  %10162 = vmatpush3.msra.mxu0 %v5279_v8  ;;  %v17858_v8 = vld [vmem:[#allocation165_spill] sm:$0xff]  ;;  %v11480_v51 = vld [vmem:[#allocation8 + $0x38] sm:$0xff] }
 0x538   : > { %17847 = vst [vmem:[#allocation228_spill] sm:$0xff] %v14565_v58  ;;  %10041 = vmatmul.mubr.msk.f32.gmra.mxu1 %vm1605_vm1, %v14565_v58  ;;  %10122 = vmatmul.mubr.msk.f32.gmra.mxu0 %vm928_vm0, %v14185_v15  ;;  %v17851_v15 = vld [vmem:[#allocation189_spill] sm:$0xff] }
 0x539   : > { %10163 = vmatprep.subr.mxu0 %v5277_v2  ;;  %10124 = vmatprep.mubr.msk.f32.mxu0 %vm928_vm0, %v17848_v34 }
 0x53a   : > { %10164 = vmatpush3.msra.mxu0 %v5277_v2  ;;  %10087 = vmatprep.mubr.msk.f32.mxu1 %vm928_vm0, %v17849_v61  ;;  %v5438_v2 = vpop.permute.xlu0 %5437  ;;  %v17863_v61 = vld [vmem:[#allocation95_spill] sm:$0xff] }
 0x53b   : > { %10165 = vmatprep.subr.mxu0 %v5275_v22 }
 0x53c   : > { %10166 = vmatpush3.msra.mxu0 %v5275_v22  ;;  %10088 = vmatmul.mubr.msk.f32.vlgmr.msra.gmra.mxu1 %vm928_vm0, %v17850_v30  ;;  %v17861_v22 = vld [vmem:[#allocation162_spill] sm:$0xff] }
 0x53d   : > { %10125 = vmatmul.mubr.msk.f32.gmra.mxu0 %vm928_vm0, %v14195_v49  ;;  %10167 = vmatprep.subr.mxu0 %v5273_v53  ;;  %v14590_v49 = vpop.permute.xlu1 %5588 }
 0x53e   : > { %10168 = vmatpush3.msra.mxu0 %v5273_v53  ;;  %10128 = vmatpush3.xpose.msk.msra.mxu1 %vm928_vm0, %v17839_v52  ;;  %v17855_v52 = vld [vmem:[#allocation164_spill] sm:$0xff]  ;;  %v17862_v53 = vld [vmem:[#allocation159_spill] sm:$0xff]  ;;  %v5434_v34 = vpop.permute.xlu0 %5433 }
 0x53f   : > { %10169 = vmatprep.subr.mxu0 %v5271_v47  ;;  %10090 = vmatprep.mubr.msk.f32.mxu1 %vm928_vm0, %v17851_v15  ;;  %v17864_v15 = vld [vmem:[#allocation101_spill] sm:$0xff] }
 0x540   : > { %10129 = vmatprep.subr.msk.mxu1 %vm928_vm0, %v17852_v19  ;;  %10170 = vmatpush3.msra.mxu0 %v5271_v47 }
 0x541   : > { %10211 = vmatprep.subr.mxu0 %v14561_v39  ;;  %10091 = vmatmul.mubr.msk.f32.gmra.mxu1 %vm928_vm0, %v17853_v29  ;;  %v5432_v54 = vpop.permute.xlu1 %5431 }
 0x542   : > { %10130 = vmatpush3.xpose.msk.msra.mxu1 %vm928_vm0, %v17852_v19  ;;  %10093 = vmatprep.mubr.msk.f32.mxu1 %vm928_vm0, %v17854_v27  ;;  %v14624_v47 = vpop.permute.xlu0 %5586  ;;  %v17865_v27 = vld [vmem:[#allocation175_spill] sm:$0xff] }
 0x543   : > { %10131 = vmatprep.subr.msk.mxu1 %vm928_vm0, %v17855_v52 }
 0x545   : > { %10094 = vmatmul.mubr.msk.f32.gmra.mxu1 %vm928_vm0, %v17856_v12  ;;  %v14614_v28 = vpop.permute.xlu1 %5584 }
 0x546   : > { %10132 = vmatpush3.xpose.msk.msra.mxu1 %vm928_vm0, %v17855_v52  ;;  %10096 = vmatprep.mubr.msk.f32.mxu1 %vm928_vm0, %v17857_v48  ;;  %v5428_v29 = vpop.permute.xlu0 %5427  ;;  %v17866_v52 = vld [vmem:[#allocation125_spill] sm:$0xff] }
 0x547   : > { %10133 = vmatprep.subr.msk.mxu1 %vm928_vm0, %v17858_v8  ;;  %v17867_v48 = vld [vmem:[#allocation193_spill] sm:$0xff] }
 0x549   : > { %10097 = vmatmul.mubr.msk.f32.gmra.mxu1 %vm928_vm0, %v17859_v59  ;;  %v5430_v30 = vpop.permute.xlu1 %5429  ;;  %v17868_v59 = vld [vmem:[#allocation180_spill] sm:$0xff] }
 0x54a   : > { %10134 = vmatpush3.xpose.msk.msra.mxu1 %vm928_vm0, %v17858_v8  ;;  %10143 = vmatprep.mubr.msk.f32.mxu1 %vm928_vm0, %v17860_v4  ;;  %v14640_v8 = vpop.permute.xlu0 %5580  ;;  %v17869_v4 = vld [vmem:[#allocation121_spill] sm:$0xff] }
 0x54b   : > { %10135 = vmatprep.subr.msk.mxu1 %vm928_vm0, %v17861_v22 }
 0x54d   : > { %v14630_v19 = vpop.permute.xlu1 %5582 }
 0x54e   : > { %10136 = vmatpush3.xpose.msk.msra.mxu1 %vm928_vm0, %v17861_v22  ;;  %v17870_v22 = vld [vmem:[#allocation174_spill] sm:$0xff] }
 0x54f   : > { %10137 = vmatprep.subr.msk.mxu1 %vm928_vm0, %v17862_v53 }
 0x551   : > { %v5424_v12 = vpop.permute.xlu1 %5423 }
 0x552   : > { %10138 = vmatpush3.xpose.msk.msra.mxu1 %vm928_vm0, %v17862_v53  ;;  %v17871_v53 = vld [vmem:[#allocation134_spill] sm:$0xff] }
 0x553   : > { %10139 = vmatprep.subr.msk.mxu1 %vm928_vm0, %v17863_v61 }
 0x556   : > { %10140 = vmatpush3.xpose.msk.msra.mxu1 %vm928_vm0, %v17863_v61 }
 0x557   : > { %10141 = vmatprep.subr.msk.mxu1 %vm928_vm0, %v17864_v15 }
 0x55a   : > { %10142 = vmatpush3.xpose.msk.msra.mxu1 %vm928_vm0, %v17864_v15 }
 0x55b   : > { %10183 = vmatprep.subr.mxu1 %v5438_v2 }
 0x55d   : > { %10144 = vmatmul.mubr.msk.f32.vlgmr.msra.gmra.mxu1 %vm928_vm0, %v17865_v27 }
 0x55e   : > { %10146 = vmatprep.mubr.msk.f32.mxu1 %vm928_vm0, %v17866_v52  ;;  %10184 = vmatpush3.msra.mxu1 %v5438_v2  ;;  %v14646_v2 = vpop.permute.xlu1 %5576 }
 0x55f   : > { %10185 = vmatprep.subr.mxu1 %v5436_v26 }
 0x560   : > { %10186 = vmatpush3.msra.mxu1 %v5436_v26  ;;  %v5426_v26 = vpop.permute.xlu0 %5425 }
 0x561   : > { %10147 = vmatmul.mubr.msk.f32.gmra.mxu1 %vm928_vm0, %v17867_v48  ;;  %10187 = vmatprep.subr.mxu1 %v5434_v34 }
 0x562   : > { %10149 = vmatprep.mubr.msk.f32.mxu1 %vm928_vm0, %v17868_v59  ;;  %10188 = vmatpush3.msra.mxu1 %v5434_v34 }
 0x563   : > { %10189 = vmatprep.subr.mxu1 %v5432_v54 }
 0x564   : > { %10190 = vmatpush3.msra.mxu1 %v5432_v54  ;;  %v14652_v54 = vpop.permute.xlu1 %5743 }
 0x565   : > { %10150 = vmatmul.mubr.msk.f32.gmra.mxu1 %vm928_vm0, %v17869_v4  ;;  %10191 = vmatprep.subr.mxu1 %v5430_v30 }
 0x566   : > { %10152 = vmatprep.mubr.msk.f32.mxu1 %vm928_vm0, %v17870_v22  ;;  %10192 = vmatpush3.msra.mxu1 %v5430_v30 }
 0x567   : > { %10193 = vmatprep.subr.mxu1 %v5428_v29 }
 0x568   : > { %10194 = vmatpush3.msra.mxu1 %v5428_v29 }
 0x569   : > { %10153 = vmatmul.mubr.msk.f32.gmra.mxu1 %vm928_vm0, %v17871_v53  ;;  %10195 = vmatprep.subr.mxu1 %v5426_v26 }
 0x56a   : > { %10196 = vmatpush3.msra.mxu1 %v5426_v26 }
 0x56b   : > { %10197 = vmatprep.subr.mxu1 %v5424_v12 }
 0x56c   : > { %10198 = vmatpush3.msra.mxu1 %v5424_v12 }
 0x56d   : > { %10239 = vmatprep.subr.mxu1 %v14652_v54 }
 0x588   : > { %v14655_v34 = vpop.f32.mrf.mxu0 }
 0x589   : > { %17872 = vst [vmem:[#allocation225_spill] sm:$0xff] %v14655_v34  ;;  %v11478_v34 = vld [vmem:[#allocation8 + $0x28] sm:$0xff] }
 0x58a   : > { %v14657_v61 = vpop.f32.mrf.mxu0 }
 0x58b   : > { %17873 = vst [vmem:[#allocation234_spill] sm:$0xff] %v14657_v61 }
 0x591   : > { %v14659_v15 = vpop.f32.mrf.mxu0 }
 0x592   : > { %17874 = vst [vmem:[#allocation236_spill] sm:$0xff] %v14659_v15 }
 0x593   : > { %v14661_v30 = vpop.f32.mrf.mxu0 }
 0x594   : > { %17875 = vst [vmem:[#allocation227_spill] sm:$0xff] %v14661_v30  ;;  %v11475_v30 = vld [vmem:[#allocation8] sm:$0xff] }
 0x595   : > { %v14663_v29 = vpop.f32.mrf.mxu0 }
 0x596   : > { %17876 = vst [vmem:[#allocation238_spill] sm:$0xff] %v14663_v29 }
 0x597   : > { %v14665_v27 = vpop.f32.mrf.mxu0 }
 0x598   : > { %17877 = vst [vmem:[#allocation229_spill] sm:$0xff] %v14665_v27 }
 0x599   : > { %v14667_v52 = vpop.f32.mrf.mxu0 }
 0x59a   : > { %17878 = vst [vmem:[#allocation246_spill] sm:$0xff] %v14667_v52 }
 0x59b   : > { %v14669_v48 = vpop.f32.mrf.mxu0  ;;  %v14681_v53 = vpop.f32.mrf.mxu1 }
 0x59c   : > { %17879 = vst [vmem:[#allocation239_spill] sm:$0xff] %v14669_v48  ;;  %17885 = vst [vmem:[#allocation111_spill] sm:$0xff] %v14681_v53 }
 0x59d   : > { %v14685_v29 = vpop.f32.mrf.mxu1 }
 0x59e   : > { %17887 = vst [vmem:[#allocation242_spill] sm:$0xff] %v14685_v29 }
 0x59f   : > { %v14689_v52 = vpop.f32.mrf.mxu1 }
 0x5a0   : > { %17889 = vst [vmem:[#allocation116_spill] sm:$0xff] %v14689_v52 }
 0x5af   : > { %v14671_v59 = vpop.f32.mrf.mxu0 }
 0x5b0   : > { %17880 = vst [vmem:[#allocation230_spill] sm:$0xff] %v14671_v59  ;;  %v14693_v59 = vpop.f32.mrf.mxu1 }
 0x5b1   : > { %v14673_v12 = vpop.f32.mrf.mxu0  ;;  %17891 = vst [vmem:[#allocation233_spill] sm:$0xff] %v14693_v59  ;;  %v11476_v59 = vld [vmem:[#allocation8 + $0x18] sm:$0xff] }
 0x5b2   : > { %17881 = vst [vmem:[#allocation237_spill] sm:$0xff] %v14673_v12  ;;  %v14697_v53 = vpop.f32.mrf.mxu1 }
 0x5b3   : > { %v14675_v4 = vpop.f32.mrf.mxu0  ;;  %17892 = vst [vmem:[#allocation195_spill] sm:$0xff] %v14697_v53  ;;  %v11477_v53 = vld [vmem:[#allocation8 + $0x10] sm:$0xff] }
 0x5b4   : > { %17882 = vst [vmem:[#allocation166_spill] sm:$0xff] %v14675_v4 }
 0x5b5   : > { %v14677_v22 = vpop.f32.mrf.mxu0 }
 0x5b6   : > { %17883 = vst [vmem:[#allocation240_spill] sm:$0xff] %v14677_v22  ;;  %v11474_v22 = vld [vmem:[#allocation8 + $0x8] sm:$0xff] }
 0x5b7   : > { %v14679_v26 = vpop.f32.mrf.mxu0 }
 0x5b8   : > { %17884 = vst [vmem:[#allocation231_spill] sm:$0xff] %v14679_v26 }
 0x5b9   : > { %v14683_v58 = vpop.f32.mrf.mxu0 }
 0x5ba   : > { %17886 = vst [vmem:[#allocation176_spill] sm:$0xff] %v14683_v58 }
 0x5bb   : > { %v14687_v27 = vpop.f32.mrf.mxu0 }
 0x5bc   : > { %17888 = vst [vmem:[#allocation232_spill] sm:$0xff] %v14687_v27 }
 0x5bd   : > { %v14691_v48 = vpop.f32.mrf.mxu0 }
 0x5be   : > { %17890 = vst [vmem:[#allocation245_spill] sm:$0xff] %v14691_v48 }
 0x5cf   : > { %v10061_v12 = vpop.f32.mrf.mxu0 }
 0x5d0   : > { %v4887_v4 = vmul.f32 0.17677669, %v10061_v12 }
 0x5d1   : > { %v4340_v16 = vpop.f32.mrf.mxu0 }
 0x5d2   : > { %v14695_v15 = vadd.f32 %v11474_v22, %v4887_v4  ;;  %v4886_v26 = vmul.f32 0.17677669, %v4340_v16  ;;  %v14707_v16 = vpop.f32.mrf.mxu1 }
 0x5d3   : > { %v10064_v58 = vpop.f32.mrf.mxu0  ;;  %17893 = vst [vmem:[#allocation129_spill] sm:$0xff] %v14707_v16  ;;  %v11479_v16 = vld [vmem:[#allocation8 + $0x20] sm:$0xff] }
 0x5d4   : > { %v14699_v29 = vadd.f32 %v11475_v30, %v4886_v26  ;;  %v4889_v27 = vmul.f32 0.17677669, %v10064_v58  ;;  %v4953_v52 = vsel %vm1605_vm1, %v14695_v15, -inf }
 0x5d5   : > { %4954 = vmax.xlane.f32.xlu0 %v4953_v52  ;;  %v4350_v48 = vpop.f32.mrf.mxu0 }
 0x5d6   : > { %v14703_v43 = vadd.f32 %v11476_v59, %v4889_v27  ;;  %v4888_v12 = vmul.f32 0.17677669, %v4350_v48  ;;  %v4950_v4 = vsel %vm1605_vm1, %v14699_v29, -inf  ;;  %v14717_v59 = vpop.f32.mrf.mxu1 }
 0x5d7   : > { %4951 = vmax.xlane.f32.xlu1 %v4950_v4  ;;  %v10067_v22 = vpop.f32.mrf.mxu0  ;;  %17894 = vst [vmem:[#allocation182_spill] sm:$0xff] %v14717_v59 }
 0x5d8   : > { %v14709_v30 = vadd.f32 %v11477_v53, %v4888_v12  ;;  %v4891_v58 = vmul.f32 0.17677669, %v10067_v22  ;;  %v4959_v27 = vsel %vm1605_vm1, %v14703_v43, -inf  ;;  %v14727_v45 = vpop.f32.mrf.mxu1 }
 0x5d9   : > { %v4360_v26 = vpop.f32.mrf.mxu0  ;;  %17895 = vst [vmem:[#allocation178_spill] sm:$0xff] %v14727_v45 }
 0x5da   : > { %v14711_v61 = vadd.f32 %v11478_v34, %v4891_v58  ;;  %v4890_v52 = vmul.f32 0.17677669, %v4360_v26  ;;  %v4956_v48 = vsel %vm1605_vm1, %v14709_v30, -inf }
 0x5db   : > { %4960 = vmax.xlane.f32.xlu1 %v4959_v27  ;;  %4957 = vmax.xlane.f32.xlu0 %v4956_v48  ;;  %v10070_v4 = vpop.f32.mrf.mxu0  ;;  %v11481_v27 = vld [vmem:[#allocation8 + $0x30] sm:$0xff] }
 0x5dc   : > { %v14719_v53 = vadd.f32 %v11479_v16, %v4890_v52  ;;  %v4893_v12 = vmul.f32 0.17677669, %v10070_v4  ;;  %v4965_v26 = vsel %vm1605_vm1, %v14711_v61, -inf  ;;  %v14731_v16 = vpop.f32.mrf.mxu1 }
 0x5dd   : > { %v4370_v22 = vpop.f32.mrf.mxu0  ;;  %17896 = vst [vmem:[#allocation150_spill] sm:$0xff] %v14731_v16 }
 0x5de   : > { %v14721_v34 = vadd.f32 %v11480_v51, %v4893_v12  ;;  %v4892_v58 = vmul.f32 0.17677669, %v4370_v22  ;;  %v4962_v50 = vsel %vm1605_vm1, %v14719_v53, -inf  ;;  %v14737_v4 = vpop.f32.mrf.mxu1 }
 0x5df   : > { %4966 = vmax.xlane.f32.xlu1 %v4965_v26  ;;  %4963 = vmax.xlane.f32.xlu0 %v4962_v50  ;;  %17897 = vst [vmem:[#allocation110_spill] sm:$0xff] %v14737_v4 }
 0x5e0   : > { %v14729_v48 = vadd.f32 %v11481_v27, %v4892_v58  ;;  %v4971_v51 = vsel %vm1605_vm1, %v14721_v34, -inf  ;;  %v14739_v12 = vpop.f32.mrf.mxu1 }
 0x5e1   : > { %17898 = vst [vmem:[#allocation244_spill] sm:$0xff] %v14739_v12 }
 0x5e2   : > { %v4968_v52 = vsel %vm1605_vm1, %v14729_v48, -inf  ;;  %v14741_v22 = vpop.f32.mrf.mxu1 }
 0x5e3   : > { %4972 = vmax.xlane.f32.xlu1 %v4971_v51  ;;  %4969 = vmax.xlane.f32.xlu0 %v4968_v52  ;;  %17899 = vst [vmem:[#allocation235_spill] sm:$0xff] %v14741_v22 }
 0x5e4   : > { %v14745_v58 = vpop.f32.mrf.mxu1 }
 0x5e5   : > { %17900 = vst [vmem:[#allocation189_spill] sm:$0xff] %v14745_v58 }
 0x5e6   : > { %v14751_v16 = vpop.f32.mrf.mxu1 }
 0x5e7   : > { %17901 = vst [vmem:[#allocation170_spill] sm:$0xff] %v14751_v16 }
 0x5f0   : > { %v14743_v50 = vpop.f32.mrf.mxu0 }
 0x5f2   : > { %v14747_v26 = vpop.f32.mrf.mxu0 }
 0x5f4   : > { %v14749_v27 = vpop.f32.mrf.mxu0 }
 0x5f6   : > { %v4688_v45 = vpop.f32.mrf.mxu0 }
 0x5f7   : > { %v4904_v14 = vmul.f32 0.17677669, %v4688_v45  ;;  %v11485_v45 = vld [vmem:[#allocation8 + $0x90] sm:$0xff] }
 0x5f8   : > { %v14753_v59 = vpop.f32.mrf.mxu1  ;;  %v14757_v52 = vpop.f32.mrf.mxu0 }
 0x5f9   : > { %17902 = vst [vmem:[#allocation120_spill] sm:$0xff] %v14753_v59 }
 0x5fa   : > { %v14755_v51 = vpop.f32.mrf.mxu1  ;;  %v4698_v63 = vpop.f32.mrf.mxu0 }
 0x5fb   : > { %17903 = vst [vmem:[#allocation188_spill] sm:$0xff] %v14755_v51 }
 0x5fc   : > { %v10089_v4 = vpop.f32.mrf.mxu1 }
 0x5fd   : > { %v4895_v12 = vmul.f32 0.17677669, %v10089_v4  ;;  %v14765_v51 = vpop.f32.mrf.mxu0 }
 0x5fe   : > { %v4509_v22 = vpop.f32.mrf.mxu1 }
 0x5ff   : > { %v14759_v37 = vadd.f32 %v11482_v56, %v4895_v12  ;;  %v4894_v58 = vmul.f32 0.17677669, %v4509_v22  ;;  %v4708_v18 = vpop.f32.mrf.mxu0 }
 0x601   : > { %v14761_v9 = vadd.f32 %v11483_v40, %v4894_v58  ;;  %v10092_v16 = vpop.f32.mrf.mxu1  ;;  %v4977_v59 = vsel %vm1605_vm1, %v14759_v37, -inf  ;;  %v14771_v40 = vadd.f32 %v11485_v45, %v4904_v14  ;;  %v4906_v58 = vmul.f32 0.17677669, %v4698_v63  ;;  %v11488_v63 = vld [vmem:[#allocation8 + $0xa0] sm:$0xff] }
 0x602   : > { %v4897_v11 = vmul.f32 0.17677669, %v10092_v16  ;;  %4978 = vmax.xlane.f32.xlu0 %v4977_v59  ;;  %v11489_v45 = vld [vmem:[#allocation8 + $0x60] sm:$0xff] }
 0x603   : > { %v4519_v3 = vpop.f32.mrf.mxu1  ;;  %v4974_v4 = vsel %vm1605_vm1, %v14761_v9, -inf }
 0x604   : > { %v14769_v56 = vadd.f32 %v11484_v13, %v4897_v11  ;;  %v4896_v12 = vmul.f32 0.17677669, %v4519_v3  ;;  %4975 = vmax.xlane.f32.xlu1 %v4974_v4  ;;  %v14781_v4 = vadd.f32 %v11488_v63, %v4906_v58 }
 0x605   : > { %v10095_v22 = vpop.f32.mrf.mxu1 }
 0x606   : > { %v14773_v62 = vadd.f32 %v11486_v57, %v4896_v12  ;;  %v4899_v59 = vmul.f32 0.17677669, %v10095_v22  ;;  %v4983_v16 = vsel %vm1605_vm1, %v14769_v56, -inf  ;;  %v4908_v57 = vmul.f32 0.17677669, %v4708_v18  ;;  %v11491_v18 = vld [vmem:[#allocation8 + $0x78] sm:$0xff] }
 0x607   : > { %4984 = vmax.xlane.f32.xlu0 %v4983_v16  ;;  %v4529_v32 = vpop.f32.mrf.mxu1  ;;  %v5004_v12 = vsel %vm1605_vm1, %v14771_v40, -inf  ;;  %v5010_v58 = vsel %vm1605_vm1, %v14781_v4, -inf }
 0x608   : > { %v14777_v13 = vadd.f32 %v11487_v38, %v4899_v59  ;;  %v4898_v3 = vmul.f32 0.17677669, %v4529_v32  ;;  %v4980_v14 = vsel %vm1605_vm1, %v14773_v62, -inf  ;;  %v11490_v59 = vld [vmem:[#allocation8 + $0xb0] sm:$0xff] }
 0x609   : > { %4981 = vmax.xlane.f32.xlu1 %v4980_v14  ;;  %v10098_v11 = vpop.f32.mrf.mxu1  ;;  %v14789_v14 = vadd.f32 %v11490_v59, %v4908_v57  ;;  %v11492_v57 = vld [vmem:[#allocation8 + $0x70] sm:$0xff] }
 0x60a   : > { %v14785_v22 = vadd.f32 %v11489_v45, %v4898_v3  ;;  %v4901_v16 = vmul.f32 0.17677669, %v10098_v11  ;;  %v4989_v38 = vsel %vm1605_vm1, %v14777_v13, -inf  ;;  %v4903_v45 = vmul.f32 0.17677669, %v14743_v50 }
 0x60b   : > { %5005 = vmax.xlane.f32.xlu0 %v5004_v12  ;;  %v4539_v32 = vpop.f32.mrf.mxu1  ;;  %v5016_v11 = vsel %vm1605_vm1, %v14789_v14, -inf  ;;  %v4905_v50 = vmul.f32 0.17677669, %v14749_v27 }
 0x60c   : > { %v14793_v63 = vadd.f32 %v11491_v18, %v4901_v16  ;;  %v4900_v12 = vmul.f32 0.17677669, %v4539_v32  ;;  %v4986_v3 = vsel %vm1605_vm1, %v14785_v22, -inf  ;;  %v11493_v16 = vld [vmem:[#allocation8 + $0x88] sm:$0xff]  ;;  %v4902_v32 = vmul.f32 0.17677669, %v14747_v26 }
 0x60d   : > { %4990 = vmax.xlane.f32.xlu1 %v4989_v38 }
 0x60e   : > { %v14800_v38 = vadd.f32 %v11492_v57, %v4900_v12  ;;  %v4995_v59 = vsel %vm1605_vm1, %v14793_v63, -inf }
 0x60f   : > { %5011 = vmax.xlane.f32.xlu0 %v5010_v58  ;;  %v14804_v58 = vadd.f32 %v11493_v16, %v4903_v45  ;;  %v11495_v16 = vld [vmem:[#allocation8 + $0x98] sm:$0xff] }
 0x610   : > { %v4992_v18 = vsel %vm1605_vm1, %v14800_v38, -inf  ;;  %v14815_v33 = vadd.f32 %v11495_v16, %v4905_v50 }
 0x611   : > { %4987 = vmax.xlane.f32.xlu1 %v4986_v3  ;;  %v11494_v3 = vld [vmem:[#allocation8 + $0x80] sm:$0xff]  ;;  %v5001_v12 = vsel %vm1605_vm1, %v14804_v58, -inf }
 0x613   : > { %5017 = vmax.xlane.f32.xlu0 %v5016_v11  ;;  %v14809_v11 = vadd.f32 %v11494_v3, %v4902_v32  ;;  %v11496_v32 = vld [vmem:[#allocation8 + $0xc0] sm:$0xff] }
 0x615   : > { %4996 = vmax.xlane.f32.xlu1 %v4995_v59  ;;  %v4907_v59 = vmul.f32 0.17677669, %v14757_v52  ;;  %v4909_v52 = vmul.f32 0.17677669, %v14765_v51 }
 0x617   : > { %v14821_v31 = vadd.f32 %v11497_v35, %v4907_v59  ;;  %v11499_v35 = vld [vmem:[#allocation8 + $0xb8] sm:$0xff] }
 0x618   : > { %v14832_v59 = vadd.f32 %v11499_v35, %v4909_v52 }
 0x619   : > { %4993 = vmax.xlane.f32.xlu1 %v4992_v18  ;;  %v4998_v18 = vsel %vm1605_vm1, %v14809_v11, -inf }
 0x61a   : > { %v5019_v52 = vsel %vm1605_vm1, %v14832_v59, -inf }
 0x61d   : > { %v10145_v57 = vpop.f32.mrf.mxu1  ;;  %5002 = vmax.xlane.f32.xlu1 %v5001_v12 }
 0x61e   : > { %v4911_v51 = vmul.f32 0.17677669, %v10145_v57  ;;  %v11502_v57 = vld [vmem:[#allocation8 + $0xd0] sm:$0xff] }
 0x61f   : > { %v4847_v45 = vpop.f32.mrf.mxu1 }
 0x620   : > { %v4910_v26 = vmul.f32 0.17677669, %v4847_v45  ;;  %v5007_v45 = vsel %vm1605_vm1, %v14815_v33, -inf }
 0x621   : > { %v10148_v55 = vpop.f32.mrf.mxu1  ;;  %4999 = vmax.xlane.f32.xlu1 %v4998_v18  ;;  %v11500_v18 = vld [vmem:[#allocation8 + $0xe8] sm:$0xff] }
 0x622   : > { %v14819_v3 = vadd.f32 %v11496_v32, %v4910_v26  ;;  %v4913_v27 = vmul.f32 0.17677669, %v10148_v55  ;;  %v5013_v55 = vsel %vm1605_vm1, %v14821_v31, -inf }
 0x623   : > { %v4857_v12 = vpop.f32.mrf.mxu1 }
 0x624   : > { %v14824_v42 = vadd.f32 %v11498_v6, %v4913_v27  ;;  %v5022_v50 = vsel %vm1605_vm1, %v14819_v3, -inf  ;;  %v11501_v27 = vld [vmem:[#allocation8 + $0xc8] sm:$0xff] }
 0x625   : > { %5023 = vmax.xlane.f32.xlu0 %v5022_v50  ;;  %v10151_v16 = vpop.f32.mrf.mxu1  ;;  %5008 = vmax.xlane.f32.xlu1 %v5007_v45  ;;  %v14838_v50 = vadd.f32 %v11501_v27, %v4911_v51  ;;  %v4912_v45 = vmul.f32 0.17677669, %v4857_v12  ;;  %v11503_v51 = vld [vmem:[#allocation8 + $0xe0] sm:$0xff] }
 0x626   : > { %v4915_v26 = vmul.f32 0.17677669, %v10151_v16  ;;  %v5031_v32 = vsel %vm1605_vm1, %v14824_v42, -inf }
 0x627   : > { %v4867_v35 = vpop.f32.mrf.mxu1 }
 0x628   : > { %v14834_v6 = vadd.f32 %v11500_v18, %v4915_v26  ;;  %v14844_v26 = vadd.f32 %v11502_v57, %v4912_v45  ;;  %v4914_v18 = vmul.f32 0.17677669, %v4867_v35  ;;  %v14856_v45 = vpop.permute.xlu1 %5944  ;;  %v17906_v57 = vld [vmem:[#allocation28_spill] sm:$0xff] }
 0x629   : > { %5032 = vmax.xlane.f32.xlu0 %v5031_v32  ;;  %5014 = vmax.xlane.f32.xlu1 %v5013_v55  ;;  %v5025_v55 = vsel %vm1605_vm1, %v14838_v50, -inf }
 0x62a   : > { %v5037_v16 = vsel %vm1605_vm1, %v14834_v6, -inf  ;;  %v14848_v32 = vadd.f32 %v11503_v51, %v4914_v18  ;;  %v5028_v12 = vsel %vm1605_vm1, %v14844_v26, -inf  ;;  %v14864_v18 = vpop.permute.xlu0 %5578 }
 0x62c   : > { %v5034_v27 = vsel %vm1605_vm1, %v14848_v32, -inf  ;;  %v14860_v35 = vpop.permute.xlu1 %5739 }
 0x62d   : > { %5038 = vmax.xlane.f32.xlu0 %v5037_v16  ;;  %5020 = vmax.xlane.f32.xlu1 %v5019_v52  ;;  %v17904_v16 = vld [vmem:[#allocation77_spill] sm:$0xff]  ;;  %v17905_v52 = vld [vmem:[#allocation154_spill] sm:$0xff] }
 0x62e   : > { %v14868_v51 = vpop.permute.xlu0 %5741 }
 0x631   : > { %5026 = vmax.xlane.f32.xlu1 %v5025_v55  ;;  %v14866_v55 = vpop.permute.xlu1 %5942 }
 0x632   : > { %v14872_v44 = vpop.permute.xlu0 %5735 }
 0x635   : > { %5029 = vmax.xlane.f32.xlu1 %v5028_v12  ;;  %v10154_v12 = vpop.f32.mrf.mxu1 }
 0x636   : > { %v4917_v5 = vmul.f32 0.17677669, %v10154_v12 }
 0x637   : > { %v4877_v25 = vpop.f32.mrf.mxu1 }
 0x638   : > { %v14876_v24 = vadd.f32 %v11504_v21, %v4917_v5 }
 0x639   : > { %5035 = vmax.xlane.f32.xlu1 %v5034_v27  ;;  %v14870_v27 = vpop.permute.xlu1 %5737 }
 0x63a   : > { %v5043_v23 = vsel %vm1605_vm1, %v14876_v24, -inf }
 0x63d   : > { %v14874_v10 = vpop.permute.xlu1 %5940 }
 0x643   : > { %5731 = vrot.lane.b32.xlu0 %v17904_v16, %s11728_s10 }
 0x64a   : > { %5733 = vrot.lane.b32.xlu1 %v17905_v52, %s11728_s10 }
 0x64e   : > { %5938 = vrot.lane.b32.xlu1 %v17906_v57, %s11729_s12 }
 0x65e   : > { %v4955_v16 = vpop.xlane.xlu0 %4954 }
 0x65f   : > { %v5047_v57 = vsub.f32 %v14695_v15, %v4955_v16  ;;  %v4916_v16 = vmul.f32 0.17677669, %v4877_v25 }
 0x660   : > { %v4952_v1 = vpop.xlane.xlu1 %4951 }
 0x661   : > { %v5046_v52 = vsub.f32 %v14699_v29, %v4952_v1  ;;  %v5080_v17 = vmul.f32 1.442695, %v5047_v57  ;;  %v11505_v57 = vld [vmem:[#allocation8 + $0xf0] sm:$0xff] }
 0x662   : > { %5044 = vmax.xlane.f32.xlu0 %v5043_v23 }
 0x663   : > { %v5078_v0 = vmul.f32 1.442695, %v5046_v52 }
 0x664   : > { %v4961_v12 = vpop.xlane.xlu1 %4960  ;;  %v4958_v41 = vpop.xlane.xlu0 %4957 }
 0x665   : > { %11058 = vpow2.f32 %v5078_v0  ;;  %v5049_v46 = vsub.f32 %v14703_v43, %v4961_v12  ;;  %v5048_v21 = vsub.f32 %v14709_v30, %v4958_v41  ;;  %v14886_v0 = vadd.f32 %v11505_v57, %v4916_v16  ;;  %v17916_v57 = vld [vmem:[#allocation54_spill] sm:$0xff] }
 0x666   : > { %11060 = vpow2.f32 %v5080_v17 }
 0x667   : > { %v5084_v5 = vmul.f32 1.442695, %v5049_v46  ;;  %v5082_v15 = vmul.f32 1.442695, %v5048_v21 }
 0x668   : > { %v4967_v20 = vpop.xlane.xlu1 %4966  ;;  %v4964_v60 = vpop.xlane.xlu0 %4963 }
 0x669   : > { %11062 = vpow2.f32 %v5084_v5  ;;  %v5051_v1 = vsub.f32 %v14711_v61, %v4967_v20  ;;  %v5050_v23 = vsub.f32 %v14719_v53, %v4964_v60  ;;  %v5040_v20 = vsel %vm1605_vm1, %v14886_v0, -inf  ;;  %v17909_v5 = vld [vmem:[#allocation22_spill] sm:$0xff] }
 0x66a   : > { %11064 = vpow2.f32 %v5082_v15  ;;  %v17913_v15 = vld [vmem:[#allocation15_spill] sm:$0xff] }
 0x66b   : > { %v5088_v29 = vmul.f32 1.442695, %v5051_v1  ;;  %v5086_v52 = vmul.f32 1.442695, %v5050_v23  ;;  %v17915_v1 = vld [vmem:[#allocation63_spill] sm:$0xff] }
 0x66c   : > { %v4973_v43 = vpop.xlane.xlu1 %4972  ;;  %v4970_v12 = vpop.xlane.xlu0 %4969 }
 0x66d   : > { %11066 = vpow2.f32 %v5088_v29  ;;  %v5053_v46 = vsub.f32 %v14721_v34, %v4973_v43  ;;  %v5052_v25 = vsub.f32 %v14729_v48, %v4970_v12  ;;  %v17907_v34 = vld [vmem:[#allocation144_spill] sm:$0xff]  ;;  %v17917_v12 = vld [vmem:[#allocation25_spill] sm:$0xff] }
 0x66e   : > { %11068 = vpow2.f32 %v5086_v52 }
 0x66f   : > { %v5092_v41 = vmul.f32 1.442695, %v5053_v46  ;;  %v5090_v17 = vmul.f32 1.442695, %v5052_v25 }
 0x671   : > { %11070 = vpow2.f32 %v5092_v41 }
 0x672   : > { %5041 = vmax.xlane.f32.xlu1 %v5040_v20  ;;  %v14892_v60 = vpop.eup %11058  ;;  %11072 = vpow2.f32 %v5090_v17  ;;  %v17919_v20 = vld [vmem:[#allocation66_spill] sm:$0xff] }
 0x673   : > { %v14894_v61 = vpop.eup %11060  ;;  %10171 = vmatprep.mubr.msk.f32.mxu0 %vm1605_vm1, %v14892_v60 }
 0x674   : > { %10172 = vmatmul.mubr.msk.f32.vlgmr.msra.gmra.mxu0 %vm1605_vm1, %v14894_v61 }
 0x675   : > { %10212 = vmatpush3.msra.mxu0 %v14561_v39 }
 0x676   : > { %v14901_v30 = vpop.eup %11062  ;;  %10213 = vmatprep.subr.mxu0 %v14590_v49 }
 0x677   : > { %v14904_v53 = vpop.eup %11064  ;;  %10214 = vmatpush3.msra.mxu0 %v14590_v49  ;;  %v17908_v49 = vld [vmem:[#allocation29_spill] sm:$0xff] }
 0x678   : > { %5729 = vrot.lane.b32.xlu0 %v17907_v34, %s11728_s10  ;;  %10174 = vmatprep.mubr.msk.f32.mxu0 %vm1605_vm1, %v14904_v53 }
 0x679   : > { %10215 = vmatprep.subr.mxu0 %v14624_v47  ;;  %10175 = vmatmul.mubr.msk.f32.gmra.mxu0 %vm1605_vm1, %v14901_v30 }
 0x67a   : > { %v14914_v39 = vpop.eup %11066  ;;  %10216 = vmatpush3.msra.mxu0 %v14624_v47 }
 0x67b   : > { %v14917_v48 = vpop.eup %11068  ;;  %10217 = vmatprep.subr.mxu0 %v14614_v28 }
 0x67c   : > { %5934 = vrot.lane.b32.xlu0 %v17908_v49, %s11729_s12  ;;  %10218 = vmatpush3.msra.mxu0 %v14614_v28  ;;  %v17910_v28 = vld [vmem:[#allocation33_spill] sm:$0xff] }
 0x67d   : > { %10177 = vmatprep.mubr.msk.f32.mxu0 %vm1605_vm1, %v14917_v48  ;;  %10219 = vmatprep.subr.mxu0 %v14630_v19 }
 0x67e   : > { %10178 = vmatmul.mubr.msk.f32.gmra.mxu0 %vm1605_vm1, %v14914_v39  ;;  %v14928_v21 = vpop.eup %11070 }
 0x67f   : > { %10220 = vmatpush3.msra.mxu0 %v14630_v19  ;;  %v14931_v47 = vpop.eup %11072  ;;  %v17911_v19 = vld [vmem:[#allocation20_spill] sm:$0xff] }
 0x680   : > { %10221 = vmatprep.subr.mxu0 %v14640_v8  ;;  %5932 = vrot.lane.b32.xlu0 %v17909_v5, %s11729_s12 }
 0x681   : > { %10222 = vmatpush3.msra.mxu0 %v14640_v8  ;;  %10180 = vmatprep.mubr.msk.f32.mxu0 %vm1605_vm1, %v14931_v47  ;;  %v17912_v8 = vld [vmem:[#allocation47_spill] sm:$0xff] }
 0x682   : > { %10223 = vmatprep.subr.mxu0 %v14864_v18  ;;  %10181 = vmatmul.mubr.msk.f32.gmra.mxu0 %vm1605_vm1, %v14928_v21 }
 0x683   : > { %10224 = vmatpush3.msra.mxu0 %v14864_v18  ;;  %5936 = vrot.lane.b32.xlu1 %v17910_v28, %s11729_s12  ;;  %v17914_v18 = vld [vmem:[#allocation49_spill] sm:$0xff]  ;;  %v17920_v28 = vld [vmem:[#allocation18_spill] sm:$0xff] }
 0x684   : > { %10225 = vmatprep.subr.mxu0 %v14646_v2  ;;  %5930 = vrot.lane.b32.xlu0 %v17911_v19, %s11729_s12  ;;  %v17921_v19 = vld [vmem:[#allocation38_spill] sm:$0xff] }
 0x685   : > { %10226 = vmatpush3.msra.mxu0 %v14646_v2 }
 0x686   : > { %10267 = vmatprep.subr.msk.mxu0 %vm928_vm0, %v14856_v45 }
 0x687   : > { %6113 = vrot.lane.b32.xlu1 %v17912_v8, %s11729_s12 }
 0x688   : > { %5914 = vrot.lane.b32.xlu0 %v17913_v15, %s11729_s12  ;;  %v17922_v15 = vld [vmem:[#allocation19_spill] sm:$0xff] }
 0x68b   : > { %6111 = vrot.lane.b32.xlu1 %v17914_v18, %s11729_s12  ;;  %v4979_v16 = vpop.xlane.xlu0 %4978 }
 0x68c   : > { %6105 = vrot.lane.b32.xlu0 %v17915_v1, %s11729_s12  ;;  %v5055_v23 = vsub.f32 %v14759_v37, %v4979_v16  ;;  %v17918_v37 = vld [vmem:[#allocation58_spill] sm:$0xff]  ;;  %v17923_v16 = vld [vmem:[#allocation65_spill] sm:$0xff] }
 0x68d   : > { %v4976_v29 = vpop.xlane.xlu1 %4975 }
 0x68e   : > { %v5054_v2 = vsub.f32 %v14761_v9, %v4976_v29  ;;  %v5096_v52 = vmul.f32 1.442695, %v5055_v23 }
 0x68f   : > { %6109 = vrot.lane.b32.xlu1 %v17916_v57, %s11729_s12  ;;  %v17925_v57 = vld [vmem:[#allocation44_spill] sm:$0xff] }
 0x690   : > { %v5094_v43 = vmul.f32 1.442695, %v5054_v2  ;;  %5918 = vrot.lane.b32.xlu0 %v17917_v12, %s11729_s12  ;;  %v4985_v46 = vpop.xlane.xlu0 %4984 }
 0x691   : > { %v5057_v25 = vsub.f32 %v14769_v56, %v4985_v46  ;;  %v17926_v46 = vld [vmem:[#allocation16_spill] sm:$0xff] }
 0x692   : > { %11074 = vpow2.f32 %v5094_v43  ;;  %v4982_v41 = vpop.xlane.xlu1 %4981 }
 0x693   : > { %11076 = vpow2.f32 %v5096_v52  ;;  %v5056_v17 = vsub.f32 %v14773_v62, %v4982_v41  ;;  %6107 = vrot.lane.b32.xlu1 %v17918_v37, %s11729_s12  ;;  %v5100_v9 = vmul.f32 1.442695, %v5057_v25 }
 0x694   : > { %6103 = vrot.lane.b32.xlu0 %v17919_v20, %s11729_s12  ;;  %v5006_v23 = vpop.xlane.xlu0 %5005  ;;  %v17929_v20 = vld [vmem:[#allocation56_spill] sm:$0xff] }
 0x695   : > { %v5098_v49 = vmul.f32 1.442695, %v5056_v17  ;;  %v17927_v17 = vld [vmem:[#allocation62_spill] sm:$0xff] }
 0x696   : > { %v4991_v5 = vpop.xlane.xlu1 %4990 }
 0x697   : > { %11078 = vpow2.f32 %v5098_v49  ;;  %5916 = vrot.lane.b32.xlu1 %v17920_v28, %s11729_s12  ;;  %v5059_v56 = vsub.f32 %v14777_v13, %v4991_v5  ;;  %v17924_v13 = vld [vmem:[#allocation24_spill] sm:$0xff]  ;;  %v5064_v49 = vsub.f32 %v14771_v40, %v5006_v23 }
 0x698   : > { %11080 = vpow2.f32 %v5100_v9  ;;  %5922 = vrot.lane.b32.xlu0 %v17921_v19, %s11729_s12  ;;  %v5012_v25 = vpop.xlane.xlu0 %5011  ;;  %v17934_v23 = vld [vmem:[#allocation60_spill] sm:$0xff] }
 0x699   : > { %v5104_v18 = vmul.f32 1.442695, %v5059_v56  ;;  %v17930_v56 = vld [vmem:[#allocation72_spill] sm:$0xff] }
 0x69a   : > { %v4988_v62 = vpop.xlane.xlu1 %4987 }
 0x69b   : > { %v5058_v8 = vsub.f32 %v14785_v22, %v4988_v62  ;;  %6282 = vrot.lane.b32.xlu1 %v17922_v15, %s11729_s12  ;;  %v17931_v62 = vld [vmem:[#allocation73_spill] sm:$0xff] }
 0x69c   : > { %6101 = vrot.lane.b32.xlu0 %v17923_v16, %s11729_s12  ;;  %v5018_v5 = vpop.xlane.xlu0 %5017 }
 0x69d   : > { %v5102_v1 = vmul.f32 1.442695, %v5058_v8  ;;  %v5114_v8 = vmul.f32 1.442695, %v5064_v49  ;;  %v17941_v49 = vld [vmem:[#allocation80_spill] sm:$0xff] }
 0x69e   : > { %v4997_v29 = vpop.xlane.xlu1 %4996 }
 0x69f   : > { %v14981_v2 = vpop.eup %11074  ;;  %11082 = vpow2.f32 %v5102_v1  ;;  %5920 = vrot.lane.b32.xlu1 %v17924_v13, %s11729_s12  ;;  %v5061_v22 = vsub.f32 %v14793_v63, %v4997_v29  ;;  %v17933_v1 = vld [vmem:[#allocation41_spill] sm:$0xff] }
 0x6a0   : > { %v14985_v52 = vpop.eup %11076  ;;  %11084 = vpow2.f32 %v5104_v18  ;;  %5926 = vrot.lane.b32.xlu0 %v17925_v57, %s11729_s12  ;;  %10199 = vmatprep.mubr.msk.f32.mxu1 %vm1605_vm1, %v14981_v2 }
 0x6a1   : > { %10200 = vmatmul.mubr.msk.f32.vlgmr.msra.gmra.mxu1 %vm1605_vm1, %v14985_v52  ;;  %v5108_v41 = vmul.f32 1.442695, %v5061_v22  ;;  %v5068_v22 = vsub.f32 %v14789_v14, %v5018_v5 }
 0x6a2   : > { %v4994_v43 = vpop.xlane.xlu1 %4993  ;;  %10240 = vmatpush3.msra.mxu1 %v14652_v54 }
 0x6a3   : > { %v5060_v12 = vsub.f32 %v14800_v38, %v4994_v43  ;;  %6280 = vrot.lane.b32.xlu1 %v17926_v46, %s11729_s12  ;;  %10241 = vmatprep.subr.mxu1 %v14868_v51  ;;  %v17928_v38 = vld [vmem:[#allocation34_spill] sm:$0xff]  ;;  %v5122_v14 = vmul.f32 1.442695, %v5068_v22 }
 0x6a4   : > { %v14999_v63 = vpop.eup %11078  ;;  %6099 = vrot.lane.b32.xlu0 %v17927_v17, %s11729_s12  ;;  %10242 = vmatpush3.msra.mxu1 %v14868_v51  ;;  %v17938_v17 = vld [vmem:[#allocation52_spill] sm:$0xff]  ;;  %v17957_v22 = vld [vmem:[#allocation42_spill] sm:$0xff] }
 0x6a5   : > { %v15004_v37 = vpop.eup %11080  ;;  %v5106_v9 = vmul.f32 1.442695, %v5060_v12  ;;  %10202 = vmatprep.mubr.msk.f32.mxu1 %vm1605_vm1, %v14999_v63  ;;  %10243 = vmatprep.subr.mxu1 %v14860_v35  ;;  %v17936_v12 = vld [vmem:[#allocation75_spill] sm:$0xff] }
 0x6a6   : > { %v5003_v54 = vpop.xlane.xlu1 %5002  ;;  %10203 = vmatmul.mubr.msk.f32.gmra.mxu1 %vm1605_vm1, %v15004_v37 }
 0x6a7   : > { %11086 = vpow2.f32 %v5106_v9  ;;  %10244 = vmatpush3.msra.mxu1 %v14860_v35  ;;  %5924 = vrot.lane.b32.xlu1 %v17928_v38, %s11729_s12  ;;  %v5063_v51 = vsub.f32 %v14804_v58, %v5003_v54  ;;  %v17939_v9 = vld [vmem:[#allocation79_spill] sm:$0xff] }
 0x6a8   : > { %11088 = vpow2.f32 %v5108_v41  ;;  %6083 = vrot.lane.b32.xlu0 %v17929_v20, %s11729_s12  ;;  %10245 = vmatprep.subr.mxu1 %v14870_v27 }
 0x6a9   : > { %10246 = vmatpush3.msra.mxu1 %v14870_v27  ;;  %v5112_v19 = vmul.f32 1.442695, %v5063_v51  ;;  %v17940_v51 = vld [vmem:[#allocation70_spill] sm:$0xff] }
 0x6aa   : > { %10247 = vmatprep.subr.mxu1 %v14872_v44  ;;  %v5000_v28 = vpop.xlane.xlu1 %4999 }
 0x6ab   : > { %v5062_v35 = vsub.f32 %v14809_v11, %v5000_v28  ;;  %10248 = vmatpush3.msra.mxu1 %v14872_v44  ;;  %6278 = vrot.lane.b32.xlu1 %v17930_v56, %s11729_s12  ;;  %v5066_v11 = vsub.f32 %v14781_v4, %v5012_v25  ;;  %v17944_v56 = vld [vmem:[#allocation74_spill] sm:$0xff] }
 0x6ac   : > { %v15025_v58 = vpop.eup %11082  ;;  %6274 = vrot.lane.b32.xlu0 %v17931_v62, %s11729_s12  ;;  %v17946_v62 = vld [vmem:[#allocation82_spill] sm:$0xff] }
 0x6ad   : > { %v15029_v27 = vpop.eup %11084  ;;  %v5110_v40 = vmul.f32 1.442695, %v5062_v35  ;;  %10205 = vmatprep.mubr.msk.f32.mxu1 %vm1605_vm1, %v15025_v58  ;;  %v5118_v4 = vmul.f32 1.442695, %v5066_v11  ;;  %v17949_v11 = vld [vmem:[#allocation48_spill] sm:$0xff] }
 0x6ae   : > { %17932 = vst [vmem:[#allocation164_spill] sm:$0xff] %v15029_v27  ;;  %v5024_v15 = vpop.xlane.xlu0 %5023  ;;  %v5009_v44 = vpop.xlane.xlu1 %5008  ;;  %10206 = vmatmul.mubr.msk.f32.gmra.mxu1 %vm1605_vm1, %v15029_v27  ;;  %v11532_v27 = vld [vmem:[#allocation8 + $0xd0] sm:$0xff] }
 0x6af   : > { %11090 = vpow2.f32 %v5110_v40  ;;  %v5070_v18 = vsub.f32 %v14819_v3, %v5024_v15  ;;  %v5065_v16 = vsub.f32 %v14815_v33, %v5009_v44  ;;  %5928 = vrot.lane.b32.xlu1 %v17933_v1, %s11729_s12  ;;  %v17935_v3 = vld [vmem:[#allocation71_spill] sm:$0xff]  ;;  %v17953_v1 = vld [vmem:[#allocation81_spill] sm:$0xff] }
 0x6b0   : > { %11092 = vpow2.f32 %v5112_v19  ;;  %6087 = vrot.lane.b32.xlu0 %v17934_v23, %s11729_s12  ;;  %v17950_v44 = vld [vmem:[#allocation83_spill] sm:$0xff]  ;;  %v17954_v23 = vld [vmem:[#allocation50_spill] sm:$0xff] }
 0x6b1   : > { %v5126_v29 = vmul.f32 1.442695, %v5070_v18  ;;  %v5116_v13 = vmul.f32 1.442695, %v5065_v16  ;;  %11094 = vpow2.f32 %v5114_v8 }
 0x6b2   : > { %v5015_v57 = vpop.xlane.xlu1 %5014  ;;  %v5033_v5 = vpop.xlane.xlu0 %5032 }
 0x6b3   : > { %11096 = vpow2.f32 %v5126_v29  ;;  %v5067_v43 = vsub.f32 %v14821_v31, %v5015_v57  ;;  %6276 = vrot.lane.b32.xlu1 %v17935_v3, %s11729_s12  ;;  %v17958_v57 = vld [vmem:[#allocation85_spill] sm:$0xff]  ;;  %v17960_v3 = vld [vmem:[#allocation40_spill] sm:$0xff] }
 0x6b4   : > { %v15046_v33 = vpop.eup %11086  ;;  %11098 = vpow2.f32 %v5116_v13  ;;  %6272 = vrot.lane.b32.xlu0 %v17936_v12, %s11729_s12  ;;  %v17961_v12 = vld [vmem:[#allocation91_spill] sm:$0xff] }
 0x6b5   : > { %v15050_v46 = vpop.eup %11088  ;;  %v5120_v25 = vmul.f32 1.442695, %v5067_v43  ;;  %10208 = vmatprep.mubr.msk.f32.mxu1 %vm1605_vm1, %v15046_v33  ;;  %11100 = vpow2.f32 %v5118_v4  ;;  %v17959_v43 = vld [vmem:[#allocation90_spill] sm:$0xff] }
 0x6b6   : > { %17937 = vst [vmem:[#allocation152_spill] sm:$0xff] %v15050_v46  ;;  %v5021_v41 = vpop.xlane.xlu1 %5020  ;;  %10209 = vmatmul.mubr.msk.f32.gmra.mxu1 %vm1605_vm1, %v15050_v46  ;;  %v5039_v15 = vpop.xlane.xlu0 %5038  ;;  %v11531_v46 = vld [vmem:[#allocation8 + $0xc8] sm:$0xff] }
 0x6b7   : > { %v5069_v31 = vsub.f32 %v14832_v59, %v5021_v41  ;;  %6085 = vrot.lane.b32.xlu1 %v17938_v17, %s11729_s12  ;;  %11102 = vpow2.f32 %v5120_v25  ;;  %v17962_v25 = vld [vmem:[#allocation87_spill] sm:$0xff]  ;;  %v17964_v41 = vld [vmem:[#allocation88_spill] sm:$0xff]  ;;  %v17965_v17 = vld [vmem:[#allocation21_spill] sm:$0xff] }
 0x6b8   : > { %6091 = vrot.lane.b32.xlu0 %v17939_v9, %s11729_s12  ;;  %11104 = vpow2.f32 %v5122_v14  ;;  %v17963_v14 = vld [vmem:[#allocation36_spill] sm:$0xff] }
 0x6b9   : > { %v5124_v54 = vmul.f32 1.442695, %v5069_v31 }
 0x6ba   : > { %v5027_v38 = vpop.xlane.xlu1 %5026  ;;  %v5732_v13 = vpop.permute.xlu0 %5731 }
 0x6bb   : > { %6451 = vrot.lane.b32.xlu1 %v17940_v51, %s11729_s12  ;;  %11106 = vpow2.f32 %v5124_v54  ;;  %v5071_v31 = vsub.f32 %v14838_v50, %v5027_v38  ;;  %v17966_v54 = vld [vmem:[#allocation32_spill] sm:$0xff]  ;;  %v5073_v51 = vsub.f32 %v14824_v42, %v5033_v5  ;;  %v5075_v38 = vsub.f32 %v14834_v6, %v5039_v15  ;;  %v17970_v42 = vld [vmem:[#allocation17_spill] sm:$0xff]  ;;  %v17973_v6 = vld [vmem:[#allocation59_spill] sm:$0xff] }
 0x6bc   : > { %v15063_v20 = vpop.eup %11090  ;;  %6270 = vrot.lane.b32.xlu0 %v17941_v49, %s11729_s12 }
 0x6bd   : > { %v15067_v59 = vpop.eup %11092  ;;  %10227 = vmatprep.mubr.msk.f32.mxu0 %vm1605_vm1, %v15063_v20  ;;  %v5128_v49 = vmul.f32 1.442695, %v5071_v31  ;;  %v5132_v50 = vmul.f32 1.442695, %v5073_v51  ;;  %v5136_v5 = vmul.f32 1.442695, %v5075_v38 }
 0x6be   : > { %17942 = vst [vmem:[#allocation104_spill] sm:$0xff] %v15067_v59  ;;  %v5030_v28 = vpop.xlane.xlu1 %5029  ;;  %10228 = vmatmul.mubr.msk.f32.vlgmr.msra.gmra.mxu0 %vm1605_vm1, %v15067_v59  ;;  %v15073_v35 = vpop.eup %11094  ;;  %v17987_v38 = vld [vmem:[#allocation78_spill] sm:$0xff]  ;;  %v11530_v59 = vld [vmem:[#allocation8 + $0xc0] sm:$0xff] }
 0x6bf   : > { %17943 = vst [vmem:[#allocation165_spill] sm:$0xff] %v15073_v35  ;;  %10268 = vmatpush3.xpose.msk.msra.mxu0 %vm928_vm0, %v14856_v45  ;;  %6089 = vrot.lane.b32.xlu1 %v17944_v56, %s11729_s12  ;;  %v5072_v9 = vsub.f32 %v14844_v26, %v5030_v28  ;;  %v17967_v56 = vld [vmem:[#allocation27_spill] sm:$0xff]  ;;  %11108 = vpow2.f32 %v5128_v49 }
 0x6c0   : > { %v15079_v19 = vpop.eup %11096  ;;  %6095 = vrot.lane.b32.xlu0 %v17946_v62, %s11729_s12  ;;  %10230 = vmatprep.mubr.msk.f32.mxu0 %vm1605_vm1, %v15073_v35  ;;  %v17969_v26 = vld [vmem:[#allocation39_spill] sm:$0xff] }
 0x6c1   : > { %17945 = vst [vmem:[#allocation158_spill] sm:$0xff] %v15079_v19  ;;  %v15085_v40 = vpop.eup %11098  ;;  %10269 = vmatprep.subr.msk.mxu0 %vm928_vm0, %v14866_v55  ;;  %10255 = vmatprep.mubr.msk.f32.mxu1 %vm1605_vm1, %v15079_v19  ;;  %v5130_v62 = vmul.f32 1.442695, %v5072_v9 }
 0x6c2   : > { %17947 = vst [vmem:[#allocation147_spill] sm:$0xff] %v15085_v40  ;;  %v5036_v45 = vpop.xlane.xlu1 %5035  ;;  %10231 = vmatmul.mubr.msk.f32.gmra.mxu0 %vm1605_vm1, %v15085_v40  ;;  %v15093_v8 = vpop.eup %11100 }
 0x6c3   : > { %17948 = vst [vmem:[#allocation162_spill] sm:$0xff] %v15093_v8  ;;  %10270 = vmatpush3.xpose.msk.msra.mxu0 %vm928_vm0, %v14866_v55  ;;  %6449 = vrot.lane.b32.xlu1 %v17949_v11, %s11729_s12  ;;  %v5074_v11 = vsub.f32 %v14848_v32, %v5036_v45  ;;  %11110 = vpow2.f32 %v5130_v62  ;;  %v17972_v45 = vld [vmem:[#allocation23_spill] sm:$0xff]  ;;  %v17985_v62 = vld [vmem:[#allocation86_spill] sm:$0xff] }
 0x6c4   : > { %6268 = vrot.lane.b32.xlu0 %v17950_v44, %s11729_s12  ;;  %10233 = vmatprep.mubr.msk.f32.mxu0 %vm1605_vm1, %v15093_v8  ;;  %v15103_v18 = vpop.eup %11102  ;;  %v17968_v44 = vld [vmem:[#allocation94_spill] sm:$0xff]  ;;  %11112 = vpow2.f32 %v5132_v50 }
 0x6c5   : > { %17951 = vst [vmem:[#allocation159_spill] sm:$0xff] %v15103_v18  ;;  %10271 = vmatprep.subr.msk.mxu0 %vm928_vm0, %v14874_v10  ;;  %v15109_v55 = vpop.eup %11104  ;;  %v5134_v28 = vmul.f32 1.442695, %v5074_v11 }
 0x6c6   : > { %v5734_v16 = vpop.permute.xlu1 %5733  ;;  %10234 = vmatmul.mubr.msk.f32.gmra.mxu0 %vm1605_vm1, %v15103_v18  ;;  %17952 = vst [vmem:[#allocation95_spill] sm:$0xff] %v15109_v55  ;;  %v11527_v18 = vld [vmem:[#allocation8 + $0xa8] sm:$0xff] }
 0x6c7   : > { %10272 = vmatpush3.xpose.msk.msra.mxu0 %vm928_vm0, %v14874_v10  ;;  %6093 = vrot.lane.b32.xlu1 %v17953_v1, %s11729_s12  ;;  %v17956_v10 = vld [vmem:[#allocation45_spill] sm:$0xff]  ;;  %11114 = vpow2.f32 %v5134_v28  ;;  %v17974_v1 = vld [vmem:[#allocation26_spill] sm:$0xff] }
 0x6c8   : > { %6252 = vrot.lane.b32.xlu0 %v17954_v23, %s11729_s12  ;;  %10236 = vmatprep.mubr.msk.f32.mxu0 %vm1605_vm1, %v15109_v55  ;;  %v15119_v29 = vpop.eup %11106  ;;  %11116 = vpow2.f32 %v5136_v5  ;;  %v17975_v23 = vld [vmem:[#allocation89_spill] sm:$0xff] }
 0x6c9   : > { %17955 = vst [vmem:[#allocation101_spill] sm:$0xff] %v15119_v29  ;;  %10249 = vmatprep.subr.mxu1 %v5734_v16 }
 0x6ca   : > { %10250 = vmatpush3.msra.mxu1 %v5734_v16  ;;  %v5939_v4 = vpop.permute.xlu1 %5938  ;;  %10237 = vmatmul.mubr.msk.f32.gmra.mxu0 %vm1605_vm1, %v15119_v29  ;;  %v17971_v16 = vld [vmem:[#allocation46_spill] sm:$0xff] }
 0x6cb   : > { %10251 = vmatprep.subr.mxu1 %v5732_v13  ;;  %6447 = vrot.lane.b32.xlu1 %v17956_v10, %s11729_s12 }
 0x6cc   : > { %10252 = vmatpush3.msra.mxu1 %v5732_v13  ;;  %6443 = vrot.lane.b32.xlu0 %v17957_v22, %s11729_s12  ;;  %v15170_v13 = vpop.eup %11108  ;;  %v17978_v22 = vld [vmem:[#allocation37_spill] sm:$0xff] }
 0x6cd   : > { %10273 = vmatprep.subr.msk.mxu0 %vm928_vm0, %v5939_v4  ;;  %17976 = vst [vmem:[#allocation175_spill] sm:$0xff] %v15170_v13 }
 0x6ce   : > { %10274 = vmatpush3.xpose.msk.msra.mxu0 %vm928_vm0, %v5939_v4 }
 0x6cf   : > { %6097 = vrot.lane.b32.xlu1 %v17958_v57, %s11729_s12  ;;  %v17979_v57 = vld [vmem:[#allocation69_spill] sm:$0xff] }
 0x6d0   : > { %6258 = vrot.lane.b32.xlu0 %v17959_v43, %s11729_s12  ;;  %v15172_v4 = vpop.eup %11110 }
 0x6d1   : > { %17977 = vst [vmem:[#allocation125_spill] sm:$0xff] %v15172_v4  ;;  %v15182_v43 = vpop.eup %11112 }
 0x6d2   : > { %17980 = vst [vmem:[#allocation193_spill] sm:$0xff] %v15182_v43 }
 0x6d3   : > { %6445 = vrot.lane.b32.xlu1 %v17960_v3, %s11729_s12 }
 0x6d4   : > { %6260 = vrot.lane.b32.xlu0 %v17961_v12, %s11729_s12  ;;  %v15184_v3 = vpop.eup %11114 }
 0x6d5   : > { %17981 = vst [vmem:[#allocation180_spill] sm:$0xff] %v15184_v3 }
 0x6d7   : > { %6254 = vrot.lane.b32.xlu1 %v17962_v25, %s11729_s12  ;;  %v17982_v25 = vld [vmem:[#allocation43_spill] sm:$0xff] }
 0x6d8   : > { %6439 = vrot.lane.b32.xlu0 %v17963_v14, %s11729_s12  ;;  %v15192_v14 = vpop.eup %11116 }
 0x6d9   : > { %17983 = vst [vmem:[#allocation121_spill] sm:$0xff] %v15192_v14 }
 0x6db   : > { %6256 = vrot.lane.b32.xlu1 %v17964_v41, %s11729_s12 }
 0x6dc   : > { %6266 = vrot.lane.b32.xlu0 %v17965_v17, %s11729_s12  ;;  %v17984_v17 = vld [vmem:[#allocation55_spill] sm:$0xff] }
 0x6df   : > { %6441 = vrot.lane.b32.xlu1 %v17966_v54, %s11729_s12 }
 0x6e0   : > { %6421 = vrot.lane.b32.xlu0 %v17967_v56, %s11729_s12 }
 0x6e3   : > { %6262 = vrot.lane.b32.xlu1 %v17968_v44, %s11729_s12 }
 0x6e4   : > { %6425 = vrot.lane.b32.xlu0 %v17969_v26, %s11729_s12 }
 0x6e7   : > { %6264 = vrot.lane.b32.xlu1 %v17970_v42, %s11729_s12  ;;  %v17988_v42 = vld [vmem:[#allocation76_spill] sm:$0xff] }
 0x6e8   : > { %6429 = vrot.lane.b32.xlu0 %v17971_v16, %s11729_s12 }
 0x6eb   : > { %v5045_v32 = vpop.xlane.xlu0 %5044  ;;  %6437 = vrot.lane.b32.xlu1 %v17972_v45, %s11729_s12 }
 0x6ec   : > { %6433 = vrot.lane.b32.xlu0 %v17973_v6, %s11729_s12  ;;  %v5077_v41 = vsub.f32 %v14876_v24, %v5045_v32 }
 0x6ee   : > { %v5140_v51 = vmul.f32 1.442695, %v5077_v41 }
 0x6ef   : > { %v5730_v15 = vpop.permute.xlu0 %5729  ;;  %6423 = vrot.lane.b32.xlu1 %v17974_v1, %s11729_s12 }
 0x6f0   : > { %6986 = vrot.lane.b32.xlu0 %v17975_v23, %s11729_s12  ;;  %10253 = vmatprep.subr.mxu1 %v5730_v15 }
 0x6f1   : > { %10254 = vmatpush3.msra.mxu1 %v5730_v15 }
 0x6f2   : > { %10256 = vmatmul.mubr.msk.f32.vlgmr.msra.gmra.mxu1 %vm1605_vm1, %v15170_v13 }
 0x6f3   : > { %10258 = vmatprep.mubr.msk.f32.mxu1 %vm1605_vm1, %v15172_v4  ;;  %v5935_v10 = vpop.permute.xlu0 %5934  ;;  %6427 = vrot.lane.b32.xlu1 %v17978_v22, %s11729_s12 }
 0x6f4   : > { %6980 = vrot.lane.b32.xlu0 %v17979_v57, %s11729_s12 }
 0x6f6   : > { %10259 = vmatmul.mubr.msk.f32.gmra.mxu1 %vm1605_vm1, %v15182_v43 }
 0x6f7   : > { %10261 = vmatprep.mubr.msk.f32.mxu1 %vm1605_vm1, %v15184_v3  ;;  %v5933_v12 = vpop.permute.xlu0 %5932  ;;  %6431 = vrot.lane.b32.xlu1 %v17982_v25, %s11729_s12 }
 0x6fa   : > { %10262 = vmatmul.mubr.msk.f32.gmra.mxu1 %vm1605_vm1, %v15192_v14 }
 0x6fb   : > { %v5931_v31 = vpop.permute.xlu0 %5930  ;;  %6435 = vrot.lane.b32.xlu1 %v17984_v17, %s11729_s12  ;;  %v5042_v9 = vpop.xlane.xlu1 %5041 }
 0x6fc   : > { %v5076_v54 = vsub.f32 %v14886_v0, %v5042_v9  ;;  %v17986_v0 = vld [vmem:[#allocation84_spill] sm:$0xff] }
 0x6fe   : > { %v5138_v49 = vmul.f32 1.442695, %v5076_v54 }
 0x6ff   : > { %v5915_v56 = vpop.permute.xlu0 %5914  ;;  %6988 = vrot.lane.b32.xlu1 %v17985_v62, %s11729_s12  ;;  %v5937_v11 = vpop.permute.xlu1 %5936 }
 0x700   : > { %11118 = vpow2.f32 %v5138_v49  ;;  %10283 = vmatprep.mubr.msk.f32.mxu0 %vm928_vm0, %v5915_v56  ;;  %10275 = vmatprep.subr.msk.mxu0 %vm928_vm0, %v5937_v11 }
 0x701   : > { %11120 = vpow2.f32 %v5140_v51  ;;  %10276 = vmatpush3.xpose.msk.msra.mxu0 %vm928_vm0, %v5937_v11 }
 0x702   : > { %10277 = vmatprep.subr.msk.mxu0 %vm928_vm0, %v5935_v10 }
 0x703   : > { %v6106_v24 = vpop.permute.xlu0 %6105  ;;  %6984 = vrot.lane.b32.xlu1 %v17986_v0, %s11729_s12  ;;  %v6114_v44 = vpop.permute.xlu1 %6113 }
 0x704   : > { %10295 = vmatprep.subr.msk.mxu1 %vm928_vm0, %v6114_v44 }
 0x705   : > { %10278 = vmatpush3.xpose.msk.msra.mxu0 %vm928_vm0, %v5935_v10  ;;  %10296 = vmatpush3.xpose.msk.msra.mxu1 %vm928_vm0, %v6114_v44 }
 0x706   : > { %10279 = vmatprep.subr.msk.mxu0 %vm928_vm0, %v5933_v12 }
 0x707   : > { %v5919_v50 = vpop.permute.xlu0 %5918  ;;  %6982 = vrot.lane.b32.xlu1 %v17987_v38, %s11729_s12  ;;  %v6112_v26 = vpop.permute.xlu1 %6111 }
 0x708   : > { %10297 = vmatprep.subr.msk.mxu1 %vm928_vm0, %v6112_v26 }
 0x709   : > { %10280 = vmatpush3.xpose.msk.msra.mxu0 %vm928_vm0, %v5933_v12  ;;  %10298 = vmatpush3.xpose.msk.msra.mxu1 %vm928_vm0, %v6112_v26 }
 0x70a   : > { %10281 = vmatprep.subr.msk.mxu0 %vm928_vm0, %v5931_v31 }
 0x70b   : > { %v6104_v28 = vpop.permute.xlu0 %6103  ;;  %6978 = vrot.lane.b32.xlu1 %v17988_v42, %s11729_s12  ;;  %v6110_v5 = vpop.permute.xlu1 %6109 }
 0x70c   : > { %10299 = vmatprep.subr.msk.mxu1 %vm928_vm0, %v6110_v5 }
 0x70d   : > { %v15221_v16 = vpop.eup %11118  ;;  %10282 = vmatpush3.xpose.msk.msra.mxu0 %vm928_vm0, %v5931_v31  ;;  %10300 = vmatpush3.xpose.msk.msra.mxu1 %vm928_vm0, %v6110_v5 }
 0x70e   : > { %17989 = vst [vmem:[#allocation174_spill] sm:$0xff] %v15221_v16  ;;  %v15225_v32 = vpop.eup %11120  ;;  %10264 = vmatprep.mubr.msk.f32.mxu1 %vm1605_vm1, %v15221_v16  ;;  %v18026_v16 = vld [vmem:[#allocation105_spill] sm:$0xff] }
 0x70f   : > { %17990 = vst [vmem:[#allocation134_spill] sm:$0xff] %v15225_v32  ;;  %v5923_v45 = vpop.permute.xlu0 %5922  ;;  %v6108_v6 = vpop.permute.xlu1 %6107  ;;  %10265 = vmatmul.mubr.msk.f32.gmra.mxu1 %vm1605_vm1, %v15225_v32 }
 0x710   : > { %10301 = vmatprep.subr.msk.mxu1 %vm928_vm0, %v6108_v6 }
 0x711   : > { %10302 = vmatpush3.xpose.msk.msra.mxu1 %vm928_vm0, %v6108_v6 }
 0x712   : > { %10303 = vmatprep.subr.msk.mxu1 %vm928_vm0, %v6106_v24 }
 0x713   : > { %v6102_v15 = vpop.permute.xlu0 %6101  ;;  %v5917_v1 = vpop.permute.xlu1 %5916 }
 0x714   : > { %10284 = vmatmul.mubr.msk.f32.vlgmr.msra.gmra.mxu0 %vm928_vm0, %v5917_v1 }
 0x715   : > { %10286 = vmatprep.mubr.msk.f32.mxu0 %vm928_vm0, %v5919_v50  ;;  %10304 = vmatpush3.xpose.msk.msra.mxu1 %vm928_vm0, %v6106_v24 }
 0x716   : > { %10305 = vmatprep.subr.msk.mxu1 %vm928_vm0, %v6104_v28 }
 0x717   : > { %v5927_v23 = vpop.permute.xlu0 %5926  ;;  %v6283_v10 = vpop.permute.xlu1 %6282 }
 0x718   : > { %10323 = vmatprep.subr.msk.mxu0 %vm928_vm0, %v6283_v10 }
 0x719   : > { %10306 = vmatpush3.xpose.msk.msra.mxu1 %vm928_vm0, %v6104_v28  ;;  %10324 = vmatpush3.xpose.msk.msra.mxu0 %vm928_vm0, %v6283_v10 }
 0x71a   : > { %10307 = vmatprep.subr.msk.mxu1 %vm928_vm0, %v6102_v15 }
 0x71b   : > { %v6100_v22 = vpop.permute.xlu0 %6099  ;;  %v5921_v57 = vpop.permute.xlu1 %5920 }
 0x71c   : > { %10287 = vmatmul.mubr.msk.f32.gmra.mxu0 %vm928_vm0, %v5921_v57 }
 0x71d   : > { %10289 = vmatprep.mubr.msk.f32.mxu0 %vm928_vm0, %v5923_v45  ;;  %10308 = vmatpush3.xpose.msk.msra.mxu1 %vm928_vm0, %v6102_v15 }
 0x71e   : > { %10309 = vmatprep.subr.msk.mxu1 %vm928_vm0, %v6100_v22 }
 0x71f   : > { %v6084_v12 = vpop.permute.xlu0 %6083  ;;  %v6281_v25 = vpop.permute.xlu1 %6280 }
 0x720   : > { %10311 = vmatprep.mubr.msk.f32.mxu1 %vm928_vm0, %v6084_v12  ;;  %10325 = vmatprep.subr.msk.mxu0 %vm928_vm0, %v6281_v25 }
 0x721   : > { %10310 = vmatpush3.xpose.msk.msra.mxu1 %vm928_vm0, %v6100_v22  ;;  %10326 = vmatpush3.xpose.msk.msra.mxu0 %vm928_vm0, %v6281_v25 }
 0x723   : > { %v6275_v41 = vpop.permute.xlu0 %6274  ;;  %v5925_v31 = vpop.permute.xlu1 %5924 }
 0x724   : > { %10290 = vmatmul.mubr.msk.f32.gmra.mxu0 %vm928_vm0, %v5925_v31 }
 0x725   : > { %10292 = vmatprep.mubr.msk.f32.mxu0 %vm928_vm0, %v5927_v23 }
 0x727   : > { %v6088_v17 = vpop.permute.xlu0 %6087  ;;  %v6279_v9 = vpop.permute.xlu1 %6278 }
 0x728   : > { %10327 = vmatprep.subr.msk.mxu0 %vm928_vm0, %v6279_v9 }
 0x729   : > { %10328 = vmatpush3.xpose.msk.msra.mxu0 %vm928_vm0, %v6279_v9 }
 0x72b   : > { %v6273_v54 = vpop.permute.xlu0 %6272  ;;  %v5929_v51 = vpop.permute.xlu1 %5928 }
 0x72c   : > { %10293 = vmatmul.mubr.msk.f32.gmra.mxu0 %vm928_vm0, %v5929_v51 }
 0x72f   : > { %v6092_v49 = vpop.permute.xlu0 %6091  ;;  %v6277_v56 = vpop.permute.xlu1 %6276 }
 0x730   : > { %10329 = vmatprep.subr.msk.mxu0 %vm928_vm0, %v6277_v56 }
 0x731   : > { %10330 = vmatpush3.xpose.msk.msra.mxu0 %vm928_vm0, %v6277_v56 }
 0x732   : > { %10331 = vmatprep.subr.msk.mxu0 %vm928_vm0, %v6275_v41 }
 0x733   : > { %v6271_v62 = vpop.permute.xlu0 %6270  ;;  %v6086_v11 = vpop.permute.xlu1 %6085 }
 0x734   : > { %10312 = vmatmul.mubr.msk.f32.vlgmr.msra.gmra.mxu1 %vm928_vm0, %v6086_v11 }
 0x735   : > { %10314 = vmatprep.mubr.msk.f32.mxu1 %vm928_vm0, %v6088_v17  ;;  %10332 = vmatpush3.xpose.msk.msra.mxu0 %vm928_vm0, %v6275_v41 }
 0x736   : > { %10333 = vmatprep.subr.msk.mxu0 %vm928_vm0, %v6273_v54 }
 0x737   : > { %v6096_v24 = vpop.permute.xlu0 %6095  ;;  %v6452_v0 = vpop.permute.xlu1 %6451 }
 0x738   : > { %10351 = vmatprep.subr.msk.mxu1 %vm928_vm0, %v6452_v0 }
 0x739   : > { %10334 = vmatpush3.xpose.msk.msra.mxu0 %vm928_vm0, %v6273_v54  ;;  %10352 = vmatpush3.xpose.msk.msra.mxu1 %vm928_vm0, %v6452_v0 }
 0x73a   : > { %10335 = vmatprep.subr.msk.mxu0 %vm928_vm0, %v6271_v62 }
 0x73b   : > { %v6269_v44 = vpop.permute.xlu0 %6268  ;;  %v6090_v50 = vpop.permute.xlu1 %6089 }
 0x73c   : > { %10315 = vmatmul.mubr.msk.f32.gmra.mxu1 %vm928_vm0, %v6090_v50 }
 0x73d   : > { %10336 = vmatpush3.xpose.msk.msra.mxu0 %vm928_vm0, %v6271_v62  ;;  %10317 = vmatprep.mubr.msk.f32.mxu1 %vm928_vm0, %v6092_v49 }
 0x73e   : > { %10337 = vmatprep.subr.msk.mxu0 %vm928_vm0, %v6269_v44 }
 0x73f   : > { %v6253_v38 = vpop.permute.xlu0 %6252  ;;  %v6450_v26 = vpop.permute.xlu1 %6449 }
 0x740   : > { %10339 = vmatprep.mubr.msk.f32.mxu0 %vm928_vm0, %v6253_v38  ;;  %10353 = vmatprep.subr.msk.mxu1 %vm928_vm0, %v6450_v26 }
 0x741   : > { %10338 = vmatpush3.xpose.msk.msra.mxu0 %vm928_vm0, %v6269_v44  ;;  %10354 = vmatpush3.xpose.msk.msra.mxu1 %vm928_vm0, %v6450_v26 }
 0x743   : > { %v6444_v28 = vpop.permute.xlu0 %6443  ;;  %v6094_v42 = vpop.permute.xlu1 %6093 }
 0x744   : > { %10318 = vmatmul.mubr.msk.f32.gmra.mxu1 %vm928_vm0, %v6094_v42 }
 0x745   : > { %10320 = vmatprep.mubr.msk.f32.mxu1 %vm928_vm0, %v6096_v24 }
 0x747   : > { %v6259_v5 = vpop.permute.xlu0 %6258  ;;  %v6448_v45 = vpop.permute.xlu1 %6447 }
 0x748   : > { %10355 = vmatprep.subr.msk.mxu1 %vm928_vm0, %v6448_v45 }
 0x749   : > { %10356 = vmatpush3.xpose.msk.msra.mxu1 %vm928_vm0, %v6448_v45 }
 0x74b   : > { %v6261_v6 = vpop.permute.xlu0 %6260  ;;  %v6098_v15 = vpop.permute.xlu1 %6097 }
 0x74c   : > { %10321 = vmatmul.mubr.msk.f32.gmra.mxu1 %vm928_vm0, %v6098_v15 }
 0x74f   : > { %v6440_v1 = vpop.permute.xlu0 %6439  ;;  %v6446_v23 = vpop.permute.xlu1 %6445 }
 0x750   : > { %10357 = vmatprep.subr.msk.mxu1 %vm928_vm0, %v6446_v23 }
 0x751   : > { %10358 = vmatpush3.xpose.msk.msra.mxu1 %vm928_vm0, %v6446_v23 }
 0x752   : > { %10359 = vmatprep.subr.msk.mxu1 %vm928_vm0, %v6444_v28 }
 0x753   : > { %v6267_v10 = vpop.permute.xlu0 %6266  ;;  %v6255_v22 = vpop.permute.xlu1 %6254 }
 0x754   : > { %10340 = vmatmul.mubr.msk.f32.vlgmr.msra.gmra.mxu0 %vm928_vm0, %v6255_v22 }
 0x755   : > { %10360 = vmatpush3.xpose.msk.msra.mxu1 %vm928_vm0, %v6444_v28  ;;  %v15304_v28 = vpop.f32.mrf.mxu0 }
 0x756   : > { %17991 = vst [vmem:[#allocation28_spill] sm:$0xff] %v15304_v28 }
 0x757   : > { %v6422_v57 = vpop.permute.xlu0 %6421  ;;  %v6257_v12 = vpop.permute.xlu1 %6256 }
 0x758   : > { %10367 = vmatprep.mubr.msk.f32.mxu1 %vm928_vm0, %v6422_v57  ;;  %10342 = vmatprep.mubr.msk.f32.mxu0 %vm928_vm0, %v6257_v12  ;;  %v15306_v42 = vpop.f32.mrf.mxu0 }
 0x759   : > { %10343 = vmatmul.mubr.msk.f32.gmra.mxu0 %vm928_vm0, %v6259_v5  ;;  %17992 = vst [vmem:[#allocation144_spill] sm:$0xff] %v15306_v42 }
 0x75a   : > { %10345 = vmatprep.mubr.msk.f32.mxu0 %vm928_vm0, %v6261_v6  ;;  %v15308_v5 = vpop.f32.mrf.mxu0 }
 0x75b   : > { %v6442_v25 = vpop.permute.xlu1 %6441  ;;  %v6426_v9 = vpop.permute.xlu0 %6425  ;;  %17993 = vst [vmem:[#allocation29_spill] sm:$0xff] %v15308_v5 }
 0x75c   : > { %10361 = vmatprep.subr.msk.mxu1 %vm928_vm0, %v6442_v25  ;;  %v15310_v45 = vpop.f32.mrf.mxu0 }
 0x75d   : > { %10362 = vmatpush3.xpose.msk.msra.mxu1 %vm928_vm0, %v6442_v25  ;;  %17994 = vst [vmem:[#allocation22_spill] sm:$0xff] %v15310_v45 }
 0x75e   : > { %10363 = vmatprep.subr.msk.mxu1 %vm928_vm0, %v6440_v1  ;;  %v15312_v6 = vpop.f32.mrf.mxu0 }
 0x75f   : > { %v6263_v41 = vpop.permute.xlu1 %6262  ;;  %v6430_v51 = vpop.permute.xlu0 %6429  ;;  %17995 = vst [vmem:[#allocation33_spill] sm:$0xff] %v15312_v6 }
 0x760   : > { %10346 = vmatmul.mubr.msk.f32.gmra.mxu0 %vm928_vm0, %v6263_v41  ;;  %v15314_v15 = vpop.f32.mrf.mxu0 }
 0x761   : > { %10364 = vmatpush3.xpose.msk.msra.mxu1 %vm928_vm0, %v6440_v1  ;;  %17996 = vst [vmem:[#allocation20_spill] sm:$0xff] %v15314_v15  ;;  %v15324_v57 = vpop.f32.mrf.mxu1 }
 0x762   : > { %v15316_v1 = vpop.f32.mrf.mxu0  ;;  %18001 = vst [vmem:[#allocation54_spill] sm:$0xff] %v15324_v57 }
 0x763   : > { %v6265_v31 = vpop.permute.xlu1 %6264  ;;  %v6434_v62 = vpop.permute.xlu0 %6433  ;;  %17997 = vst [vmem:[#allocation47_spill] sm:$0xff] %v15316_v1 }
 0x764   : > { %10348 = vmatprep.mubr.msk.f32.mxu0 %vm928_vm0, %v6265_v31  ;;  %v15318_v23 = vpop.f32.mrf.mxu0  ;;  %v15328_v25 = vpop.f32.mrf.mxu1 }
 0x765   : > { %10349 = vmatmul.mubr.msk.f32.gmra.mxu0 %vm928_vm0, %v6267_v10  ;;  %17998 = vst [vmem:[#allocation15_spill] sm:$0xff] %v15318_v23  ;;  %18003 = vst [vmem:[#allocation58_spill] sm:$0xff] %v15328_v25 }
 0x766   : > { %v15332_v31 = vpop.f32.mrf.mxu1 }
 0x767   : > { %v6438_v17 = vpop.permute.xlu1 %6437  ;;  %v6987_v0 = vpop.permute.xlu0 %6986  ;;  %18005 = vst [vmem:[#allocation18_spill] sm:$0xff] %v15332_v31 }
 0x768   : > { %10365 = vmatprep.subr.msk.mxu1 %vm928_vm0, %v6438_v17 }
 0x769   : > { %10366 = vmatpush3.xpose.msk.msra.mxu1 %vm928_vm0, %v6438_v17 }
 0x76b   : > { %v6424_v54 = vpop.permute.xlu1 %6423  ;;  %v6981_v38 = vpop.permute.xlu0 %6980 }
 0x76c   : > { %10368 = vmatmul.mubr.msk.f32.vlgmr.msra.gmra.mxu1 %vm928_vm0, %v6424_v54 }
 0x76d   : > { %10370 = vmatprep.mubr.msk.f32.mxu1 %vm928_vm0, %v6426_v9  ;;  %v15336_v9 = vpop.f32.mrf.mxu1 }
 0x76e   : > { %18007 = vst [vmem:[#allocation19_spill] sm:$0xff] %v15336_v9 }
 0x76f   : > { %v6428_v49 = vpop.permute.xlu1 %6427 }
 0x770   : > { %10371 = vmatmul.mubr.msk.f32.gmra.mxu1 %vm928_vm0, %v6428_v49 }
 0x771   : > { %10373 = vmatprep.mubr.msk.f32.mxu1 %vm928_vm0, %v6430_v51  ;;  %v15340_v51 = vpop.f32.mrf.mxu1 }
 0x772   : > { %18009 = vst [vmem:[#allocation24_spill] sm:$0xff] %v15340_v51 }
 0x773   : > { %v6432_v56 = vpop.permute.xlu1 %6431 }
 0x774   : > { %10374 = vmatmul.mubr.msk.f32.gmra.mxu1 %vm928_vm0, %v6432_v56  ;;  %v15344_v56 = vpop.f32.mrf.mxu1 }
 0x775   : > { %10376 = vmatprep.mubr.msk.f32.mxu1 %vm928_vm0, %v6434_v62  ;;  %18011 = vst [vmem:[#allocation16_spill] sm:$0xff] %v15344_v56 }
 0x776   : > { %v15346_v62 = vpop.f32.mrf.mxu1 }
 0x777   : > { %v6436_v11 = vpop.permute.xlu1 %6435  ;;  %18012 = vst [vmem:[#allocation62_spill] sm:$0xff] %v15346_v62 }
 0x778   : > { %10377 = vmatmul.mubr.msk.f32.gmra.mxu1 %vm928_vm0, %v6436_v11 }
 0x77b   : > { %v6989_v24 = vpop.permute.xlu1 %6988 }
 0x77c   : > { %10379 = vmatprep.subr.mxu0 %v6989_v24 }
 0x77d   : > { %10380 = vmatpush3.msra.mxu0 %v6989_v24 }
 0x77e   : > { %10381 = vmatprep.subr.mxu0 %v6987_v0  ;;  %v15320_v10 = vpop.f32.mrf.mxu0 }
 0x77f   : > { %v6985_v44 = vpop.permute.xlu1 %6984  ;;  %10382 = vmatpush3.msra.mxu0 %v6987_v0  ;;  %17999 = vst [vmem:[#allocation49_spill] sm:$0xff] %v15320_v10 }
 0x780   : > { %10383 = vmatprep.subr.mxu0 %v6985_v44  ;;  %v15322_v22 = vpop.f32.mrf.mxu0 }
 0x781   : > { %10384 = vmatpush3.msra.mxu0 %v6985_v44  ;;  %18000 = vst [vmem:[#allocation63_spill] sm:$0xff] %v15322_v22  ;;  %v15350_v44 = vpop.f32.mrf.mxu1 }
 0x782   : > { %v15326_v12 = vpop.f32.mrf.mxu0  ;;  %18014 = vst [vmem:[#allocation56_spill] sm:$0xff] %v15350_v44 }
 0x783   : > { %v6983_v50 = vpop.permute.xlu1 %6982  ;;  %18002 = vst [vmem:[#allocation25_spill] sm:$0xff] %v15326_v12 }
 0x784   : > { %10385 = vmatprep.subr.mxu0 %v6983_v50  ;;  %v15330_v41 = vpop.f32.mrf.mxu0 }
 0x785   : > { %10386 = vmatpush3.msra.mxu0 %v6983_v50  ;;  %18004 = vst [vmem:[#allocation66_spill] sm:$0xff] %v15330_v41  ;;  %v11507_v41 = vld [vmem:[#allocation8] sm:$0xff] }
 0x786   : > { %10387 = vmatprep.subr.mxu0 %v6981_v38  ;;  %v15334_v17 = vpop.f32.mrf.mxu0 }
 0x787   : > { %v6979_v26 = vpop.permute.xlu1 %6978  ;;  %10388 = vmatpush3.msra.mxu0 %v6981_v38  ;;  %18006 = vst [vmem:[#allocation38_spill] sm:$0xff] %v15334_v17  ;;  %v11506_v38 = vld [vmem:[#allocation8 + $0x8] sm:$0xff] }
 0x788   : > { %10389 = vmatprep.subr.mxu0 %v6979_v26  ;;  %v15338_v54 = vpop.f32.mrf.mxu0 }
 0x789   : > { %10390 = vmatpush3.msra.mxu0 %v6979_v26  ;;  %18008 = vst [vmem:[#allocation65_spill] sm:$0xff] %v15338_v54 }
 0x78a   : > { %v15342_v49 = vpop.f32.mrf.mxu0 }
 0x78b   : > { %18010 = vst [vmem:[#allocation44_spill] sm:$0xff] %v15342_v49 }
 0x78c   : > { %v15348_v11 = vpop.f32.mrf.mxu0 }
 0x78d   : > { %18013 = vst [vmem:[#allocation34_spill] sm:$0xff] %v15348_v11 }
 0x7b2   : > { %v15354_v54 = vpop.f32.mrf.mxu1 }
 0x7b3   : > { %18015 = vst [vmem:[#allocation72_spill] sm:$0xff] %v15354_v54 }
 0x7d4   : > { %v10285_v24 = vpop.f32.mrf.mxu0 }
 0x7d5   : > { %v6591_v0 = vmul.f32 0.17677669, %v10285_v24  ;;  %v15362_v24 = vpop.f32.mrf.mxu1 }
 0x7d6   : > { %v6044_v50 = vpop.f32.mrf.mxu0  ;;  %18016 = vst [vmem:[#allocation73_spill] sm:$0xff] %v15362_v24 }
 0x7d7   : > { %v15352_v26 = vadd.f32 %v11506_v38, %v6591_v0  ;;  %v6590_v17 = vmul.f32 0.17677669, %v6044_v50  ;;  %v11508_v38 = vld [vmem:[#allocation8 + $0x18] sm:$0xff]  ;;  %v15366_v44 = vpop.f32.mrf.mxu1 }
 0x7d8   : > { %18017 = vst [vmem:[#allocation41_spill] sm:$0xff] %v15366_v44 }
 0x7d9   : > { %v15356_v12 = vadd.f32 %v11507_v41, %v6590_v17  ;;  %v6657_v49 = vsel %vm1605_vm1, %v15352_v26, -inf  ;;  %v11509_v41 = vld [vmem:[#allocation8 + $0x10] sm:$0xff]  ;;  %v15372_v62 = vpop.f32.mrf.mxu1 }
 0x7da   : > { %6658 = vmax.xlane.f32.xlu1 %v6657_v49  ;;  %18018 = vst [vmem:[#allocation60_spill] sm:$0xff] %v15372_v62  ;;  %v11514_v62 = vld [vmem:[#allocation8 + $0x48] sm:$0xff] }
 0x7db   : > { %v6654_v11 = vsel %vm1605_vm1, %v15356_v12, -inf  ;;  %v15378_v51 = vpop.f32.mrf.mxu1 }
 0x7dc   : > { %6655 = vmax.xlane.f32.xlu0 %v6654_v11  ;;  %v10288_v22 = vpop.f32.mrf.mxu0  ;;  %18019 = vst [vmem:[#allocation71_spill] sm:$0xff] %v15378_v51 }
 0x7dd   : > { %v6593_v10 = vmul.f32 0.17677669, %v10288_v22  ;;  %v15386_v9 = vpop.f32.mrf.mxu1 }
 0x7de   : > { %v6054_v0 = vpop.f32.mrf.mxu0  ;;  %18020 = vst [vmem:[#allocation75_spill] sm:$0xff] %v15386_v9 }
 0x7df   : > { %v15364_v50 = vadd.f32 %v11508_v38, %v6593_v10  ;;  %v6592_v54 = vmul.f32 0.17677669, %v6054_v0  ;;  %v11510_v38 = vld [vmem:[#allocation8 + $0x28] sm:$0xff] }
 0x7e1   : > { %v15368_v17 = vadd.f32 %v11509_v41, %v6592_v54  ;;  %v6663_v49 = vsel %vm1605_vm1, %v15364_v50, -inf  ;;  %v11511_v54 = vld [vmem:[#allocation8 + $0x20] sm:$0xff] }
 0x7e2   : > { %6664 = vmax.xlane.f32.xlu0 %v6663_v49 }
 0x7e3   : > { %v6660_v22 = vsel %vm1605_vm1, %v15368_v17, -inf }
 0x7e4   : > { %v10291_v24 = vpop.f32.mrf.mxu0 }
 0x7e5   : > { %v6595_v11 = vmul.f32 0.17677669, %v10291_v24 }
 0x7e6   : > { %6661 = vmax.xlane.f32.xlu0 %v6660_v22  ;;  %v6064_v10 = vpop.f32.mrf.mxu0 }
 0x7e7   : > { %v15376_v0 = vadd.f32 %v11510_v38, %v6595_v11  ;;  %v6594_v56 = vmul.f32 0.17677669, %v6064_v10  ;;  %v15388_v11 = vpop.f32.mrf.mxu1  ;;  %v11512_v38 = vld [vmem:[#allocation8 + $0x38] sm:$0xff] }
 0x7e8   : > { %18021 = vst [vmem:[#allocation52_spill] sm:$0xff] %v15388_v11 }
 0x7e9   : > { %v15380_v41 = vadd.f32 %v11511_v54, %v6594_v56  ;;  %v6669_v49 = vsel %vm1605_vm1, %v15376_v0, -inf  ;;  %v11513_v54 = vld [vmem:[#allocation8 + $0x30] sm:$0xff]  ;;  %v15396_v23 = vpop.f32.mrf.mxu1 }
 0x7ea   : > { %6670 = vmax.xlane.f32.xlu0 %v6669_v49  ;;  %18022 = vst [vmem:[#allocation79_spill] sm:$0xff] %v15396_v23 }
 0x7eb   : > { %v6666_v24 = vsel %vm1605_vm1, %v15380_v41, -inf }
 0x7ec   : > { %6667 = vmax.xlane.f32.xlu1 %v6666_v24  ;;  %v10294_v22 = vpop.f32.mrf.mxu0 }
 0x7ed   : > { %v6597_v31 = vmul.f32 0.17677669, %v10294_v22 }
 0x7ee   : > { %v6074_v10 = vpop.f32.mrf.mxu0 }
 0x7ef   : > { %v15390_v25 = vadd.f32 %v11512_v38, %v6597_v31  ;;  %v6596_v56 = vmul.f32 0.17677669, %v6074_v10  ;;  %v11515_v38 = vld [vmem:[#allocation8 + $0x40] sm:$0xff] }
 0x7f1   : > { %v15392_v57 = vadd.f32 %v11513_v54, %v6596_v56  ;;  %v6675_v49 = vsel %vm1605_vm1, %v15390_v25, -inf }
 0x7f2   : > { %6676 = vmax.xlane.f32.xlu0 %v6675_v49 }
 0x7f3   : > { %v6672_v24 = vsel %vm1605_vm1, %v15392_v57, -inf }
 0x7f4   : > { %6673 = vmax.xlane.f32.xlu1 %v6672_v24  ;;  %v10313_v22 = vpop.f32.mrf.mxu1 }
 0x7f5   : > { %v6599_v1 = vmul.f32 0.17677669, %v10313_v22  ;;  %v11516_v22 = vld [vmem:[#allocation8 + $0x58] sm:$0xff] }
 0x7f6   : > { %v6213_v44 = vpop.f32.mrf.mxu1 }
 0x7f7   : > { %v15400_v31 = vadd.f32 %v11514_v62, %v6599_v1  ;;  %v6598_v10 = vmul.f32 0.17677669, %v6213_v44  ;;  %v11517_v62 = vld [vmem:[#allocation8 + $0x50] sm:$0xff] }
 0x7f9   : > { %v15402_v56 = vadd.f32 %v11515_v38, %v6598_v10  ;;  %v6681_v54 = vsel %vm1605_vm1, %v15400_v31, -inf }
 0x7fa   : > { %6682 = vmax.xlane.f32.xlu0 %v6681_v54 }
 0x7fb   : > { %v6678_v49 = vsel %vm1605_vm1, %v15402_v56, -inf }
 0x7fc   : > { %v10316_v11 = vpop.f32.mrf.mxu1 }
 0x7fd   : > { %v6601_v23 = vmul.f32 0.17677669, %v10316_v11 }
 0x7fe   : > { %6679 = vmax.xlane.f32.xlu0 %v6678_v49  ;;  %v6223_v24 = vpop.f32.mrf.mxu1  ;;  %v11518_v49 = vld [vmem:[#allocation8 + $0x68] sm:$0xff] }
 0x7ff   : > { %v15408_v15 = vadd.f32 %v11516_v22, %v6601_v23  ;;  %v6600_v1 = vmul.f32 0.17677669, %v6223_v24  ;;  %v11519_v22 = vld [vmem:[#allocation8 + $0x60] sm:$0xff] }
 0x801   : > { %v15410_v44 = vadd.f32 %v11517_v62, %v6600_v1  ;;  %v6687_v10 = vsel %vm1605_vm1, %v15408_v15, -inf }
 0x802   : > { %6688 = vmax.xlane.f32.xlu0 %v6687_v10 }
 0x803   : > { %v6684_v38 = vsel %vm1605_vm1, %v15410_v44, -inf }
 0x804   : > { %6685 = vmax.xlane.f32.xlu1 %v6684_v38  ;;  %v10319_v54 = vpop.f32.mrf.mxu1 }
 0x805   : > { %v6603_v6 = vmul.f32 0.17677669, %v10319_v54  ;;  %v11520_v54 = vld [vmem:[#allocation8 + $0x70] sm:$0xff] }
 0x806   : > { %v6233_v11 = vpop.f32.mrf.mxu1 }
 0x807   : > { %v15416_v51 = vadd.f32 %v11518_v49, %v6603_v6  ;;  %v6602_v23 = vmul.f32 0.17677669, %v6233_v11  ;;  %v18023_v11 = vld [vmem:[#allocation61_spill] sm:$0xff]  ;;  %v18024_v49 = vld [vmem:[#allocation67_spill] sm:$0xff] }
 0x809   : > { %v15418_v24 = vadd.f32 %v11519_v22, %v6602_v23  ;;  %v6693_v1 = vsel %vm1605_vm1, %v15416_v51, -inf }
 0x80a   : > { %6694 = vmax.xlane.f32.xlu0 %v6693_v1  ;;  %v11521_v1 = vld [vmem:[#allocation8 + $0x78] sm:$0xff] }
 0x80b   : > { %v6690_v62 = vsel %vm1605_vm1, %v15418_v24, -inf }
 0x80c   : > { %6691 = vmax.xlane.f32.xlu1 %v6690_v62  ;;  %v10322_v10 = vpop.f32.mrf.mxu1 }
 0x80d   : > { %v6605_v23 = vmul.f32 0.17677669, %v10322_v10 }
 0x80e   : > { %v6243_v38 = vpop.f32.mrf.mxu1 }
 0x80f   : > { %v6604_v9 = vmul.f32 0.17677669, %v6243_v38  ;;  %v15432_v62 = vadd.f32 %v11521_v1, %v6605_v23 }
 0x811   : > { %v15424_v42 = vadd.f32 %v11520_v54, %v6604_v9  ;;  %v6699_v9 = vsel %vm1605_vm1, %v15432_v62, -inf  ;;  %v11522_v54 = vld [vmem:[#allocation8 + $0x80] sm:$0xff] }
 0x813   : > { %v6696_v6 = vsel %vm1605_vm1, %v15424_v42, -inf }
 0x814   : > { %6697 = vmax.xlane.f32.xlu1 %v6696_v6  ;;  %v10341_v22 = vpop.f32.mrf.mxu0 }
 0x815   : > { %v6607_v1 = vmul.f32 0.17677669, %v10341_v22 }
 0x816   : > { %v6382_v28 = vpop.f32.mrf.mxu0 }
 0x817   : > { %v6606_v38 = vmul.f32 0.17677669, %v6382_v28 }
 0x819   : > { %v15436_v5 = vadd.f32 %v11522_v54, %v6606_v38  ;;  %v10344_v28 = vpop.f32.mrf.mxu0  ;;  %v11523_v38 = vld [vmem:[#allocation8 + $0x88] sm:$0xff] }
 0x81a   : > { %v15445_v54 = vadd.f32 %v11523_v38, %v6607_v1 }
 0x81b   : > { %v6702_v6 = vsel %vm1605_vm1, %v15436_v5, -inf  ;;  %v6392_v45 = vpop.f32.mrf.mxu0 }
 0x820   : > { %6976 = vrot.lane.b32.xlu0 %v18023_v11, %s11729_s12  ;;  %v18025_v11 = vld [vmem:[#allocation100_spill] sm:$0xff] }
 0x825   : > { %6974 = vrot.lane.b32.xlu1 %v18024_v49, %s11729_s12 }
 0x83f   : > { %6700 = vmax.xlane.f32.xlu0 %v6699_v9 }
 0x849   : > { %6703 = vmax.xlane.f32.xlu1 %v6702_v6  ;;  %v6705_v6 = vsel %vm1605_vm1, %v15445_v54, -inf }
 0x855   : > { %7141 = vrot.lane.b32.xlu0 %v18025_v11, %s11729_s12  ;;  %v6608_v11 = vmul.f32 0.17677669, %v6392_v45 }
 0x85a   : > { %7139 = vrot.lane.b32.xlu1 %v17766_v7, %s11729_s12  ;;  %v11524_v7 = vld [vmem:[#allocation8 + $0x90] sm:$0xff] }
 0x863   : > { %v6659_v45 = vpop.xlane.xlu1 %6658 }
 0x865   : > { %v6656_v10 = vpop.xlane.xlu0 %6655 }
 0x866   : > { %v6750_v49 = vsub.f32 %v15356_v12, %v6656_v10  ;;  %v15453_v12 = vadd.f32 %v11524_v7, %v6608_v11  ;;  %v6751_v11 = vsub.f32 %v15352_v26, %v6659_v45 }
 0x868   : > { %v6782_v23 = vmul.f32 1.442695, %v6750_v49  ;;  %v6708_v10 = vsel %vm1605_vm1, %v15453_v12, -inf  ;;  %v6784_v29 = vmul.f32 1.442695, %v6751_v11 }
 0x86a   : > { %11122 = vpow2.f32 %v6782_v23 }
 0x86b   : > { %v6665_v9 = vpop.xlane.xlu0 %6664 }
 0x86f   : > { %v6662_v43 = vpop.xlane.xlu0 %6661 }
 0x870   : > { %v6752_v7 = vsub.f32 %v15368_v17, %v6662_v43 }
 0x873   : > { %v6671_v22 = vpop.xlane.xlu0 %6670 }
 0x874   : > { %6706 = vmax.xlane.f32.xlu0 %v6705_v6  ;;  %v6755_v43 = vsub.f32 %v15376_v0, %v6671_v22 }
 0x875   : > { %v6668_v13 = vpop.xlane.xlu1 %6667 }
 0x877   : > { %v15449_v32 = vpop.eup %11122 }
 0x878   : > { %10395 = vmatprep.mubr.msk.f32.mxu0 %vm1605_vm1, %v15449_v32 }
 0x87b   : > { %v6677_v49 = vpop.xlane.xlu0 %6676 }
 0x87e   : > { %6709 = vmax.xlane.f32.xlu1 %v6708_v10  ;;  %v6674_v10 = vpop.xlane.xlu1 %6673 }
 0x87f   : > { %v6756_v45 = vsub.f32 %v15392_v57, %v6674_v10 }
 0x881   : > { %v6794_v0 = vmul.f32 1.442695, %v6756_v45  ;;  %v11526_v45 = vld [vmem:[#allocation8 + $0xa0] sm:$0xff] }
 0x883   : > { %v15457_v23 = vpop.xlane.xlu0 %6682 }
 0x887   : > { %v6680_v1 = vpop.xlane.xlu0 %6679 }
 0x888   : > { %v6758_v38 = vsub.f32 %v15402_v56, %v6680_v1  ;;  %v6753_v56 = vsub.f32 %v15364_v50, %v6665_v9  ;;  %v6786_v1 = vmul.f32 1.442695, %v6752_v7  ;;  %v6609_v9 = vmul.f32 0.17677669, %v10344_v28  ;;  %v10347_v7 = vpop.f32.mrf.mxu0 }
 0x88a   : > { %v6798_v6 = vmul.f32 1.442695, %v6758_v38  ;;  %7137 = vrot.lane.b32.xlu0 %v18026_v16, %s11729_s12  ;;  %v6754_v38 = vsub.f32 %v15380_v41, %v6668_v13  ;;  %v6788_v26 = vmul.f32 1.442695, %v6753_v56  ;;  %v6792_v13 = vmul.f32 1.442695, %v6755_v43  ;;  %v6402_v28 = vpop.f32.mrf.mxu0 }
 0x88b   : > { %v15464_v14 = vpop.xlane.xlu0 %6688  ;;  %v11525_v56 = vld [vmem:[#allocation8 + $0x98] sm:$0xff] }
 0x88c   : > { %11124 = vpow2.f32 %v6798_v6  ;;  %v6790_v17 = vmul.f32 1.442695, %v6754_v38 }
 0x88d   : > { %v15472_v16 = vpop.xlane.xlu1 %6685  ;;  %11126 = vpow2.f32 %v6784_v29  ;;  %v6757_v29 = vsub.f32 %v15390_v25, %v6677_v49 }
 0x88e   : > { %11128 = vpow2.f32 %v6786_v1  ;;  %v15489_v1 = vadd.f32 %v11525_v56, %v6609_v9 }
 0x88f   : > { %7135 = vrot.lane.b32.xlu1 %v17767_v36, %s11729_s12  ;;  %11130 = vpow2.f32 %v6788_v26  ;;  %v6796_v57 = vmul.f32 1.442695, %v6757_v29  ;;  %v6610_v26 = vmul.f32 0.17677669, %v6402_v28 }
 0x890   : > { %11132 = vpow2.f32 %v6790_v17  ;;  %v6711_v38 = vsel %vm1605_vm1, %v15489_v1, -inf }
 0x891   : > { %11134 = vpow2.f32 %v6792_v13 }
 0x892   : > { %11136 = vpow2.f32 %v6794_v0  ;;  %v18027_v0 = vld [vmem:[#allocation97_spill] sm:$0xff] }
 0x893   : > { %v15470_v3 = vpop.xlane.xlu0 %6694  ;;  %11138 = vpow2.f32 %v6796_v57  ;;  %v18028_v57 = vld [vmem:[#allocation57_spill] sm:$0xff] }
 0x895   : > { %v15478_v50 = vpop.xlane.xlu1 %6691 }
 0x897   : > { %v6977_v36 = vpop.permute.xlu0 %6976 }
 0x898   : > { %10391 = vmatprep.subr.mxu0 %v6977_v36 }
 0x899   : > { %v15476_v6 = vpop.eup %11124  ;;  %10392 = vmatpush3.msra.mxu0 %v6977_v36  ;;  %v15513_v36 = vadd.f32 %v11526_v45, %v6610_v26 }
 0x89a   : > { %10423 = vmatprep.mubr.msk.f32.mxu1 %vm1605_vm1, %v15476_v6  ;;  %v15485_v11 = vpop.eup %11126 }
 0x89b   : > { %v15487_v10 = vpop.eup %11128  ;;  %v6714_v29 = vsel %vm1605_vm1, %v15513_v36, -inf }
 0x89c   : > { %v15495_v25 = vpop.eup %11130 }
 0x89d   : > { %v15483_v41 = vpop.xlane.xlu1 %6697  ;;  %v15497_v49 = vpop.eup %11132 }
 0x89e   : > { %v15505_v43 = vpop.eup %11134 }
 0x89f   : > { %v15507_v17 = vpop.eup %11136 }
 0x8a0   : > { %v15515_v13 = vpop.eup %11138 }
 0x8a1   : > { %v6975_v22 = vpop.permute.xlu1 %6974 }
 0x8a2   : > { %10393 = vmatprep.subr.mxu0 %v6975_v22 }
 0x8a3   : > { %10394 = vmatpush3.msra.mxu0 %v6975_v22 }
 0x8a4   : > { %10396 = vmatmul.mubr.msk.f32.vlgmr.msra.gmra.mxu0 %vm1605_vm1, %v15485_v11 }
 0x8a5   : > { %10398 = vmatprep.mubr.msk.f32.mxu0 %vm1605_vm1, %v15487_v10 }
 0x8a8   : > { %10399 = vmatmul.mubr.msk.f32.gmra.mxu0 %vm1605_vm1, %v15495_v25 }
 0x8a9   : > { %6712 = vmax.xlane.f32.xlu0 %v6711_v38  ;;  %10401 = vmatprep.mubr.msk.f32.mxu0 %vm1605_vm1, %v15497_v49  ;;  %v6611_v38 = vmul.f32 0.17677669, %v10347_v7 }
 0x8ac   : > { %10402 = vmatmul.mubr.msk.f32.gmra.mxu0 %vm1605_vm1, %v15505_v43 }
 0x8ad   : > { %10404 = vmatprep.mubr.msk.f32.mxu0 %vm1605_vm1, %v15507_v17 }
 0x8b0   : > { %10405 = vmatmul.mubr.msk.f32.gmra.mxu0 %vm1605_vm1, %v15515_v13 }
 0x8b3   : > { %6715 = vmax.xlane.f32.xlu1 %v6714_v29  ;;  %v10350_v29 = vpop.f32.mrf.mxu0 }
 0x8b5   : > { %v6412_v4 = vpop.f32.mrf.mxu0 }
 0x8b6   : > { %v6612_v40 = vmul.f32 0.17677669, %v6412_v4 }
 0x8bf   : > { %7133 = vrot.lane.b32.xlu0 %v18027_v0, %s11729_s12  ;;  %v15528_v0 = vadd.f32 %v11527_v18, %v6611_v38  ;;  %v18029_v18 = vld [vmem:[#allocation51_spill] sm:$0xff]  ;;  %v6613_v38 = vmul.f32 0.17677669, %v10350_v29 }
 0x8c0   : > { %v18031_v29 = vld [vmem:[#allocation107_spill] sm:$0xff] }
 0x8c4   : > { %7131 = vrot.lane.b32.xlu1 %v18028_v57, %s11729_s12  ;;  %v6717_v57 = vsel %vm1605_vm1, %v15528_v0, -inf }
 0x8c8   : > { %v15525_v9 = vpop.xlane.xlu0 %6700 }
 0x8cc   : > { %v7142_v22 = vpop.permute.xlu0 %7141 }
 0x8cd   : > { %10407 = vmatprep.subr.mxu1 %v7142_v22 }
 0x8ce   : > { %10408 = vmatpush3.msra.mxu1 %v7142_v22  ;;  %v11528_v22 = vld [vmem:[#allocation8 + $0xb0] sm:$0xff] }
 0x8cf   : > { %v15532_v19 = vadd.f32 %v11528_v22, %v6612_v40 }
 0x8d1   : > { %v6720_v7 = vsel %vm1605_vm1, %v15532_v19, -inf }
 0x8d2   : > { %v6704_v56 = vpop.xlane.xlu1 %6703 }
 0x8d3   : > { %v6766_v28 = vsub.f32 %v15436_v5, %v6704_v56  ;;  %v18030_v56 = vld [vmem:[#allocation53_spill] sm:$0xff] }
 0x8d5   : > { %v6814_v26 = vmul.f32 1.442695, %v6766_v28 }
 0x8d6   : > { %v7140_v45 = vpop.permute.xlu1 %7139 }
 0x8d7   : > { %11140 = vpow2.f32 %v6814_v26  ;;  %10409 = vmatprep.subr.mxu1 %v7140_v45 }
 0x8d8   : > { %10410 = vmatpush3.msra.mxu1 %v7140_v45  ;;  %v10369_v45 = vpop.f32.mrf.mxu1 }
 0x8de   : > { %6718 = vmax.xlane.f32.xlu0 %v6717_v57  ;;  %v11529_v57 = vld [vmem:[#allocation8 + $0xb8] sm:$0xff] }
 0x8df   : > { %v15548_v22 = vadd.f32 %v11529_v57, %v6613_v38 }
 0x8e4   : > { %v15534_v5 = vpop.eup %11140 }
 0x8e5   : > { %10451 = vmatprep.mubr.msk.f32.mxu0 %vm1605_vm1, %v15534_v5 }
 0x8e8   : > { %6721 = vmax.xlane.f32.xlu1 %v6720_v7  ;;  %v6551_v7 = vpop.f32.mrf.mxu1 }
 0x8f4   : > { %7129 = vrot.lane.b32.xlu0 %v18029_v18, %s11729_s12  ;;  %v6723_v18 = vsel %vm1605_vm1, %v15548_v22, -inf }
 0x8f9   : > { %7127 = vrot.lane.b32.xlu1 %v18030_v56, %s11729_s12  ;;  %v6614_v56 = vmul.f32 0.17677669, %v6551_v7  ;;  %v6615_v7 = vmul.f32 0.17677669, %v10369_v45  ;;  %v18033_v45 = vld [vmem:[#allocation119_spill] sm:$0xff] }
 0x8fb   : > { %v15552_v55 = vadd.f32 %v11530_v59, %v6614_v56  ;;  %v10372_v56 = vpop.f32.mrf.mxu1 }
 0x8fd   : > { %v15544_v28 = vpop.xlane.xlu0 %6706  ;;  %v6561_v8 = vpop.f32.mrf.mxu1 }
 0x901   : > { %v7138_v4 = vpop.permute.xlu0 %7137 }
 0x902   : > { %10411 = vmatprep.subr.mxu1 %v7138_v4 }
 0x903   : > { %10412 = vmatpush3.msra.mxu1 %v7138_v4  ;;  %v6726_v4 = vsel %vm1605_vm1, %v15552_v55, -inf }
 0x907   : > { %v15546_v40 = vpop.xlane.xlu1 %6709 }
 0x90b   : > { %v7136_v26 = vpop.permute.xlu1 %7135 }
 0x90c   : > { %10413 = vmatprep.subr.mxu1 %v7136_v26 }
 0x90d   : > { %10414 = vmatpush3.msra.mxu1 %v7136_v26  ;;  %v18032_v26 = vld [vmem:[#allocation136_spill] sm:$0xff] }
 0x913   : > { %6724 = vmax.xlane.f32.xlu0 %v6723_v18 }
 0x91d   : > { %6727 = vmax.xlane.f32.xlu1 %v6726_v4  ;;  %v15564_v4 = vadd.f32 %v11531_v46, %v6615_v7  ;;  %v6759_v46 = vsub.f32 %v15400_v31, %v15457_v23  ;;  %v6760_v7 = vsub.f32 %v15410_v44, %v15472_v16  ;;  %v6763_v31 = vsub.f32 %v15416_v51, %v15470_v3 }
 0x91e   : > { %v6764_v23 = vsub.f32 %v15424_v42, %v15483_v41  ;;  %v6617_v3 = vmul.f32 0.17677669, %v10372_v56  ;;  %v10375_v41 = vpop.f32.mrf.mxu1 }
 0x929   : > { %7294 = vrot.lane.b32.xlu0 %v18031_v29, %s11729_s12  ;;  %v6729_v29 = vsel %vm1605_vm1, %v15564_v4, -inf }
 0x92e   : > { %7292 = vrot.lane.b32.xlu1 %v18032_v26, %s11729_s12  ;;  %v6616_v26 = vmul.f32 0.17677669, %v6561_v8  ;;  %v6800_v8 = vmul.f32 1.442695, %v6759_v46 }
 0x930   : > { %v15568_v35 = vadd.f32 %v11532_v27, %v6616_v26  ;;  %v6761_v27 = vsub.f32 %v15408_v15, %v15464_v14  ;;  %v6762_v26 = vsub.f32 %v15418_v24, %v15478_v50  ;;  %11142 = vpow2.f32 %v6800_v8 }
 0x931   : > { %v6808_v14 = vmul.f32 1.442695, %v6763_v31  ;;  %v6765_v15 = vsub.f32 %v15432_v62, %v15525_v9  ;;  %v6810_v24 = vmul.f32 1.442695, %v6764_v23  ;;  %v6571_v9 = vpop.f32.mrf.mxu1  ;;  %v11534_v31 = vld [vmem:[#allocation8 + $0xe0] sm:$0xff] }
 0x932   : > { %v15560_v38 = vpop.xlane.xlu0 %6712  ;;  %v6806_v44 = vmul.f32 1.442695, %v6762_v26 }
 0x933   : > { %v6812_v46 = vmul.f32 1.442695, %v6765_v15  ;;  %v18038_v15 = vld [vmem:[#allocation130_spill] sm:$0xff] }
 0x936   : > { %v7134_v57 = vpop.permute.xlu0 %7133 }
 0x937   : > { %10415 = vmatprep.subr.mxu1 %v7134_v57 }
 0x938   : > { %10416 = vmatpush3.msra.mxu1 %v7134_v57  ;;  %v6732_v57 = vsel %vm1605_vm1, %v15568_v35, -inf }
 0x93c   : > { %v15562_v18 = vpop.xlane.xlu1 %6715 }
 0x93d   : > { %v15594_v42 = vpop.eup %11142 }
 0x940   : > { %v7132_v59 = vpop.permute.xlu1 %7131 }
 0x941   : > { %10417 = vmatprep.subr.mxu1 %v7132_v59 }
 0x942   : > { %10418 = vmatpush3.msra.mxu1 %v7132_v59  ;;  %v18034_v59 = vld [vmem:[#allocation123_spill] sm:$0xff] }
 0x948   : > { %6730 = vmax.xlane.f32.xlu0 %v6729_v29  ;;  %v6802_v29 = vmul.f32 1.442695, %v6760_v7 }
 0x94a   : > { %11144 = vpow2.f32 %v6802_v29  ;;  %v6618_v29 = vmul.f32 0.17677669, %v6571_v9 }
 0x952   : > { %6733 = vmax.xlane.f32.xlu1 %v6732_v57 }
 0x957   : > { %v15596_v7 = vpop.eup %11144 }
 0x95e   : > { %7290 = vrot.lane.b32.xlu0 %v18033_v45, %s11729_s12  ;;  %v6804_v45 = vmul.f32 1.442695, %v6761_v27 }
 0x960   : > { %11146 = vpow2.f32 %v6804_v45 }
 0x961   : > { %11148 = vpow2.f32 %v6806_v44  ;;  %v15622_v44 = vadd.f32 %v11534_v31, %v6618_v29  ;;  %v10378_v29 = vpop.f32.mrf.mxu1  ;;  %v11535_v31 = vld [vmem:[#allocation8 + $0xe8] sm:$0xff] }
 0x962   : > { %11150 = vpow2.f32 %v6808_v14  ;;  %v18037_v14 = vld [vmem:[#allocation113_spill] sm:$0xff] }
 0x963   : > { %7288 = vrot.lane.b32.xlu1 %v18034_v59, %s11729_s12  ;;  %11152 = vpow2.f32 %v6810_v24  ;;  %v11533_v59 = vld [vmem:[#allocation8 + $0xd8] sm:$0xff] }
 0x964   : > { %11154 = vpow2.f32 %v6812_v46  ;;  %v15598_v8 = vadd.f32 %v11533_v59, %v6617_v3  ;;  %v6619_v59 = vmul.f32 0.17677669, %v10375_v41 }
 0x966   : > { %v6735_v27 = vsel %vm1605_vm1, %v15598_v8, -inf }
 0x967   : > { %v15584_v57 = vpop.xlane.xlu0 %6718 }
 0x96b   : > { %v7130_v16 = vpop.permute.xlu0 %7129 }
 0x96c   : > { %10419 = vmatprep.subr.mxu1 %v7130_v16 }
 0x96d   : > { %10420 = vmatpush3.msra.mxu1 %v7130_v16  ;;  %v15604_v62 = vpop.eup %11146  ;;  %v6738_v16 = vsel %vm1605_vm1, %v15622_v44, -inf }
 0x96e   : > { %v15606_v56 = vpop.eup %11148 }
 0x96f   : > { %v15614_v26 = vpop.eup %11150 }
 0x970   : > { %18035 = vst [vmem:[#allocation70_spill] sm:$0xff] %v15614_v26  ;;  %v15616_v45 = vpop.eup %11152 }
 0x971   : > { %v15592_v50 = vpop.xlane.xlu1 %6721  ;;  %v15624_v23 = vpop.eup %11154 }
 0x972   : > { %18036 = vst [vmem:[#allocation80_spill] sm:$0xff] %v15624_v23 }
 0x975   : > { %v7128_v51 = vpop.permute.xlu1 %7127 }
 0x976   : > { %10421 = vmatprep.subr.mxu1 %v7128_v51 }
 0x977   : > { %10422 = vmatpush3.msra.mxu1 %v7128_v51 }
 0x978   : > { %10424 = vmatmul.mubr.msk.f32.vlgmr.msra.gmra.mxu1 %vm1605_vm1, %v15594_v42 }
 0x979   : > { %10426 = vmatprep.mubr.msk.f32.mxu1 %vm1605_vm1, %v15596_v7 }
 0x97c   : > { %10427 = vmatmul.mubr.msk.f32.gmra.mxu1 %vm1605_vm1, %v15604_v62 }
 0x97d   : > { %6736 = vmax.xlane.f32.xlu0 %v6735_v27  ;;  %10429 = vmatprep.mubr.msk.f32.mxu1 %vm1605_vm1, %v15606_v56 }
 0x980   : > { %10430 = vmatmul.mubr.msk.f32.gmra.mxu1 %vm1605_vm1, %v15614_v26 }
 0x981   : > { %10432 = vmatprep.mubr.msk.f32.mxu1 %vm1605_vm1, %v15616_v45 }
 0x984   : > { %10433 = vmatmul.mubr.msk.f32.gmra.mxu1 %vm1605_vm1, %v15624_v23 }
 0x987   : > { %6739 = vmax.xlane.f32.xlu1 %v6738_v16  ;;  %v15637_v16 = vadd.f32 %v11535_v31, %v6619_v59  ;;  %v18041_v59 = vld [vmem:[#allocation146_spill] sm:$0xff] }
 0x988   : > { %v18043_v31 = vld [vmem:[#allocation138_spill] sm:$0xff] }
 0x993   : > { %7286 = vrot.lane.b32.xlu0 %v18037_v14, %s11729_s12  ;;  %v6581_v14 = vpop.f32.mrf.mxu1 }
 0x994   : > { %v6620_v23 = vmul.f32 0.17677669, %v6581_v14 }
 0x998   : > { %7284 = vrot.lane.b32.xlu1 %v18038_v15, %s11729_s12  ;;  %v6741_v15 = vsel %vm1605_vm1, %v15637_v16, -inf }
 0x99c   : > { %v15634_v24 = vpop.xlane.xlu0 %6724 }
 0x9a0   : > { %v7295_v46 = vpop.permute.xlu0 %7294 }
 0x9a1   : > { %10435 = vmatprep.subr.mxu0 %v7295_v46 }
 0x9a2   : > { %10436 = vmatpush3.msra.mxu0 %v7295_v46  ;;  %v11536_v46 = vld [vmem:[#allocation8 + $0xf0] sm:$0xff] }
 0x9a3   : > { %v15641_v26 = vadd.f32 %v11536_v46, %v6620_v23  ;;  %v6621_v46 = vmul.f32 0.17677669, %v10378_v29  ;;  %v18047_v29 = vld [vmem:[#allocation131_spill] sm:$0xff] }
 0x9a5   : > { %v6744_v41 = vsel %vm1605_vm1, %v15641_v26, -inf }
 0x9a6   : > { %v6728_v3 = vpop.xlane.xlu1 %6727 }
 0x9a7   : > { %v6774_v51 = vsub.f32 %v15552_v55, %v6728_v3  ;;  %v18039_v3 = vld [vmem:[#allocation64_spill] sm:$0xff] }
 0x9a9   : > { %v6830_v9 = vmul.f32 1.442695, %v6774_v51  ;;  %v18040_v51 = vld [vmem:[#allocation68_spill] sm:$0xff] }
 0x9aa   : > { %v7293_v27 = vpop.permute.xlu1 %7292 }
 0x9ab   : > { %11156 = vpow2.f32 %v6830_v9  ;;  %10437 = vmatprep.subr.mxu0 %v7293_v27  ;;  %v18042_v9 = vld [vmem:[#allocation139_spill] sm:$0xff] }
 0x9ac   : > { %10438 = vmatpush3.msra.mxu0 %v7293_v27 }
 0x9b2   : > { %6742 = vmax.xlane.f32.xlu0 %v6741_v15  ;;  %v18044_v15 = vld [vmem:[#allocation154_spill] sm:$0xff] }
 0x9b8   : > { %v15643_v55 = vpop.eup %11156 }
 0x9b9   : > { %10479 = vmatprep.mubr.msk.f32.mxu1 %vm1605_vm1, %v15643_v55 }
 0x9bc   : > { %6745 = vmax.xlane.f32.xlu1 %v6744_v41 }
 0x9c8   : > { %7282 = vrot.lane.b32.xlu0 %v18039_v3, %s11729_s12  ;;  %v11537_v3 = vld [vmem:[#allocation8 + $0xf8] sm:$0xff] }
 0x9cd   : > { %7280 = vrot.lane.b32.xlu1 %v18040_v51, %s11729_s12  ;;  %v15667_v51 = vadd.f32 %v11537_v3, %v6621_v46  ;;  %v6846_v46 = vsel %vm1605_vm1, %v15449_v32, 0.0  ;;  %v18049_v3 = vld [vmem:[#allocation171_spill] sm:$0xff]  ;;  %v18050_v32 = vld [vmem:[#allocation196_spill] sm:$0xff] }
 0x9d1   : > { %7445 = vrot.lane.b32.xlu1 %v18041_v59, %s11729_s12  ;;  %v15655_v23 = vpop.xlane.xlu0 %6730  ;;  %v6747_v59 = vsel %vm1605_vm1, %v15667_v51, -inf }
 0x9d5   : > { %7443 = vrot.lane.b32.xlu1 %v18042_v9, %s11729_s12  ;;  %v7291_v27 = vpop.permute.xlu0 %7290  ;;  %v18045_v9 = vld [vmem:[#allocation115_spill] sm:$0xff] }
 0x9d6   : > { %10439 = vmatprep.subr.mxu0 %v7291_v27 }
 0x9d7   : > { %10440 = vmatpush3.msra.mxu0 %v7291_v27  ;;  %v18046_v27 = vld [vmem:[#allocation149_spill] sm:$0xff] }
 0x9d9   : > { %7441 = vrot.lane.b32.xlu1 %v18043_v31, %s11729_s12  ;;  %v3409_v31 = vsel %vm1605_vm1, %v18047_v29, 0.0 }
 0x9db   : > { %v15661_v14 = vpop.xlane.xlu1 %6733 }
 0x9dd   : > { %7437 = vrot.lane.b32.xlu1 %v18044_v15, %s11729_s12  ;;  %v18048_v15 = vld [vmem:[#allocation77_spill] sm:$0xff] }
 0x9df   : > { %v7289_v41 = vpop.permute.xlu1 %7288 }
 0x9e0   : > { %10441 = vmatprep.subr.mxu0 %v7289_v41 }
 0x9e1   : > { %7433 = vrot.lane.b32.xlu1 %v17907_v34, %s11729_s12  ;;  %10442 = vmatpush3.msra.mxu0 %v7289_v41 }
 0x9e7   : > { %6748 = vmax.xlane.f32.xlu0 %v6747_v59  ;;  %v3412_v59 = vsel %vm1605_vm1, %v18049_v3, 0.0 }
 0x9fd   : > { %7447 = vrot.lane.b32.xlu0 %v18045_v9, %s11729_s12 }
 0xa01   : > { %7439 = vrot.lane.b32.xlu0 %v18046_v27, %s11729_s12  ;;  %v5148_v27 = vsel %vm1605_vm1, %v14904_v53, 0.0  ;;  %v18051_v53 = vld [vmem:[#allocation172_spill] sm:$0xff] }
 0xa02   : > { %v3406_v3 = vsel %vm1605_vm1, %v18051_v53, 0.0 }
 0xa05   : > { %7435 = vrot.lane.b32.xlu0 %v18048_v15, %s11729_s12  ;;  %3410 = vadd.xlane.f32.xlu1 %v3409_v31  ;;  %v6852_v31 = vsel %vm1605_vm1, %v15487_v10, 0.0  ;;  %v3418_v15 = vsel %vm1605_vm1, %v18050_v32, 0.0  ;;  %v18052_v10 = vld [vmem:[#allocation203_spill] sm:$0xff]  ;;  %v18053_v32 = vld [vmem:[#allocation190_spill] sm:$0xff] }
 0xa06   : > { %v15679_v34 = vpop.xlane.xlu0 %6736 }
 0xa09   : > { %6847 = vadd.xlane.f32.xlu1 %v6846_v46  ;;  %v5154_v46 = vsel %vm1605_vm1, %v14917_v48, 0.0  ;;  %v5160_v48 = vsel %vm1605_vm1, %v14931_v47, 0.0 }
 0xa0a   : > { %v7287_v41 = vpop.permute.xlu0 %7286 }
 0xa0b   : > { %10443 = vmatprep.subr.mxu0 %v7287_v41 }
 0xa0c   : > { %10444 = vmatpush3.msra.mxu0 %v7287_v41  ;;  %v6858_v41 = vsel %vm1605_vm1, %v15497_v49, 0.0  ;;  %v5145_v49 = vsel %vm1605_vm1, %v14894_v61, 0.0  ;;  %v5166_v61 = vsel %vm1605_vm1, %v14981_v2, 0.0 }
 0xa0d   : > { %3413 = vadd.xlane.f32.xlu1 %v3412_v59  ;;  %v3424_v59 = vsel %vm1605_vm1, %v18052_v10, 0.0  ;;  %v6770_v10 = vsub.f32 %v15513_v36, %v15562_v18  ;;  %v6772_v36 = vsub.f32 %v15532_v19, %v15592_v50  ;;  %v18056_v18 = vld [vmem:[#allocation141_spill] sm:$0xff]  ;;  %v5157_v19 = vsel %vm1605_vm1, %v14914_v39, 0.0 }
 0xa0e   : > { %v6876_v50 = vsel %vm1605_vm1, %v15596_v7, 0.0  ;;  %v18058_v7 = vld [vmem:[#allocation210_spill] sm:$0xff] }
 0xa10   : > { %v15685_v9 = vpop.xlane.xlu1 %6739 }
 0xa11   : > { %5149 = vadd.xlane.f32.xlu1 %v5148_v27  ;;  %v5142_v27 = vsel %vm1605_vm1, %v14892_v60, 0.0  ;;  %v3430_v60 = vsel %vm1605_vm1, %v18053_v32, 0.0 }
 0xa14   : > { %v7285_v29 = vpop.permute.xlu1 %7284 }
 0xa15   : > { %6853 = vadd.xlane.f32.xlu1 %v6852_v31  ;;  %10445 = vmatprep.subr.mxu0 %v7285_v29  ;;  %v6849_v31 = vsel %vm1605_vm1, %v15485_v11, 0.0  ;;  %v5151_v11 = vsel %vm1605_vm1, %v14901_v30, 0.0  ;;  %v18055_v30 = vld [vmem:[#allocation99_spill] sm:$0xff] }
 0xa16   : > { %10446 = vmatpush3.msra.mxu0 %v7285_v29  ;;  %v6864_v29 = vsel %vm1605_vm1, %v15507_v17, 0.0  ;;  %v6767_v17 = vsub.f32 %v15445_v54, %v15544_v28  ;;  %v3436_v28 = vsel %vm1605_vm1, %v18055_v30, 0.0 }
 0xa18   : > { %v6816_v53 = vmul.f32 1.442695, %v6767_v17  ;;  %v6867_v17 = vsel %vm1605_vm1, %v15515_v13, 0.0  ;;  %v5184_v13 = vsel %vm1605_vm1, %v15046_v33, 0.0 }
 0xa19   : > { %3419 = vadd.xlane.f32.xlu1 %v3418_v15  ;;  %v18054_v15 = vld [vmem:[#allocation142_spill] sm:$0xff] }
 0xa1a   : > { %v3415_v47 = vsel %vm1605_vm1, %v18054_v15, 0.0  ;;  %11158 = vpow2.f32 %v6816_v53  ;;  %v5163_v15 = vsel %vm1605_vm1, %v14928_v21, 0.0  ;;  %v18059_v21 = vld [vmem:[#allocation179_spill] sm:$0xff] }
 0xa1d   : > { %5155 = vadd.xlane.f32.xlu1 %v5154_v46  ;;  %v6768_v46 = vsub.f32 %v15453_v12, %v15546_v40  ;;  %v6855_v12 = vsel %vm1605_vm1, %v15495_v25, 0.0  ;;  %v6771_v40 = vsub.f32 %v15528_v0, %v15584_v57  ;;  %v5172_v25 = vsel %vm1605_vm1, %v14999_v63, 0.0 }
 0xa1e   : > { %v6773_v0 = vsub.f32 %v15548_v22, %v15634_v24  ;;  %v6826_v57 = vmul.f32 1.442695, %v6772_v36  ;;  %v18057_v22 = vld [vmem:[#allocation191_spill] sm:$0xff] }
 0xa1f   : > { %v6818_v2 = vmul.f32 1.442695, %v6768_v46  ;;  %v3442_v24 = vsel %vm1605_vm1, %v18057_v22, 0.0  ;;  %v18068_v22 = vld [vmem:[#allocation214_spill] sm:$0xff] }
 0xa20   : > { %v6828_v63 = vmul.f32 1.442695, %v6773_v0  ;;  %v6777_v0 = vsub.f32 %v15598_v8, %v15679_v34  ;;  %v18067_v34 = vld [vmem:[#allocation70_spill] sm:$0xff] }
 0xa21   : > { %6859 = vadd.xlane.f32.xlu1 %v6858_v41  ;;  %v6870_v41 = vsel %vm1605_vm1, %v15476_v6, 0.0  ;;  %11160 = vpow2.f32 %v6818_v2  ;;  %v6888_v2 = vsel %vm1605_vm1, %v15616_v45, 0.0  ;;  %v5175_v45 = vsel %vm1605_vm1, %v15004_v37, 0.0 }
 0xa24   : > { %3407 = vadd.xlane.f32.xlu0 %v3406_v3  ;;  %v6769_v3 = vsub.f32 %v15489_v1, %v15560_v38  ;;  %v6822_v1 = vmul.f32 1.442695, %v6770_v10  ;;  %v6873_v10 = vsel %vm1605_vm1, %v15594_v42, 0.0  ;;  %v6894_v42 = vsel %vm1605_vm1, %v15534_v5, 0.0 }
 0xa25   : > { %3425 = vadd.xlane.f32.xlu1 %v3424_v59  ;;  %v3421_v59 = vsel %vm1605_vm1, %v18056_v18, 0.0  ;;  %v6776_v18 = vsub.f32 %v15568_v35, %v15661_v14 }
 0xa26   : > { %v6820_v6 = vmul.f32 1.442695, %v6769_v3  ;;  %v5169_v3 = vsel %vm1605_vm1, %v14985_v52, 0.0  ;;  %v5190_v52 = vsel %vm1605_vm1, %v15063_v20, 0.0  ;;  %v6775_v20 = vsub.f32 %v15564_v4, %v15655_v23 }
 0xa27   : > { %v15755_v39 = vpop.eup %11158  ;;  %v6834_v23 = vmul.f32 1.442695, %v6776_v18 }
 0xa28   : > { %5143 = vadd.xlane.f32.xlu0 %v5142_v27  ;;  %11162 = vpow2.f32 %v6820_v6  ;;  %v6824_v27 = vmul.f32 1.442695, %v6771_v40  ;;  %v6879_v40 = vsel %vm1605_vm1, %v15604_v62, 0.0 }
 0xa29   : > { %5161 = vadd.xlane.f32.xlu1 %v5160_v48  ;;  %11164 = vpow2.f32 %v6822_v1  ;;  %v18063_v1 = vld [vmem:[#allocation194_spill] sm:$0xff] }
 0xa2a   : > { %11166 = vpow2.f32 %v6824_v27  ;;  %v3460_v36 = vsel %vm1605_vm1, %v18063_v1, 0.0  ;;  %v6832_v27 = vmul.f32 1.442695, %v6775_v20  ;;  %v6897_v20 = vsel %vm1605_vm1, %v15755_v39, 0.0 }
 0xa2b   : > { %11168 = vpow2.f32 %v6826_v57  ;;  %v18066_v57 = vld [vmem:[#allocation164_spill] sm:$0xff] }
 0xa2c   : > { %5146 = vadd.xlane.f32.xlu0 %v5145_v49  ;;  %v6861_v49 = vsel %vm1605_vm1, %v15505_v43, 0.0  ;;  %11170 = vpow2.f32 %v6828_v63  ;;  %v5178_v43 = vsel %vm1605_vm1, %v15025_v58, 0.0  ;;  %v5181_v4 = vsel %vm1605_vm1, %v18066_v57, 0.0 }
 0xa2d   : > { %6865 = vadd.xlane.f32.xlu1 %v6864_v29  ;;  %11172 = vpow2.f32 %v6832_v27  ;;  %v6836_v63 = vmul.f32 1.442695, %v6777_v0  ;;  %v18080_v27 = vld [vmem:[#allocation147_spill] sm:$0xff]  ;;  %v6918_v57 = vsel %vm1605_vm1, %v15643_v55, 0.0 }
 0xa2e   : > { %v15759_v32 = vpop.eup %11160  ;;  %11174 = vpow2.f32 %v6834_v23  ;;  %v5199_v0 = vsel %vm1605_vm1, %v18080_v27, 0.0  ;;  %v18097_v27 = vld [vmem:[#allocation134_spill] sm:$0xff] }
 0xa2f   : > { %v6900_v14 = vsel %vm1605_vm1, %v15759_v32, 0.0  ;;  %11176 = vpow2.f32 %v6836_v63 }
 0xa30   : > { %6850 = vadd.xlane.f32.xlu0 %v6849_v31  ;;  %v3427_v31 = vsel %vm1605_vm1, %v18058_v7, 0.0  ;;  %v18069_v7 = vld [vmem:[#allocation199_spill] sm:$0xff] }
 0xa31   : > { %3431 = vadd.xlane.f32.xlu1 %v3430_v60 }
 0xa34   : > { %3416 = vadd.xlane.f32.xlu0 %v3415_v47 }
 0xa35   : > { %5167 = vadd.xlane.f32.xlu1 %v5166_v61  ;;  %v15767_v60 = vpop.eup %11162  ;;  %v6882_v61 = vsel %vm1605_vm1, %v15606_v56, 0.0 }
 0xa36   : > { %v15771_v47 = vpop.eup %11164  ;;  %v6903_v23 = vsel %vm1605_vm1, %v15767_v60, 0.0 }
 0xa37   : > { %v15779_v58 = vpop.eup %11166 }
 0xa38   : > { %5152 = vadd.xlane.f32.xlu0 %v5151_v11  ;;  %v15783_v46 = vpop.eup %11168  ;;  %v3448_v11 = vsel %vm1605_vm1, %v18059_v21, 0.0  ;;  %v6906_v21 = vsel %vm1605_vm1, %v15771_v47, 0.0 }
 0xa39   : > { %6871 = vadd.xlane.f32.xlu1 %v6870_v41  ;;  %v15791_v56 = vpop.eup %11170  ;;  %v18060_v41 = vld [vmem:[#allocation103_spill] sm:$0xff] }
 0xa3a   : > { %v3433_v53 = vsel %vm1605_vm1, %v18060_v41, 0.0  ;;  %v18072_v41 = vld [vmem:[#allocation80_spill] sm:$0xff] }
 0xa3b   : > { %v15729_v54 = vpop.xlane.xlu0 %6742 }
 0xa3c   : > { %6856 = vadd.xlane.f32.xlu0 %v6855_v12  ;;  %v18061_v12 = vld [vmem:[#allocation192_spill] sm:$0xff]  ;;  %v6779_v8 = vsub.f32 %v15637_v16, %v15729_v54 }
 0xa3d   : > { %3437 = vadd.xlane.f32.xlu1 %v3436_v28  ;;  %v3454_v30 = vsel %vm1605_vm1, %v18061_v12, 0.0  ;;  %v18062_v28 = vld [vmem:[#allocation202_spill] sm:$0xff] }
 0xa3e   : > { %v3439_v33 = vsel %vm1605_vm1, %v18062_v28, 0.0  ;;  %v6840_v16 = vmul.f32 1.442695, %v6779_v8  ;;  %v18075_v28 = vld [vmem:[#allocation95_spill] sm:$0xff]  ;;  %v18083_v8 = vld [vmem:[#allocation125_spill] sm:$0xff] }
 0xa3f   : > { %v7283_v38 = vpop.permute.xlu0 %7282  ;;  %v5220_v55 = vsel %vm1605_vm1, %v18083_v8, 0.0 }
 0xa40   : > { %3422 = vadd.xlane.f32.xlu0 %v3421_v59  ;;  %10447 = vmatprep.subr.mxu0 %v7283_v38 }
 0xa41   : > { %5173 = vadd.xlane.f32.xlu1 %v5172_v25  ;;  %10448 = vmatpush3.msra.mxu0 %v7283_v38  ;;  %v18064_v38 = vld [vmem:[#allocation184_spill] sm:$0xff]  ;;  %v18065_v25 = vld [vmem:[#allocation165_spill] sm:$0xff] }
 0xa42   : > { %v3445_v37 = vsel %vm1605_vm1, %v18064_v38, 0.0  ;;  %v5196_v62 = vsel %vm1605_vm1, %v18065_v25, 0.0  ;;  %v18079_v25 = vld [vmem:[#allocation158_spill] sm:$0xff] }
 0xa44   : > { %5158 = vadd.xlane.f32.xlu0 %v5157_v19  ;;  %v6778_v19 = vsub.f32 %v15622_v44, %v15685_v9 }
 0xa45   : > { %v15749_v48 = vpop.xlane.xlu1 %6745  ;;  %6877 = vadd.xlane.f32.xlu1 %v6876_v50 }
 0xa46   : > { %v6838_v44 = vmul.f32 1.442695, %v6778_v19  ;;  %v6780_v9 = vsub.f32 %v15641_v26, %v15749_v48  ;;  %v18070_v48 = vld [vmem:[#allocation162_spill] sm:$0xff]  ;;  %v18081_v19 = vld [vmem:[#allocation224_spill] sm:$0xff] }
 0xa48   : > { %6862 = vadd.xlane.f32.xlu0 %v6861_v49  ;;  %v6885_v49 = vsel %vm1605_vm1, %v18067_v34, 0.0  ;;  %11178 = vpow2.f32 %v6838_v44 }
 0xa49   : > { %v7281_v29 = vpop.permute.xlu1 %7280  ;;  %3443 = vadd.xlane.f32.xlu1 %v3442_v24  ;;  %v3466_v24 = vsel %vm1605_vm1, %v18068_v22, 0.0  ;;  %11180 = vpow2.f32 %v6840_v16  ;;  %v6909_v22 = vsel %vm1605_vm1, %v15779_v58, 0.0 }
 0xa4a   : > { %10449 = vmatprep.subr.mxu0 %v7281_v29 }
 0xa4b   : > { %10450 = vmatpush3.msra.mxu0 %v7281_v29 }
 0xa4c   : > { %3428 = vadd.xlane.f32.xlu0 %v3427_v31  ;;  %10452 = vmatmul.mubr.msk.f32.vlgmr.msra.gmra.mxu0 %vm1605_vm1, %v15755_v39  ;;  %v3451_v31 = vsel %vm1605_vm1, %v18069_v7, 0.0 }
 0xa4d   : > { %5179 = vadd.xlane.f32.xlu1 %v5178_v43  ;;  %10454 = vmatprep.mubr.msk.f32.mxu0 %vm1605_vm1, %v15759_v32  ;;  %v7446_v6 = vpop.permute.xlu1 %7445  ;;  %v6842_v32 = vmul.f32 1.442695, %v6780_v9  ;;  %v5202_v43 = vsel %vm1605_vm1, %v18070_v48, 0.0 }
 0xa4f   : > { %11182 = vpow2.f32 %v6842_v32 }
 0xa50   : > { %5164 = vadd.xlane.f32.xlu0 %v5163_v15  ;;  %10455 = vmatmul.mubr.msk.f32.gmra.mxu0 %vm1605_vm1, %v15767_v60 }
 0xa51   : > { %6883 = vadd.xlane.f32.xlu1 %v6882_v61  ;;  %10457 = vmatprep.mubr.msk.f32.mxu0 %vm1605_vm1, %v15771_v47  ;;  %v7444_v5 = vpop.permute.xlu1 %7443  ;;  %v18071_v61 = vld [vmem:[#allocation152_spill] sm:$0xff] }
 0xa52   : > { %v18074_v47 = vld [vmem:[#allocation208_spill] sm:$0xff] }
 0xa53   : > { %v3457_v12 = vsel %vm1605_vm1, %v18074_v47, 0.0  ;;  %v18092_v47 = vld [vmem:[#allocation221_spill] sm:$0xff] }
 0xa54   : > { %6868 = vadd.xlane.f32.xlu0 %v6867_v17  ;;  %10458 = vmatmul.mubr.msk.f32.gmra.mxu0 %vm1605_vm1, %v15779_v58  ;;  %v18088_v58 = vld [vmem:[#allocation101_spill] sm:$0xff] }
 0xa55   : > { %3449 = vadd.xlane.f32.xlu1 %v3448_v11  ;;  %10460 = vmatprep.mubr.msk.f32.mxu0 %vm1605_vm1, %v15783_v46  ;;  %v7442_v50 = vpop.permute.xlu1 %7441 }
 0xa58   : > { %3434 = vadd.xlane.f32.xlu0 %v3433_v53  ;;  %10461 = vmatmul.mubr.msk.f32.gmra.mxu0 %vm1605_vm1, %v15791_v56  ;;  %v6891_v53 = vsel %vm1605_vm1, %v18072_v41, 0.0 }
 0xa59   : > { %5185 = vadd.xlane.f32.xlu1 %v5184_v13  ;;  %v7438_v26 = vpop.permute.xlu1 %7437  ;;  %v15854_v13 = vpop.eup %11172 }
 0xa5c   : > { %5170 = vadd.xlane.f32.xlu0 %v5169_v3  ;;  %v18073_v3 = vld [vmem:[#allocation217_spill] sm:$0xff] }
 0xa5d   : > { %6889 = vadd.xlane.f32.xlu1 %v6888_v2  ;;  %v7434_v11 = vpop.permute.xlu1 %7433  ;;  %v3472_v2 = vsel %vm1605_vm1, %v18073_v3, 0.0 }
 0xa60   : > { %6874 = vadd.xlane.f32.xlu0 %v6873_v10  ;;  %v11175_v10 = vpop.eup %11174 }
 0xa61   : > { %3455 = vadd.xlane.f32.xlu1 %v3454_v30  ;;  %v15863_v30 = vpop.eup %11176  ;;  %v6924_v44 = vsel %vm1605_vm1, %v11175_v10, 0.0 }
 0xa64   : > { %3440 = vadd.xlane.f32.xlu0 %v3439_v33  ;;  %v5208_v33 = vsel %vm1605_vm1, %v18075_v28, 0.0 }
 0xa65   : > { %5191 = vadd.xlane.f32.xlu1 %v5190_v52  ;;  %v15867_v52 = vpop.eup %11178 }
 0xa68   : > { %5176 = vadd.xlane.f32.xlu0 %v5175_v45  ;;  %v18076_v45 = vld [vmem:[#allocation104_spill] sm:$0xff] }
 0xa69   : > { %6895 = vadd.xlane.f32.xlu1 %v6894_v42  ;;  %v5193_v42 = vsel %vm1605_vm1, %v18076_v45, 0.0 }
 0xa6c   : > { %6880 = vadd.xlane.f32.xlu0 %v6879_v40  ;;  %v6912_v40 = vsel %vm1605_vm1, %v15783_v46, 0.0 }
 0xa6d   : > { %3461 = vadd.xlane.f32.xlu1 %v3460_v36 }
 0xa70   : > { %3446 = vadd.xlane.f32.xlu0 %v3445_v37  ;;  %v6749_v59 = vpop.xlane.xlu0 %6748  ;;  %v18077_v37 = vld [vmem:[#allocation30_spill] sm:$0xff] }
 0xa71   : > { %5197 = vadd.xlane.f32.xlu1 %v5196_v62  ;;  %v6781_v54 = vsub.f32 %v15667_v51, %v6749_v59  ;;  %v5187_v51 = vsel %vm1605_vm1, %v18071_v61, 0.0  ;;  %v3478_v18 = vsel %vm1605_vm1, %v18077_v37, 0.0  ;;  %v5214_v62 = vsel %vm1605_vm1, %v18079_v25, 0.0  ;;  %v18095_v37 = vld [vmem:[#allocation234_spill] sm:$0xff] }
 0xa73   : > { %v6844_v15 = vmul.f32 1.442695, %v6781_v54  ;;  %v18086_v54 = vld [vmem:[#allocation219_spill] sm:$0xff] }
 0xa74   : > { %5182 = vadd.xlane.f32.xlu0 %v5181_v4  ;;  %v7448_v35 = vpop.permute.xlu0 %7447  ;;  %v3475_v7 = vsel %vm1605_vm1, %v18086_v54, 0.0 }
 0xa75   : > { %6901 = vadd.xlane.f32.xlu1 %v6900_v14  ;;  %10463 = vmatprep.subr.mxu1 %v7448_v35  ;;  %11184 = vpow2.f32 %v6844_v15  ;;  %v18089_v15 = vld [vmem:[#allocation121_spill] sm:$0xff] }
 0xa76   : > { %10464 = vmatpush3.msra.mxu1 %v7448_v35  ;;  %v3484_v35 = vsel %vm1605_vm1, %v18081_v19, 0.0  ;;  %v5229_v61 = vsel %vm1605_vm1, %v18089_v15, 0.0  ;;  %v10397_v19 = vpop.f32.mrf.mxu0  ;;  %v18102_v15 = vld [vmem:[#allocation200_spill] sm:$0xff] }
 0xa77   : > { %10465 = vmatprep.subr.mxu1 %v7446_v6 }
 0xa78   : > { %6886 = vadd.xlane.f32.xlu0 %v6885_v49  ;;  %10466 = vmatpush3.msra.mxu1 %v7446_v6  ;;  %v7440_v29 = vpop.permute.xlu0 %7439  ;;  %v15875_v6 = vpop.eup %11180  ;;  %v18084_v49 = vld [vmem:[#allocation159_spill] sm:$0xff] }
 0xa79   : > { %3467 = vadd.xlane.f32.xlu1 %v3466_v24  ;;  %10467 = vmatprep.subr.mxu1 %v7444_v5  ;;  %v15879_v1 = vpop.eup %11182  ;;  %v5205_v60 = vsel %vm1605_vm1, %v18084_v49, 0.0  ;;  %v18085_v24 = vld [vmem:[#allocation212_spill] sm:$0xff] }
 0xa7a   : > { %10468 = vmatpush3.msra.mxu1 %v7444_v5  ;;  %v18078_v5 = vld [vmem:[#allocation31_spill] sm:$0xff] }
 0xa7b   : > { %10469 = vmatprep.subr.mxu1 %v7442_v50  ;;  %v3463_v59 = vsel %vm1605_vm1, %v18078_v5, 0.0 }
 0xa7c   : > { %3452 = vadd.xlane.f32.xlu0 %v3451_v31  ;;  %10470 = vmatpush3.msra.mxu1 %v7442_v50  ;;  %v7436_v17 = vpop.permute.xlu0 %7435  ;;  %v18082_v50 = vld [vmem:[#allocation205_spill] sm:$0xff]  ;;  %v18087_v31 = vld [vmem:[#allocation180_spill] sm:$0xff] }
 0xa7d   : > { %5203 = vadd.xlane.f32.xlu1 %v5202_v43  ;;  %10471 = vmatprep.subr.mxu1 %v7440_v29  ;;  %v3469_v63 = vsel %vm1605_vm1, %v18082_v50, 0.0  ;;  %v5226_v32 = vsel %vm1605_vm1, %v18087_v31, 0.0  ;;  %v5211_v43 = vsel %vm1605_vm1, %v18088_v58, 0.0 }
 0xa7e   : > { %10472 = vmatpush3.msra.mxu1 %v7440_v29  ;;  %v3490_v29 = vsel %vm1605_vm1, %v18085_v24, 0.0  ;;  %v18101_v24 = vld [vmem:[#allocation209_spill] sm:$0xff] }
 0xa7f   : > { %10473 = vmatprep.subr.mxu1 %v7438_v26 }
 0xa80   : > { %5188 = vadd.xlane.f32.xlu0 %v5187_v51  ;;  %10474 = vmatpush3.msra.mxu1 %v7438_v26 }
 0xa81   : > { %6907 = vadd.xlane.f32.xlu1 %v6906_v21  ;;  %10475 = vmatprep.subr.mxu1 %v7436_v17  ;;  %v6915_v21 = vsel %vm1605_vm1, %v15791_v56, 0.0 }
 0xa82   : > { %10476 = vmatpush3.msra.mxu1 %v7436_v17  ;;  %v15887_v38 = vpop.eup %11184 }
 0xa83   : > { %10477 = vmatprep.subr.mxu1 %v7434_v11 }
 0xa84   : > { %6892 = vadd.xlane.f32.xlu0 %v6891_v53  ;;  %10478 = vmatpush3.msra.mxu1 %v7434_v11  ;;  %v18090_v11 = vld [vmem:[#allocation243_spill] sm:$0xff] }
 0xa85   : > { %3473 = vadd.xlane.f32.xlu1 %v3472_v2  ;;  %10480 = vmatmul.mubr.msk.f32.vlgmr.msra.gmra.mxu1 %vm1605_vm1, %v15854_v13  ;;  %v1801_v41 = vsel %vm1605_vm1, %v18090_v11, 0.0  ;;  %v18091_v2 = vld [vmem:[#allocation226_spill] sm:$0xff] }
 0xa86   : > { %10482 = vmatprep.mubr.msk.f32.mxu1 %vm1605_vm1, %v11175_v10  ;;  %v3481_v10 = vsel %vm1605_vm1, %v18091_v2, 0.0 }
 0xa88   : > { %3458 = vadd.xlane.f32.xlu0 %v3457_v12  ;;  %v3496_v12 = vsel %vm1605_vm1, %v18092_v47, 0.0 }
 0xa89   : > { %5209 = vadd.xlane.f32.xlu1 %v5208_v33  ;;  %10483 = vmatmul.mubr.msk.f32.gmra.mxu1 %vm1605_vm1, %v15863_v30 }
 0xa8a   : > { %10485 = vmatprep.mubr.msk.f32.mxu1 %vm1605_vm1, %v15867_v52 }
 0xa8c   : > { %5194 = vadd.xlane.f32.xlu0 %v5193_v42  ;;  %v18093_v42 = vld [vmem:[#allocation175_spill] sm:$0xff] }
 0xa8d   : > { %6913 = vadd.xlane.f32.xlu1 %v6912_v40  ;;  %10486 = vmatmul.mubr.msk.f32.gmra.mxu1 %vm1605_vm1, %v15875_v6  ;;  %v5217_v40 = vsel %vm1605_vm1, %v18093_v42, 0.0 }
 0xa8e   : > { %v3411_v36 = vpop.xlane.xlu1 %3410  ;;  %10488 = vmatprep.mubr.msk.f32.mxu1 %vm1605_vm1, %v15879_v1 }
 0xa8f   : > { %11186 = vrcp.f32 %v3411_v36  ;;  %v18094_v36 = vld [vmem:[#allocation174_spill] sm:$0xff] }
 0xa90   : > { %6898 = vadd.xlane.f32.xlu0 %v6897_v20  ;;  %v5232_v20 = vsel %vm1605_vm1, %v18094_v36, 0.0 }
 0xa91   : > { %3479 = vadd.xlane.f32.xlu1 %v3478_v18  ;;  %10489 = vmatmul.mubr.msk.f32.gmra.mxu1 %vm1605_vm1, %v15887_v38 }
 0xa92   : > { %v6848_v46 = vpop.xlane.xlu1 %6847 }
 0xa94   : > { %3464 = vadd.xlane.f32.xlu0 %v3463_v59 }
 0xa95   : > { %5215 = vadd.xlane.f32.xlu1 %v5214_v62  ;;  %v8099_v62 = vld [vmem:[#allocation7] sm:$0xff] }
 0xa96   : > { %v3414_v39 = vpop.xlane.xlu1 %3413 }
 0xa98   : > { %5200 = vadd.xlane.f32.xlu0 %v5199_v0  ;;  %v5235_v0 = vsel %vm1605_vm1, %v18097_v27, 0.0 }
 0xa99   : > { %6919 = vadd.xlane.f32.xlu1 %v6918_v57 }
 0xa9a   : > { %v15901_v4 = vpop.xlane.xlu1 %5149 }
 0xa9c   : > { %6904 = vadd.xlane.f32.xlu0 %v6903_v23  ;;  %v11187_v28 = vpop.eup %11186 }
 0xa9d   : > { %3485 = vadd.xlane.f32.xlu1 %v3484_v35  ;;  %v18098_v35 = vld [vmem:[#allocation35_spill] sm:$0xff] }
 0xa9e   : > { %v15907_v14 = vpop.xlane.xlu1 %6853  ;;  %v3487_v50 = vsel %vm1605_vm1, %v18098_v35, 0.0 }
 0xaa0   : > { %3470 = vadd.xlane.f32.xlu0 %v3469_v63  ;;  %v18099_v63 = vld [vmem:[#allocation207_spill] sm:$0xff] }
 0xaa1   : > { %5221 = vadd.xlane.f32.xlu1 %v5220_v55 }
 0xaa2   : > { %v15913_v34 = vpop.xlane.xlu1 %3419 }
 0xaa4   : > { %5206 = vadd.xlane.f32.xlu0 %v5205_v60  ;;  %v7088_v60 = vpop.f32.mrf.mxu0 }
 0xaa5   : > { %6925 = vadd.xlane.f32.xlu1 %v6924_v44  ;;  %v18100_v44 = vld [vmem:[#allocation193_spill] sm:$0xff] }
 0xaa6   : > { %v15918_v9 = vpop.xlane.xlu1 %5155 }
 0xaa8   : > { %6910 = vadd.xlane.f32.xlu0 %v6909_v22  ;;  %v5223_v22 = vsel %vm1605_vm1, %v18100_v44, 0.0 }
 0xaa9   : > { %3491 = vadd.xlane.f32.xlu1 %v3490_v29  ;;  %v1810_v29 = vsel %vm1605_vm1, %v18101_v24, 0.0  ;;  %v6930_v24 = vsel %vm1605_vm1, %v15867_v52, 0.0 }
 0xaaa   : > { %v15924_v16 = vpop.xlane.xlu1 %6859 }
 0xaac   : > { %3476 = vadd.xlane.f32.xlu0 %v3475_v7 }
 0xaad   : > { %5227 = vadd.xlane.f32.xlu1 %v5226_v32  ;;  %v3408_v26 = vpop.xlane.xlu0 %3407 }
 0xaae   : > { %11188 = vrcp.f32 %v3408_v26  ;;  %v15930_v48 = vpop.xlane.xlu1 %3425 }
 0xaaf   : > { %11190 = vrcp.f32 %v6848_v46  ;;  %v18096_v46 = vld [vmem:[#allocation225_spill] sm:$0xff] }
 0xab0   : > { %5212 = vadd.xlane.f32.xlu0 %v5211_v43  ;;  %v15962_v5 = vmul.f32 %v11187_v28, %v18096_v46  ;;  %v6927_v43 = vsel %vm1605_vm1, %v15863_v30, 0.0  ;;  %v18108_v46 = vld [vmem:[#allocation29_spill] sm:$0xff] }
 0xab1   : > { %5230 = vadd.xlane.f32.xlu1 %v5229_v61  ;;  %v15936_v51 = vpop.xlane.xlu0 %5143  ;;  %v1816_v61 = vsel %vm1605_vm1, %v18102_v15, 0.0  ;;  %v6933_v15 = vsel %vm1605_vm1, %v15875_v6, 0.0  ;;  %v8101_v28 = vld [vmem:[#allocation7 + $0x10] sm:$0xff] }
 0xab2   : > { %v15938_v17 = vpop.xlane.xlu1 %5161 }
 0xab4   : > { %6916 = vadd.xlane.f32.xlu0 %v6915_v21  ;;  %v18103_v21 = vld [vmem:[#allocation227_spill] sm:$0xff] }
 0xab5   : > { %1802 = vadd.xlane.f32.xlu1 %v1801_v41  ;;  %v15944_v53 = vpop.xlane.xlu0 %5146  ;;  %v18104_v41 = vld [vmem:[#allocation236_spill] sm:$0xff] }
 0xab6   : > { %v15946_v3 = vpop.xlane.xlu1 %6865 }
 0xab8   : > { %3482 = vadd.xlane.f32.xlu0 %v3481_v10 }
 0xab9   : > { %3497 = vadd.xlane.f32.xlu1 %v3496_v12  ;;  %v6851_v56 = vpop.xlane.xlu0 %6850 }
 0xaba   : > { %11192 = vrcp.f32 %v6851_v56  ;;  %v15952_v33 = vpop.xlane.xlu1 %3431  ;;  %v10400_v56 = vpop.f32.mrf.mxu0 }
 0xabb   : > { %v11189_v45 = vpop.eup %11188  ;;  %11194 = vrcp.f32 %v3414_v39  ;;  %v6921_v39 = vsel %vm1605_vm1, %v15854_v13, 0.0  ;;  %v1807_v13 = vsel %vm1605_vm1, %v18099_v63, 0.0 }
 0xabc   : > { %5218 = vadd.xlane.f32.xlu0 %v5217_v40  ;;  %v15959_v18 = vmul.f32 %v11189_v45, %v18095_v37  ;;  %v18105_v45 = vld [vmem:[#allocation223_spill] sm:$0xff]  ;;  %v18106_v40 = vld [vmem:[#allocation201_spill] sm:$0xff]  ;;  %v7098_v35 = vpop.f32.mrf.mxu0 }
 0xabd   : > { %5233 = vadd.xlane.f32.xlu1 %v5232_v20  ;;  %v3417_v59 = vpop.xlane.xlu0 %3416  ;;  %v3493_v42 = vsel %vm1605_vm1, %v18105_v45, 0.0  ;;  %v1822_v36 = vsel %vm1605_vm1, %v18106_v40, 0.0  ;;  %v18107_v20 = vld [vmem:[#allocation22_spill] sm:$0xff] }
 0xabe   : > { %11196 = vrcp.f32 %v3417_v59  ;;  %v15964_v25 = vpop.xlane.xlu1 %5167 }
 0xabf   : > { %11198 = vrcp.f32 %v15901_v4  ;;  %v11191_v4 = vpop.eup %11190 }
 0xac0   : > { %6922 = vadd.xlane.f32.xlu0 %v6921_v39 }
 0xac1   : > { %5236 = vadd.xlane.f32.xlu1 %v5235_v0  ;;  %v5153_v57 = vpop.xlane.xlu0 %5152 }
 0xac2   : > { %11200 = vrcp.f32 %v5153_v57  ;;  %v15973_v23 = vpop.xlane.xlu1 %6871 }
 0xac3   : > { %11202 = vrcp.f32 %v15907_v14  ;;  %v15986_v14 = vmul.f32 %v11191_v4, %v7088_v60 }
 0xac4   : > { %3488 = vadd.xlane.f32.xlu0 %v3487_v50  ;;  %v18109_v50 = vld [vmem:[#allocation241_spill] sm:$0xff] }
 0xac5   : > { %1808 = vadd.xlane.f32.xlu1 %v1807_v13  ;;  %v6857_v8 = vpop.xlane.xlu0 %6856  ;;  %v1798_v63 = vsel %vm1605_vm1, %v18109_v50, 0.0  ;;  %v18110_v13 = vld [vmem:[#allocation204_spill] sm:$0xff]  ;;  %v6939_v50 = vsel %vm1605_vm1, %v15887_v38, 0.0  ;;  %v18121_v38 = vld [vmem:[#allocation215_spill] sm:$0xff] }
 0xac6   : > { %11204 = vrcp.f32 %v6857_v8  ;;  %v15980_v55 = vpop.xlane.xlu1 %3437  ;;  %v1828_v4 = vsel %vm1605_vm1, %v18110_v13, 0.0 }
 0xac7   : > { %v11193_v49 = vpop.eup %11192  ;;  %11206 = vrcp.f32 %v15944_v53 }
 0xac8   : > { %5224 = vadd.xlane.f32.xlu0 %v5223_v22  ;;  %v15988_v54 = vmul.f32 %v11193_v49, %v10397_v19  ;;  %v11195_v7 = vpop.eup %11194  ;;  %11208 = vrcp.f32 %v15936_v51  ;;  %v8103_v22 = vld [vmem:[#allocation7 + $0x20] sm:$0xff] }
 0xac9   : > { %1811 = vadd.xlane.f32.xlu1 %v1810_v29  ;;  %v15990_v31 = vpop.xlane.xlu0 %3422  ;;  %v16001_v11 = vmul.f32 %v11195_v7, %v18103_v21  ;;  %v18111_v29 = vld [vmem:[#allocation173_spill] sm:$0xff] }
 0xaca   : > { %v15992_v32 = vpop.xlane.xlu1 %5173  ;;  %v1834_v7 = vsel %vm1605_vm1, %v18111_v29, 0.0  ;;  %v18118_v29 = vld [vmem:[#allocation144_spill] sm:$0xff] }
 0xacb   : > { %v11197_v58 = vpop.eup %11196 }
 0xacc   : > { %6928 = vadd.xlane.f32.xlu0 %v6927_v43  ;;  %v16004_v2 = vmul.f32 %v11197_v58, %v18104_v41  ;;  %v11199_v10 = vpop.eup %11198 }
 0xacd   : > { %1817 = vadd.xlane.f32.xlu1 %v1816_v61  ;;  %v16006_v47 = vpop.xlane.xlu0 %5158  ;;  %v16017_v37 = vmul.f32 %v11199_v10, %v18107_v20  ;;  %v18112_v61 = vld [vmem:[#allocation222_spill] sm:$0xff]  ;;  %v18113_v10 = vld [vmem:[#allocation228_spill] sm:$0xff]  ;;  %v6936_v20 = vsel %vm1605_vm1, %v15879_v1, 0.0 }
 0xace   : > { %v16008_v12 = vpop.xlane.xlu1 %6877  ;;  %v1840_v21 = vsel %vm1605_vm1, %v18112_v61, 0.0  ;;  %v18119_v1 = vld [vmem:[#allocation198_spill] sm:$0xff] }
 0xacf   : > { %v11201_v30 = vpop.eup %11200 }
 0xad0   : > { %3494 = vadd.xlane.f32.xlu0 %v3493_v42  ;;  %v16020_v59 = vmul.f32 %v11201_v30, %v18108_v46  ;;  %v11203_v39 = vpop.eup %11202  ;;  %v3499_v30 = vsel %vm1605_vm1, %v18113_v10, 0.0  ;;  %v18115_v42 = vld [vmem:[#allocation185_spill] sm:$0xff] }
 0xad1   : > { %1823 = vadd.xlane.f32.xlu1 %v1822_v36  ;;  %v16022_v27 = vpop.xlane.xlu0 %6862  ;;  %v16032_v8 = vmul.f32 %v11203_v39, %v7098_v35  ;;  %v1804_v40 = vsel %vm1605_vm1, %v18115_v42, 0.0  ;;  %v8114_v42 = vld [vmem:[#allocation7 + $0x78] sm:$0xff] }
 0xad2   : > { %v16024_v0 = vpop.xlane.xlu1 %3443  ;;  %10491 = vmatprep.subr.mxu0 %v8114_v42 }
 0xad3   : > { %v11205_v19 = vpop.eup %11204  ;;  %10492 = vmatpush3.msra.mxu0 %v8114_v42 }
 0xad4   : > { %1799 = vadd.xlane.f32.xlu0 %v1798_v63  ;;  %v16034_v49 = vmul.f32 %v11205_v19, %v10400_v56  ;;  %v18114_v56 = vld [vmem:[#allocation206_spill] sm:$0xff]  ;;  %v11207_v46 = vpop.eup %11206  ;;  %v18116_v63 = vld [vmem:[#allocation28_spill] sm:$0xff] }
 0xad5   : > { %1829 = vadd.xlane.f32.xlu1 %v1828_v4  ;;  %v16036_v60 = vpop.xlane.xlu0 %3428  ;;  %v1843_v6 = vsel %vm1605_vm1, %v18114_v56, 0.0  ;;  %v11209_v35 = vpop.eup %11208  ;;  %v5883_v13 = vmul.f32 %v11207_v46, %v18116_v63  ;;  %v8112_v63 = vld [vmem:[#allocation7 + $0x68] sm:$0xff] }
 0xad6   : > { %v16038_v44 = vpop.xlane.xlu1 %5179 }
 0xad8   : > { %6931 = vadd.xlane.f32.xlu0 %v6930_v24 }
 0xad9   : > { %1835 = vadd.xlane.f32.xlu1 %v1834_v7  ;;  %v16046_v58 = vpop.xlane.xlu0 %5164  ;;  %v5882_v7 = vmul.f32 %v11209_v35, %v18118_v29  ;;  %v18125_v29 = vld [vmem:[#allocation216_spill] sm:$0xff] }
 0xada   : > { %v16048_v43 = vpop.xlane.xlu1 %6883 }
 0xadb   : > { %v10695_v61 = vpack.i.bf16 %v5883_v13, %v5882_v7  ;;  %v8111_v13 = vld [vmem:[#allocation7 + $0x60] sm:$0xff]  ;;  %v1831_v7 = vsel %vm1605_vm1, %v18125_v29, 0.0 }
 0xadc   : > { %6934 = vadd.xlane.f32.xlu0 %v6933_v15  ;;  %v1813_v15 = vsel %vm1605_vm1, %v18119_v1, 0.0 }
 0xadd   : > { %1841 = vadd.xlane.f32.xlu1 %v1840_v21  ;;  %v16055_v52 = vpop.xlane.xlu0 %6868 }
 0xade   : > { %v16058_v41 = vpop.xlane.xlu1 %3449 }
 0xae0   : > { %3500 = vadd.xlane.f32.xlu0 %v3499_v30  ;;  %v1819_v30 = vsel %vm1605_vm1, %v18121_v38, 0.0  ;;  %v8109_v38 = vld [vmem:[#allocation7 + $0x50] sm:$0xff] }
 0xae1   : > { %1844 = vadd.xlane.f32.xlu1 %v1843_v6  ;;  %v16064_v53 = vpop.xlane.xlu0 %3434 }
 0xae2   : > { %v16066_v45 = vpop.xlane.xlu1 %5185 }
 0xae4   : > { %1805 = vadd.xlane.f32.xlu0 %v1804_v40  ;;  %v8113_v40 = vld [vmem:[#allocation7 + $0x70] sm:$0xff] }
 0xae5   : > { %v16070_v36 = vpop.xlane.xlu0 %5170  ;;  %10493 = vmatprep.subr.mxu0 %v8113_v40 }
 0xae6   : > { %v16072_v51 = vpop.xlane.xlu1 %6889  ;;  %10494 = vmatpush3.msra.mxu0 %v8113_v40 }
 0xae7   : > { %10495 = vmatprep.subr.mxu0 %v8112_v63 }
 0xae8   : > { %6937 = vadd.xlane.f32.xlu0 %v6936_v20  ;;  %v18123_v20 = vld [vmem:[#allocation183_spill] sm:$0xff]  ;;  %10496 = vmatpush3.msra.mxu0 %v8112_v63 }
 0xae9   : > { %v16076_v39 = vpop.xlane.xlu0 %6874  ;;  %v1825_v46 = vsel %vm1605_vm1, %v18123_v20, 0.0  ;;  %10497 = vmatprep.subr.mxu0 %v8111_v13  ;;  %v8107_v63 = vld [vmem:[#allocation7 + $0x40] sm:$0xff] }
 0xaea   : > { %v16078_v19 = vpop.xlane.xlu1 %3455  ;;  %10498 = vmatpush3.msra.mxu0 %v8111_v13 }
 0xaec   : > { %6940 = vadd.xlane.f32.xlu0 %v6939_v50 }
 0xaed   : > { %v16083_v4 = vpop.xlane.xlu0 %3440 }
 0xaee   : > { %v16085_v24 = vpop.xlane.xlu1 %5191 }
 0xaef   : > { %18117 = vst [vmem:[#allocation74_spill] sm:$0xff] %v16085_v24  ;;  %v18211_v24 = vld [vmem:[#allocation98_spill] sm:$0xff] }
 0xaf0   : > { %1814 = vadd.xlane.f32.xlu0 %v1813_v15 }
 0xaf1   : > { %v16090_v21 = vpop.xlane.xlu0 %5176 }
 0xaf2   : > { %v16092_v10 = vpop.xlane.xlu1 %6895  ;;  %10696 = vrot.lane.b32.xlu1 %v10695_v61, %s11728_s10  ;;  %v8110_v61 = vld [vmem:[#allocation7 + $0x58] sm:$0xff] }
 0xaf3   : > { %18120 = vst [vmem:[#allocation82_spill] sm:$0xff] %v16092_v10  ;;  %10499 = vmatprep.subr.mxu0 %v8110_v61 }
 0xaf4   : > { %1820 = vadd.xlane.f32.xlu0 %v1819_v30  ;;  %v18127_v30 = vld [vmem:[#allocation218_spill] sm:$0xff]  ;;  %10500 = vmatpush3.msra.mxu0 %v8110_v61 }
 0xaf5   : > { %v16097_v56 = vpop.xlane.xlu0 %6880  ;;  %v1837_v42 = vsel %vm1605_vm1, %v18127_v30, 0.0  ;;  %10501 = vmatprep.subr.mxu0 %v8109_v38  ;;  %v8105_v30 = vld [vmem:[#allocation7 + $0x30] sm:$0xff] }
 0xaf6   : > { %v16099_v6 = vpop.xlane.xlu1 %3461  ;;  %10502 = vmatpush3.msra.mxu0 %v8109_v38  ;;  %v8104_v38 = vld [vmem:[#allocation7 + $0x28] sm:$0xff] }
 0xaf7   : > { %18122 = vst [vmem:[#allocation48_spill] sm:$0xff] %v16099_v6 }
 0xaf8   : > { %1826 = vadd.xlane.f32.xlu0 %v1825_v46  ;;  %v8108_v46 = vld [vmem:[#allocation7 + $0x48] sm:$0xff] }
 0xaf9   : > { %v16103_v35 = vpop.xlane.xlu0 %3446  ;;  %10503 = vmatprep.subr.mxu0 %v8108_v46 }
 0xafa   : > { %v16105_v50 = vpop.xlane.xlu1 %5197  ;;  %10504 = vmatpush3.msra.mxu0 %v8108_v46 }
 0xafb   : > { %18124 = vst [vmem:[#allocation83_spill] sm:$0xff] %v16105_v50  ;;  %10505 = vmatprep.subr.mxu0 %v8107_v63 }
 0xafc   : > { %1832 = vadd.xlane.f32.xlu0 %v1831_v7  ;;  %10506 = vmatpush3.msra.mxu0 %v8107_v63  ;;  %v8106_v7 = vld [vmem:[#allocation7 + $0x38] sm:$0xff] }
 0xafd   : > { %v16109_v1 = vpop.xlane.xlu0 %5182  ;;  %10507 = vmatprep.subr.mxu0 %v8106_v7  ;;  %v8102_v63 = vld [vmem:[#allocation7 + $0x18] sm:$0xff] }
 0xafe   : > { %v16111_v15 = vpop.xlane.xlu1 %6901  ;;  %10508 = vmatpush3.msra.mxu0 %v8106_v7 }
 0xaff   : > { %18126 = vst [vmem:[#allocation81_spill] sm:$0xff] %v16111_v15  ;;  %10509 = vmatprep.subr.mxu0 %v8105_v30  ;;  %v18160_v15 = vld [vmem:[#allocation71_spill] sm:$0xff] }
 0xb00   : > { %1838 = vadd.xlane.f32.xlu0 %v1837_v42  ;;  %10510 = vmatpush3.msra.mxu0 %v8105_v30  ;;  %v8100_v30 = vld [vmem:[#allocation7 + $0x8] sm:$0xff] }
 0xb01   : > { %v16115_v40 = vpop.xlane.xlu0 %6886  ;;  %10511 = vmatprep.subr.mxu0 %v8104_v38 }
 0xb02   : > { %v16117_v20 = vpop.xlane.xlu1 %3467  ;;  %10512 = vmatpush3.msra.mxu0 %v8104_v38 }
 0xb03   : > { %18128 = vst [vmem:[#allocation50_spill] sm:$0xff] %v16117_v20  ;;  %10513 = vmatprep.subr.mxu0 %v8103_v22 }
 0xb04   : > { %10514 = vmatpush3.msra.mxu0 %v8103_v22 }
 0xb05   : > { %v16119_v29 = vpop.xlane.xlu0 %3452  ;;  %10515 = vmatprep.subr.mxu0 %v8102_v63 }
 0xb06   : > { %v16121_v13 = vpop.xlane.xlu1 %5203  ;;  %10516 = vmatpush3.msra.mxu0 %v8102_v63  ;;  %v18135_v63 = vpack.i.bf16 %v15962_v5, %v15959_v18  ;;  %v18141_v18 = vpack.i.bf16 %v16004_v2, %v16001_v11 }
 0xb07   : > { %18129 = vst [vmem:[#allocation45_spill] sm:$0xff] %v16121_v13  ;;  %10517 = vmatprep.subr.mxu0 %v8101_v28 }
 0xb08   : > { %10518 = vmatpush3.msra.mxu0 %v8101_v28 }
 0xb09   : > { %v16123_v61 = vpop.xlane.xlu0 %5188  ;;  %10519 = vmatprep.subr.mxu0 %v8100_v30 }
 0xb0a   : > { %v16125_v42 = vpop.xlane.xlu1 %6907  ;;  %10520 = vmatpush3.msra.mxu0 %v8100_v30 }
 0xb0b   : > { %18130 = vst [vmem:[#allocation42_spill] sm:$0xff] %v16125_v42  ;;  %v18133_v42 = vld [vmem:[#allocation213_spill] sm:$0xff]  ;;  %10521 = vmatprep.subr.mxu0 %v8099_v62 }
 0xb0c   : > { %v1846_v10 = vsel %vm1605_vm1, %v18133_v42, 0.0  ;;  %10522 = vmatpush3.msra.mxu0 %v8099_v62 }
 0xb0d   : > { %v16127_v46 = vpop.xlane.xlu0 %6892 }
 0xb0e   : > { %v16129_v57 = vpop.xlane.xlu1 %3473 }
 0xb0f   : > { %18131 = vst [vmem:[#allocation85_spill] sm:$0xff] %v16129_v57  ;;  %v18138_v57 = vpack.i.bf16 %v15988_v54, %v15986_v14  ;;  %v18146_v14 = vpack.i.bf16 %v16020_v59, %v16017_v37  ;;  %v18152_v59 = vld [vmem:[#allocation247_spill] sm:$0xff] }
 0xb11   : > { %v16131_v7 = vpop.xlane.xlu0 %3458 }
 0xb12   : > { %v16133_v26 = vpop.xlane.xlu1 %5209 }
 0xb13   : > { %18132 = vst [vmem:[#allocation90_spill] sm:$0xff] %v16133_v26 }
 0xb15   : > { %v16135_v38 = vpop.xlane.xlu0 %5194 }
 0xb16   : > { %v16139_v22 = vpop.xlane.xlu1 %6913  ;;  %1847 = vadd.xlane.f32.xlu1 %v1846_v10  ;;  %10691 = vrot.lane.b32.xlu0 %v18135_v63, %s11729_s12 }
 0xb17   : > { %18134 = vst [vmem:[#allocation40_spill] sm:$0xff] %v16139_v22 }
 0xb19   : > { %v16145_v28 = vpop.xlane.xlu0 %6898 }
 0xb1a   : > { %18136 = vst [vmem:[#allocation91_spill] sm:$0xff] %v16145_v28  ;;  %v16147_v26 = vpop.xlane.xlu1 %3479  ;;  %10701 = vrot.lane.b32.xlu0 %v18138_v57, %s11727_s30 }
 0xb1b   : > { %18137 = vst [vmem:[#allocation87_spill] sm:$0xff] %v16147_v26 }
 0xb1d   : > { %v16153_v42 = vpop.xlane.xlu0 %3464 }
 0xb1e   : > { %18139 = vst [vmem:[#allocation36_spill] sm:$0xff] %v16153_v42  ;;  %v16155_v30 = vpop.xlane.xlu1 %5215  ;;  %10706 = vrot.lane.b32.xlu0 %v18141_v18, %s11729_s12 }
 0xb1f   : > { %18140 = vst [vmem:[#allocation88_spill] sm:$0xff] %v16155_v30  ;;  %v16181_v30 = vpop.f32.mrf.mxu1 }
 0xb21   : > { %v16161_v5 = vpop.xlane.xlu0 %5200  ;;  %v16185_v37 = vpop.f32.mrf.mxu1 }
 0xb22   : > { %18142 = vst [vmem:[#allocation21_spill] sm:$0xff] %v16161_v5  ;;  %v16163_v62 = vpop.xlane.xlu1 %6919 }
 0xb23   : > { %18143 = vst [vmem:[#allocation32_spill] sm:$0xff] %v16163_v62 }
 0xb25   : > { %v16165_v10 = vpop.xlane.xlu0 %6904 }
 0xb26   : > { %18144 = vst [vmem:[#allocation27_spill] sm:$0xff] %v16165_v10  ;;  %v16167_v63 = vpop.xlane.xlu1 %3485 }
 0xb27   : > { %18145 = vst [vmem:[#allocation94_spill] sm:$0xff] %v16167_v63  ;;  %10711 = vrot.lane.b32.xlu1 %v18146_v14, %s11728_s10  ;;  %v1849_v14 = vsel %vm1605_vm1, %v18152_v59, 0.0 }
 0xb29   : > { %v16173_v54 = vpop.xlane.xlu0 %3470 }
 0xb2a   : > { %18147 = vst [vmem:[#allocation39_spill] sm:$0xff] %v16173_v54  ;;  %v5222_v57 = vpop.xlane.xlu1 %5221 }
 0xb2d   : > { %v16175_v26 = vpop.xlane.xlu0 %5206 }
 0xb2e   : > { %18148 = vst [vmem:[#allocation17_spill] sm:$0xff] %v16175_v26  ;;  %v6926_v11 = vpop.xlane.xlu1 %6925  ;;  %v16193_v26 = vpop.f32.mrf.mxu1 }
 0xb31   : > { %v16177_v2 = vpop.xlane.xlu0 %6910 }
 0xb32   : > { %18149 = vst [vmem:[#allocation46_spill] sm:$0xff] %v16177_v2  ;;  %v3492_v18 = vpop.xlane.xlu1 %3491 }
 0xb35   : > { %v16179_v28 = vpop.xlane.xlu0 %3476 }
 0xb36   : > { %18150 = vst [vmem:[#allocation23_spill] sm:$0xff] %v16179_v28  ;;  %v5228_v62 = vpop.xlane.xlu1 %5227 }
 0xb37   : > { %11210 = vrcp.f32 %v5228_v62 }
 0xb39   : > { %v16183_v63 = vpop.xlane.xlu0 %5212 }
 0xb3a   : > { %18151 = vst [vmem:[#allocation59_spill] sm:$0xff] %v16183_v63  ;;  %v5231_v22 = vpop.xlane.xlu1 %5230  ;;  %v16200_v63 = vpop.f32.mrf.mxu1 }
 0xb3b   : > { %11212 = vrcp.f32 %v5231_v22 }
 0xb3c   : > { %11214 = vrcp.f32 %v15990_v31 }
 0xb3d   : > { %1850 = vadd.xlane.f32.xlu0 %v1849_v14  ;;  %v16189_v13 = vpop.xlane.xlu0 %6916  ;;  %11216 = vrcp.f32 %v15913_v34 }
 0xb3e   : > { %18153 = vst [vmem:[#allocation26_spill] sm:$0xff] %v16189_v13  ;;  %v16191_v2 = vpop.xlane.xlu1 %1802  ;;  %11218 = vrcp.f32 %v16006_v47  ;;  %v16206_v13 = vpop.f32.mrf.mxu1 }
 0xb3f   : > { %18156 = vst [vmem:[#allocation69_spill] sm:$0xff] %v16206_v13  ;;  %11220 = vrcp.f32 %v15918_v9 }
 0xb40   : > { %v16219_v47 = vpop.f32.mrf.mxu1 }
 0xb41   : > { %v16196_v28 = vpop.xlane.xlu0 %3482  ;;  %18163 = vst [vmem:[#allocation84_spill] sm:$0xff] %v16219_v47 }
 0xb42   : > { %18154 = vst [vmem:[#allocation89_spill] sm:$0xff] %v16196_v28  ;;  %v16198_v62 = vpop.xlane.xlu1 %3497  ;;  %v18158_v28 = vld [vmem:[#allocation75_spill] sm:$0xff]  ;;  %v16225_v5 = vpop.f32.mrf.mxu1 }
 0xb43   : > { %18165 = vst [vmem:[#allocation76_spill] sm:$0xff] %v16225_v5 }
 0xb44   : > { %v11211_v59 = vpop.eup %11210 }
 0xb45   : > { %v16203_v22 = vpop.xlane.xlu0 %5218  ;;  %v16212_v54 = vmul.f32 %v11211_v59, %v18158_v28 }
 0xb46   : > { %18155 = vst [vmem:[#allocation37_spill] sm:$0xff] %v16203_v22  ;;  %v5234_v14 = vpop.xlane.xlu1 %5233  ;;  %v18162_v22 = vld [vmem:[#allocation220_spill] sm:$0xff] }
 0xb47   : > { %11222 = vrcp.f32 %v5234_v14  ;;  %18159 = vst [vmem:[#allocation55_spill] sm:$0xff] %v16212_v54  ;;  %v1852_v50 = vsel %vm1605_vm1, %v18162_v22, 0.0  ;;  %v16228_v22 = vpop.f32.mrf.mxu1 }
 0xb48   : > { %v11213_v20 = vpop.eup %11212  ;;  %18167 = vst [vmem:[#allocation61_spill] sm:$0xff] %v16228_v22  ;;  %v18172_v22 = vld [vmem:[#allocation20_spill] sm:$0xff] }
 0xb49   : > { %v16209_v31 = vpop.xlane.xlu0 %6922  ;;  %v16215_v10 = vmul.f32 %v11213_v20, %v18160_v15  ;;  %v18166_v20 = vld [vmem:[#allocation238_spill] sm:$0xff] }
 0xb4a   : > { %18157 = vst [vmem:[#allocation43_spill] sm:$0xff] %v16209_v31  ;;  %v5237_v34 = vpop.xlane.xlu1 %5236  ;;  %v11215_v31 = vpop.eup %11214 }
 0xb4b   : > { %18161 = vst [vmem:[#allocation86_spill] sm:$0xff] %v16215_v10  ;;  %11224 = vrcp.f32 %v5237_v34  ;;  %1853 = vadd.xlane.f32.xlu1 %v1852_v50  ;;  %v11217_v28 = vpop.eup %11216  ;;  %v4183_v59 = vmul.f32 %v11215_v31, %v18166_v20  ;;  %v18168_v50 = vpack.i.bf16 %v16034_v49, %v16032_v8  ;;  %v18169_v34 = vld [vmem:[#allocation229_spill] sm:$0xff]  ;;  %v16235_v10 = vpop.f32.mrf.mxu1 }
 0xb4c   : > { %11226 = vrcp.f32 %v5222_v57  ;;  %v11219_v13 = vpop.eup %11218  ;;  %v4182_v9 = vmul.f32 %v11217_v28, %v18169_v34  ;;  %18170 = vst [vmem:[#allocation67_spill] sm:$0xff] %v16235_v10  ;;  %v18171_v31 = vld [vmem:[#allocation33_spill] sm:$0xff]  ;;  %v18174_v28 = vld [vmem:[#allocation79_spill] sm:$0xff]  ;;  %v18191_v10 = vld [vmem:[#allocation248_spill] sm:$0xff] }
 0xb4d   : > { %v16223_v14 = vpop.xlane.xlu0 %3488  ;;  %v11221_v54 = vpop.eup %11220 }
 0xb4e   : > { %18164 = vst [vmem:[#allocation78_spill] sm:$0xff] %v16223_v14  ;;  %v10720_v57 = vpack.i.bf16 %v4183_v59, %v4182_v9  ;;  %v5886_v5 = vmul.f32 %v11221_v54, %v18172_v22  ;;  %v16240_v8 = vpop.f32.mrf.mxu1  ;;  %v16251_v54 = vpop.xlane.xlu1 %1808 }
 0xb4f   : > { %18173 = vst [vmem:[#allocation100_spill] sm:$0xff] %v16240_v8 }
 0xb51   : > { %v5225_v15 = vpop.xlane.xlu0 %5224 }
 0xb52   : > { %11228 = vrcp.f32 %v5225_v15  ;;  %v5887_v15 = vmul.f32 %v11219_v13, %v18171_v31  ;;  %v16263_v13 = vpop.xlane.xlu1 %1811 }
 0xb53   : > { %10716 = vrot.lane.b32.xlu0 %v18168_v50, %s11727_s30  ;;  %11230 = vrcp.f32 %v6926_v11  ;;  %v18176_v11 = vld [vmem:[#allocation52_spill] sm:$0xff] }
 0xb54   : > { %v11223_v47 = vpop.eup %11222  ;;  %v10725_v9 = vpack.i.bf16 %v5887_v15, %v5886_v5  ;;  %v18186_v15 = vld [vmem:[#allocation189_spill] sm:$0xff] }
 0xb55   : > { %v6929_v14 = vpop.xlane.xlu0 %6928  ;;  %v16243_v50 = vmul.f32 %v11223_v47, %v18174_v28  ;;  %v18180_v47 = vld [vmem:[#allocation41_spill] sm:$0xff] }
 0xb56   : > { %11232 = vrcp.f32 %v6929_v14 }
 0xb57   : > { %10721 = vrot.lane.b32.xlu0 %v10720_v57, %s11729_s12  ;;  %11234 = vrcp.f32 %v3492_v18  ;;  %18175 = vst [vmem:[#allocation105_spill] sm:$0xff] %v16243_v50  ;;  %v10484_v18 = vpop.f32.mrf.mxu1  ;;  %v18178_v57 = vld [vmem:[#allocation60_spill] sm:$0xff] }
 0xb58   : > { %v11225_v20 = vpop.eup %11224 }
 0xb59   : > { %v3495_v49 = vpop.xlane.xlu0 %3494  ;;  %v16246_v34 = vmul.f32 %v11225_v20, %v18176_v11  ;;  %v11227_v14 = vpop.eup %11226 }
 0xb5a   : > { %11236 = vrcp.f32 %v3495_v49  ;;  %v16254_v31 = vmul.f32 %v11227_v14, %v18178_v57  ;;  %v7557_v20 = vpop.f32.mrf.mxu1 }
 0xb5b   : > { %18177 = vst [vmem:[#allocation97_spill] sm:$0xff] %v16246_v34 }
 0xb5c   : > { %10726 = vrot.lane.b32.xlu1 %v10725_v9, %s11728_s10  ;;  %18179 = vst [vmem:[#allocation57_spill] sm:$0xff] %v16254_v31  ;;  %v16276_v31 = vpop.xlane.xlu1 %1817 }
 0xb5d   : > { %v1800_v59 = vpop.xlane.xlu0 %1799 }
 0xb5f   : > { %v11229_v22 = vpop.eup %11228 }
 0xb60   : > { %v16257_v28 = vmul.f32 %v11229_v22, %v18180_v47  ;;  %v11231_v5 = vpop.eup %11230  ;;  %v18184_v47 = vld [vmem:[#allocation170_spill] sm:$0xff] }
 0xb61   : > { %v6932_v49 = vpop.xlane.xlu0 %6931  ;;  %v16261_v9 = vmul.f32 %v11231_v5, %v7557_v20 }
 0xb62   : > { %18181 = vst [vmem:[#allocation51_spill] sm:$0xff] %v16257_v28  ;;  %11238 = vrcp.f32 %v6932_v49 }
 0xb63   : > { %v11233_v11 = vpop.eup %11232  ;;  %18182 = vst [vmem:[#allocation53_spill] sm:$0xff] %v16261_v9 }
 0xb64   : > { %v16265_v50 = vmul.f32 %v11233_v11, %v10484_v18  ;;  %v11235_v34 = vpop.eup %11234  ;;  %v10487_v11 = vpop.f32.mrf.mxu1  ;;  %v1855_v18 = vsel %vm1605_vm1, %v18191_v10, 0.0 }
 0xb65   : > { %v6935_v14 = vpop.xlane.xlu0 %6934  ;;  %v16271_v8 = vmul.f32 %v11235_v34, %v18184_v47 }
 0xb66   : > { %18183 = vst [vmem:[#allocation107_spill] sm:$0xff] %v16265_v50  ;;  %11240 = vrcp.f32 %v6935_v14  ;;  %v16282_v14 = vpop.xlane.xlu1 %1823  ;;  %v7567_v34 = vpop.f32.mrf.mxu1 }
 0xb67   : > { %v11237_v57 = vpop.eup %11236  ;;  %11242 = vrcp.f32 %v16198_v62  ;;  %18185 = vst [vmem:[#allocation136_spill] sm:$0xff] %v16271_v8  ;;  %18188 = vst [vmem:[#allocation123_spill] sm:$0xff] %v16282_v14 }
 0xb68   : > { %v16274_v20 = vmul.f32 %v11237_v57, %v18186_v15 }
 0xb69   : > { %v3501_v5 = vpop.xlane.xlu0 %3500 }
 0xb6a   : > { %18187 = vst [vmem:[#allocation119_spill] sm:$0xff] %v16274_v20  ;;  %11244 = vrcp.f32 %v3501_v5  ;;  %v16291_v8 = vpop.xlane.xlu1 %1829 }
 0xb6b   : > { %18192 = vst [vmem:[#allocation64_spill] sm:$0xff] %v16291_v8 }
 0xb6d   : > { %v16280_v49 = vpop.xlane.xlu0 %1805 }
 0xb6f   : > { %v11239_v22 = vpop.eup %11238 }
 0xb70   : > { %v16284_v47 = vmul.f32 %v11239_v22, %v7567_v34  ;;  %v18193_v22 = vld [vmem:[#allocation188_spill] sm:$0xff] }
 0xb71   : > { %v6938_v62 = vpop.xlane.xlu0 %6937 }
 0xb72   : > { %11246 = vrcp.f32 %v6938_v62  ;;  %18189 = vst [vmem:[#allocation113_spill] sm:$0xff] %v16284_v47 }
 0xb73   : > { %v11241_v28 = vpop.eup %11240  ;;  %11248 = vrcp.f32 %v16022_v27 }
 0xb74   : > { %v16286_v15 = vmul.f32 %v11241_v28, %v10487_v11  ;;  %v11243_v57 = vpop.eup %11242  ;;  %v18195_v11 = vld [vmem:[#allocation120_spill] sm:$0xff] }
 0xb75   : > { %v6941_v5 = vpop.xlane.xlu0 %6940  ;;  %v16297_v28 = vmul.f32 %v11243_v57, %v18193_v22 }
 0xb76   : > { %18190 = vst [vmem:[#allocation130_spill] sm:$0xff] %v16286_v15  ;;  %11250 = vrcp.f32 %v6941_v5  ;;  %1856 = vadd.xlane.f32.xlu0 %v1855_v18 }
 0xb77   : > { %v11245_v9 = vpop.eup %11244  ;;  %11252 = vrcp.f32 %v15924_v16  ;;  %18194 = vst [vmem:[#allocation68_spill] sm:$0xff] %v16297_v28  ;;  %v16310_v16 = vpop.xlane.xlu1 %1835 }
 0xb78   : > { %v16300_v62 = vmul.f32 %v11245_v9, %v18195_v11  ;;  %11254 = vrcp.f32 %v16036_v60  ;;  %18197 = vst [vmem:[#allocation139_spill] sm:$0xff] %v16310_v16  ;;  %v10490_v9 = vpop.f32.mrf.mxu1  ;;  %v18198_v60 = vld [vmem:[#allocation124_spill] sm:$0xff] }
 0xb79   : > { %v16303_v27 = vpop.xlane.xlu0 %1814  ;;  %11256 = vrcp.f32 %v15930_v48  ;;  %v1858_v34 = vsel %vm1605_vm1, %v18198_v60, 0.0 }
 0xb7a   : > { %18196 = vst [vmem:[#allocation146_spill] sm:$0xff] %v16300_v62  ;;  %11258 = vrcp.f32 %v16046_v58  ;;  %v7577_v11 = vpop.f32.mrf.mxu1 }
 0xb7b   : > { %11260 = vrcp.f32 %v15938_v17  ;;  %v16319_v22 = vpop.xlane.xlu1 %1841  ;;  %v10403_v17 = vpop.f32.mrf.mxu0 }
 0xb7c   : > { %11262 = vrcp.f32 %v16191_v2  ;;  %18200 = vst [vmem:[#allocation154_spill] sm:$0xff] %v16319_v22 }
 0xb7d   : > { %v16313_v18 = vpop.xlane.xlu0 %1820  ;;  %11264 = vrcp.f32 %v1800_v59  ;;  %v7108_v15 = vpop.f32.mrf.mxu0 }
 0xb7e   : > { %11266 = vrcp.f32 %v16055_v52 }
 0xb7f   : > { %v11247_v48 = vpop.eup %11246  ;;  %v16329_v62 = vpop.xlane.xlu1 %1844  ;;  %11268 = vrcp.f32 %v16070_v36 }
 0xb80   : > { %1859 = vadd.xlane.f32.xlu1 %v1858_v34  ;;  %v11249_v5 = vpop.eup %11248  ;;  %v16321_v20 = vmul.f32 %v11247_v48, %v7577_v11  ;;  %18204 = vst [vmem:[#allocation77_spill] sm:$0xff] %v16329_v62  ;;  %v18206_v48 = vld [vmem:[#allocation246_spill] sm:$0xff]  ;;  %11270 = vrcp.f32 %v15946_v3 }
 0xb81   : > { %v16317_v57 = vpop.xlane.xlu0 %1826  ;;  %v7591_v47 = vmul.f32 %v11249_v5, %v10403_v17  ;;  %v18208_v5 = vld [vmem:[#allocation47_spill] sm:$0xff]  ;;  %11272 = vrcp.f32 %v15964_v25 }
 0xb82   : > { %18199 = vst [vmem:[#allocation138_spill] sm:$0xff] %v16317_v57  ;;  %18201 = vst [vmem:[#allocation115_spill] sm:$0xff] %v16321_v20  ;;  %11274 = vrcp.f32 %v16064_v53 }
 0xb83   : > { %v11251_v58 = vpop.eup %11250  ;;  %v10697_v62 = vpop.permute.xlu1 %10696  ;;  %11276 = vrcp.f32 %v15952_v33 }
 0xb84   : > { %v16323_v2 = vmul.f32 %v11251_v58, %v10490_v9  ;;  %v11253_v10 = vpop.eup %11252  ;;  %11278 = vrcp.f32 %v16251_v54 }
 0xb85   : > { %v16325_v59 = vpop.xlane.xlu0 %1832  ;;  %v11255_v16 = vpop.eup %11254  ;;  %v7590_v22 = vmul.f32 %v11253_v10, %v7108_v15  ;;  %v18210_v15 = vld [vmem:[#allocation157_spill] sm:$0xff]  ;;  %11280 = vrcp.f32 %v16280_v49 }
 0xb86   : > { %18202 = vst [vmem:[#allocation149_spill] sm:$0xff] %v16323_v2  ;;  %18203 = vst [vmem:[#allocation131_spill] sm:$0xff] %v16325_v59  ;;  %v11257_v34 = vpop.eup %11256  ;;  %v4185_v9 = vmul.f32 %v11255_v16, %v18206_v48  ;;  %v18207_v59 = vld [vmem:[#allocation239_spill] sm:$0xff]  ;;  %11282 = vrcp.f32 %v16090_v21 }
 0xb87   : > { %v11259_v28 = vpop.eup %11258  ;;  %v10730_v11 = vpack.i.bf16 %v7591_v47, %v7590_v22  ;;  %v4184_v14 = vmul.f32 %v11257_v34, %v18207_v59  ;;  %v18209_v2 = vld [vmem:[#allocation15_spill] sm:$0xff]  ;;  %v10699_v22 = vunpack.i.h.bf16 %v10697_v62  ;;  %v10698_v59 = vunpack.i.l.bf16 %v10697_v62 }
 0xb88   : > { %v11261_v50 = vpop.eup %11260  ;;  %v5889_v17 = vmul.f32 %v11259_v28, %v18208_v5  ;;  %v18214_v5 = vld [vmem:[#allocation54_spill] sm:$0xff]  ;;  %11284 = vrcp.f32 %v15992_v32 }
 0xb89   : > { %v16331_v8 = vpop.xlane.xlu0 %1838  ;;  %v11263_v58 = vpop.eup %11262  ;;  %v10735_v20 = vpack.i.bf16 %v4185_v9, %v4184_v14  ;;  %v5888_v6 = vmul.f32 %v11261_v50, %v18209_v2  ;;  %11286 = vrcp.f32 %v16076_v39 }
 0xb8a   : > { %18205 = vst [vmem:[#allocation171_spill] sm:$0xff] %v16331_v8  ;;  %v11265_v57 = vpop.eup %11264  ;;  %v2443_v10 = vmul.f32 %v11263_v58, %v18210_v15  ;;  %11288 = vrcp.f32 %v16097_v56 }
 0xb8b   : > { %v2442_v16 = vmul.f32 %v11265_v57, %v18211_v24  ;;  %v10740_v48 = vpack.i.bf16 %v5889_v17, %v5888_v6  ;;  %v11267_v52 = vpop.eup %11266  ;;  %v10406_v57 = vpop.f32.mrf.mxu0  ;;  %11290 = vrcp.f32 %v15973_v23 }
 0xb8c   : > { %10731 = vrot.lane.b32.xlu0 %v10730_v11, %s11727_s30  ;;  %v11269_v9 = vpop.eup %11268  ;;  %v7593_v25 = vmul.f32 %v11267_v52, %v10406_v57  ;;  %v18219_v52 = vld [vmem:[#allocation106_spill] sm:$0xff]  ;;  %11292 = vrcp.f32 %v16008_v12 }
 0xb8d   : > { %v10692_v60 = vpop.permute.xlu0 %10691  ;;  %v11271_v36 = vpop.eup %11270  ;;  %v5891_v17 = vmul.f32 %v11269_v9, %v18214_v5  ;;  %11294 = vrcp.f32 %v16083_v4  ;;  %v18222_v12 = vld [vmem:[#allocation18_spill] sm:$0xff] }
 0xb8e   : > { %v10694_v42 = vunpack.i.h.bf16 %v10692_v60  ;;  %v10693_v8 = vunpack.i.l.bf16 %v10692_v60  ;;  %v11273_v58 = vpop.eup %11272  ;;  %v7118_v53 = vpop.f32.mrf.mxu0  ;;  %11296 = vrcp.f32 %v16103_v35  ;;  %v18223_v35 = vld [vmem:[#allocation19_spill] sm:$0xff] }
 0xb8f   : > { %v11275_v11 = vpop.eup %11274  ;;  %v7592_v15 = vmul.f32 %v11271_v36, %v7118_v53  ;;  %11298 = vrcp.f32 %v15980_v55 }
 0xb90   : > { %v8003_v47 = vsel %vm928_vm0, %v2443_v10, %v10694_v42  ;;  %10736 = vrot.lane.b32.xlu0 %v10735_v20, %s11729_s12  ;;  %v8002_v28 = vsel %vm928_vm0, %v2442_v16, %v10693_v8  ;;  %v18212_v42 = vld [vmem:[#allocation249_spill] sm:$0xff]  ;;  %v18213_v20 = vld [vmem:[#allocation127_spill] sm:$0xff]  ;;  %v11277_v10 = vpop.eup %11276  ;;  %v18215_v16 = vld [vmem:[#allocation58_spill] sm:$0xff]  ;;  %11300 = vrcp.f32 %v16024_v0 }
 0xb91   : > { %10741 = vrot.lane.b32.xlu1 %v10740_v48, %s11728_s10  ;;  %v10702_v50 = vpop.permute.xlu0 %10701  ;;  %v8035_v34 = vsel %vm1605_vm1, %v8003_v47, %v10699_v22  ;;  %v8034_v60 = vsel %vm1605_vm1, %v8002_v28, %v10698_v59  ;;  %v1861_v8 = vsel %vm1605_vm1, %v18212_v42, 0.0  ;;  %v1864_v62 = vsel %vm1605_vm1, %v18213_v20, 0.0  ;;  %v18216_v47 = vld [vmem:[#allocation111_spill] sm:$0xff]  ;;  %v11279_v22 = vpop.eup %11278 }
 0xb92   : > { %v10704_v14 = vunpack.i.h.bf16 %v10702_v50  ;;  %v10703_v2 = vunpack.i.l.bf16 %v10702_v50  ;;  %v5890_v48 = vmul.f32 %v11273_v58, %v18215_v16  ;;  %v10745_v54 = vpack.i.bf16 %v7593_v25, %v7592_v15  ;;  %v18217_v50 = vld [vmem:[#allocation242_spill] sm:$0xff]  ;;  %v18218_v20 = vld [vmem:[#allocation155_spill] sm:$0xff] }
 0xb93   : > { %v4187_v49 = vmul.f32 %v11275_v11, %v18216_v47  ;;  %v18221_v16 = vld [vmem:[#allocation211_spill] sm:$0xff]  ;;  %11302 = vrcp.f32 %v16109_v1 }
 0xb94   : > { %v8068_v24 = vsel %vm8066_vm2, %v8035_v34, %v10704_v14  ;;  %v8067_v6 = vsel %vm8066_vm2, %v8034_v60, %v10703_v2  ;;  %v10755_v28 = vpack.i.bf16 %v5891_v17, %v5890_v48  ;;  %v4186_v14 = vmul.f32 %v11277_v10, %v18217_v50  ;;  %v11281_v2 = vpop.eup %11280  ;;  %v18220_v10 = vld [vmem:[#allocation250_spill] sm:$0xff] }
 0xb95   : > { %10523 = vmatprep.mubr.f32.mxu0 %v8067_v6  ;;  %v10707_v33 = vpop.permute.xlu0 %10706  ;;  %v2444_v57 = vmul.f32 %v11281_v2, %v18219_v52  ;;  %v1870_v48 = vsel %vm1605_vm1, %v18221_v16, 0.0  ;;  %11304 = vrcp.f32 %v16263_v13  ;;  %v11283_v32 = vpop.eup %11282  ;;  %v18224_v2 = vld [vmem:[#allocation116_spill] sm:$0xff]  ;;  %v18230_v16 = vld [vmem:[#allocation153_spill] sm:$0xff] }
 0xb96   : > { %10524 = vmatmul.mubr.f32.vlgmr.msra.gmra.mxu0 %v8068_v24  ;;  %v10709_v60 = vunpack.i.h.bf16 %v10707_v33  ;;  %v10708_v24 = vunpack.i.l.bf16 %v10707_v33  ;;  %v10750_v6 = vpack.i.bf16 %v4187_v49, %v4186_v14  ;;  %v1867_v33 = vsel %vm1605_vm1, %v18220_v10, 0.0  ;;  %v11285_v23 = vpop.eup %11284  ;;  %v18229_v10 = vld [vmem:[#allocation96_spill] sm:$0xff] }
 0xb97   : > { %11306 = vrcp.f32 %v16303_v27  ;;  %v11287_v39 = vpop.eup %11286  ;;  %v5893_v21 = vmul.f32 %v11283_v32, %v18222_v12 }
 0xb98   : > { %v8004_v11 = vsel %vm928_vm0, %v2444_v57, %v10708_v24  ;;  %11308 = vrcp.f32 %v16038_v44  ;;  %v11289_v4 = vpop.eup %11288  ;;  %v7595_v0 = vmul.f32 %v11287_v39, %v16181_v30  ;;  %v18225_v30 = vld [vmem:[#allocation195_spill] sm:$0xff] }
 0xb99   : > { %v11291_v56 = vpop.eup %11290  ;;  %v7597_v49 = vmul.f32 %v11289_v4, %v16193_v26  ;;  %v18226_v26 = vld [vmem:[#allocation233_spill] sm:$0xff]  ;;  %11310 = vrcp.f32 %v16048_v43 }
 0xb9a   : > { %v11293_v55 = vpop.eup %11292  ;;  %v7594_v44 = vmul.f32 %v11291_v56, %v16185_v37  ;;  %11312 = vrcp.f32 %v16066_v45  ;;  %v18235_v43 = vld [vmem:[#allocation169_spill] sm:$0xff] }
 0xb9b   : > { %v11295_v1 = vpop.eup %11294  ;;  %11314 = vrcp.f32 %v16123_v61 }
 0xb9c   : > { %v11297_v27 = vpop.eup %11296  ;;  %v10760_v14 = vpack.i.bf16 %v7595_v0, %v7594_v44  ;;  %11316 = vrcp.f32 %v16115_v40 }
 0xb9d   : > { %11318 = vrcp.f32 %v16127_v46 }
 0xb9e   : > { %11320 = vrcp.f32 %v16072_v51 }
 0xb9f   : > { %v16360_v3 = vpop.xlane.xlu1 %1847  ;;  %11322 = vrcp.f32 %v16276_v31  ;;  %v18236_v31 = vld [vmem:[#allocation74_spill] sm:$0xff] }
 0xba0   : > { %11324 = vrcp.f32 %v16313_v18 }
 0xba1   : > { %11326 = vrcp.f32 %v16119_v29  ;;  %v18237_v29 = vld [vmem:[#allocation36_spill] sm:$0xff] }
 0xba2   : > { %11328 = vrcp.f32 %v16131_v7  ;;  %v18238_v7 = vld [vmem:[#allocation62_spill] sm:$0xff] }
 0xba3   : > { %v10712_v59 = vpop.permute.xlu1 %10711 }
 0xba4   : > { %v10714_v42 = vunpack.i.h.bf16 %v10712_v59 }
 0xbaf   : > { %1862 = vadd.xlane.f32.xlu0 %v1861_v8  ;;  %v10713_v8 = vunpack.i.l.bf16 %v10712_v59  ;;  %v7596_v59 = vmul.f32 %v11293_v55, %v16200_v63  ;;  %v18227_v63 = vld [vmem:[#allocation129_spill] sm:$0xff] }
 0xbb1   : > { %v8036_v53 = vsel %vm1605_vm1, %v8004_v11, %v10713_v8 }
 0xbb5   : > { %1865 = vadd.xlane.f32.xlu1 %v1864_v62  ;;  %v2445_v62 = vmul.f32 %v11279_v22, %v18218_v20 }
 0xbb7   : > { %v8005_v36 = vsel %vm928_vm0, %v2445_v62, %v10709_v60  ;;  %v4189_v60 = vmul.f32 %v11295_v1, %v18224_v2 }
 0xbb8   : > { %v8037_v5 = vsel %vm1605_vm1, %v8005_v36, %v10714_v42  ;;  %v4191_v42 = vmul.f32 %v11297_v27, %v18225_v30  ;;  %v18233_v27 = vld [vmem:[#allocation92_spill] sm:$0xff] }
 0xbb9   : > { %v1876_v44 = vsel %vm1605_vm1, %v18233_v27, 0.0 }
 0xbc5   : > { %10746 = vrot.lane.b32.xlu0 %v10745_v54, %s11727_s30  ;;  %v5892_v54 = vmul.f32 %v11285_v23, %v18223_v35  ;;  %v18231_v23 = vld [vmem:[#allocation16_spill] sm:$0xff] }
 0xbc6   : > { %10756 = vrot.lane.b32.xlu1 %v10755_v28, %s11728_s10  ;;  %v16368_v34 = vpop.xlane.xlu0 %1850  ;;  %v11299_v28 = vpop.eup %11298  ;;  %11330 = vrcp.f32 %v16058_v41 }
 0xbc7   : > { %v10770_v13 = vpack.i.bf16 %v5893_v21, %v5892_v54  ;;  %v11301_v50 = vpop.eup %11300  ;;  %v4188_v37 = vmul.f32 %v11299_v28, %v18226_v26  ;;  %v18234_v28 = vld [vmem:[#allocation117_spill] sm:$0xff]  ;;  %11332 = vrcp.f32 %v16078_v19  ;;  %v18242_v26 = vld [vmem:[#allocation76_spill] sm:$0xff] }
 0xbc8   : > { %v11303_v24 = vpop.eup %11302  ;;  %v4190_v57 = vmul.f32 %v11301_v50, %v18227_v63  ;;  %11334 = vrcp.f32 %v16135_v38  ;;  %v18240_v38 = vld [vmem:[#allocation56_spill] sm:$0xff] }
 0xbc9   : > { %10751 = vrot.lane.b32.xlu0 %v10750_v6, %s11729_s12  ;;  %v10775_v6 = vpack.i.bf16 %v7597_v49, %v7596_v59  ;;  %v11305_v8 = vpop.eup %11304  ;;  %v1882_v59 = vsel %vm1605_vm1, %v18235_v43, 0.0  ;;  %11336 = vrcp.f32 %v18236_v31  ;;  %v18253_v31 = vld [vmem:[#allocation237_spill] sm:$0xff] }
 0xbca   : > { %v10717_v9 = vpop.permute.xlu0 %10716  ;;  %v11307_v62 = vpop.eup %11306  ;;  %11338 = vrcp.f32 %v18237_v29 }
 0xbcb   : > { %v10719_v58 = vunpack.i.h.bf16 %v10717_v9  ;;  %v10718_v25 = vunpack.i.l.bf16 %v10717_v9  ;;  %v11309_v9 = vpop.eup %11308 }
 0xbcc   : > { %v5894_v39 = vmul.f32 %v11309_v9, %v18231_v23  ;;  %v11311_v45 = vpop.eup %11310  ;;  %v18243_v9 = vld [vmem:[#allocation84_spill] sm:$0xff]  ;;  %v18248_v23 = vld [vmem:[#allocation83_spill] sm:$0xff] }
 0xbcd   : > { %v8069_v17 = vsel %vm8066_vm2, %v8036_v53, %v10718_v25  ;;  %v8070_v15 = vsel %vm8066_vm2, %v8037_v5, %v10719_v58  ;;  %v10765_v25 = vpack.i.bf16 %v4189_v60, %v4188_v37  ;;  %v10780_v5 = vpack.i.bf16 %v4191_v42, %v4190_v57  ;;  %v11313_v51 = vpop.eup %11312 }
 0xbce   : > { %10526 = vmatprep.mubr.f32.mxu0 %v8069_v17  ;;  %v10722_v22 = vpop.permute.xlu0 %10721  ;;  %v18228_v17 = vld [vmem:[#allocation24_spill] sm:$0xff]  ;;  %v11315_v61 = vpop.eup %11314  ;;  %v5896_v42 = vmul.f32 %v11313_v51, %v18240_v38  ;;  %v18252_v51 = vld [vmem:[#allocation178_spill] sm:$0xff] }
 0xbcf   : > { %10527 = vmatmul.mubr.f32.gmra.mxu0 %v8070_v15  ;;  %v10724_v36 = vunpack.i.h.bf16 %v10722_v22  ;;  %v10723_v58 = vunpack.i.l.bf16 %v10722_v22  ;;  %v5895_v15 = vmul.f32 %v11303_v24, %v18228_v17  ;;  %v1879_v22 = vsel %vm1605_vm1, %v18234_v28, 0.0  ;;  %v11317_v46 = vpop.eup %11316  ;;  %v18239_v24 = vld [vmem:[#allocation48_spill] sm:$0xff]  ;;  %v18251_v28 = vld [vmem:[#allocation230_spill] sm:$0xff] }
 0xbd0   : > { %v11319_v50 = vpop.eup %11318  ;;  %v5897_v2 = vmul.f32 %v11315_v61, %v18238_v7  ;;  %11340 = vrcp.f32 %v18239_v24  ;;  %v18255_v7 = vld [vmem:[#allocation39_spill] sm:$0xff]  ;;  %v18257_v24 = vld [vmem:[#allocation50_spill] sm:$0xff] }
 0xbd1   : > { %v10785_v35 = vpack.i.bf16 %v5895_v15, %v5894_v39  ;;  %v7601_v37 = vmul.f32 %v11319_v50, %v18242_v26  ;;  %v18259_v26 = vld [vmem:[#allocation17_spill] sm:$0xff] }
 0xbd2   : > { %v10800_v17 = vpack.i.bf16 %v5897_v2, %v5896_v42  ;;  %v18258_v42 = vld [vmem:[#allocation63_spill] sm:$0xff] }
 0xbd4   : > { %v16399_v47 = vpop.xlane.xlu1 %1853 }
 0xbd8   : > { %v10727_v20 = vpop.permute.xlu1 %10726 }
 0xbd9   : > { %v10729_v11 = vunpack.i.h.bf16 %v10727_v20  ;;  %v10728_v53 = vunpack.i.l.bf16 %v10727_v20 }
 0xbe8   : > { %1868 = vadd.xlane.f32.xlu0 %v1867_v33  ;;  %v2447_v33 = vmul.f32 %v11307_v62, %v18229_v10  ;;  %v18246_v10 = vld [vmem:[#allocation93_spill] sm:$0xff] }
 0xbea   : > { %1871 = vadd.xlane.f32.xlu1 %v1870_v48  ;;  %v2446_v48 = vmul.f32 %v11305_v8, %v18230_v16  ;;  %v8007_v12 = vsel %vm928_vm0, %v2447_v33, %v10724_v36  ;;  %v18241_v8 = vld [vmem:[#allocation69_spill] sm:$0xff]  ;;  %v7598_v36 = vmul.f32 %v11311_v45, %v18243_v9  ;;  %v18247_v16 = vld [vmem:[#allocation122_spill] sm:$0xff] }
 0xbeb   : > { %v8039_v55 = vsel %vm1605_vm1, %v8007_v12, %v10729_v11  ;;  %v7599_v20 = vmul.f32 %v11317_v46, %v18241_v8  ;;  %v18245_v11 = vld [vmem:[#allocation21_spill] sm:$0xff] }
 0xbec   : > { %v8006_v56 = vsel %vm928_vm0, %v2446_v48, %v10723_v58  ;;  %v18244_v58 = vld [vmem:[#allocation61_spill] sm:$0xff]  ;;  %11342 = vrcp.f32 %v18245_v11 }
 0xbed   : > { %v8038_v54 = vsel %vm1605_vm1, %v8006_v56, %v10728_v53  ;;  %11344 = vrcp.f32 %v18248_v23  ;;  %v18249_v56 = vld [vmem:[#allocation182_spill] sm:$0xff]  ;;  %v18261_v9 = vld [vmem:[#allocation45_spill] sm:$0xff] }
 0xbfb   : > { %10771 = vrot.lane.b32.xlu1 %v10770_v13, %s11728_s10  ;;  %v18232_v13 = vld [vmem:[#allocation112_spill] sm:$0xff] }
 0xbfc   : > { %v1873_v49 = vsel %vm1605_vm1, %v18232_v13, 0.0 }
 0xbfe   : > { %10761 = vrot.lane.b32.xlu0 %v10760_v14, %s11727_s30  ;;  %v11321_v14 = vpop.eup %11320 }
 0xbff   : > { %10776 = vrot.lane.b32.xlu1 %v10775_v6, %s11727_s30  ;;  %v16411_v52 = vpop.xlane.xlu0 %1856  ;;  %v11323_v41 = vpop.eup %11322 }
 0xc00   : > { %v11325_v19 = vpop.eup %11324  ;;  %v16454_v6 = vpop.f32.mrf.mxu0  ;;  %v2448_v48 = vmul.f32 %v11323_v41, %v18247_v16  ;;  %v18256_v41 = vld [vmem:[#allocation49_spill] sm:$0xff] }
 0xc01   : > { %v11327_v62 = vpop.eup %11326  ;;  %v2449_v33 = vmul.f32 %v11325_v19, %v18246_v10 }
 0xc02   : > { %10766 = vrot.lane.b32.xlu0 %v10765_v25, %s11729_s12  ;;  %v7600_v25 = vmul.f32 %v11321_v14, %v18244_v58  ;;  %v11329_v15 = vpop.eup %11328  ;;  %v16467_v39 = vpop.f32.mrf.mxu0  ;;  %v18254_v14 = vld [vmem:[#allocation81_spill] sm:$0xff]  ;;  %v18262_v58 = vld [vmem:[#allocation240_spill] sm:$0xff] }
 0xc03   : > { %10781 = vrot.lane.b32.xlu1 %v10780_v5, %s11729_s12  ;;  %v10732_v32 = vpop.permute.xlu0 %10731 }
 0xc04   : > { %v10734_v21 = vunpack.i.h.bf16 %v10732_v32  ;;  %v10733_v4 = vunpack.i.l.bf16 %v10732_v32  ;;  %v11331_v32 = vpop.eup %11330  ;;  %v10456_v46 = vpop.f32.mrf.mxu0 }
 0xc05   : > { %v4192_v61 = vmul.f32 %v11331_v32, %v18252_v51 }
 0xc06   : > { %v8071_v0 = vsel %vm8066_vm2, %v8038_v54, %v10733_v4  ;;  %v8072_v1 = vsel %vm8066_vm2, %v8039_v55, %v10734_v21  ;;  %v10790_v21 = vpack.i.bf16 %v7599_v20, %v7598_v36  ;;  %v10805_v4 = vpack.i.bf16 %v7601_v37, %v7600_v25  ;;  %v11333_v54 = vpop.eup %11332  ;;  %v7404_v38 = vpop.f32.mrf.mxu0 }
 0xc07   : > { %10786 = vrot.lane.b32.xlu1 %v10785_v35, %s11728_s10  ;;  %10529 = vmatprep.mubr.f32.mxu0 %v8071_v0  ;;  %v10737_v18 = vpop.permute.xlu0 %10736  ;;  %v4193_v35 = vmul.f32 %v11327_v62, %v18249_v56  ;;  %v11335_v43 = vpop.eup %11334  ;;  %v18260_v62 = vld [vmem:[#allocation166_spill] sm:$0xff] }
 0xc08   : > { %10530 = vmatmul.mubr.f32.gmra.mxu0 %v8072_v1  ;;  %v10739_v63 = vunpack.i.h.bf16 %v10737_v18  ;;  %v10738_v57 = vunpack.i.l.bf16 %v10737_v18  ;;  %v4194_v18 = vmul.f32 %v11333_v54, %v18253_v31  ;;  %v11337_v50 = vpop.eup %11336  ;;  %v16493_v36 = vpop.f32.mrf.mxu0  ;;  %v18268_v54 = vld [vmem:[#allocation40_spill] sm:$0xff] }
 0xc09   : > { %v16447_v40 = vpop.xlane.xlu1 %1859  ;;  %v10795_v29 = vpack.i.bf16 %v4193_v35, %v4192_v61  ;;  %v11339_v19 = vpop.eup %11338  ;;  %v5898_v8 = vmul.f32 %v11337_v50, %v18258_v42  ;;  %v18273_v61 = vld [vmem:[#allocation78_spill] sm:$0xff]  ;;  %v18277_v42 = vld [vmem:[#allocation232_spill] sm:$0xff] }
 0xc0a   : > { %v8009_v55 = vsel %vm928_vm0, %v2449_v33, %v10739_v63  ;;  %v8008_v13 = vsel %vm928_vm0, %v2448_v48, %v10738_v57  ;;  %v11341_v20 = vpop.eup %11340  ;;  %v4197_v63 = vmul.f32 %v11339_v19, %v18260_v62  ;;  %v18265_v33 = vld [vmem:[#allocation85_spill] sm:$0xff]  ;;  %v16500_v16 = vpop.f32.mrf.mxu0  ;;  %v18266_v48 = vld [vmem:[#allocation66_spill] sm:$0xff] }
 0xc0b   : > { %v11343_v57 = vpop.eup %11342  ;;  %v4196_v25 = vmul.f32 %v11341_v20, %v18262_v58 }
 0xc0c   : > { %v11345_v11 = vpop.eup %11344 }
 0xc0d   : > { %v10742_v60 = vpop.permute.xlu1 %10741  ;;  %v5900_v32 = vmul.f32 %v11345_v11, %v18266_v48  ;;  %v18279_v11 = vld [vmem:[#allocation123_spill] sm:$0xff] }
 0xc0e   : > { %v10744_v53 = vunpack.i.h.bf16 %v10742_v60  ;;  %v10743_v5 = vunpack.i.l.bf16 %v10742_v60  ;;  %v5899_v60 = vmul.f32 %v11335_v43, %v18256_v41  ;;  %v16514_v43 = vld [vmem:[%s16894_s4] ss:$0 sm:$0xff]  ;;  %v18276_v41 = vld [vmem:[#allocation65_spill] sm:$0xff] }
 0xc10   : > { %v8040_v27 = vsel %vm1605_vm1, %v8008_v13, %v10743_v5  ;;  %v10815_v37 = vpack.i.bf16 %v5899_v60, %v5898_v8  ;;  %v10825_v5 = vpack.i.bf16 %v4197_v63, %v4196_v25 }
 0xc21   : > { %1874 = vadd.xlane.f32.xlu0 %v1873_v49  ;;  %v18250_v49 = vld [vmem:[#allocation27_spill] sm:$0xff] }
 0xc22   : > { %11346 = vrcp.f32 %v18250_v49  ;;  %v18270_v49 = vld [vmem:[#allocation231_spill] sm:$0xff] }
 0xc23   : > { %11348 = vrcp.f32 %v18254_v14 }
 0xc24   : > { %11350 = vrcp.f32 %v18255_v7  ;;  %v18275_v7 = vld [vmem:[#allocation94_spill] sm:$0xff] }
 0xc25   : > { %1877 = vadd.xlane.f32.xlu0 %v1876_v44  ;;  %v8041_v44 = vsel %vm1605_vm1, %v8009_v55, %v10744_v53  ;;  %11352 = vrcp.f32 %v18257_v24  ;;  %v18263_v53 = vld [vmem:[#allocation23_spill] sm:$0xff]  ;;  %v10462_v55 = vpop.f32.mrf.mxu0 }
 0xc26   : > { %11354 = vrcp.f32 %v18259_v26  ;;  %v18278_v26 = vld [vmem:[#allocation245_spill] sm:$0xff] }
 0xc27   : > { %11356 = vrcp.f32 %v18261_v9 }
 0xc28   : > { %11358 = vrcp.f32 %v18263_v53  ;;  %v18280_v53 = vld [vmem:[#allocation114_spill] sm:$0xff] }
 0xc29   : > { %1880 = vadd.xlane.f32.xlu0 %v1879_v22  ;;  %v4195_v22 = vmul.f32 %v11329_v15, %v18251_v28  ;;  %11360 = vrcp.f32 %v18265_v33  ;;  %v7424_v28 = vpop.f32.mrf.mxu0 }
 0xc2b   : > { %1883 = vadd.xlane.f32.xlu1 %v1882_v59  ;;  %v10810_v2 = vpack.i.bf16 %v4195_v22, %v4194_v18  ;;  %v18271_v22 = vld [vmem:[#allocation88_spill] sm:$0xff]  ;;  %v18274_v18 = vld [vmem:[#allocation38_spill] sm:$0xff] }
 0xc2f   : > { %v11347_v10 = vpop.eup %11346 }
 0xc30   : > { %v11349_v23 = vpop.eup %11348 }
 0xc31   : > { %v11351_v56 = vpop.eup %11350  ;;  %v7604_v35 = vmul.f32 %v11349_v23, %v7404_v38 }
 0xc38   : > { %v16456_v30 = vpop.xlane.xlu0 %1862 }
 0xc3c   : > { %10801 = vrot.lane.b32.xlu1 %v10800_v17, %s11728_s10  ;;  %v10747_v12 = vpop.permute.xlu0 %10746  ;;  %v18264_v17 = vld [vmem:[#allocation25_spill] sm:$0xff] }
 0xc3d   : > { %v10749_v0 = vunpack.i.h.bf16 %v10747_v12  ;;  %v10748_v1 = vunpack.i.l.bf16 %v10747_v12  ;;  %v5901_v15 = vmul.f32 %v11343_v57, %v18264_v17  ;;  %v18267_v12 = vld [vmem:[#allocation26_spill] sm:$0xff] }
 0xc3e   : > { %11362 = vrcp.f32 %v18267_v12  ;;  %v18281_v17 = vld [vmem:[#allocation138_spill] sm:$0xff] }
 0xc3f   : > { %10791 = vrot.lane.b32.xlu0 %v10790_v21, %s11727_s30  ;;  %v8073_v59 = vsel %vm8066_vm2, %v8040_v27, %v10748_v1  ;;  %v8074_v45 = vsel %vm8066_vm2, %v8041_v44, %v10749_v0  ;;  %v10830_v21 = vpack.i.bf16 %v5901_v15, %v5900_v32  ;;  %11364 = vrcp.f32 %v18268_v54  ;;  %v11353_v0 = vpop.eup %11352  ;;  %v18269_v1 = vld [vmem:[#allocation37_spill] sm:$0xff] }
 0xc40   : > { %10806 = vrot.lane.b32.xlu1 %v10805_v4, %s11727_s30  ;;  %10532 = vmatprep.mubr.f32.mxu0 %v8073_v59  ;;  %v7605_v4 = vmul.f32 %v11347_v10, %v10456_v46  ;;  %11366 = vrcp.f32 %v18269_v1  ;;  %v4199_v27 = vmul.f32 %v11351_v56, %v18270_v49  ;;  %v11355_v44 = vpop.eup %11354  ;;  %v18272_v59 = vld [vmem:[#allocation176_spill] sm:$0xff]  ;;  %v18283_v32 = vld [vmem:[#allocation73_spill] sm:$0xff]  ;;  %v16548_v49 = vpop.xlane.xlu1 %1865 }
 0xc41   : > { %10533 = vmatmul.mubr.f32.gmra.mxu0 %v8074_v45  ;;  %11368 = vrcp.f32 %v18271_v22  ;;  %v4198_v45 = vmul.f32 %v11353_v0, %v18272_v59  ;;  %v11357_v51 = vpop.eup %11356  ;;  %v5903_v50 = vmul.f32 %v11355_v44, %v18274_v18  ;;  %v18282_v10 = vld [vmem:[#allocation72_spill] sm:$0xff]  ;;  %v18287_v0 = vld [vmem:[#allocation235_spill] sm:$0xff]  ;;  %v18291_v59 = vld [vmem:[#allocation82_spill] sm:$0xff] }
 0xc42   : > { %v10835_v13 = vpack.i.bf16 %v7605_v4, %v7604_v35  ;;  %11370 = vrcp.f32 %v18273_v61  ;;  %v11359_v14 = vpop.eup %11358  ;;  %v5902_v60 = vmul.f32 %v11357_v51, %v18276_v41  ;;  %v18285_v35 = vld [vmem:[#allocation244_spill] sm:$0xff]  ;;  %v18292_v61 = vld [vmem:[#allocation46_spill] sm:$0xff] }
 0xc43   : > { %10796 = vrot.lane.b32.xlu0 %v10795_v29, %s11729_s12  ;;  %v10840_v31 = vpack.i.bf16 %v4199_v27, %v4198_v45  ;;  %11372 = vrcp.f32 %v18275_v7  ;;  %v11361_v19 = vpop.eup %11360  ;;  %v4201_v8 = vmul.f32 %v11359_v14, %v18277_v42  ;;  %v18289_v27 = vld [vmem:[#allocation102_spill] sm:$0xff]  ;;  %v10752_v45 = vpop.permute.xlu0 %10751  ;;  %v18295_v7 = vld [vmem:[#allocation53_spill] sm:$0xff] }
 0xc44   : > { %10811 = vrot.lane.b32.xlu1 %v10810_v2, %s11729_s12  ;;  %v10845_v38 = vpack.i.bf16 %v5903_v50, %v5902_v60  ;;  %11374 = vrcp.f32 %v18279_v11  ;;  %v1891_v44 = vsel %vm1605_vm1, %v18289_v27, 0.0  ;;  %v18293_v18 = vld [vmem:[#allocation42_spill] sm:$0xff]  ;;  %v10754_v50 = vunpack.i.h.bf16 %v10752_v45  ;;  %v18297_v60 = vld [vmem:[#allocation59_spill] sm:$0xff] }
 0xc45   : > { %11376 = vrcp.f32 %v18281_v17  ;;  %v10753_v14 = vunpack.i.l.bf16 %v10752_v45 }
 0xc48   : > { %10816 = vrot.lane.b32.xlu1 %v10815_v37, %s11728_s10  ;;  %v4200_v37 = vmul.f32 %v11361_v19, %v18278_v26  ;;  %v18298_v19 = vld [vmem:[#allocation109_spill] sm:$0xff] }
 0xc4a   : > { %v10855_v63 = vpack.i.bf16 %v4201_v8, %v4200_v37  ;;  %v18300_v37 = vld [vmem:[#allocation90_spill] sm:$0xff] }
 0xc4b   : > { %v11363_v20 = vpop.eup %11362 }
 0xc4c   : > { %10826 = vrot.lane.b32.xlu1 %v10825_v5, %s11729_s12  ;;  %v11365_v62 = vpop.eup %11364  ;;  %v7609_v57 = vmul.f32 %v11363_v20, %v10462_v55  ;;  %v1885_v5 = vsel %vm1605_vm1, %v18280_v53, 0.0  ;;  %v18286_v55 = vld [vmem:[#allocation91_spill] sm:$0xff] }
 0xc4d   : > { %v11367_v9 = vpop.eup %11366  ;;  %v7608_v58 = vmul.f32 %v11365_v62, %v7424_v28  ;;  %11378 = vrcp.f32 %v18286_v55  ;;  %v18290_v28 = vld [vmem:[#allocation131_spill] sm:$0xff] }
 0xc4e   : > { %v11369_v25 = vpop.eup %11368  ;;  %v5907_v33 = vmul.f32 %v11367_v9, %v18282_v10 }
 0xc4f   : > { %v10865_v15 = vpack.i.bf16 %v7609_v57, %v7608_v58  ;;  %v11371_v48 = vpop.eup %11370  ;;  %v5906_v23 = vmul.f32 %v11369_v25, %v18283_v32  ;;  %v18302_v57 = vld [vmem:[#allocation55_spill] sm:$0xff] }
 0xc50   : > { %10831 = vrot.lane.b32.xlu1 %v10830_v21, %s11728_s10  ;;  %v11373_v12 = vpop.eup %11372  ;;  %v18284_v21 = vld [vmem:[#allocation163_spill] sm:$0xff]  ;;  %v4205_v54 = vmul.f32 %v11371_v48, %v18285_v35 }
 0xc51   : > { %v1888_v4 = vsel %vm1605_vm1, %v18284_v21, 0.0  ;;  %v10875_v56 = vpack.i.bf16 %v5907_v33, %v5906_v23  ;;  %v4204_v1 = vmul.f32 %v11373_v12, %v18287_v0  ;;  %v11375_v51 = vpop.eup %11374  ;;  %v18305_v23 = vld [vmem:[#allocation87_spill] sm:$0xff]  ;;  %v18306_v12 = vld [vmem:[#allocation146_spill] sm:$0xff]  ;;  %v18307_v21 = vld [vmem:[#allocation68_spill] sm:$0xff] }
 0xc53   : > { %v10885_v22 = vpack.i.bf16 %v4205_v54, %v4204_v1  ;;  %v18309_v54 = vld [vmem:[#allocation43_spill] sm:$0xff] }
 0xc54   : > { %10836 = vrot.lane.b32.xlu1 %v10835_v13, %s11727_s30  ;;  %v18288_v13 = vld [vmem:[#allocation64_spill] sm:$0xff] }
 0xc55   : > { %11380 = vrcp.f32 %v18288_v13  ;;  %v18310_v13 = vld [vmem:[#allocation108_spill] sm:$0xff] }
 0xc56   : > { %v10525_v46 = vpop.f32.mrf.mxu0  ;;  %11382 = vrcp.f32 %v18290_v28 }
 0xc57   : > { %v8194_v29 = vadd.f32 %v10525_v46, %v16514_v43  ;;  %11384 = vrcp.f32 %v18291_v59  ;;  %v11377_v46 = vpop.eup %11376 }
 0xc58   : > { %10841 = vrot.lane.b32.xlu1 %v10840_v31, %s11729_s12  ;;  %v8188_v2 = vpop.f32.mrf.mxu0  ;;  %11386 = vrcp.f32 %v18292_v61  ;;  %v10757_v31 = vpop.permute.xlu1 %10756 }
 0xc59   : > { %8348 = vst [vmem:[%s16525_s15 + $0x8] sm:$0xff] %v8194_v29  ;;  %v8189_v24 = vadd.f32 %v16514_v43, %v8188_v2  ;;  %11388 = vrcp.f32 %v18293_v18  ;;  %v18294_v29 = vld [vmem:[#allocation107_spill] sm:$0xff]  ;;  %v10759_v8 = vunpack.i.h.bf16 %v10757_v31  ;;  %v10758_v20 = vunpack.i.l.bf16 %v10757_v31 }
 0xc5a   : > { %v18296_v2 = vpack.i.bf16 %v18294_v29, %v18295_v7  ;;  %11390 = vrcp.f32 %v18297_v60  ;;  %v11379_v25 = vpop.eup %11378  ;;  %v18313_v29 = vld [vmem:[#allocation115_spill] sm:$0xff] }
 0xc5b   : > { %8347 = vst [vmem:[%s16525_s15] sm:$0xff] %v8189_v24  ;;  %v2451_v24 = vmul.f32 %v11377_v46, %v18298_v19  ;;  %11392 = vrcp.f32 %v18300_v37  ;;  %v7603_v0 = vmul.f32 %v11379_v25, %v16454_v6  ;;  %v18312_v6 = vld [vmem:[#allocation149_spill] sm:$0xff]  ;;  %v18315_v19 = vld [vmem:[#allocation32_spill] sm:$0xff] }
 0xc5c   : > { %10846 = vrot.lane.b32.xlu1 %v10845_v38, %s11728_s10  ;;  %v18299_v38 = vld [vmem:[#allocation140_spill] sm:$0xff]  ;;  %v18314_v7 = vpack.i.bf16 %v18312_v6, %v18313_v29 }
 0xc5d   : > { %v2450_v42 = vmul.f32 %v11375_v51, %v18299_v38  ;;  %v8011_v62 = vsel %vm928_vm0, %v2451_v24, %v10754_v50 }
 0xc5e   : > { %v8043_v32 = vsel %vm1605_vm1, %v8011_v62, %v10759_v8 }
 0xc5f   : > { %v8010_v58 = vsel %vm928_vm0, %v2450_v42, %v10753_v14 }
 0xc60   : > { %10856 = vrot.lane.b32.xlu1 %v10855_v63, %s11729_s12  ;;  %v18301_v63 = vld [vmem:[#allocation86_spill] sm:$0xff]  ;;  %v8042_v48 = vsel %vm1605_vm1, %v8010_v58, %v10758_v20 }
 0xc61   : > { %v18303_v9 = vpack.i.bf16 %v18301_v63, %v18302_v57 }
 0xc62   : > { %1886 = vadd.xlane.f32.xlu0 %v1885_v5  ;;  %v11381_v53 = vpop.eup %11380  ;;  %v18304_v5 = vld [vmem:[#allocation89_spill] sm:$0xff] }
 0xc63   : > { %11394 = vrcp.f32 %v18304_v5  ;;  %v11383_v10 = vpop.eup %11382 }
 0xc64   : > { %10866 = vrot.lane.b32.xlu1 %v10865_v15, %s11727_s30  ;;  %11396 = vrcp.f32 %v18305_v23  ;;  %v11385_v1 = vpop.eup %11384  ;;  %v2453_v27 = vmul.f32 %v11383_v10, %v18310_v13  ;;  %v18320_v23 = vld [vmem:[#allocation67_spill] sm:$0xff]  ;;  %v18323_v13 = vld [vmem:[#allocation57_spill] sm:$0xff] }
 0xc65   : > { %11398 = vrcp.f32 %v18309_v54  ;;  %v11387_v45 = vpop.eup %11386  ;;  %v7602_v51 = vmul.f32 %v11385_v1, %v16467_v39  ;;  %v18322_v1 = vld [vmem:[#allocation51_spill] sm:$0xff] }
 0xc66   : > { %1889 = vadd.xlane.f32.xlu0 %v1888_v4  ;;  %v18308_v4 = vpack.i.bf16 %v18306_v12, %v18307_v21  ;;  %v11389_v60 = vpop.eup %11388  ;;  %11400 = vrcp.f32 %v18315_v19  ;;  %v7607_v20 = vmul.f32 %v11387_v45, %v16493_v36  ;;  %v18321_v21 = vld [vmem:[#allocation100_spill] sm:$0xff]  ;;  %v18329_v45 = vld [vmem:[#allocation113_spill] sm:$0xff] }
 0xc67   : > { %v10820_v42 = vpack.i.bf16 %v7603_v0, %v7602_v51  ;;  %v11391_v37 = vpop.eup %11390  ;;  %v7606_v62 = vmul.f32 %v11389_v60, %v16500_v16  ;;  %v18319_v16 = vld [vmem:[#allocation110_spill] sm:$0xff] }
 0xc68   : > { %10876 = vrot.lane.b32.xlu1 %v10875_v56, %s11728_s10  ;;  %v11393_v63 = vpop.eup %11392 }
 0xc69   : > { %v10850_v57 = vpack.i.bf16 %v7607_v20, %v7606_v62  ;;  %v18338_v62 = vld [vmem:[#allocation118_spill] sm:$0xff] }
 0xc6a   : > { %1892 = vadd.xlane.f32.xlu0 %v1891_v44 }
 0xc6c   : > { %10886 = vrot.lane.b32.xlu1 %v10885_v22, %s11729_s12  ;;  %v18311_v22 = vld [vmem:[#allocation148_spill] sm:$0xff] }
 0xc6d   : > { %v2452_v59 = vmul.f32 %v11381_v53, %v18311_v22 }
 0xc70   : > { %10896 = vrot.lane.b32.xlu1 %v18296_v2, %s11727_s30  ;;  %v11395_v25 = vpop.eup %11394 }
 0xc71   : > { %v16561_v41 = vpop.xlane.xlu0 %1868  ;;  %v11397_v5 = vpop.eup %11396 }
 0xc73   : > { %v16566_v26 = vpop.xlane.xlu1 %1871 }
 0xc74   : > { %10906 = vrot.lane.b32.xlu1 %v18303_v9, %s11728_s10  ;;  %v18316_v9 = vld [vmem:[#allocation44_spill] sm:$0xff] }
 0xc75   : > { %v10762_v11 = vpop.permute.xlu0 %10761  ;;  %v5905_v58 = vmul.f32 %v11391_v37, %v18316_v9 }
 0xc76   : > { %v10764_v17 = vunpack.i.h.bf16 %v10762_v11  ;;  %v10763_v15 = vunpack.i.l.bf16 %v10762_v11  ;;  %v18317_v11 = vld [vmem:[#allocation34_spill] sm:$0xff] }
 0xc77   : > { %v10772_v33 = vpop.permute.xlu1 %10771  ;;  %v5904_v53 = vmul.f32 %v11393_v63, %v18317_v11 }
 0xc78   : > { %10916 = vrot.lane.b32.xlu1 %v18308_v4, %s11729_s12  ;;  %v8075_v56 = vsel %vm8066_vm2, %v8042_v48, %v10763_v15  ;;  %v8076_v35 = vsel %vm8066_vm2, %v8043_v32, %v10764_v17  ;;  %v10774_v61 = vunpack.i.h.bf16 %v10772_v33  ;;  %v10773_v46 = vunpack.i.l.bf16 %v10772_v33  ;;  %v11399_v17 = vpop.eup %11398  ;;  %v18318_v15 = vld [vmem:[#allocation150_spill] sm:$0xff] }
 0xc79   : > { %v10767_v55 = vpop.permute.xlu0 %10766  ;;  %10535 = vmatprep.mubr.f32.mxu0 %v8075_v56  ;;  %v10860_v36 = vpack.i.bf16 %v5905_v58, %v5904_v53  ;;  %v4203_v10 = vmul.f32 %v11395_v25, %v18318_v15  ;;  %v4202_v33 = vmul.f32 %v11397_v5, %v18319_v16  ;;  %v11401_v48 = vpop.eup %11400  ;;  %v7611_v12 = vmul.f32 %v11399_v17, %v18320_v23  ;;  %v18340_v23 = vld [vmem:[#allocation128_spill] sm:$0xff] }
 0xc7a   : > { %v10769_v44 = vunpack.i.h.bf16 %v10767_v55  ;;  %v10768_v28 = vunpack.i.l.bf16 %v10767_v55  ;;  %10536 = vmatmul.mubr.f32.gmra.mxu0 %v8076_v35  ;;  %v7610_v4 = vmul.f32 %v11401_v48, %v18321_v21 }
 0xc7b   : > { %v10777_v31 = vpop.permute.xlu1 %10776  ;;  %v10870_v32 = vpack.i.bf16 %v4203_v10, %v4202_v33 }
 0xc7c   : > { %v8013_v18 = vsel %vm928_vm0, %v2453_v27, %v10769_v44  ;;  %v10779_v50 = vunpack.i.h.bf16 %v10777_v31  ;;  %v10778_v14 = vunpack.i.l.bf16 %v10777_v31  ;;  %10926 = vrot.lane.b32.xlu1 %v18314_v7, %s11727_s30  ;;  %v8012_v2 = vsel %vm928_vm0, %v2452_v59, %v10768_v28  ;;  %v18325_v44 = vld [vmem:[#allocation119_spill] sm:$0xff]  ;;  %v18326_v28 = vld [vmem:[#allocation136_spill] sm:$0xff]  ;;  %v18328_v59 = vld [vmem:[#allocation130_spill] sm:$0xff] }
 0xc7d   : > { %v8044_v24 = vsel %vm1605_vm1, %v8012_v2, %v10773_v46  ;;  %v8045_v39 = vsel %vm1605_vm1, %v8013_v18, %v10774_v61  ;;  %v10880_v56 = vpack.i.bf16 %v7611_v12, %v7610_v4  ;;  %v18324_v27 = vpack.i.bf16 %v18322_v1, %v18323_v13  ;;  %v18331_v61 = vld [vmem:[#allocation97_spill] sm:$0xff]  ;;  %v18334_v18 = vld [vmem:[#allocation139_spill] sm:$0xff] }
 0xc7e   : > { %v8077_v38 = vsel %vm8066_vm2, %v8044_v24, %v10778_v14  ;;  %v8078_v8 = vsel %vm8066_vm2, %v8045_v39, %v10779_v50  ;;  %v18327_v22 = vpack.i.bf16 %v18325_v44, %v18326_v28  ;;  %v18330_v51 = vpack.i.bf16 %v18328_v59, %v18329_v45  ;;  %v18332_v46 = vld [vmem:[#allocation105_spill] sm:$0xff]  ;;  %v18335_v50 = vld [vmem:[#allocation171_spill] sm:$0xff]  ;;  %v18336_v14 = vld [vmem:[#allocation154_spill] sm:$0xff] }
 0xc7f   : > { %10538 = vmatprep.mubr.f32.mxu0 %v8077_v38  ;;  %v18333_v31 = vpack.i.bf16 %v18331_v61, %v18332_v46  ;;  %11402 = vrcp.f32 %v18334_v18  ;;  %v10782_v6 = vpop.permute.xlu1 %10781  ;;  %v18337_v7 = vld [vmem:[#allocation77_spill] sm:$0xff] }
 0xc80   : > { %10821 = vrot.lane.b32.xlu0 %v10820_v42, %s11727_s30  ;;  %10539 = vmatmul.mubr.f32.gmra.mxu0 %v8078_v8  ;;  %11404 = vrcp.f32 %v18335_v50  ;;  %v10784_v38 = vunpack.i.h.bf16 %v10782_v6  ;;  %v10783_v42 = vunpack.i.l.bf16 %v10782_v6 }
 0xc81   : > { %11406 = vrcp.f32 %v18336_v14 }
 0xc82   : > { %11408 = vrcp.f32 %v18337_v7 }
 0xc83   : > { %v10787_v60 = vpop.permute.xlu1 %10786  ;;  %11410 = vrcp.f32 %v16360_v3 }
 0xc84   : > { %10851 = vrot.lane.b32.xlu0 %v10850_v57, %s11727_s30  ;;  %v10789_v8 = vunpack.i.h.bf16 %v10787_v60  ;;  %v10788_v20 = vunpack.i.l.bf16 %v10787_v60  ;;  %v18339_v57 = vld [vmem:[#allocation145_spill] sm:$0xff]  ;;  %11412 = vrcp.f32 %v16368_v34 }
 0xc85   : > { %11414 = vrcp.f32 %v16399_v47 }
 0xc86   : > { %11416 = vrcp.f32 %v16411_v52 }
 0xc87   : > { %11418 = vrcp.f32 %v16447_v40 }
 0xc88   : > { %10861 = vrot.lane.b32.xlu0 %v10860_v36, %s11728_s10  ;;  %11420 = vrcp.f32 %v16456_v30 }
 0xc89   : > { %11422 = vrcp.f32 %v16548_v49 }
 0xc8a   : > { %11424 = vrcp.f32 %v16561_v41 }
 0xc8b   : > { %11426 = vrcp.f32 %v16566_v26  ;;  %v18344_v26 = vld [vmem:[#allocation132_spill] sm:$0xff] }
 0xc8c   : > { %10871 = vrot.lane.b32.xlu0 %v10870_v32, %s11729_s12  ;;  %v11403_v19 = vpop.eup %11402 }
 0xc8d   : > { %v11405_v24 = vpop.eup %11404  ;;  %v2454_v9 = vmul.f32 %v11403_v19, %v18339_v57 }
 0xc8e   : > { %v2455_v63 = vmul.f32 %v11405_v24, %v18338_v62  ;;  %v11407_v25 = vpop.eup %11406  ;;  %v18342_v62 = vld [vmem:[#allocation197_spill] sm:$0xff] }
 0xc8f   : > { %v10528_v35 = vpop.f32.mrf.mxu0  ;;  %v8014_v17 = vsel %vm928_vm0, %v2454_v9, %v10783_v42  ;;  %v11409_v36 = vpop.eup %11408 }
 0xc90   : > { %v8204_v54 = vadd.f32 %v10528_v35, %v16514_v43  ;;  %10881 = vrot.lane.b32.xlu0 %v10880_v56, %s11727_s30  ;;  %v8015_v11 = vsel %vm928_vm0, %v2455_v63, %v10784_v38  ;;  %v8046_v10 = vsel %vm1605_vm1, %v8014_v17, %v10788_v20  ;;  %v2457_v12 = vmul.f32 %v11409_v36, %v18340_v23  ;;  %v18341_v56 = vld [vmem:[#allocation151_spill] sm:$0xff]  ;;  %v11411_v34 = vpop.eup %11410 }
 0xc91   : > { %v8198_v55 = vpop.f32.mrf.mxu0  ;;  %v8047_v16 = vsel %vm1605_vm1, %v8015_v11, %v10789_v8  ;;  %v2456_v35 = vmul.f32 %v11407_v25, %v18341_v56  ;;  %v11413_v47 = vpop.eup %11412  ;;  %v2458_v11 = vmul.f32 %v11411_v34, %v18344_v26 }
 0xc92   : > { %8350 = vst [vmem:[%s16525_s15 + $0x18] sm:$0xff] %v8204_v54  ;;  %v8199_v0 = vadd.f32 %v16514_v43, %v8198_v55  ;;  %v11415_v52 = vpop.eup %11414  ;;  %v2459_v63 = vmul.f32 %v11413_v47, %v18342_v62 }
 0xc93   : > { %v11417_v30 = vpop.eup %11416 }
 0xc94   : > { %8349 = vst [vmem:[%s16525_s15 + $0x10] sm:$0xff] %v8199_v0  ;;  %10891 = vrot.lane.b32.xlu0 %v18324_v27, %s11728_s10  ;;  %v11419_v49 = vpop.eup %11418 }
 0xc98   : > { %10901 = vrot.lane.b32.xlu0 %v18327_v22, %s11729_s12 }
 0xc9c   : > { %10911 = vrot.lane.b32.xlu0 %v18330_v51, %s11727_s30  ;;  %s11650_s30 = scalar_lea.vmem %s11649_s29, 8192 }
 0xc9d   : > { %p11652_p2 = scmp.lt.s32.totalorder %s11650_s30, %s11644_s11 }
 0xc9f   : > { %p11653_p3 = por %p11652_p2, %p11651_p1 }
 0xca0   : > { %10921 = vrot.lane.b32.xlu0 %v18333_v31, %s11728_s10 }
 0xca1   : > { %p11654_p9 = pnand %p11653_p3, %p11647_p10 }
 0xcaa   : > { %v16637_v29 = vpop.xlane.xlu0 %1874 }
 0xcab   : > { %11428 = vrcp.f32 %v16637_v29 }
 0xcae   : > { %v16640_v2 = vpop.xlane.xlu0 %1877 }
 0xcaf   : > { %11430 = vrcp.f32 %v16640_v2 }
 0xcb2   : > { %v16642_v39 = vpop.xlane.xlu0 %1880 }
 0xcb3   : > { %11432 = vrcp.f32 %v16642_v39 }
 0xcb4   : > { %v16644_v37 = vpop.xlane.xlu1 %1883 }
 0xcb5   : > { %11434 = vrcp.f32 %v16644_v37 }
 0xcb6   : > { %v10792_v58 = vpop.permute.xlu0 %10791 }
 0xcb7   : > { %v10794_v53 = vunpack.i.h.bf16 %v10792_v58  ;;  %v10793_v5 = vunpack.i.l.bf16 %v10792_v58  ;;  %v18343_v58 = vld [vmem:[#allocation186_spill] sm:$0xff] }
 0xcb8   : > { %v10802_v15 = vpop.permute.xlu1 %10801  ;;  %v2461_v25 = vmul.f32 %v11417_v30, %v18343_v58 }
 0xcb9   : > { %v8079_v33 = vsel %vm8066_vm2, %v8046_v10, %v10793_v5  ;;  %v8080_v48 = vsel %vm8066_vm2, %v8047_v16, %v10794_v53  ;;  %v10804_v54 = vunpack.i.h.bf16 %v10802_v15  ;;  %v10803_v55 = vunpack.i.l.bf16 %v10802_v15  ;;  %v18345_v53 = vld [vmem:[#allocation168_spill] sm:$0xff]  ;;  %v18346_v15 = vld [vmem:[#allocation143_spill] sm:$0xff]  ;;  %v11421_v16 = vpop.eup %11420 }
 0xcba   : > { %v10797_v32 = vpop.permute.xlu0 %10796  ;;  %10541 = vmatprep.mubr.f32.mxu0 %v8079_v33  ;;  %v2460_v29 = vmul.f32 %v11415_v52, %v18345_v53  ;;  %v2462_v10 = vmul.f32 %v11419_v49, %v18346_v15  ;;  %v18351_v53 = vld [vmem:[#allocation137_spill] sm:$0xff] }
 0xcbb   : > { %v10799_v21 = vunpack.i.h.bf16 %v10797_v32  ;;  %v10798_v4 = vunpack.i.l.bf16 %v10797_v32  ;;  %10542 = vmatmul.mubr.f32.gmra.mxu0 %v8080_v48 }
 0xcbc   : > { %v10807_v0 = vpop.permute.xlu1 %10806 }
 0xcbd   : > { %v8017_v1 = vsel %vm928_vm0, %v2457_v12, %v10799_v21  ;;  %v10809_v13 = vunpack.i.h.bf16 %v10807_v0  ;;  %v10808_v27 = vunpack.i.l.bf16 %v10807_v0  ;;  %v8016_v44 = vsel %vm928_vm0, %v2456_v35, %v10798_v4  ;;  %v11423_v21 = vpop.eup %11422 }
 0xcbe   : > { %v8048_v28 = vsel %vm1605_vm1, %v8016_v44, %v10803_v55  ;;  %v8049_v22 = vsel %vm1605_vm1, %v8017_v1, %v10804_v54  ;;  %v11425_v54 = vpop.eup %11424 }
 0xcbf   : > { %v8081_v59 = vsel %vm8066_vm2, %v8048_v28, %v10808_v27  ;;  %v8082_v45 = vsel %vm8066_vm2, %v8049_v22, %v10809_v13 }
 0xcc0   : > { %10544 = vmatprep.mubr.f32.mxu0 %v8081_v59  ;;  %v10812_v51 = vpop.permute.xlu1 %10811  ;;  %v18347_v59 = vld [vmem:[#allocation181_spill] sm:$0xff] }
 0xcc1   : > { %10545 = vmatmul.mubr.f32.gmra.mxu0 %v8082_v45  ;;  %v10814_v42 = vunpack.i.h.bf16 %v10812_v51  ;;  %v10813_v20 = vunpack.i.l.bf16 %v10812_v51  ;;  %v2463_v45 = vmul.f32 %v11421_v16, %v18347_v59 }
 0xcc3   : > { %v8019_v5 = vsel %vm928_vm0, %v2459_v63, %v10814_v42  ;;  %v8018_v12 = vsel %vm928_vm0, %v2458_v11, %v10813_v20 }
 0xcc4   : > { %v10817_v61 = vpop.permute.xlu1 %10816 }
 0xcc5   : > { %v10819_v41 = vunpack.i.h.bf16 %v10817_v61  ;;  %v10818_v57 = vunpack.i.l.bf16 %v10817_v61 }
 0xcc7   : > { %v8050_v2 = vsel %vm1605_vm1, %v8018_v12, %v10818_v57  ;;  %v8051_v56 = vsel %vm1605_vm1, %v8019_v5, %v10819_v41 }
 0xcc8   : > { %v10531_v46 = vpop.f32.mrf.mxu0  ;;  %v16666_v14 = vpop.permute.xlu1 %10826 }
 0xcc9   : > { %v8214_v31 = vadd.f32 %v10531_v46, %v16514_v43  ;;  %v10828_v9 = vunpack.i.l.bf16 %v16666_v14  ;;  %v10829_v4 = vunpack.i.h.bf16 %v16666_v14  ;;  %v18348_v46 = vld [vmem:[#allocation160_spill] sm:$0xff]  ;;  %v18349_v14 = vld [vmem:[#allocation187_spill] sm:$0xff] }
 0xcca   : > { %v8208_v18 = vpop.f32.mrf.mxu0 }
 0xccb   : > { %8352 = vst [vmem:[%s16525_s15 + $0x28] sm:$0xff] %v8214_v31  ;;  %v8209_v50 = vadd.f32 %v16514_v43, %v8208_v18  ;;  %v8020_v35 = vsel %vm928_vm0, %v2460_v29, %v10828_v9  ;;  %v2464_v31 = vmul.f32 %v11423_v21, %v18348_v46  ;;  %v8021_v18 = vsel %vm928_vm0, %v2461_v25, %v10829_v4  ;;  %v18350_v25 = vld [vmem:[#allocation135_spill] sm:$0xff] }
 0xccc   : > { %v16668_v6 = vpop.permute.xlu1 %10831 }
 0xccd   : > { %8351 = vst [vmem:[%s16525_s15 + $0x20] sm:$0xff] %v8209_v50  ;;  %v10833_v17 = vunpack.i.l.bf16 %v16668_v6  ;;  %v10834_v55 = vunpack.i.h.bf16 %v16668_v6  ;;  %v2465_v6 = vmul.f32 %v11425_v54, %v18349_v14 }
 0xccf   : > { %v8052_v22 = vsel %vm1605_vm1, %v8020_v35, %v10833_v17  ;;  %v8053_v52 = vsel %vm1605_vm1, %v8021_v18, %v10834_v55 }
 0xcd0   : > { %v16670_v7 = vpop.permute.xlu1 %10836 }
 0xcd1   : > { %v10838_v33 = vunpack.i.l.bf16 %v16670_v7  ;;  %v10839_v27 = vunpack.i.h.bf16 %v16670_v7  ;;  %v11427_v7 = vpop.eup %11426 }
 0xcd2   : > { %v11429_v42 = vpop.eup %11428  ;;  %v2466_v26 = vmul.f32 %v11427_v7, %v18350_v25 }
 0xcd3   : > { %v8085_v61 = vsel %vm8066_vm2, %v8052_v22, %v10838_v33  ;;  %v8086_v62 = vsel %vm8066_vm2, %v8053_v52, %v10839_v27  ;;  %v11431_v33 = vpop.eup %11430 }
 0xcd4   : > { %v16672_v60 = vpop.permute.xlu1 %10841 }
 0xcd5   : > { %v10843_v0 = vunpack.i.l.bf16 %v16672_v60  ;;  %v10844_v39 = vunpack.i.h.bf16 %v16672_v60 }
 0xcd7   : > { %v8022_v30 = vsel %vm928_vm0, %v2462_v10, %v10843_v0  ;;  %v8023_v57 = vsel %vm928_vm0, %v2463_v45, %v10844_v39 }
 0xcd8   : > { %v16678_v19 = vpop.permute.xlu1 %10846 }
 0xcd9   : > { %v10848_v44 = vunpack.i.l.bf16 %v16678_v19  ;;  %v10849_v34 = vunpack.i.h.bf16 %v16678_v19 }
 0xcdb   : > { %v8054_v63 = vsel %vm1605_vm1, %v8022_v30, %v10848_v44  ;;  %v8055_v29 = vsel %vm1605_vm1, %v8023_v57, %v10849_v34  ;;  %v18355_v57 = vld [vmem:[#allocation161_spill] sm:$0xff] }
 0xcdc   : > { %v16685_v38 = vpop.permute.xlu1 %10856 }
 0xcdd   : > { %v10858_v50 = vunpack.i.l.bf16 %v16685_v38  ;;  %v10859_v49 = vunpack.i.h.bf16 %v16685_v38 }
 0xcdf   : > { %v8024_v38 = vsel %vm928_vm0, %v2464_v31, %v10858_v50  ;;  %v8025_v17 = vsel %vm928_vm0, %v2465_v6, %v10859_v49  ;;  %v18353_v31 = vld [vmem:[#allocation133_spill] sm:$0xff] }
 0xce0   : > { %v16692_v40 = vpop.permute.xlu1 %10866  ;;  %v2468_v18 = vmul.f32 %v11431_v33, %v18353_v31 }
 0xce1   : > { %v10868_v9 = vunpack.i.l.bf16 %v16692_v40 }
 0xce4   : > { %v16706_v48 = vpop.permute.xlu1 %10876 }
 0xce5   : > { %v10879_v35 = vunpack.i.h.bf16 %v16706_v48  ;;  %v10878_v54 = vunpack.i.l.bf16 %v16706_v48 }
 0xce8   : > { %v16730_v47 = vpop.permute.xlu1 %10886 }
 0xceb   : > { %v16682_v24 = vpop.xlane.xlu0 %1886 }
 0xcec   : > { %11436 = vrcp.f32 %v16682_v24  ;;  %v2467_v24 = vmul.f32 %v11429_v42, %v18351_v53 }
 0xcef   : > { %v16688_v3 = vpop.xlane.xlu0 %1889 }
 0xcf0   : > { %11438 = vrcp.f32 %v16688_v3 }
 0xcf3   : > { %v16694_v8 = vpop.xlane.xlu0 %1892 }
 0xcf4   : > { %11440 = vrcp.f32 %v16694_v8  ;;  %v10888_v8 = vunpack.i.l.bf16 %v16730_v47 }
 0xcf7   : > { %v10822_v36 = vpop.permute.xlu0 %10821 }
 0xcf8   : > { %v10824_v32 = vunpack.i.h.bf16 %v10822_v36  ;;  %v10823_v23 = vunpack.i.l.bf16 %v10822_v36 }
 0xcfa   : > { %v8083_v1 = vsel %vm8066_vm2, %v8050_v2, %v10823_v23  ;;  %v8084_v13 = vsel %vm8066_vm2, %v8051_v56, %v10824_v32  ;;  %v10897_v32 = vpop.permute.xlu1 %10896  ;;  %v10869_v2 = vunpack.i.h.bf16 %v16692_v40  ;;  %v10889_v40 = vunpack.i.h.bf16 %v16730_v47 }
 0xcfb   : > { %v10852_v28 = vpop.permute.xlu0 %10851  ;;  %10547 = vmatprep.mubr.f32.mxu0 %v8083_v1  ;;  %v11433_v1 = vpop.eup %11432  ;;  %v10899_v7 = vunpack.i.h.bf16 %v10897_v32  ;;  %v10898_v34 = vunpack.i.l.bf16 %v10897_v32  ;;  %v8028_v47 = vsel %vm928_vm0, %v2468_v18, %v10888_v8 }
 0xcfc   : > { %v10853_v51 = vunpack.i.l.bf16 %v10852_v28  ;;  %10548 = vmatmul.mubr.f32.gmra.mxu0 %v8084_v13  ;;  %v10854_v60 = vunpack.i.h.bf16 %v10852_v28  ;;  %v11435_v45 = vpop.eup %11434 }
 0xcfd   : > { %10550 = vmatprep.mubr.f32.mxu0 %v8085_v61  ;;  %v11437_v14 = vpop.eup %11436 }
 0xcfe   : > { %v8087_v19 = vsel %vm8066_vm2, %v8054_v63, %v10853_v51  ;;  %v8088_v10 = vsel %vm8066_vm2, %v8055_v29, %v10854_v60  ;;  %v10907_v22 = vpop.permute.xlu1 %10906  ;;  %v18352_v51 = vld [vmem:[#allocation156_spill] sm:$0xff]  ;;  %v18354_v63 = vld [vmem:[#allocation177_spill] sm:$0xff] }
 0xcff   : > { %v10862_v20 = vpop.permute.xlu0 %10861  ;;  %v2469_v61 = vmul.f32 %v11433_v1, %v18352_v51 }
 0xd00   : > { %v10864_v37 = vunpack.i.h.bf16 %v10862_v20  ;;  %v10863_v41 = vunpack.i.l.bf16 %v10862_v20  ;;  %10551 = vmatmul.mubr.f32.gmra.mxu0 %v8086_v62  ;;  %v11439_v20 = vpop.eup %11438 }
 0xd01   : > { %v10534_v58 = vpop.f32.mrf.mxu0  ;;  %10553 = vmatprep.mubr.f32.mxu0 %v8087_v19  ;;  %v8029_v6 = vsel %vm928_vm0, %v2469_v61, %v10889_v40 }
 0xd02   : > { %v8224_v11 = vadd.f32 %v10534_v58, %v16514_v43  ;;  %v8056_v5 = vsel %vm1605_vm1, %v8024_v38, %v10863_v41  ;;  %v8057_v4 = vsel %vm1605_vm1, %v8025_v17, %v10864_v37  ;;  %v10917_v62 = vpop.permute.xlu1 %10916  ;;  %v2471_v37 = vmul.f32 %v11437_v14, %v18354_v63  ;;  %v11441_v58 = vpop.eup %11440 }
 0xd03   : > { %v10872_v36 = vpop.permute.xlu0 %10871  ;;  %v8218_v15 = vpop.f32.mrf.mxu0  ;;  %v8089_v16 = vsel %vm8066_vm2, %v8056_v5, %v10868_v9  ;;  %v8090_v0 = vsel %vm8066_vm2, %v8057_v4, %v10869_v2  ;;  %v2470_v9 = vmul.f32 %v11435_v45, %v18355_v57  ;;  %v18356_v5 = vld [vmem:[#allocation167_spill] sm:$0xff] }
 0xd04   : > { %8354 = vst [vmem:[%s16525_s15 + $0x38] sm:$0xff] %v8224_v11  ;;  %v10874_v23 = vunpack.i.h.bf16 %v10872_v36  ;;  %v10873_v12 = vunpack.i.l.bf16 %v10872_v36  ;;  %v8219_v21 = vadd.f32 %v16514_v43, %v8218_v15  ;;  %10554 = vmatmul.mubr.f32.gmra.mxu0 %v8088_v10  ;;  %v10908_v11 = vunpack.i.l.bf16 %v10907_v22  ;;  %v18357_v10 = vld [vmem:[#allocation126_spill] sm:$0xff] }
 0xd05   : > { %10556 = vmatprep.mubr.f32.mxu0 %v8089_v16  ;;  %v2473_v17 = vmul.f32 %v11441_v58, %v18356_v5  ;;  %v2472_v16 = vmul.f32 %v11439_v20, %v18357_v10 }
 0xd06   : > { %v8027_v3 = vsel %vm928_vm0, %v2467_v24, %v10874_v23  ;;  %8353 = vst [vmem:[%s16525_s15 + $0x30] sm:$0xff] %v8219_v21  ;;  %v8026_v56 = vsel %vm928_vm0, %v2466_v26, %v10873_v12  ;;  %v10909_v26 = vunpack.i.h.bf16 %v10907_v22  ;;  %v10927_v33 = vpop.permute.xlu1 %10926  ;;  %v10919_v12 = vunpack.i.h.bf16 %v10917_v62 }
 0xd07   : > { %v10882_v55 = vpop.permute.xlu0 %10881  ;;  %v8058_v44 = vsel %vm1605_vm1, %v8026_v56, %v10878_v54  ;;  %v8059_v28 = vsel %vm1605_vm1, %v8027_v3, %v10879_v35  ;;  %v10918_v21 = vunpack.i.l.bf16 %v10917_v62  ;;  %v10929_v35 = vunpack.i.h.bf16 %v10927_v33 }
 0xd08   : > { %v10884_v13 = vunpack.i.h.bf16 %v10882_v55  ;;  %v10883_v27 = vunpack.i.l.bf16 %v10882_v55  ;;  %10557 = vmatmul.mubr.f32.gmra.mxu0 %v8090_v0  ;;  %v8033_v56 = vsel %vm928_vm0, %v2473_v17, %v10919_v12  ;;  %v10928_v54 = vunpack.i.l.bf16 %v10927_v33 }
 0xd09   : > { %v8032_v55 = vsel %vm928_vm0, %v2472_v16, %v10918_v21 }
 0xd0a   : > { %v8091_v59 = vsel %vm8066_vm2, %v8058_v44, %v10883_v27  ;;  %v8092_v48 = vsel %vm8066_vm2, %v8059_v28, %v10884_v13 }
 0xd0b   : > { %v10892_v46 = vpop.permute.xlu0 %10891  ;;  %10559 = vmatprep.mubr.f32.mxu0 %v8091_v59 }
 0xd0c   : > { %v10894_v39 = vunpack.i.h.bf16 %v10892_v46  ;;  %v10893_v50 = vunpack.i.l.bf16 %v10892_v46  ;;  %10560 = vmatmul.mubr.f32.gmra.mxu0 %v8092_v48 }
 0xd0e   : > { %v8060_v52 = vsel %vm1605_vm1, %v8028_v47, %v10893_v50  ;;  %v8061_v30 = vsel %vm1605_vm1, %v8029_v6, %v10894_v39 }
 0xd0f   : > { %v10902_v42 = vpop.permute.xlu0 %10901  ;;  %v8093_v49 = vsel %vm8066_vm2, %v8060_v52, %v10898_v34  ;;  %v8094_v60 = vsel %vm8066_vm2, %v8061_v30, %v10899_v7 }
 0xd10   : > { %v10904_v41 = vunpack.i.h.bf16 %v10902_v42  ;;  %v10903_v19 = vunpack.i.l.bf16 %v10902_v42  ;;  %10562 = vmatprep.mubr.f32.mxu0 %v8093_v49 }
 0xd11   : > { %10563 = vmatmul.mubr.f32.gmra.mxu0 %v8094_v60 }
 0xd12   : > { %v8031_v38 = vsel %vm928_vm0, %v2471_v37, %v10904_v41  ;;  %v8030_v25 = vsel %vm928_vm0, %v2470_v9, %v10903_v19 }
 0xd13   : > { %v10912_v53 = vpop.permute.xlu0 %10911  ;;  %v8062_v36 = vsel %vm1605_vm1, %v8030_v25, %v10908_v11  ;;  %v8063_v15 = vsel %vm1605_vm1, %v8031_v38, %v10909_v26 }
 0xd14   : > { %v10914_v24 = vunpack.i.h.bf16 %v10912_v53  ;;  %v10913_v29 = vunpack.i.l.bf16 %v10912_v53 }
 0xd16   : > { %v8095_v32 = vsel %vm8066_vm2, %v8062_v36, %v10913_v29  ;;  %v8096_v23 = vsel %vm8066_vm2, %v8063_v15, %v10914_v24 }
 0xd17   : > { %v10922_v4 = vpop.permute.xlu0 %10921  ;;  %10565 = vmatprep.mubr.f32.mxu0 %v8095_v32 }
 0xd18   : > { %v10924_v2 = vunpack.i.h.bf16 %v10922_v4  ;;  %v10923_v3 = vunpack.i.l.bf16 %v10922_v4  ;;  %10566 = vmatmul.mubr.f32.gmra.mxu0 %v8096_v23 }
 0xd1a   : > { %v8065_v0 = vsel %vm1605_vm1, %v8033_v56, %v10924_v2  ;;  %v8064_v1 = vsel %vm1605_vm1, %v8032_v55, %v10923_v3 }
 0xd1b   : > { %v8097_v13 = vsel %vm8066_vm2, %v8064_v1, %v10928_v54  ;;  %v8098_v27 = vsel %vm8066_vm2, %v8065_v0, %v10929_v35 }
 0xd1c   : > { %10568 = vmatprep.mubr.f32.mxu0 %v8097_v13 }
 0xd1d   : > { %10569 = vmatmul.mubr.f32.gmra.mxu0 %v8098_v27 }
 0xd3a   : > { %v10537_v40 = vpop.f32.mrf.mxu0 }
 0xd3b   : > { %v8234_v8 = vadd.f32 %v10537_v40, %v16514_v43 }
 0xd3c   : > { %v8228_v44 = vpop.f32.mrf.mxu0 }
 0xd3d   : > { %8356 = vst [vmem:[%s16525_s15 + $0x48] sm:$0xff] %v8234_v8  ;;  %v8229_v28 = vadd.f32 %v16514_v43, %v8228_v44 }
 0xd3f   : > { %8355 = vst [vmem:[%s16525_s15 + $0x40] sm:$0xff] %v8229_v28 }
 0xd40   : > { %v10540_v22 = vpop.f32.mrf.mxu0 }
 0xd41   : > { %v8244_v59 = vadd.f32 %v10540_v22, %v16514_v43 }
 0xd42   : > { %v8238_v48 = vpop.f32.mrf.mxu0 }
 0xd43   : > { %8358 = vst [vmem:[%s16525_s15 + $0x58] sm:$0xff] %v8244_v59  ;;  %v8239_v45 = vadd.f32 %v16514_v43, %v8238_v48 }
 0xd45   : > { %8357 = vst [vmem:[%s16525_s15 + $0x50] sm:$0xff] %v8239_v45 }
 0xd7b   : > { %v10543_v51 = vpop.f32.mrf.mxu0 }
 0xd7c   : > { %v8254_v61 = vadd.f32 %v10543_v51, %v16514_v43 }
 0xd7d   : > { %v8248_v46 = vpop.f32.mrf.mxu0 }
 0xd7e   : > { %8360 = vst [vmem:[%s16525_s15 + $0x68] sm:$0xff] %v8254_v61  ;;  %v8249_v31 = vadd.f32 %v16514_v43, %v8248_v46 }
 0xd80   : > { %8359 = vst [vmem:[%s16525_s15 + $0x60] sm:$0xff] %v8249_v31 }
 0xd81   : > { %v10546_v18 = vpop.f32.mrf.mxu0 }
 0xd82   : > { %v8264_v39 = vadd.f32 %v10546_v18, %v16514_v43 }
 0xd83   : > { %v8258_v50 = vpop.f32.mrf.mxu0 }
 0xd84   : > { %8362 = vst [vmem:[%s16525_s15 + $0x78] sm:$0xff] %v8264_v39  ;;  %v8259_v14 = vadd.f32 %v16514_v43, %v8258_v50 }
 0xd86   : > { %8361 = vst [vmem:[%s16525_s15 + $0x70] sm:$0xff] %v8259_v14 }
 0xdbc   : > { %v10549_v6 = vpop.f32.mrf.mxu0 }
 0xdbd   : > { %v8274_v7 = vadd.f32 %v10549_v6, %v16514_v43 }
 0xdbe   : > { %v8268_v34 = vpop.f32.mrf.mxu0 }
 0xdbf   : > { %8364 = vst [vmem:[%s16525_s15 + $0x88] sm:$0xff] %v8274_v7  ;;  %v8269_v47 = vadd.f32 %v16514_v43, %v8268_v34 }
 0xdc0   : > { %v10552_v52 = vpop.f32.mrf.mxu0 }
 0xdc1   : > { %8363 = vst [vmem:[%s16525_s15 + $0x80] sm:$0xff] %v8269_v47  ;;  %v8284_v30 = vadd.f32 %v10552_v52, %v16514_v43 }
 0xdc2   : > { %v8278_v42 = vpop.f32.mrf.mxu0 }
 0xdc3   : > { %8366 = vst [vmem:[%s16525_s15 + $0x98] sm:$0xff] %v8284_v30  ;;  %v8279_v49 = vadd.f32 %v16514_v43, %v8278_v42 }
 0xdc4   : > { %v10555_v60 = vpop.f32.mrf.mxu0 }
 0xdc5   : > { %8365 = vst [vmem:[%s16525_s15 + $0x90] sm:$0xff] %v8279_v49  ;;  %v8294_v20 = vadd.f32 %v10555_v60, %v16514_v43 }
 0xdc6   : > { %v8288_v62 = vpop.f32.mrf.mxu0 }
 0xdc7   : > { %8368 = vst [vmem:[%s16525_s15 + $0xa8] sm:$0xff] %v8294_v20  ;;  %v8289_v63 = vadd.f32 %v16514_v43, %v8288_v62 }
 0xdc8   : > { %v10558_v37 = vpop.f32.mrf.mxu0 }
 0xdc9   : > { %8367 = vst [vmem:[%s16525_s15 + $0xa0] sm:$0xff] %v8289_v63  ;;  %v8304_v41 = vadd.f32 %v10558_v37, %v16514_v43 }
 0xdca   : > { %v8298_v19 = vpop.f32.mrf.mxu0 }
 0xdcb   : > { %8370 = vst [vmem:[%s16525_s15 + $0xb8] sm:$0xff] %v8304_v41  ;;  %v8299_v57 = vadd.f32 %v16514_v43, %v8298_v19 }
 0xdcc   : > { %v10561_v9 = vpop.f32.mrf.mxu0 }
 0xdcd   : > { %8369 = vst [vmem:[%s16525_s15 + $0xb0] sm:$0xff] %v8299_v57  ;;  %v8314_v58 = vadd.f32 %v10561_v9, %v16514_v43 }
 0xdce   : > { %v8308_v38 = vpop.f32.mrf.mxu0 }
 0xdcf   : > { %8372 = vst [vmem:[%s16525_s15 + $0xc8] sm:$0xff] %v8314_v58  ;;  %v8309_v25 = vadd.f32 %v16514_v43, %v8308_v38 }
 0xdd1   : > { %8371 = vst [vmem:[%s16525_s15 + $0xc0] sm:$0xff] %v8309_v25  ;;  %v10564_v26 = vpop.f32.mrf.mxu0 }
 0xdd2   : > { %v8324_v11 = vadd.f32 %v10564_v26, %v16514_v43 }
 0xdd3   : > { %v8318_v53 = vpop.f32.mrf.mxu0 }
 0xdd4   : > { %8374 = vst [vmem:[%s16525_s15 + $0xd8] sm:$0xff] %v8324_v11  ;;  %v8319_v24 = vadd.f32 %v16514_v43, %v8318_v53 }
 0xdd6   : > { %8373 = vst [vmem:[%s16525_s15 + $0xd0] sm:$0xff] %v8319_v24 }
 0xdd8   : > { %v10567_v29 = vpop.f32.mrf.mxu0 }
 0xdd9   : > { %v8334_v5 = vadd.f32 %v10567_v29, %v16514_v43 }
 0xdda   : > { %v8328_v17 = vpop.f32.mrf.mxu0 }
 0xddb   : > { %8376 = vst [vmem:[%s16525_s15 + $0xe8] sm:$0xff] %v8334_v5  ;;  %v8329_v36 = vadd.f32 %v16514_v43, %v8328_v17 }
 0xddd   : > { %8375 = vst [vmem:[%s16525_s15 + $0xe0] sm:$0xff] %v8329_v36  ;;  %v10570_v15 = vpop.f32.mrf.mxu0 }
 0xdde   : > { %v8344_v10 = vadd.f32 %v10570_v15, %v16514_v43 }
 0xddf   : > { %v8338_v16 = vpop.f32.mrf.mxu0 }
 0xde0   : > { %8378 = vst [vmem:[%s16525_s15 + $0xf8] sm:$0xff] %v8344_v10  ;;  %v8339_v33 = vadd.f32 %v16514_v43, %v8338_v16 }
 0xde2   : > { %8377 = vst [vmem:[%s16525_s15 + $0xf0] sm:$0xff] %v8339_v33 }
 0xde3   : > { %11657 = shalt.err (!%p11654_p9)
}
 0xde4   : > { %s11658_s10 = scalar_lea.hbm %s16842_s19, 4096  ;;  %s11662_s9 = scalar_lea.hbm %s16896_s6, 8192 }
 0xde5   : > { %p11659_p7 = scmp.ne.s32.totalorder %s16842_s19, %s11658_s10  ;;  %p11663_p6 = scmp.lt.s32.totalorder %s16842_s19, %s16896_s6 }
 0xde6   : > { %p11664_p11 = scmp.lt.s32.totalorder %s11662_s9, %s11658_s10 }
 0xde7   : > { %p11660_p4 = pnand %p11659_p7, %p18358_p0 }
 0xde8   : > { %p11665_p13 = por %p11664_p11, %p11663_p6 }
 0xde9   : > { %p11661_p8 = pneg %p11660_p4 }
 0xdeb   : > { %p11666_p12 = pnand %p11665_p13, %p11661_p8 }
 0xded   : > { %11669 = shalt.err (!%p11666_p12)
}
 0xdee   : > { %s11731_s20 = smov 128   ;;  %s11732_s18 = smov 8  }
 0xdef   : > { %10617 = dma.vmem_to_hbm [thread:$0]  (%p18358_p0), %s16844_s8, 4096, %s16842_s19, %s8380_s25, %s11731_s20, %s11731_s20, %s11732_s18  }
 0xdf0 PF: > { %s8409_s11 = sand.u32 1, %s11704_s21   ;;  %p18359_p5 = scmp.ne.s32.totalorder %s17269_s28, 0 }
 0xdf1   : > { %p18360_p10 = scmp.ge.s32.totalorder %s11716_s24, 2  ;;  %s8410_s27 = scalar_lea.sflag [#allocation4], %s8409_s11 }
 0xdf3   : > { %p10634_p1 = pnand %p18360_p10, %p18359_p5 }
 0xdf5   : > { %p10635_p2 = pneg %p10634_p1 }
 0xdf7   : > { %11699 = dma.done.wait (%p10635_p2), %s8410_s27, 4096  }
 0xdf8   : > { %11701 = vsyncadd (%p10635_p2), %s8410_s27, 4294963200  ;;  %p21_p3 = scmp.ge.s32.totalorder %s11843_s7, 4   ;;  %s18361_s21 = smov %s11708_s22 }
 0xdf9   : > { %s18362_s22 = smov %s11712_s23  ;;  %s18363_s23 = smov %s11864_s13 }
 0xdfa   : > { %s18364_s24 = smov %s11843_s7  ;;  %23 = sbr.rel (!%p21_p3) target bundleno = 7 (0x7), region = 101 }
 0xdff   :  { %8415 = vsyncpa [#allocation3], 1 }
 0xe00   :  { %8417 = vsyncpa [#allocation3 + $0x1], 1 }
 0xe01   :  { %8418 = vsyncpa [#allocation6], 1 }
 0xe02   :  { %8419 = vsyncpa [#allocation9], 1 }
 0xe03   :  { %8420 = vsyncpa [#allocation4], 1 }
 0xe04   :  { %8422 = vsyncpa [#allocation4 + $0x1], 1 }

</bundles_post_ra>
